<compile_context>
chip_gen: v5e
topology: v5e:2x2
jax: 0.10.0
libtpu: 0.0.40
codegen_flags: <defaults>
</compile_context>

<pallas_src>
import jax
import jax.numpy as jnp
from jax import lax
from jax.experimental import pallas as pl
from jax.experimental.pallas import tpu as pltpu


def _scoped_vmem_bytes():
    """Generation-aware scoped-VMEM budget (~half of physical VMEM)."""
    cap = 64 * 1024 * 1024          # conservative fallback (v7x per-TC VMEM)
    try:
        info_fn = getattr(pltpu, "get_tpu_info", None)
        if info_fn is not None:
            cap = int(info_fn().vmem_capacity_bytes)
    except Exception:
        pass
    return max(16 * 1024 * 1024, min(cap // 2, 96 * 1024 * 1024))


def _pick_row_tile(total_rows, row_bytes, budget_bytes):
    """Largest divisor TH of total_rows whose double-buffered tile fits budget."""
    cap = max(1, budget_bytes // max(1, 2 * row_bytes))   # x2: double buffering
    t = int(min(total_rows, cap))
    while total_rows % t:
        t -= 1
    # TODO(synk): a cdiv grid with a masked last tile would avoid the divisor
    # fallback to TH=1 when total_rows is prime and too large for the budget.
    return t


# ---------------------------------------------------------------------------
# Kernel 1: ConvTranspose2d(k=2, s=2) as bf16 MXU matmuls per row tile.
#   out[n, 2i+di, 2j+dj, co] = sum_ci x[n, i, j, ci] * W[ci, co, di, dj] + b[co]
# The weight is pre-split per di with columns ordered (dj, co), so each di is
# one matmul whose result is stored as a single slab into an
# (NH, 2, W1, 2*Cup) output -- a byte-identical contiguous reshape of the
# (N, 2*H1, 2*W1, Cup) NHWC result (index order n, i, di, j, dj, co).
# ---------------------------------------------------------------------------
def _make_deconv2x2(NH, W1, Chalf, Cup, TH, vmem_limit, out_dtype=jnp.bfloat16):
    G = NH // TH

    def kernel(x_ref, w_ref, b_ref, o_ref):
        x = x_ref[...].reshape(TH * W1, Chalf)          # bf16 operands
        b = b_ref[...]                                   # (1, 2*Cup) f32
        for di in range(2):
            y = jnp.dot(x, w_ref[di], preferred_element_type=jnp.float32) + b
            o_ref[:, di:di + 1, :, :] = (
                y.reshape(TH, 1, W1, 2 * Cup).astype(o_ref.dtype))

    return pl.pallas_call(
        kernel,
        grid=(G,),
        in_specs=[
            pl.BlockSpec((TH, W1, Chalf), lambda g: (g, 0, 0)),
            pl.BlockSpec((2, Chalf, 2 * Cup), lambda g: (0, 0, 0)),
            pl.BlockSpec((1, 2 * Cup), lambda g: (0, 0)),
        ],
        out_specs=pl.BlockSpec((TH, 2, W1, 2 * Cup), lambda g: (g, 0, 0, 0)),
        out_shape=jax.ShapeDtypeStruct((NH, 2, W1, 2 * Cup), out_dtype),
        compiler_params=pltpu.CompilerParams(
            dimension_semantics=("parallel",),
            vmem_limit_bytes=vmem_limit),
    )


# ---------------------------------------------------------------------------
# Kernel 2: 3x3 conv (padding=1) + folded BatchNorm + LeakyReLU(0.01), with
# the channel concat of several inputs and the 1-pixel halo assembled in a
# bf16 VMEM scratch (no HBM pad/concat).  A single dx-shifted patch buffer of
# shape (H+2, W, 3*Ctot) is built (3 copies), then each dy is one bf16 MXU
# matmul over a contiguous row slice of it (K = 3*Ctot).
# Optionally adds the (single) input back as a residual (res_conv.conv2).
# ---------------------------------------------------------------------------
def _make_conv3x3_bn_lrelu(N, H, W, cins, Cout, add_residual, out_dtype,
                           vmem_limit, slope=0.01):
    Ctot = sum(cins)
    Hp, Wp = H + 2, W + 2
    n_in = len(cins)

    def kernel(*refs):
        x_refs = refs[:n_in]
        w_ref, b_ref = refs[n_in], refs[n_in + 1]
        o_ref = refs[n_in + 2]
        xp_ref, pat_ref = refs[n_in + 3], refs[n_in + 4]

        # Re-zero only the 1-pixel halo each step (cheap, and keeps the kernel
        # correct under megacore grid sharding), then write the channel-
        # concatenated interior: fuses torch.cat + conv padding in VMEM.
        zrow = jnp.zeros((1, Wp, Ctot), xp_ref.dtype)
        zcol = jnp.zeros((Hp, 1, Ctot), xp_ref.dtype)
        xp_ref[0:1, :, :] = zrow
        xp_ref[H + 1:H + 2, :, :] = zrow
        xp_ref[:, 0:1, :] = zcol
        xp_ref[:, W + 1:W + 2, :] = zcol
        off = 0
        for r, c in zip(x_refs, cins):
            xp_ref[1:H + 1, 1:W + 1, off:off + c] = r[0].astype(xp_ref.dtype)
            off += c
        # TODO(synk): for Ctot >= 128 the concat/im2col writes would benefit
        # from 128-aligned channel slots (zero-padded weights); skipped for the
        # small-channel case since the padding would dominate.

        # Build the dx-shifted patches ONCE (3 copies instead of 9):
        #   pat[r, j, dx*Ctot:(dx+1)*Ctot] = xp[r, j+dx, :]
        for dx in range(3):
            pat_ref[:, :, dx * Ctot:(dx + 1) * Ctot] = xp_ref[:, dx:dx + W, :]

        # 3x3 conv: 3 matmuls with K = 3*Ctot (dx merged into contraction);
        # each dy patch is a contiguous leading-dim slice of pat.
        acc = jnp.zeros((H * W, Cout), jnp.float32)
        for dy in range(3):
            patch = pat_ref[dy:dy + H].reshape(H * W, 3 * Ctot)
            acc = acc + jnp.dot(patch, w_ref[dy],
                                preferred_element_type=jnp.float32)

        y = acc + b_ref[...]                       # folded BN shift
        y = jnp.where(y > 0, y, slope * y)         # LeakyReLU(0.01)
        y = y.reshape(H, W, Cout)
        if add_residual:
            y = y + x_refs[0][0].astype(jnp.float32)
        o_ref[0] = y.astype(o_ref.dtype)

    in_specs = [
        pl.BlockSpec((1, H, W, c), lambda n: (n, 0, 0, 0)) for c in cins
    ] + [
        pl.BlockSpec((3, 3 * Ctot, Cout), lambda n: (0, 0, 0)),
        pl.BlockSpec((1, Cout), lambda n: (0, 0)),
    ]
    return pl.pallas_call(
        kernel,
        grid=(N,),
        in_specs=in_specs,
        out_specs=pl.BlockSpec((1, H, W, Cout), lambda n: (n, 0, 0, 0)),
        out_shape=jax.ShapeDtypeStruct((N, H, W, Cout), out_dtype),
        scratch_shapes=[
            pltpu.VMEM((Hp, Wp, Ctot), jnp.bfloat16),      # padded/concat image
            pltpu.VMEM((Hp, W, 3 * Ctot), jnp.bfloat16),   # dx-shifted patches
        ],
        compiler_params=pltpu.CompilerParams(
            dimension_semantics=("parallel",),
            vmem_limit_bytes=vmem_limit),
    )
    # TODO(synk): for very large images (v7x 64 MiB VMEM) a spatial row-tile
    # grid axis with a 1-row halo (manual halo DMA from an ANY-space input)
    # should replace the whole-image-per-step blocks.


def _fold_bn(conv_bias, gamma, beta, mean, var, eps=1e-5):
    scale = gamma / jnp.sqrt(var + eps)
    shift = beta + (conv_bias - mean) * scale
    return scale, shift


# ---------------------------------------------------------------------------
# up_conv forward
# ---------------------------------------------------------------------------
def up_conv_forward(params, x1_nchw, x2_nchw):
    # bf16 NHWC at the kernel boundary: the MXU consumes bf16 anyway, and this
    # halves the HBM bytes both kernels have to stream.
    x1 = jnp.transpose(x1_nchw, (0, 2, 3, 1)).astype(jnp.bfloat16)   # NHWC
    x2 = jnp.transpose(x2_nchw, (0, 2, 3, 1)).astype(jnp.bfloat16)
    N, H1, W1, Chalf = x1.shape
    _, H2, W2, Cx2 = x2.shape

    vmem_limit = _scoped_vmem_bytes()

    # --- self.up: ConvTranspose2d(C/2 -> C/2, kernel=2, stride=2) ----------
    w_up = params["up_w"]                       # torch layout (Cin, Cout, 2, 2)
    Cup = w_up.shape[1]
    # per-di weight blocks with columns ordered (dj, co)
    w_dec = jnp.transpose(w_up, (2, 0, 3, 1)).reshape(2, Chalf, 2 * Cup)
    w_dec = w_dec.astype(jnp.bfloat16)
    b_dec = jnp.tile(params["up_b"].astype(jnp.float32), 2)[None, :]  # (1,2*Cup)

    NH = N * H1
    # bf16 in + bf16 out bytes per input row of the tile; budget ~half scoped VMEM
    row_bytes = W1 * (Chalf * 2 + 4 * Cup * 2)
    TH = _pick_row_tile(NH, row_bytes, vmem_limit // 2)
    x1f = x1.reshape(NH, W1, Chalf)
    yf = _make_deconv2x2(NH, W1, Chalf, Cup, TH, vmem_limit)(x1f, w_dec, b_dec)
    y = yf.reshape(N, 2 * H1, 2 * W1, Cup)      # free (contiguous) reshape

    # --- F.pad: reproduces the original code's H/W argument swap exactly ----
    diff1 = H2 - 2 * H1                          # torch height difference
    diff2 = W2 - 2 * W1                          # torch width difference
    if diff1 != 0 or diff2 != 0:
        y = jnp.pad(y, ((0, 0),
                        (diff2 // 2, diff2 - diff2 // 2),   # H gets width diff
                        (diff1 // 2, diff1 - diff1 // 2),   # W gets height diff
                        (0, 0)))
    assert y.shape[1] == H2 and y.shape[2] == W2, (
        "padded upsample does not match the skip connection (as in the source)")

    # --- res_conv.conv1: Conv3x3 + BN + LeakyReLU (+ Dropout eval identity) --
    Cout = params["c1_w"].shape[0]
    Ctot = Cx2 + Cup
    assert params["c1_w"].shape[1] == Ctot
    s1, sh1 = _fold_bn(params["c1_b"], params["bn1_g"], params["bn1_b"],
                       params["bn1_m"], params["bn1_v"])
    w1 = jnp.transpose(params["c1_w"], (2, 3, 1, 0)) * s1   # (3, 3, Cin, Cout)
    w1 = w1.reshape(3, 3 * Ctot, Cout).astype(jnp.bfloat16)
    conv1 = _make_conv3x3_bn_lrelu(N, H2, W2, (Cx2, Cup), Cout,
                                   add_residual=False, out_dtype=jnp.bfloat16,
                                   vmem_limit=vmem_limit)
    h1 = conv1(x2, y, w1, sh1[None, :].astype(jnp.float32))
    # TODO(synk): Dropout(0.1) is identity in eval mode; training-mode RNG drop
    # is not implemented.

    # --- res_conv.conv2 + residual add ---------------------------------------
    s2, sh2 = _fold_bn(params["c2_b"], params["bn2_g"], params["bn2_b"],
                       params["bn2_m"], params["bn2_v"])
    w2 = jnp.transpose(params["c2_w"], (2, 3, 1, 0)) * s2
    w2 = w2.reshape(3, 3 * Cout, Cout).astype(jnp.bfloat16)
    conv2 = _make_conv3x3_bn_lrelu(N, H2, W2, (Cout,), Cout,
                                   add_residual=True, out_dtype=jnp.float32,
                                   vmem_limit=vmem_limit)
    out = conv2(h1, w2, sh2[None, :].astype(jnp.float32))

    return jnp.transpose(out, (0, 3, 1, 2))     # back to NCHW


# ---------------------------------------------------------------------------
# Pure-XLA f32 reference (eval-mode PyTorch semantics) for a sanity check.
# ---------------------------------------------------------------------------
def _reference_forward(params, x1_nchw, x2_nchw):
    x1 = x1_nchw.astype(jnp.float32)
    x2 = x2_nchw.astype(jnp.float32)
    N, _, H1, W1 = x1.shape
    up = jnp.einsum("nchw,cokl->nohkwl", x1, params["up_w"])
    up = up.reshape(N, up.shape[1], 2 * H1, 2 * W1)
    up = up + params["up_b"][None, :, None, None]
    diff1 = x2.shape[2] - up.shape[2]
    diff2 = x2.shape[3] - up.shape[3]
    up = jnp.pad(up, ((0, 0), (0, 0),
                      (diff2 // 2, diff2 - diff2 // 2),
                      (diff1 // 2, diff1 - diff1 // 2)))
    x = jnp.concatenate([x2, up], axis=1)

    def conv_bn_lrelu(x, w, b, g, bt, m, v):
        y = lax.conv_general_dilated(x, w, (1, 1), "SAME",
                                     dimension_numbers=("NCHW", "OIHW", "NCHW"))
        y = y + b[None, :, None, None]
        y = ((y - m[None, :, None, None])
             / jnp.sqrt(v[None, :, None, None] + 1e-5)
             * g[None, :, None, None] + bt[None, :, None, None])
        return jnp.where(y > 0, y, 0.01 * y)

    h1 = conv_bn_lrelu(x, params["c1_w"], params["c1_b"], params["bn1_g"],
                       params["bn1_b"], params["bn1_m"], params["bn1_v"])
    h2 = conv_bn_lrelu(h1, params["c2_w"], params["c2_b"], params["bn2_g"],
                       params["bn2_b"], params["bn2_m"], params["bn2_v"])
    return h2 + h1


def init_params(key, input_channels, output_channels):
    c_half = input_channels // 2
    ks = jax.random.split(key, 12)
    u = lambda k, s, lo=-0.1, hi=0.1: jax.random.uniform(k, s, jnp.float32, lo, hi)
    return {
        # ConvTranspose2d(C/2, C/2, 2, 2): weight (Cin, Cout, kH, kW)
        "up_w": u(ks[0], (c_half, c_half, 2, 2)),
        "up_b": u(ks[1], (c_half,)),
        # conv1: Conv2d(C, Cout, 3) + BN(Cout)
        "c1_w": u(ks[2], (output_channels, input_channels, 3, 3)),
        "c1_b": u(ks[3], (output_channels,)),
        "bn1_g": u(ks[4], (output_channels,), 0.5, 1.5),
        "bn1_b": u(ks[5], (output_channels,)),
        "bn1_m": u(ks[6], (output_channels,)),
        "bn1_v": u(ks[7], (output_channels,), 0.5, 1.5),
        # conv2: Conv2d(Cout, Cout, 3) + BN(Cout)
        "c2_w": u(ks[8], (output_channels, output_channels, 3, 3)),
        "c2_b": u(ks[9], (output_channels,)),
        "bn2_g": u(ks[10], (output_channels,), 0.5, 1.5),
        "bn2_b": u(ks[11], (output_channels,)),
        "bn2_m": jnp.zeros((output_channels,), jnp.float32),
        "bn2_v": jnp.ones((output_channels,), jnp.float32),
    }


if __name__ == "__main__":
    input_channels, output_channels = 8, 8
    N, H1, W1 = 2, 8, 8                       # x1 spatial (pre-upsample)

    key = jax.random.PRNGKey(0)
    k1, k2, kp = jax.random.split(key, 3)
    params = init_params(kp, input_channels, output_channels)

    # PyTorch-style NCHW inputs
    x1 = jax.random.normal(k1, (N, input_channels // 2, H1, W1), jnp.float32)
    x2 = jax.random.normal(k2, (N, input_channels // 2, 2 * H1, 2 * W1),
                           jnp.float32)

    out = jax.jit(up_conv_forward)(params, x1, x2)
    jax.block_until_ready(out)
    assert out.shape == (N, output_channels, 2 * H1, 2 * W1), out.shape

    ref = _reference_forward(params, x1, x2)
    err = float(jnp.max(jnp.abs(out - ref)))
    scale = float(jnp.max(jnp.abs(ref)))
    assert err <= 5e-2 * scale + 5e-2, (err, scale)   # bf16-matmul tolerance

    print("KERNEL_OK")
</pallas_src>

<mosaic_0001>
module attributes {stable_mosaic.version = 11 : i64} {
  func.func @kernel(%arg0: i32, %arg1: memref<16x8x4xbf16, #tpu.memory_space<vmem>>, %arg2: memref<2x4x8xbf16, #tpu.memory_space<vmem>>, %arg3: memref<1x8xf32, #tpu.memory_space<vmem>>, %arg4: memref<16x2x8x8xbf16, #tpu.memory_space<vmem>>) attributes {dimension_semantics = [#tpu.dimension_semantics<parallel>], iteration_bounds = array<i64: 1>, scalar_prefetch = 0 : i64, scratch_operands = 0 : i64, tpu.core_type = #tpu.core_type<tc>, window_params = [{transform_indices = @transform_0, window_bounds = array<i64: 16, 8, 4>}, {pipeline_mode = #tpu.pipeline_mode<synchronous>, transform_indices = @transform_1, window_bounds = array<i64: 2, 4, 8>}, {pipeline_mode = #tpu.pipeline_mode<synchronous>, transform_indices = @transform_2, window_bounds = array<i64: 1, 8>}, {transform_indices = @transform_3, window_bounds = array<i64: 16, 2, 8, 8>}]} {
    %c0 = arith.constant 0 : index
    %c0_0 = arith.constant 0 : index
    %c0_1 = arith.constant 0 : index
    %0 = vector.load %arg1[%c0, %c0_0, %c0_1] : memref<16x8x4xbf16, #tpu.memory_space<vmem>>, vector<16x8x4xbf16>
    %1 = vector.shape_cast %0 : vector<16x8x4xbf16> to vector<128x4xbf16>
    %c0_2 = arith.constant 0 : index
    %c0_3 = arith.constant 0 : index
    %2 = vector.load %arg3[%c0_2, %c0_3] : memref<1x8xf32, #tpu.memory_space<vmem>>, vector<1x8xf32>
    %c0_4 = arith.constant 0 : index
    %c0_5 = arith.constant 0 : index
    %c0_6 = arith.constant 0 : index
    %3 = vector.load %arg2[%c0_4, %c0_5, %c0_6] : memref<2x4x8xbf16, #tpu.memory_space<vmem>>, vector<1x4x8xbf16>
    %4 = vector.shape_cast %3 : vector<1x4x8xbf16> to vector<4x8xbf16>
    %cst = arith.constant dense<0.000000e+00> : vector<128x8xf32>
    %5 = tpu.matmul %1, %4, %cst {dimension_numbers = #tpu.dot_dimension_numbers<[1], [0], [0], [1], [0, 0, 1, 1], [], []>} : vector<128x4xbf16>, vector<4x8xbf16>, vector<128x8xf32> -> vector<128x8xf32>
    %6 = vector.broadcast %2 : vector<1x8xf32> to vector<128x8xf32>
    %7 = arith.addf %5, %6 : vector<128x8xf32>
    %8 = vector.shape_cast %7 : vector<128x8xf32> to vector<16x1x8x8xf32>
    %9 = arith.truncf %8 : vector<16x1x8x8xf32> to vector<16x1x8x8xbf16>
    %c0_7 = arith.constant 0 : index
    %c0_8 = arith.constant 0 : index
    %c0_9 = arith.constant 0 : index
    %c0_10 = arith.constant 0 : index
    %10 = vector.load %arg4[%c0_7, %c0_8, %c0_9, %c0_10] : memref<16x2x8x8xbf16, #tpu.memory_space<vmem>>, vector<16x1x8x8xbf16>
    tpu.vector_store %arg4[%c0_7, %c0_8, %c0_9, %c0_10], %9 {strides = array<i32>} : memref<16x2x8x8xbf16, #tpu.memory_space<vmem>>, vector<16x1x8x8xbf16>,
    %c1 = arith.constant 1 : index
    %c0_11 = arith.constant 0 : index
    %c0_12 = arith.constant 0 : index
    %11 = vector.load %arg2[%c1, %c0_11, %c0_12] : memref<2x4x8xbf16, #tpu.memory_space<vmem>>, vector<1x4x8xbf16>
    %12 = vector.shape_cast %11 : vector<1x4x8xbf16> to vector<4x8xbf16>
    %cst_13 = arith.constant dense<0.000000e+00> : vector<128x8xf32>
    %13 = tpu.matmul %1, %12, %cst_13 {dimension_numbers = #tpu.dot_dimension_numbers<[1], [0], [0], [1], [0, 0, 1, 1], [], []>} : vector<128x4xbf16>, vector<4x8xbf16>, vector<128x8xf32> -> vector<128x8xf32>
    %14 = vector.broadcast %2 : vector<1x8xf32> to vector<128x8xf32>
    %15 = arith.addf %13, %14 : vector<128x8xf32>
    %16 = vector.shape_cast %15 : vector<128x8xf32> to vector<16x1x8x8xf32>
    %17 = arith.truncf %16 : vector<16x1x8x8xf32> to vector<16x1x8x8xbf16>
    %c0_14 = arith.constant 0 : index
    %c1_15 = arith.constant 1 : index
    %c0_16 = arith.constant 0 : index
    %c0_17 = arith.constant 0 : index
    %18 = vector.load %arg4[%c0_14, %c1_15, %c0_16, %c0_17] : memref<16x2x8x8xbf16, #tpu.memory_space<vmem>>, vector<16x1x8x8xbf16>
    tpu.vector_store %arg4[%c0_14, %c1_15, %c0_16, %c0_17], %17 {strides = array<i32>} : memref<16x2x8x8xbf16, #tpu.memory_space<vmem>>, vector<16x1x8x8xbf16>,
    return
  }
  func.func @transform_0(%arg0: i32) -> (i32, i32, i32) {
    %c0_i32 = arith.constant 0 : i32
    %c0_i32_0 = arith.constant 0 : i32
    %c0_i32_1 = arith.constant 0 : i32
    return %arg0, %c0_i32, %c0_i32_0 : i32, i32, i32
  }
  func.func @transform_1(%arg0: i32) -> (i32, i32, i32) {
    %c0_i32 = arith.constant 0 : i32
    %c0_i32_0 = arith.constant 0 : i32
    %c0_i32_1 = arith.constant 0 : i32
    %c0_i32_2 = arith.constant 0 : i32
    return %c0_i32, %c0_i32_0, %c0_i32_1 : i32, i32, i32
  }
  func.func @transform_2(%arg0: i32) -> (i32, i32) {
    %c0_i32 = arith.constant 0 : i32
    %c0_i32_0 = arith.constant 0 : i32
    %c0_i32_1 = arith.constant 0 : i32
    return %c0_i32, %c0_i32_0 : i32, i32
  }
  func.func @transform_3(%arg0: i32) -> (i32, i32, i32, i32) {
    %c0_i32 = arith.constant 0 : i32
    %c0_i32_0 = arith.constant 0 : i32
    %c0_i32_1 = arith.constant 0 : i32
    %c0_i32_2 = arith.constant 0 : i32
    return %arg0, %c0_i32, %c0_i32_0, %c0_i32_1 : i32, i32, i32, i32
  }
}

module attributes {stable_mosaic.version = 11 : i64} {
  func.func @kernel(%arg0: i32, %arg1: memref<1x16x16x4xbf16, #tpu.memory_space<vmem>>, %arg2: memref<1x16x16x4xbf16, #tpu.memory_space<vmem>>, %arg3: memref<3x24x8xbf16, #tpu.memory_space<vmem>>, %arg4: memref<1x8xf32, #tpu.memory_space<vmem>>, %arg5: memref<1x16x16x8xbf16, #tpu.memory_space<vmem>>, %arg6: memref<18x18x8xbf16, #tpu.memory_space<vmem>>, %arg7: memref<18x16x24xbf16, #tpu.memory_space<vmem>>) attributes {dimension_semantics = [#tpu.dimension_semantics<parallel>], iteration_bounds = array<i64: 2>, scalar_prefetch = 0 : i64, scratch_operands = 2 : i64, tpu.core_type = #tpu.core_type<tc>, window_params = [{transform_indices = @transform_0, window_bounds = array<i64: 1, 16, 16, 4>}, {transform_indices = @transform_1, window_bounds = array<i64: 1, 16, 16, 4>}, {pipeline_mode = #tpu.pipeline_mode<synchronous>, transform_indices = @transform_2, window_bounds = array<i64: 3, 24, 8>}, {pipeline_mode = #tpu.pipeline_mode<synchronous>, transform_indices = @transform_3, window_bounds = array<i64: 1, 8>}, {transform_indices = @transform_4, window_bounds = array<i64: 1, 16, 16, 8>}]} {
    %cst = arith.constant 0.000000e+00 : bf16
    %0 = vector.broadcast %cst : bf16 to vector<1x18x8xbf16>
    %cst_0 = arith.constant 0.000000e+00 : bf16
    %1 = vector.broadcast %cst_0 : bf16 to vector<18x1x8xbf16>
    %c0 = arith.constant 0 : index
    %c0_1 = arith.constant 0 : index
    %c0_2 = arith.constant 0 : index
    %2 = vector.load %arg6[%c0, %c0_1, %c0_2] : memref<18x18x8xbf16, #tpu.memory_space<vmem>>, vector<1x18x8xbf16>
    tpu.vector_store %arg6[%c0, %c0_1, %c0_2], %0 {strides = array<i32>} : memref<18x18x8xbf16, #tpu.memory_space<vmem>>, vector<1x18x8xbf16>,
    %c17 = arith.constant 17 : index
    %c0_3 = arith.constant 0 : index
    %c0_4 = arith.constant 0 : index
    %3 = vector.load %arg6[%c17, %c0_3, %c0_4] : memref<18x18x8xbf16, #tpu.memory_space<vmem>>, vector<1x18x8xbf16>
    tpu.vector_store %arg6[%c17, %c0_3, %c0_4], %0 {strides = array<i32>} : memref<18x18x8xbf16, #tpu.memory_space<vmem>>, vector<1x18x8xbf16>,
    %c0_5 = arith.constant 0 : index
    %c0_6 = arith.constant 0 : index
    %c0_7 = arith.constant 0 : index
    %4 = vector.load %arg6[%c0_5, %c0_6, %c0_7] : memref<18x18x8xbf16, #tpu.memory_space<vmem>>, vector<18x1x8xbf16>
    tpu.vector_store %arg6[%c0_5, %c0_6, %c0_7], %1 {strides = array<i32>} : memref<18x18x8xbf16, #tpu.memory_space<vmem>>, vector<18x1x8xbf16>,
    %c0_8 = arith.constant 0 : index
    %c17_9 = arith.constant 17 : index
    %c0_10 = arith.constant 0 : index
    %5 = vector.load %arg6[%c0_8, %c17_9, %c0_10] : memref<18x18x8xbf16, #tpu.memory_space<vmem>>, vector<18x1x8xbf16>
    tpu.vector_store %arg6[%c0_8, %c17_9, %c0_10], %1 {strides = array<i32>} : memref<18x18x8xbf16, #tpu.memory_space<vmem>>, vector<18x1x8xbf16>,
    %c0_11 = arith.constant 0 : index
    %c0_12 = arith.constant 0 : index
    %c0_13 = arith.constant 0 : index
    %c0_14 = arith.constant 0 : index
    %6 = vector.load %arg1[%c0_11, %c0_12, %c0_13, %c0_14] : memref<1x16x16x4xbf16, #tpu.memory_space<vmem>>, vector<1x16x16x4xbf16>
    %7 = vector.shape_cast %6 : vector<1x16x16x4xbf16> to vector<16x16x4xbf16>
    %c1 = arith.constant 1 : index
    %c1_15 = arith.constant 1 : index
    %c0_16 = arith.constant 0 : index
    %8 = vector.load %arg6[%c1, %c1_15, %c0_16] : memref<18x18x8xbf16, #tpu.memory_space<vmem>>, vector<16x16x4xbf16>
    tpu.vector_store %arg6[%c1, %c1_15, %c0_16], %7 {strides = array<i32>} : memref<18x18x8xbf16, #tpu.memory_space<vmem>>, vector<16x16x4xbf16>,
    %c0_17 = arith.constant 0 : index
    %c0_18 = arith.constant 0 : index
    %c0_19 = arith.constant 0 : index
    %c0_20 = arith.constant 0 : index
    %9 = vector.load %arg2[%c0_17, %c0_18, %c0_19, %c0_20] : memref<1x16x16x4xbf16, #tpu.memory_space<vmem>>, vector<1x16x16x4xbf16>
    %10 = vector.shape_cast %9 : vector<1x16x16x4xbf16> to vector<16x16x4xbf16>
    %c1_21 = arith.constant 1 : index
    %c1_22 = arith.constant 1 : index
    %c4 = arith.constant 4 : index
    %11 = vector.load %arg6[%c1_21, %c1_22, %c4] : memref<18x18x8xbf16, #tpu.memory_space<vmem>>, vector<16x16x4xbf16>
    tpu.vector_store %arg6[%c1_21, %c1_22, %c4], %10 {strides = array<i32>} : memref<18x18x8xbf16, #tpu.memory_space<vmem>>, vector<16x16x4xbf16>,
    %c0_23 = arith.constant 0 : index
    %c0_24 = arith.constant 0 : index
    %c0_25 = arith.constant 0 : index
    %12 = vector.load %arg6[%c0_23, %c0_24, %c0_25] : memref<18x18x8xbf16, #tpu.memory_space<vmem>>, vector<18x16x8xbf16>
    %c0_26 = arith.constant 0 : index
    %c0_27 = arith.constant 0 : index
    %c0_28 = arith.constant 0 : index
    %13 = vector.load %arg7[%c0_26, %c0_27, %c0_28] : memref<18x16x24xbf16, #tpu.memory_space<vmem>>, vector<18x16x8xbf16>
    tpu.vector_store %arg7[%c0_26, %c0_27, %c0_28], %12 {strides = array<i32>} : memref<18x16x24xbf16, #tpu.memory_space<vmem>>, vector<18x16x8xbf16>,
    %c0_29 = arith.constant 0 : index
    %c1_30 = arith.constant 1 : index
    %c0_31 = arith.constant 0 : index
    %14 = vector.load %arg6[%c0_29, %c1_30, %c0_31] : memref<18x18x8xbf16, #tpu.memory_space<vmem>>, vector<18x16x8xbf16>
    %c0_32 = arith.constant 0 : index
    %c0_33 = arith.constant 0 : index
    %c8 = arith.constant 8 : index
    %15 = vector.load %arg7[%c0_32, %c0_33, %c8] : memref<18x16x24xbf16, #tpu.memory_space<vmem>>, vector<18x16x8xbf16>
    tpu.vector_store %arg7[%c0_32, %c0_33, %c8], %14 {strides = array<i32>} : memref<18x16x24xbf16, #tpu.memory_space<vmem>>, vector<18x16x8xbf16>,
    %c0_34 = arith.constant 0 : index
    %c2 = arith.constant 2 : index
    %c0_35 = arith.constant 0 : index
    %16 = vector.load %arg6[%c0_34, %c2, %c0_35] : memref<18x18x8xbf16, #tpu.memory_space<vmem>>, vector<18x16x8xbf16>
    %c0_36 = arith.constant 0 : index
    %c0_37 = arith.constant 0 : index
    %c16 = arith.constant 16 : index
    %17 = vector.load %arg7[%c0_36, %c0_37, %c16] : memref<18x16x24xbf16, #tpu.memory_space<vmem>>, vector<18x16x8xbf16>
    tpu.vector_store %arg7[%c0_36, %c0_37, %c16], %16 {strides = array<i32>} : memref<18x16x24xbf16, #tpu.memory_space<vmem>>, vector<18x16x8xbf16>,
    %cst_38 = arith.constant 0.000000e+00 : f32
    %18 = vector.broadcast %cst_38 : f32 to vector<256x8xf32>
    %c0_39 = arith.constant 0 : index
    %c0_40 = arith.constant 0 : index
    %c0_41 = arith.constant 0 : index
    %19 = vector.load %arg7[%c0_39, %c0_40, %c0_41] : memref<18x16x24xbf16, #tpu.memory_space<vmem>>, vector<16x16x24xbf16>
    %20 = vector.shape_cast %19 : vector<16x16x24xbf16> to vector<256x24xbf16>
    %c0_42 = arith.constant 0 : index
    %c0_43 = arith.constant 0 : index
    %c0_44 = arith.constant 0 : index
    %21 = vector.load %arg3[%c0_42, %c0_43, %c0_44] : memref<3x24x8xbf16, #tpu.memory_space<vmem>>, vector<1x24x8xbf16>
    %22 = vector.shape_cast %21 : vector<1x24x8xbf16> to vector<24x8xbf16>
    %cst_45 = arith.constant dense<0.000000e+00> : vector<256x8xf32>
    %23 = tpu.matmul %20, %22, %cst_45 {dimension_numbers = #tpu.dot_dimension_numbers<[1], [0], [0], [1], [0, 0, 1, 1], [], []>} : vector<256x24xbf16>, vector<24x8xbf16>, vector<256x8xf32> -> vector<256x8xf32>
    %24 = arith.addf %18, %23 : vector<256x8xf32>
    %c1_46 = arith.constant 1 : index
    %c0_47 = arith.constant 0 : index
    %c0_48 = arith.constant 0 : index
    %25 = vector.load %arg7[%c1_46, %c0_47, %c0_48] : memref<18x16x24xbf16, #tpu.memory_space<vmem>>, vector<16x16x24xbf16>
    %26 = vector.shape_cast %25 : vector<16x16x24xbf16> to vector<256x24xbf16>
    %c1_49 = arith.constant 1 : index
    %c0_50 = arith.constant 0 : index
    %c0_51 = arith.constant 0 : index
    %27 = vector.load %arg3[%c1_49, %c0_50, %c0_51] : memref<3x24x8xbf16, #tpu.memory_space<vmem>>, vector<1x24x8xbf16>
    %28 = vector.shape_cast %27 : vector<1x24x8xbf16> to vector<24x8xbf16>
    %cst_52 = arith.constant dense<0.000000e+00> : vector<256x8xf32>
    %29 = tpu.matmul %26, %28, %cst_52 {dimension_numbers = #tpu.dot_dimension_numbers<[1], [0], [0], [1], [0, 0, 1, 1], [], []>} : vector<256x24xbf16>, vector<24x8xbf16>, vector<256x8xf32> -> vector<256x8xf32>
    %30 = arith.addf %24, %29 : vector<256x8xf32>
    %c2_53 = arith.constant 2 : index
    %c0_54 = arith.constant 0 : index
    %c0_55 = arith.constant 0 : index
    %31 = vector.load %arg7[%c2_53, %c0_54, %c0_55] : memref<18x16x24xbf16, #tpu.memory_space<vmem>>, vector<16x16x24xbf16>
    %32 = vector.shape_cast %31 : vector<16x16x24xbf16> to vector<256x24xbf16>
    %c2_56 = arith.constant 2 : index
    %c0_57 = arith.constant 0 : index
    %c0_58 = arith.constant 0 : index
    %33 = vector.load %arg3[%c2_56, %c0_57, %c0_58] : memref<3x24x8xbf16, #tpu.memory_space<vmem>>, vector<1x24x8xbf16>
    %34 = vector.shape_cast %33 : vector<1x24x8xbf16> to vector<24x8xbf16>
    %cst_59 = arith.constant dense<0.000000e+00> : vector<256x8xf32>
    %35 = tpu.matmul %32, %34, %cst_59 {dimension_numbers = #tpu.dot_dimension_numbers<[1], [0], [0], [1], [0, 0, 1, 1], [], []>} : vector<256x24xbf16>, vector<24x8xbf16>, vector<256x8xf32> -> vector<256x8xf32>
    %36 = arith.addf %30, %35 : vector<256x8xf32>
    %c0_60 = arith.constant 0 : index
    %c0_61 = arith.constant 0 : index
    %37 = vector.load %arg4[%c0_60, %c0_61] : memref<1x8xf32, #tpu.memory_space<vmem>>, vector<1x8xf32>
    %38 = vector.broadcast %37 : vector<1x8xf32> to vector<256x8xf32>
    %39 = arith.addf %36, %38 : vector<256x8xf32>
    %cst_62 = arith.constant 0.000000e+00 : f32
    %40 = vector.broadcast %cst_62 : f32 to vector<256x8xf32>
    %41 = arith.cmpf ogt, %39, %40 : vector<256x8xf32>
    %cst_63 = arith.constant 0.00999999977 : f32
    %42 = vector.broadcast %cst_63 : f32 to vector<256x8xf32>
    %43 = arith.mulf %42, %39 : vector<256x8xf32>
    %44 = arith.select %41, %39, %43 : vector<256x8xi1>, vector<256x8xf32>
    %45 = vector.shape_cast %44 : vector<256x8xf32> to vector<16x16x8xf32>
    %46 = arith.truncf %45 : vector<16x16x8xf32> to vector<16x16x8xbf16>
    %c0_64 = arith.constant 0 : index
    %c0_65 = arith.constant 0 : index
    %c0_66 = arith.constant 0 : index
    %c0_67 = arith.constant 0 : index
    %47 = vector.load %arg5[%c0_64, %c0_65, %c0_66, %c0_67] : memref<1x16x16x8xbf16, #tpu.memory_space<vmem>>, vector<1x16x16x8xbf16>
    %48 = vector.shape_cast %47 : vector<1x16x16x8xbf16> to vector<16x16x8xbf16>
    %49 = vector.shape_cast %46 : vector<16x16x8xbf16> to vector<1x16x16x8xbf16>
    tpu.vector_store %arg5[%c0_64, %c0_65, %c0_66, %c0_67], %49 {strides = array<i32>} : memref<1x16x16x8xbf16, #tpu.memory_space<vmem>>, vector<1x16x16x8xbf16>,
    return
  }
  func.func @transform_0(%arg0: i32) -> (i32, i32, i32, i32) {
    %c0_i32 = arith.constant 0 : i32
    %c0_i32_0 = arith.constant 0 : i32
    %c0_i32_1 = arith.constant 0 : i32
    %c0_i32_2 = arith.constant 0 : i32
    return %arg0, %c0_i32, %c0_i32_0, %c0_i32_1 : i32, i32, i32, i32
  }
  func.func @transform_1(%arg0: i32) -> (i32, i32, i32, i32) {
    %c0_i32 = arith.constant 0 : i32
    %c0_i32_0 = arith.constant 0 : i32
    %c0_i32_1 = arith.constant 0 : i32
    %c0_i32_2 = arith.constant 0 : i32
    return %arg0, %c0_i32, %c0_i32_0, %c0_i32_1 : i32, i32, i32, i32
  }
  func.func @transform_2(%arg0: i32) -> (i32, i32, i32) {
    %c0_i32 = arith.constant 0 : i32
    %c0_i32_0 = arith.constant 0 : i32
    %c0_i32_1 = arith.constant 0 : i32
    %c0_i32_2 = arith.constant 0 : i32
    return %c0_i32, %c0_i32_0, %c0_i32_1 : i32, i32, i32
  }
  func.func @transform_3(%arg0: i32) -> (i32, i32) {
    %c0_i32 = arith.constant 0 : i32
    %c0_i32_0 = arith.constant 0 : i32
    %c0_i32_1 = arith.constant 0 : i32
    return %c0_i32, %c0_i32_0 : i32, i32
  }
  func.func @transform_4(%arg0: i32) -> (i32, i32, i32, i32) {
    %c0_i32 = arith.constant 0 : i32
    %c0_i32_0 = arith.constant 0 : i32
    %c0_i32_1 = arith.constant 0 : i32
    %c0_i32_2 = arith.constant 0 : i32
    return %arg0, %c0_i32, %c0_i32_0, %c0_i32_1 : i32, i32, i32, i32
  }
}

module attributes {stable_mosaic.version = 11 : i64} {
  func.func @kernel(%arg0: i32, %arg1: memref<1x16x16x8xbf16, #tpu.memory_space<vmem>>, %arg2: memref<3x24x8xbf16, #tpu.memory_space<vmem>>, %arg3: memref<1x8xf32, #tpu.memory_space<vmem>>, %arg4: memref<1x16x16x8xf32, #tpu.memory_space<vmem>>, %arg5: memref<18x18x8xbf16, #tpu.memory_space<vmem>>, %arg6: memref<18x16x24xbf16, #tpu.memory_space<vmem>>) attributes {dimension_semantics = [#tpu.dimension_semantics<parallel>], iteration_bounds = array<i64: 2>, scalar_prefetch = 0 : i64, scratch_operands = 2 : i64, tpu.core_type = #tpu.core_type<tc>, window_params = [{transform_indices = @transform_0, window_bounds = array<i64: 1, 16, 16, 8>}, {pipeline_mode = #tpu.pipeline_mode<synchronous>, transform_indices = @transform_1, window_bounds = array<i64: 3, 24, 8>}, {pipeline_mode = #tpu.pipeline_mode<synchronous>, transform_indices = @transform_2, window_bounds = array<i64: 1, 8>}, {transform_indices = @transform_3, window_bounds = array<i64: 1, 16, 16, 8>}]} {
    %cst = arith.constant 0.000000e+00 : bf16
    %0 = vector.broadcast %cst : bf16 to vector<1x18x8xbf16>
    %cst_0 = arith.constant 0.000000e+00 : bf16
    %1 = vector.broadcast %cst_0 : bf16 to vector<18x1x8xbf16>
    %c0 = arith.constant 0 : index
    %c0_1 = arith.constant 0 : index
    %c0_2 = arith.constant 0 : index
    %2 = vector.load %arg5[%c0, %c0_1, %c0_2] : memref<18x18x8xbf16, #tpu.memory_space<vmem>>, vector<1x18x8xbf16>
    tpu.vector_store %arg5[%c0, %c0_1, %c0_2], %0 {strides = array<i32>} : memref<18x18x8xbf16, #tpu.memory_space<vmem>>, vector<1x18x8xbf16>,
    %c17 = arith.constant 17 : index
    %c0_3 = arith.constant 0 : index
    %c0_4 = arith.constant 0 : index
    %3 = vector.load %arg5[%c17, %c0_3, %c0_4] : memref<18x18x8xbf16, #tpu.memory_space<vmem>>, vector<1x18x8xbf16>
    tpu.vector_store %arg5[%c17, %c0_3, %c0_4], %0 {strides = array<i32>} : memref<18x18x8xbf16, #tpu.memory_space<vmem>>, vector<1x18x8xbf16>,
    %c0_5 = arith.constant 0 : index
    %c0_6 = arith.constant 0 : index
    %c0_7 = arith.constant 0 : index
    %4 = vector.load %arg5[%c0_5, %c0_6, %c0_7] : memref<18x18x8xbf16, #tpu.memory_space<vmem>>, vector<18x1x8xbf16>
    tpu.vector_store %arg5[%c0_5, %c0_6, %c0_7], %1 {strides = array<i32>} : memref<18x18x8xbf16, #tpu.memory_space<vmem>>, vector<18x1x8xbf16>,
    %c0_8 = arith.constant 0 : index
    %c17_9 = arith.constant 17 : index
    %c0_10 = arith.constant 0 : index
    %5 = vector.load %arg5[%c0_8, %c17_9, %c0_10] : memref<18x18x8xbf16, #tpu.memory_space<vmem>>, vector<18x1x8xbf16>
    tpu.vector_store %arg5[%c0_8, %c17_9, %c0_10], %1 {strides = array<i32>} : memref<18x18x8xbf16, #tpu.memory_space<vmem>>, vector<18x1x8xbf16>,
    %c0_11 = arith.constant 0 : index
    %c0_12 = arith.constant 0 : index
    %c0_13 = arith.constant 0 : index
    %c0_14 = arith.constant 0 : index
    %6 = vector.load %arg1[%c0_11, %c0_12, %c0_13, %c0_14] : memref<1x16x16x8xbf16, #tpu.memory_space<vmem>>, vector<1x16x16x8xbf16>
    %7 = vector.shape_cast %6 : vector<1x16x16x8xbf16> to vector<16x16x8xbf16>
    %c1 = arith.constant 1 : index
    %c1_15 = arith.constant 1 : index
    %c0_16 = arith.constant 0 : index
    %8 = vector.load %arg5[%c1, %c1_15, %c0_16] : memref<18x18x8xbf16, #tpu.memory_space<vmem>>, vector<16x16x8xbf16>
    tpu.vector_store %arg5[%c1, %c1_15, %c0_16], %7 {strides = array<i32>} : memref<18x18x8xbf16, #tpu.memory_space<vmem>>, vector<16x16x8xbf16>,
    %c0_17 = arith.constant 0 : index
    %c0_18 = arith.constant 0 : index
    %c0_19 = arith.constant 0 : index
    %9 = vector.load %arg5[%c0_17, %c0_18, %c0_19] : memref<18x18x8xbf16, #tpu.memory_space<vmem>>, vector<18x16x8xbf16>
    %c0_20 = arith.constant 0 : index
    %c0_21 = arith.constant 0 : index
    %c0_22 = arith.constant 0 : index
    %10 = vector.load %arg6[%c0_20, %c0_21, %c0_22] : memref<18x16x24xbf16, #tpu.memory_space<vmem>>, vector<18x16x8xbf16>
    tpu.vector_store %arg6[%c0_20, %c0_21, %c0_22], %9 {strides = array<i32>} : memref<18x16x24xbf16, #tpu.memory_space<vmem>>, vector<18x16x8xbf16>,
    %c0_23 = arith.constant 0 : index
    %c1_24 = arith.constant 1 : index
    %c0_25 = arith.constant 0 : index
    %11 = vector.load %arg5[%c0_23, %c1_24, %c0_25] : memref<18x18x8xbf16, #tpu.memory_space<vmem>>, vector<18x16x8xbf16>
    %c0_26 = arith.constant 0 : index
    %c0_27 = arith.constant 0 : index
    %c8 = arith.constant 8 : index
    %12 = vector.load %arg6[%c0_26, %c0_27, %c8] : memref<18x16x24xbf16, #tpu.memory_space<vmem>>, vector<18x16x8xbf16>
    tpu.vector_store %arg6[%c0_26, %c0_27, %c8], %11 {strides = array<i32>} : memref<18x16x24xbf16, #tpu.memory_space<vmem>>, vector<18x16x8xbf16>,
    %c0_28 = arith.constant 0 : index
    %c2 = arith.constant 2 : index
    %c0_29 = arith.constant 0 : index
    %13 = vector.load %arg5[%c0_28, %c2, %c0_29] : memref<18x18x8xbf16, #tpu.memory_space<vmem>>, vector<18x16x8xbf16>
    %c0_30 = arith.constant 0 : index
    %c0_31 = arith.constant 0 : index
    %c16 = arith.constant 16 : index
    %14 = vector.load %arg6[%c0_30, %c0_31, %c16] : memref<18x16x24xbf16, #tpu.memory_space<vmem>>, vector<18x16x8xbf16>
    tpu.vector_store %arg6[%c0_30, %c0_31, %c16], %13 {strides = array<i32>} : memref<18x16x24xbf16, #tpu.memory_space<vmem>>, vector<18x16x8xbf16>,
    %cst_32 = arith.constant 0.000000e+00 : f32
    %15 = vector.broadcast %cst_32 : f32 to vector<256x8xf32>
    %c0_33 = arith.constant 0 : index
    %c0_34 = arith.constant 0 : index
    %c0_35 = arith.constant 0 : index
    %16 = vector.load %arg6[%c0_33, %c0_34, %c0_35] : memref<18x16x24xbf16, #tpu.memory_space<vmem>>, vector<16x16x24xbf16>
    %17 = vector.shape_cast %16 : vector<16x16x24xbf16> to vector<256x24xbf16>
    %c0_36 = arith.constant 0 : index
    %c0_37 = arith.constant 0 : index
    %c0_38 = arith.constant 0 : index
    %18 = vector.load %arg2[%c0_36, %c0_37, %c0_38] : memref<3x24x8xbf16, #tpu.memory_space<vmem>>, vector<1x24x8xbf16>
    %19 = vector.shape_cast %18 : vector<1x24x8xbf16> to vector<24x8xbf16>
    %cst_39 = arith.constant dense<0.000000e+00> : vector<256x8xf32>
    %20 = tpu.matmul %17, %19, %cst_39 {dimension_numbers = #tpu.dot_dimension_numbers<[1], [0], [0], [1], [0, 0, 1, 1], [], []>} : vector<256x24xbf16>, vector<24x8xbf16>, vector<256x8xf32> -> vector<256x8xf32>
    %21 = arith.addf %15, %20 : vector<256x8xf32>
    %c1_40 = arith.constant 1 : index
    %c0_41 = arith.constant 0 : index
    %c0_42 = arith.constant 0 : index
    %22 = vector.load %arg6[%c1_40, %c0_41, %c0_42] : memref<18x16x24xbf16, #tpu.memory_space<vmem>>, vector<16x16x24xbf16>
    %23 = vector.shape_cast %22 : vector<16x16x24xbf16> to vector<256x24xbf16>
    %c1_43 = arith.constant 1 : index
    %c0_44 = arith.constant 0 : index
    %c0_45 = arith.constant 0 : index
    %24 = vector.load %arg2[%c1_43, %c0_44, %c0_45] : memref<3x24x8xbf16, #tpu.memory_space<vmem>>, vector<1x24x8xbf16>
    %25 = vector.shape_cast %24 : vector<1x24x8xbf16> to vector<24x8xbf16>
    %cst_46 = arith.constant dense<0.000000e+00> : vector<256x8xf32>
    %26 = tpu.matmul %23, %25, %cst_46 {dimension_numbers = #tpu.dot_dimension_numbers<[1], [0], [0], [1], [0, 0, 1, 1], [], []>} : vector<256x24xbf16>, vector<24x8xbf16>, vector<256x8xf32> -> vector<256x8xf32>
    %27 = arith.addf %21, %26 : vector<256x8xf32>
    %c2_47 = arith.constant 2 : index
    %c0_48 = arith.constant 0 : index
    %c0_49 = arith.constant 0 : index
    %28 = vector.load %arg6[%c2_47, %c0_48, %c0_49] : memref<18x16x24xbf16, #tpu.memory_space<vmem>>, vector<16x16x24xbf16>
    %29 = vector.shape_cast %28 : vector<16x16x24xbf16> to vector<256x24xbf16>
    %c2_50 = arith.constant 2 : index
    %c0_51 = arith.constant 0 : index
    %c0_52 = arith.constant 0 : index
    %30 = vector.load %arg2[%c2_50, %c0_51, %c0_52] : memref<3x24x8xbf16, #tpu.memory_space<vmem>>, vector<1x24x8xbf16>
    %31 = vector.shape_cast %30 : vector<1x24x8xbf16> to vector<24x8xbf16>
    %cst_53 = arith.constant dense<0.000000e+00> : vector<256x8xf32>
    %32 = tpu.matmul %29, %31, %cst_53 {dimension_numbers = #tpu.dot_dimension_numbers<[1], [0], [0], [1], [0, 0, 1, 1], [], []>} : vector<256x24xbf16>, vector<24x8xbf16>, vector<256x8xf32> -> vector<256x8xf32>
    %33 = arith.addf %27, %32 : vector<256x8xf32>
    %c0_54 = arith.constant 0 : index
    %c0_55 = arith.constant 0 : index
    %34 = vector.load %arg3[%c0_54, %c0_55] : memref<1x8xf32, #tpu.memory_space<vmem>>, vector<1x8xf32>
    %35 = vector.broadcast %34 : vector<1x8xf32> to vector<256x8xf32>
    %36 = arith.addf %33, %35 : vector<256x8xf32>
    %cst_56 = arith.constant 0.000000e+00 : f32
    %37 = vector.broadcast %cst_56 : f32 to vector<256x8xf32>
    %38 = arith.cmpf ogt, %36, %37 : vector<256x8xf32>
    %cst_57 = arith.constant 0.00999999977 : f32
    %39 = vector.broadcast %cst_57 : f32 to vector<256x8xf32>
    %40 = arith.mulf %39, %36 : vector<256x8xf32>
    %41 = arith.select %38, %36, %40 : vector<256x8xi1>, vector<256x8xf32>
    %42 = vector.shape_cast %41 : vector<256x8xf32> to vector<16x16x8xf32>
    %c0_58 = arith.constant 0 : index
    %c0_59 = arith.constant 0 : index
    %c0_60 = arith.constant 0 : index
    %c0_61 = arith.constant 0 : index
    %43 = vector.load %arg1[%c0_58, %c0_59, %c0_60, %c0_61] : memref<1x16x16x8xbf16, #tpu.memory_space<vmem>>, vector<1x16x16x8xbf16>
    %44 = vector.shape_cast %43 : vector<1x16x16x8xbf16> to vector<16x16x8xbf16>
    %45 = arith.extf %44 : vector<16x16x8xbf16> to vector<16x16x8xf32>
    %46 = arith.addf %42, %45 : vector<16x16x8xf32>
    %c0_62 = arith.constant 0 : index
    %c0_63 = arith.constant 0 : index
    %c0_64 = arith.constant 0 : index
    %c0_65 = arith.constant 0 : index
    %47 = vector.load %arg4[%c0_62, %c0_63, %c0_64, %c0_65] : memref<1x16x16x8xf32, #tpu.memory_space<vmem>>, vector<1x16x16x8xf32>
    %48 = vector.shape_cast %47 : vector<1x16x16x8xf32> to vector<16x16x8xf32>
    %49 = vector.shape_cast %46 : vector<16x16x8xf32> to vector<1x16x16x8xf32>
    tpu.vector_store %arg4[%c0_62, %c0_63, %c0_64, %c0_65], %49 {strides = array<i32>} : memref<1x16x16x8xf32, #tpu.memory_space<vmem>>, vector<1x16x16x8xf32>,
    return
  }
  func.func @transform_0(%arg0: i32) -> (i32, i32, i32, i32) {
    %c0_i32 = arith.constant 0 : i32
    %c0_i32_0 = arith.constant 0 : i32
    %c0_i32_1 = arith.constant 0 : i32
    %c0_i32_2 = arith.constant 0 : i32
    return %arg0, %c0_i32, %c0_i32_0, %c0_i32_1 : i32, i32, i32, i32
  }
  func.func @transform_1(%arg0: i32) -> (i32, i32, i32) {
    %c0_i32 = arith.constant 0 : i32
    %c0_i32_0 = arith.constant 0 : i32
    %c0_i32_1 = arith.constant 0 : i32
    %c0_i32_2 = arith.constant 0 : i32
    return %c0_i32, %c0_i32_0, %c0_i32_1 : i32, i32, i32
  }
  func.func @transform_2(%arg0: i32) -> (i32, i32) {
    %c0_i32 = arith.constant 0 : i32
    %c0_i32_0 = arith.constant 0 : i32
    %c0_i32_1 = arith.constant 0 : i32
    return %c0_i32, %c0_i32_0 : i32, i32
  }
  func.func @transform_3(%arg0: i32) -> (i32, i32, i32, i32) {
    %c0_i32 = arith.constant 0 : i32
    %c0_i32_0 = arith.constant 0 : i32
    %c0_i32_1 = arith.constant 0 : i32
    %c0_i32_2 = arith.constant 0 : i32
    return %arg0, %c0_i32, %c0_i32_0, %c0_i32_1 : i32, i32, i32, i32
  }
}

</mosaic_0001>

<bundles_post_ra>
// kernel: tile.8
= control target key start
LH: loop header
LB: loop body
LE: loop exit
PB: predicated region body
PF: predicated region fallthrough
CT: control target
= control target key end

     0   :  { %s22_s0 = inlined_call_operand.vmem [shape: f32[4], index: 0, kind: input, shape index: {}]   ;;  %s23_s1 = inlined_call_operand.vmem [shape: f32[2,4], index: 1, kind: output, shape index: {}]  }
   0x1   :  { %v4_v0 = vld [vmem:[%s22_s0] ss:$0 sm:$0xff] }
   0x2   :  { %5 = vst [vmem:[%s23_s1] sm:$0x3] %v4_v0 }

// kernel: tile.9
= control target key start
LH: loop header
LB: loop body
LE: loop exit
PB: predicated region body
PF: predicated region fallthrough
CT: control target
= control target key end

     0   :  { %vm7_vm0 = vcmask 31744   ;;  %vm13_vm1 = vcmask 64544   ;;  %s39_s0 = inlined_call_operand.vmem [shape: f32[2,4], index: 0, kind: input, shape index: {}]   ;;  %s40_s1 = inlined_call_operand.vmem [shape: f32[1,8], index: 1, kind: output, shape index: {}]  }
   0x1   :  { %v4_v0 = vld [vmem:[%s39_s0] sm:$0x3]  ;;  %s22_s0 = smov 4  }
   0x2   :  { %5 = vst [vmem:[#allocation1] sm:$0x3] %v4_v0 }
   0x9   :  { %v10_v1 = vld [vmem:[#allocation1 + $0x1] sm:$0x1]   ;;  %v6_v2 = vld [vmem:[#allocation1] sm:$0x1]  }
   0xa   :  { %11 = vrot.lane.b32.xlu0 %v10_v1, %s22_s0  ;;  %8 = vst.msk [vmem:[#allocation0] sm:$0x1] %vm7_vm0, %v6_v2  }
  0x7c   :  { %v12_v3 = vpop.permute.xlu0 %11  }
  0x7d   :  { %14 = vst.msk [vmem:[#allocation0] sm:$0x1] %vm13_vm1, %v12_v3  }
  0x84   :  { %v17_v4 = vld [vmem:[#allocation0] sm:$0x1] }
  0x85   :  { %20 = vst [vmem:[%s40_s1] sm:$0x1] %v17_v4 }

// kernel: up_conv_forward.3
= control target key start
LH: loop header
LB: loop body
LE: loop exit
PB: predicated region body
PF: predicated region fallthrough
CT: control target
= control target key end

     0   :  { %vm101_vm0 = vcmask 1041408   ;;  %vm76_vm1 = vcmask 31744   ;;  %vm170_vm2 = vcmask 60416   ;;  %s585_s1 = inlined_call_operand.vmem [shape: bf16[2,4,8], index: 1, kind: input, shape index: {}]   ;;  %s586_s0 = inlined_call_operand.vmem [shape: bf16[16,8,4], index: 0, kind: input, shape index: {}]   ;;  %s587_s2 = inlined_call_operand.vmem [shape: f32[1,8], index: 2, kind: input, shape index: {}]   ;;  %s588_s3 = inlined_call_operand.vmem [shape: bf16[16,2,8,8], index: 3, kind: output, shape index: {}]  }
   0x1   :  { %v32_v0 = vld [vmem:[%s585_s1] sm:$0x3]  ;;  %v318_v1 = vld [vmem:[%s585_s1 + $0x2] sm:$0x3]  ;;  %v344_v6 = vld [vmem:[%s586_s0 + $0x8] sm:$0xff] }
   0x2   :  { %v103_v2 = vsel %vm101_vm0, %v32_v0, 0  ;;  %v190_v3 = vsel %vm101_vm0, %v318_v1, 0  ;;  %v343_v4 = vld [vmem:[%s586_s0] sm:$0xff]  ;;  %v348_v7 = vld [vmem:[%s586_s0 + $0x28] sm:$0xff]  ;;  %v345_v8 = vld [vmem:[%s586_s0 + $0x10] sm:$0xff] }
   0x3   :  { %v347_v5 = vld [vmem:[%s586_s0 + $0x20] sm:$0xff]  ;;  %112 = vmatpush.bf16.msra.mxu0 %v103_v2  ;;  %351 = vmatpush.bf16.msra.mxu2 %v103_v2  ;;  %v349_v9 = vld [vmem:[%s586_s0 + $0x30] sm:$0xff]  ;;  %v346_v10 = vld [vmem:[%s586_s0 + $0x18] sm:$0xff] }
   0x4   :  { %199 = vmatpush.bf16.msra.mxu1 %v190_v3  ;;  %352 = vmatpush.bf16.msra.mxu3 %v190_v3  ;;  %v350_v11 = vld [vmem:[%s586_s0 + $0x38] sm:$0xff]  ;;  %v423_v12 = vld [vmem:[%s587_s2] ss:$0 sm:$0xff] }
   0x6   :  { %310 = vmatmul.msk.bf16.vlgmr.msra.gmra.mxu0 %vm76_vm1, %v343_v4  ;;  %314 = vmatmul.msk.bf16.vlgmr.msra.gmra.mxu2 %vm76_vm1, %v347_v5 }
   0x7   :  { %319 = vmatmul.msk.bf16.vlgmr.msra.gmra.mxu1 %vm76_vm1, %v343_v4  ;;  %323 = vmatmul.msk.bf16.vlgmr.msra.gmra.mxu3 %vm76_vm1, %v347_v5 }
  0x16   :  { %311 = vmatmul.msk.bf16.gmra.mxu0 %vm76_vm1, %v344_v6  ;;  %315 = vmatmul.msk.bf16.gmra.mxu2 %vm76_vm1, %v348_v7 }
  0x17   :  { %320 = vmatmul.msk.bf16.gmra.mxu1 %vm76_vm1, %v344_v6  ;;  %324 = vmatmul.msk.bf16.gmra.mxu3 %vm76_vm1, %v348_v7 }
  0x26   :  { %312 = vmatmul.msk.bf16.gmra.mxu0 %vm76_vm1, %v345_v8  ;;  %316 = vmatmul.msk.bf16.gmra.mxu2 %vm76_vm1, %v349_v9 }
  0x27   :  { %321 = vmatmul.msk.bf16.gmra.mxu1 %vm76_vm1, %v345_v8  ;;  %325 = vmatmul.msk.bf16.gmra.mxu3 %vm76_vm1, %v349_v9 }
  0x36   :  { %313 = vmatmul.msk.bf16.gmra.mxu0 %vm76_vm1, %v346_v10  ;;  %317 = vmatmul.msk.bf16.gmra.mxu2 %vm76_vm1, %v350_v11 }
  0x37   :  { %322 = vmatmul.msk.bf16.gmra.mxu1 %vm76_vm1, %v346_v10  ;;  %326 = vmatmul.msk.bf16.gmra.mxu3 %vm76_vm1, %v350_v11 }
  0x83   :  { %v114_v13 = vpop.f32.mrf.mxu0 }
  0x84   :  { %v115_v14 = vadd.f32 %v423_v12, %v114_v13  ;;  %v201_v15 = vpop.f32.mrf.mxu1 }
  0x85   :  { %v202_v16 = vadd.f32 %v423_v12, %v201_v15 }
  0x86   :  { %v154_v17 = vpack.c.bf16 %v115_v14, %v115_v14 }
  0x87   :  { %v241_v18 = vpack.c.bf16 %v202_v16, %v202_v16 }
  0x88   :  { %171 = vst.msk [vmem:[%s588_s3] sm:$0xf] %vm170_vm2, %v154_v17 }
  0x89   :  { %327 = vst.msk [vmem:[%s588_s3 + $0x4] sm:$0xf] %vm170_vm2, %v241_v18  ;;  %v134_v19 = vpop.f32.mrf.mxu2 }
  0x8a   :  { %v135_v20 = vadd.f32 %v423_v12, %v134_v19  ;;  %v221_v21 = vpop.f32.mrf.mxu3 }
  0x8b   :  { %v222_v22 = vadd.f32 %v423_v12, %v221_v21  ;;  %v116_v23 = vpop.f32.mrf.mxu0 }
  0x8c   :  { %v162_v24 = vpack.c.bf16 %v135_v20, %v135_v20  ;;  %v117_v25 = vadd.f32 %v423_v12, %v116_v23  ;;  %v203_v26 = vpop.f32.mrf.mxu1 }
  0x8d   :  { %v249_v27 = vpack.c.bf16 %v222_v22, %v222_v22  ;;  %v204_v28 = vadd.f32 %v423_v12, %v203_v26 }
  0x8e   :  { %179 = vst.msk [vmem:[%s588_s3 + $0x40] sm:$0xf] %vm170_vm2, %v162_v24  ;;  %v155_v29 = vpack.c.bf16 %v117_v25, %v117_v25 }
  0x8f   :  { %335 = vst.msk [vmem:[%s588_s3 + $0x44] sm:$0xf] %vm170_vm2, %v249_v27  ;;  %v242_v30 = vpack.c.bf16 %v204_v28, %v204_v28 }
  0x90   :  { %172 = vst.msk [vmem:[%s588_s3 + $0x8] sm:$0xf] %vm170_vm2, %v155_v29 }
  0x91   :  { %328 = vst.msk [vmem:[%s588_s3 + $0xc] sm:$0xf] %vm170_vm2, %v242_v30  ;;  %v136_v31 = vpop.f32.mrf.mxu2 }
  0x92   :  { %v137_v32 = vadd.f32 %v423_v12, %v136_v31  ;;  %v223_v33 = vpop.f32.mrf.mxu3 }
  0x93   :  { %v224_v34 = vadd.f32 %v423_v12, %v223_v33  ;;  %v119_v35 = vpop.f32.mrf.mxu0 }
  0x94   :  { %v163_v36 = vpack.c.bf16 %v137_v32, %v137_v32  ;;  %v120_v37 = vadd.f32 %v423_v12, %v119_v35  ;;  %v206_v38 = vpop.f32.mrf.mxu1 }
  0x95   :  { %v250_v39 = vpack.c.bf16 %v224_v34, %v224_v34  ;;  %v207_v40 = vadd.f32 %v423_v12, %v206_v38 }
  0x96   :  { %180 = vst.msk [vmem:[%s588_s3 + $0x48] sm:$0xf] %vm170_vm2, %v163_v36  ;;  %v156_v41 = vpack.c.bf16 %v120_v37, %v120_v37 }
  0x97   :  { %336 = vst.msk [vmem:[%s588_s3 + $0x4c] sm:$0xf] %vm170_vm2, %v250_v39  ;;  %v243_v42 = vpack.c.bf16 %v207_v40, %v207_v40 }
  0x98   :  { %173 = vst.msk [vmem:[%s588_s3 + $0x10] sm:$0xf] %vm170_vm2, %v156_v41 }
  0x99   :  { %329 = vst.msk [vmem:[%s588_s3 + $0x14] sm:$0xf] %vm170_vm2, %v243_v42  ;;  %v139_v43 = vpop.f32.mrf.mxu2 }
  0x9a   :  { %v140_v44 = vadd.f32 %v423_v12, %v139_v43  ;;  %v226_v45 = vpop.f32.mrf.mxu3 }
  0x9b   :  { %v227_v46 = vadd.f32 %v423_v12, %v226_v45  ;;  %v121_v47 = vpop.f32.mrf.mxu0 }
  0x9c   :  { %v164_v48 = vpack.c.bf16 %v140_v44, %v140_v44  ;;  %v122_v49 = vadd.f32 %v423_v12, %v121_v47  ;;  %v208_v50 = vpop.f32.mrf.mxu1 }
  0x9d   :  { %v251_v51 = vpack.c.bf16 %v227_v46, %v227_v46  ;;  %v209_v52 = vadd.f32 %v423_v12, %v208_v50 }
  0x9e   :  { %181 = vst.msk [vmem:[%s588_s3 + $0x50] sm:$0xf] %vm170_vm2, %v164_v48  ;;  %v157_v53 = vpack.c.bf16 %v122_v49, %v122_v49 }
  0x9f   :  { %337 = vst.msk [vmem:[%s588_s3 + $0x54] sm:$0xf] %vm170_vm2, %v251_v51  ;;  %v244_v54 = vpack.c.bf16 %v209_v52, %v209_v52 }
  0xa0   :  { %174 = vst.msk [vmem:[%s588_s3 + $0x18] sm:$0xf] %vm170_vm2, %v157_v53 }
  0xa1   :  { %330 = vst.msk [vmem:[%s588_s3 + $0x1c] sm:$0xf] %vm170_vm2, %v244_v54  ;;  %v141_v55 = vpop.f32.mrf.mxu2 }
  0xa2   :  { %v142_v56 = vadd.f32 %v423_v12, %v141_v55  ;;  %v228_v57 = vpop.f32.mrf.mxu3 }
  0xa3   :  { %v229_v58 = vadd.f32 %v423_v12, %v228_v57  ;;  %v124_v59 = vpop.f32.mrf.mxu0 }
  0xa4   :  { %v165_v60 = vpack.c.bf16 %v142_v56, %v142_v56  ;;  %v125_v61 = vadd.f32 %v423_v12, %v124_v59  ;;  %v211_v62 = vpop.f32.mrf.mxu1 }
  0xa5   :  { %v252_v63 = vpack.c.bf16 %v229_v58, %v229_v58  ;;  %v212_v0 = vadd.f32 %v423_v12, %v211_v62 }
  0xa6   :  { %182 = vst.msk [vmem:[%s588_s3 + $0x58] sm:$0xf] %vm170_vm2, %v165_v60  ;;  %v158_v1 = vpack.c.bf16 %v125_v61, %v125_v61 }
  0xa7   :  { %338 = vst.msk [vmem:[%s588_s3 + $0x5c] sm:$0xf] %vm170_vm2, %v252_v63  ;;  %v245_v2 = vpack.c.bf16 %v212_v0, %v212_v0 }
  0xa8   :  { %175 = vst.msk [vmem:[%s588_s3 + $0x20] sm:$0xf] %vm170_vm2, %v158_v1 }
  0xa9   :  { %331 = vst.msk [vmem:[%s588_s3 + $0x24] sm:$0xf] %vm170_vm2, %v245_v2  ;;  %v144_v3 = vpop.f32.mrf.mxu2 }
  0xaa   :  { %v145_v4 = vadd.f32 %v423_v12, %v144_v3  ;;  %v231_v5 = vpop.f32.mrf.mxu3 }
  0xab   :  { %v232_v6 = vadd.f32 %v423_v12, %v231_v5  ;;  %v126_v7 = vpop.f32.mrf.mxu0 }
  0xac   :  { %v166_v8 = vpack.c.bf16 %v145_v4, %v145_v4  ;;  %v127_v9 = vadd.f32 %v423_v12, %v126_v7  ;;  %v213_v10 = vpop.f32.mrf.mxu1 }
  0xad   :  { %v253_v11 = vpack.c.bf16 %v232_v6, %v232_v6  ;;  %v214_v13 = vadd.f32 %v423_v12, %v213_v10 }
  0xae   :  { %183 = vst.msk [vmem:[%s588_s3 + $0x60] sm:$0xf] %vm170_vm2, %v166_v8  ;;  %v159_v14 = vpack.c.bf16 %v127_v9, %v127_v9 }
  0xaf   :  { %339 = vst.msk [vmem:[%s588_s3 + $0x64] sm:$0xf] %vm170_vm2, %v253_v11  ;;  %v246_v15 = vpack.c.bf16 %v214_v13, %v214_v13 }
  0xb0   :  { %176 = vst.msk [vmem:[%s588_s3 + $0x28] sm:$0xf] %vm170_vm2, %v159_v14 }
  0xb1   :  { %332 = vst.msk [vmem:[%s588_s3 + $0x2c] sm:$0xf] %vm170_vm2, %v246_v15  ;;  %v146_v16 = vpop.f32.mrf.mxu2 }
  0xb2   :  { %v147_v17 = vadd.f32 %v423_v12, %v146_v16  ;;  %v233_v18 = vpop.f32.mrf.mxu3 }
  0xb3   :  { %v234_v19 = vadd.f32 %v423_v12, %v233_v18  ;;  %v129_v20 = vpop.f32.mrf.mxu0 }
  0xb4   :  { %v167_v21 = vpack.c.bf16 %v147_v17, %v147_v17  ;;  %v130_v22 = vadd.f32 %v423_v12, %v129_v20  ;;  %v216_v23 = vpop.f32.mrf.mxu1 }
  0xb5   :  { %v254_v24 = vpack.c.bf16 %v234_v19, %v234_v19  ;;  %v217_v25 = vadd.f32 %v423_v12, %v216_v23 }
  0xb6   :  { %184 = vst.msk [vmem:[%s588_s3 + $0x68] sm:$0xf] %vm170_vm2, %v167_v21  ;;  %v160_v26 = vpack.c.bf16 %v130_v22, %v130_v22 }
  0xb7   :  { %340 = vst.msk [vmem:[%s588_s3 + $0x6c] sm:$0xf] %vm170_vm2, %v254_v24  ;;  %v247_v27 = vpack.c.bf16 %v217_v25, %v217_v25 }
  0xb8   :  { %177 = vst.msk [vmem:[%s588_s3 + $0x30] sm:$0xf] %vm170_vm2, %v160_v26 }
  0xb9   :  { %333 = vst.msk [vmem:[%s588_s3 + $0x34] sm:$0xf] %vm170_vm2, %v247_v27  ;;  %v149_v28 = vpop.f32.mrf.mxu2 }
  0xba   :  { %v150_v29 = vadd.f32 %v423_v12, %v149_v28  ;;  %v236_v30 = vpop.f32.mrf.mxu3 }
  0xbb   :  { %v237_v31 = vadd.f32 %v423_v12, %v236_v30  ;;  %v131_v32 = vpop.f32.mrf.mxu0 }
  0xbc   :  { %v168_v33 = vpack.c.bf16 %v150_v29, %v150_v29  ;;  %v132_v34 = vadd.f32 %v423_v12, %v131_v32  ;;  %v218_v35 = vpop.f32.mrf.mxu1 }
  0xbd   :  { %v255_v36 = vpack.c.bf16 %v237_v31, %v237_v31  ;;  %v219_v37 = vadd.f32 %v423_v12, %v218_v35 }
  0xbe   :  { %185 = vst.msk [vmem:[%s588_s3 + $0x70] sm:$0xf] %vm170_vm2, %v168_v33  ;;  %v161_v38 = vpack.c.bf16 %v132_v34, %v132_v34 }
  0xbf   :  { %341 = vst.msk [vmem:[%s588_s3 + $0x74] sm:$0xf] %vm170_vm2, %v255_v36  ;;  %v248_v39 = vpack.c.bf16 %v219_v37, %v219_v37 }
  0xc0   :  { %178 = vst.msk [vmem:[%s588_s3 + $0x38] sm:$0xf] %vm170_vm2, %v161_v38 }
  0xc1   :  { %334 = vst.msk [vmem:[%s588_s3 + $0x3c] sm:$0xf] %vm170_vm2, %v248_v39  ;;  %v151_v40 = vpop.f32.mrf.mxu2 }
  0xc2   :  { %v152_v41 = vadd.f32 %v423_v12, %v151_v40  ;;  %v238_v42 = vpop.f32.mrf.mxu3 }
  0xc3   :  { %v239_v43 = vadd.f32 %v423_v12, %v238_v42 }
  0xc4   :  { %v169_v44 = vpack.c.bf16 %v152_v41, %v152_v41 }
  0xc5   :  { %v256_v45 = vpack.c.bf16 %v239_v43, %v239_v43 }
  0xc6   :  { %186 = vst.msk [vmem:[%s588_s3 + $0x78] sm:$0xf] %vm170_vm2, %v169_v44 }
  0xc7   :  { %342 = vst.msk [vmem:[%s588_s3 + $0x7c] sm:$0xf] %vm170_vm2, %v256_v45 }

// kernel: up_conv_forward.4
= control target key start
LH: loop header
LB: loop body
LE: loop exit
PB: predicated region body
PF: predicated region fallthrough
CT: control target
= control target key end

     0   :  { %s3959_s15 = smov 0   ;;  %s5351_s0 = inlined_call_operand.vmem [shape: bf16[2,16,16,4], index: 0, kind: input, shape index: {}]   ;;  %s5352_s1 = inlined_call_operand.vmem [shape: bf16[2,16,16,4], index: 1, kind: input, shape index: {}]   ;;  %s5353_s2 = inlined_call_operand.vmem [shape: bf16[3,24,8], index: 2, kind: input, shape index: {}]   ;;  %s5354_s3 = inlined_call_operand.vmem [shape: f32[1,8], index: 3, kind: input, shape index: {}]   ;;  %s5355_s4 = inlined_call_operand.vmem [shape: bf16[2,16,16,8], index: 4, kind: output, shape index: {}]  }
   0x1 LB: > { %s3559_s16 = sadd.s32 4294967295, %s3928_s15   ;;  %p3563_p0 = scmp.ge.s32.totalorder %s3928_s15, 1  ;;  %s3928_s15 = sphi %s3959_s15, %s14_s15  }
   0x2   : > { %p172_p1 = scmp.lt.s32.totalorder %s3928_s15, 3 }
   0x4   : > { %p173_p2 = pnand %p3563_p0, %p172_p1 }
   0x5   : > { %p203_p3 = scmp.lt.s32.totalorder (!%p173_p2), %s3559_s16, 1  ;;  %s3930_s21 = smov (!%p173_p2), 4  }
   0x6   : > { %176 = sbr.rel (%p173_p2) target bundleno = 817 (0x331), region = 36  ;;  %s3932_s25 = smov (!%p173_p2), 8  }
   0x7   : > { %s3933_s26 = smov (!%p173_p2), 16  }
   0xb   : > { %s5375_s16 = smov (!%p203_p3, %s3559_s16), 1  ;;  %vm229_vm0 = vsmask.f32 256  ;;  %vm373_vm1 = vsmask.f32 4368  ;;  %vm219_vm3 = vcmask 60416  }
   0xc   : > { %s3967_s17 = sshll.u32 %s5375_s16, 7  ;;  %vm3982_vm2 = vmor %vm229_vm0, %vm373_vm1  ;;  %vm222_vm4 = vcmask 57344   ;;  %vm285_vm5 = vsmask.f32 7938  ;;  %vm1504_vm8 = vsmask.f32 3328 }
   0xd   : > { %s3973_s20 = scalar_lea.vmem %s5352_s1, %s3967_s17  ;;  %vm4031_vm6 = vmand %vm222_vm4, %vm285_vm5  ;;  %vm1505_vm9 = vsmask.f32 7440  ;;  %s4070_s24 = scalar_lea.vmem %s5351_s0, %s3967_s17  ;;  %vm2192_vm10 = vcmask 1042432   ;;  %vm2193_vm11 = vcmask 1046532   ;;  %vm696_vm14 = vcmask 27648  }
   0xe   : > { %v815_v0 = vld [vmem:[%s3973_s20 + $0x8] sm:$0xf]  ;;  %v816_v1 = vld [vmem:[%s3973_s20 + $0xc] sm:$0xf]  ;;  %v837_v2 = vld [vmem:[%s3973_s20 + $0x60] sm:$0xf]  ;;  %s5106_s19 = scalar_lea.vmem %s5355_s4, %s3967_s17 }
   0xf   : > { %v863_v3 = vshrl.u32 %v815_v0, 16  ;;  %v866_v4 = vshll.u32 %v815_v0, 16  ;;  %v871_v5 = vshrl.u32 %v816_v1, 16  ;;  %v874_v6 = vshll.u32 %v816_v1, 16  ;;  %v838_v7 = vld [vmem:[%s3973_s20 + $0x64] sm:$0xf]  ;;  %vm4047_vm7 = vmand %vm222_vm4, %vm229_vm0 }
  0x10   : > { %v1050_v8 = vshrl.u32 %v837_v2, 16  ;;  %v1058_v9 = vshrl.u32 %v838_v7, 16  ;;  %v813_v10 = vld [vmem:[%s3973_s20] sm:$0xf]  ;;  %v1061_v16 = vshll.u32 %v838_v7, 16  ;;  %v1053_v25 = vshll.u32 %v837_v2, 16  ;;  %vm4074_vm12 = vmor %vm1504_vm8, %vm1505_vm9 }
  0x11   : > { %v865_v11 = vrot.slane %v863_v3, 7  ;;  %v873_v12 = vrot.slane %v871_v5, 7  ;;  %v846_v13 = vshrl.u32 %v813_v10, 16  ;;  %v849_v17 = vshll.u32 %v813_v10, 16  ;;  %v814_v22 = vld [vmem:[%s3973_s20 + $0x4] sm:$0xf]  ;;  %vm4079_vm13 = vmor %vm2192_vm10, %vm2193_vm11 }
  0x12   : > { %v1052_v15 = vrot.slane %v1050_v8, 7  ;;  %v1060_v21 = vrot.slane %v1058_v9, 7  ;;  %v854_v29 = vshrl.u32 %v814_v22, 16  ;;  %v857_v33 = vshll.u32 %v814_v22, 16  ;;  %v817_v35 = vld [vmem:[%s3973_s20 + $0x10] sm:$0xf]  ;;  %vm4093_vm15 = vmand %vm696_vm14, %vm285_vm5 }
  0x13   : > { %v868_v18 = vor.u32 %v866_v4, %v865_v11  ;;  %v869_v19 = vrot.slane %v865_v11, 4  ;;  %v876_v20 = vor.u32 %v874_v6, %v873_v12  ;;  %v848_v23 = vrot.slane %v846_v13, 7  ;;  %v839_v38 = vld [vmem:[%s3973_s20 + $0x68] sm:$0xf]  ;;  %v818_v39 = vld [vmem:[%s3973_s20 + $0x14] sm:$0xf] }
  0x14   : > { %v1056_v27 = vrot.slane %v1052_v15, 4  ;;  %v1063_v28 = vor.u32 %v1061_v16, %v1060_v21  ;;  %v1055_v30 = vor.u32 %v1053_v25, %v1052_v15  ;;  %v856_v32 = vrot.slane %v854_v29, 7  ;;  %v840_v44 = vld [vmem:[%s3973_s20 + $0x6c] sm:$0xf]  ;;  %v819_v63 = vld [vmem:[%s3973_s20 + $0x18] sm:$0xf] }
  0x15   : > { %1123 = vrot.lane.b32.xlu0 %v868_v18, %s3930_s21  ;;  %v877_v24 = vsel %vm3982_vm2, %v869_v19, %v876_v20  ;;  %v851_v26 = vor.u32 %v849_v17, %v848_v23  ;;  %v878_v34 = vrot.slane %v873_v12, 4  ;;  %v852_v36 = vrot.slane %v848_v23, 4  ;;  %v841_v0 = vld [vmem:[%s3973_s20 + $0x70] sm:$0xf]  ;;  %v820_v1 = vld [vmem:[%s3973_s20 + $0x1c] sm:$0xf] }
  0x16   : > { %1125 = vrot.lane.b32.xlu1 %v877_v24, %s3930_s21  ;;  %v1064_v31 = vsel %vm3982_vm2, %v1056_v27, %v1063_v28  ;;  %v859_v37 = vor.u32 %v857_v33, %v856_v32  ;;  %v1065_v40 = vrot.slane %v1060_v21, 4  ;;  %v880_v41 = vshrl.u32 %v817_v35, 16  ;;  %v842_v6 = vld [vmem:[%s3973_s20 + $0x74] sm:$0xf]  ;;  %v821_v28 = vld [vmem:[%s3973_s20 + $0x20] sm:$0xf] }
  0x17   : > { %1117 = vrot.lane.b32.xlu2 %v851_v26, %s3930_s21  ;;  %v1067_v42 = vshrl.u32 %v839_v38, 16  ;;  %v888_v45 = vshrl.u32 %v818_v39, 16  ;;  %v861_v46 = vrot.slane %v856_v32, 4  ;;  %v883_v48 = vshll.u32 %v817_v35, 16  ;;  %v843_v29 = vld [vmem:[%s3973_s20 + $0x78] sm:$0xf] }
  0x18   : > { %v860_v43 = vsel %vm3982_vm2, %v852_v36, %v859_v37  ;;  %v882_v47 = vrot.slane %v880_v41, 7  ;;  %v891_v49 = vshll.u32 %v818_v39, 16  ;;  %v1070_v51 = vshll.u32 %v839_v38, 16  ;;  %v844_v37 = vld [vmem:[%s3973_s20 + $0x7c] sm:$0xf] }
  0x19   : > { %v1069_v50 = vrot.slane %v1067_v42, 7  ;;  %v1075_v52 = vshrl.u32 %v840_v44, 16  ;;  %v890_v53 = vrot.slane %v888_v45, 7  ;;  %v1078_v59 = vshll.u32 %v840_v44, 16 }
  0x1a   : > { %v885_v54 = vor.u32 %v883_v48, %v882_v47  ;;  %v886_v55 = vrot.slane %v882_v47, 4  ;;  %v897_v2 = vshrl.u32 %v819_v63, 16  ;;  %v1084_v5 = vshrl.u32 %v841_v0, 16  ;;  %v237_v47 = vld [vmem:[#allocation2 + $0x18] sm:$0x1] }
  0x1b   : > { %v893_v56 = vor.u32 %v891_v49, %v890_v53  ;;  %v1072_v57 = vor.u32 %v1070_v51, %v1069_v50  ;;  %v1077_v58 = vrot.slane %v1075_v52, 7  ;;  %v1073_v61 = vrot.slane %v1069_v50, 4 }
  0x1c   : > { %v895_v4 = vrot.slane %v890_v53, 4  ;;  %v905_v7 = vshrl.u32 %v820_v1, 16  ;;  %v899_v9 = vrot.slane %v897_v2, 7  ;;  %v900_v10 = vshll.u32 %v819_v63, 16 }
  0x1d   : > { %1189 = vrot.lane.b32.xlu0 %v1055_v30, %s3930_s21  ;;  %v894_v60 = vsel %vm3982_vm2, %v886_v55, %v893_v56  ;;  %v1080_v62 = vor.u32 %v1078_v59, %v1077_v58  ;;  %v1082_v8 = vrot.slane %v1077_v58, 4  ;;  %v1087_v11 = vshll.u32 %v841_v0, 16 }
  0x1e   : > { %1191 = vrot.lane.b32.xlu1 %v1064_v31, %s3930_s21  ;;  %v908_v12 = vshll.u32 %v820_v1, 16  ;;  %v1086_v13 = vrot.slane %v1084_v5, 7  ;;  %v1092_v15 = vshrl.u32 %v842_v6, 16  ;;  %v907_v16 = vrot.slane %v905_v7, 7  ;;  %v822_v31 = vld [vmem:[%s3973_s20 + $0x24] sm:$0xf] }
  0x1f   : > { %1127 = vrot.lane.b32.xlu2 %v878_v34, %s3930_s21  ;;  %v1081_v3 = vsel %vm3982_vm2, %v1073_v61, %v1080_v62  ;;  %v3931_v17 = vmov 0   ;;  %v902_v18 = vor.u32 %v900_v10, %v899_v9  ;;  %v903_v19 = vrot.slane %v899_v9, 4 }
  0x20   : > { %221 = vst.msk [vmem:[#allocation2 + $0x4] sm:$0xf] %vm219_vm3, %v3931_v17  ;;  %v910_v20 = vor.u32 %v908_v12, %v907_v16  ;;  %v1089_v21 = vor.u32 %v1087_v11, %v1086_v13  ;;  %v1094_v22 = vrot.slane %v1092_v15, 7  ;;  %v1095_v23 = vshll.u32 %v842_v6, 16  ;;  %v823_v15 = vld [vmem:[%s3973_s20 + $0x28] sm:$0xf] }
  0x21   : > { %223 = vst.msk [vmem:[#allocation2 + $0x8] sm:$0x1] %vm222_vm4, %v3931_v17  ;;  %v1090_v26 = vrot.slane %v1086_v13, 4  ;;  %v914_v33 = vshrl.u32 %v821_v28, 16  ;;  %v912_v35 = vrot.slane %v907_v16, 4  ;;  %v1101_v36 = vshrl.u32 %v843_v29, 16 }
  0x22   : > { %220 = vst.msk [vmem:[#allocation2] sm:$0xf] %vm219_vm3, %v3931_v17  ;;  %v911_v24 = vsel %vm3982_vm2, %v903_v19, %v910_v20  ;;  %v1097_v27 = vor.u32 %v1095_v23, %v1094_v22  ;;  %v922_v38 = vshrl.u32 %v822_v31, 16  ;;  %v1099_v39 = vrot.slane %v1094_v22, 4 }
  0x23   : > { %225 = vst.msk [vmem:[#allocation2 + $0xcc] sm:$0xf] %vm219_vm3, %v3931_v17  ;;  %v916_v41 = vrot.slane %v914_v33, 7  ;;  %v917_v42 = vshll.u32 %v821_v28, 16  ;;  %v1103_v44 = vrot.slane %v1101_v36, 7  ;;  %v1104_v45 = vshll.u32 %v843_v29, 16 }
  0x24   : > { %226 = vst.msk [vmem:[#allocation2 + $0xd0] sm:$0xf] %vm219_vm3, %v3931_v17  ;;  %v1098_v34 = vsel %vm3982_vm2, %v1090_v26, %v1097_v27  ;;  %v924_v48 = vrot.slane %v922_v38, 7  ;;  %v238_v50 = vsel %vm4047_vm7, 0, %v237_v47  ;;  %v1112_v52 = vshll.u32 %v844_v37, 16 }
  0x25   : > { %1193 = vrot.lane.b32.xlu0 %v1065_v40, %s3930_s21  ;;  %227 = vst.msk [vmem:[#allocation2 + $0xd4] sm:$0x1] %vm222_vm4, %v3931_v17  ;;  %v919_v51 = vor.u32 %v917_v42, %v916_v41  ;;  %v920_v53 = vrot.slane %v916_v41, 4  ;;  %v1106_v55 = vor.u32 %v1104_v45, %v1103_v44  ;;  %v343_v17 = vld [vmem:[%s4070_s24 + $0x8] sm:$0xf]  ;;  %v934_v33 = vshll.u32 %v823_v15, 16 }
  0x26   : > { %1119 = vrot.lane.b32.xlu1 %v860_v43, %s3930_s21  ;;  %v925_v43 = vshll.u32 %v822_v31, 16  ;;  %239 = vst [vmem:[#allocation2 + $0x18] sm:$0x1] %v238_v50  ;;  %v396_v26 = vshll.u32 %v343_v17, 16  ;;  %v365_v42 = vld [vmem:[%s4070_s24 + $0x60] sm:$0xf] }
  0x27   : > { %1121 = vrot.lane.b32.xlu2 %v861_v46, %s3930_s21  ;;  %v1109_v46 = vshrl.u32 %v844_v37, 16  ;;  %v1451_v49 = vld [vmem:[#allocation2 + $0x4] sm:$0xf]  ;;  %v580_v45 = vshrl.u32 %v365_v42, 16  ;;  %vm703_vm1 = vcmask 24576   ;;  %vm1261_vm8 = vcmask 60448  }
  0x28   : > { %v287_v30 = vld [vmem:[#allocation2 + $0x8] sm:$0x1]  ;;  %v1521_v58 = vshrl.u32 %v1451_v49, 16  ;;  %v2085_v1 = vld [vmem:[#allocation2 + $0x4] sm:$0xf]  ;;  %vm4139_vm4 = vmand %vm703_vm1, %vm229_vm0  ;;  %vm1268_vm9 = vcmask 57376  }
  0x29   : > { %v288_v32 = vsel %vm4031_vm6, 0, %v287_v30  ;;  %v1111_v56 = vrot.slane %v1109_v46, 7  ;;  %v2197_v6 = vrot.slane %v2085_v1, 5  ;;  %v2084_v20 = vld [vmem:[#allocation2] sm:$0xe]  ;;  %vm4173_vm10 = vmand %vm1261_vm8, %vm285_vm5  ;;  %vm2429_vm5 = vcmask 191616  }
  0x2a   : > { %289 = vst [vmem:[#allocation2 + $0x8] sm:$0x1] %v288_v32  ;;  %v1523_v63 = vrot.slane %v1521_v58, 4  ;;  %v231_v22 = vld [vmem:[#allocation2] sm:$0x1]  ;;  %v3570_v30 = vrot.slane %v2084_v20, 9  ;;  %vm4182_vm11 = vmand %vm1268_vm9, %vm229_vm0 }
  0x2b   : > { %v1114_v61 = vor.u32 %v1112_v52, %v1111_v56  ;;  %v2199_v12 = vrot.slane %v2197_v6, 4  ;;  %v232_v27 = vsel %vm4047_vm7, 0, %v231_v22  ;;  %v583_v52 = vshll.u32 %v365_v42, 16 }
  0x2c   : > { %233 = vst [vmem:[#allocation2] sm:$0x1] %v232_v27  ;;  %vm2047_vm0 = vcmask 126016   ;;  %vm2676_vm1 = vcmask 1043456   ;;  %vm2627_vm9 = vcmask 195584  }
  0x2d   : > { %1129 = vrot.lane.b32.xlu0 %v885_v54, %s3930_s21  ;;  %v927_v54 = vor.u32 %v925_v43, %v924_v48  ;;  %v708_v29 = vld [vmem:[#allocation2 + $0x18] sm:$0xf]  ;;  %v2198_v43 = vsel %vm4079_vm13, %v3570_v30, %v2197_v6 }
  0x2e   : > { %1195 = vrot.lane.b32.xlu1 %v1072_v57, %s3930_s21  ;;  %v1517_v57 = vshll.u32 %v1451_v49, 16 }
  0x2f   : > { %1131 = vrot.lane.b32.xlu2 %v894_v60, %s3930_s21  ;;  %v928_v59 = vsel %vm3982_vm2, %v920_v53, %v927_v54  ;;  %v1107_v60 = vrot.slane %v1103_v44, 4  ;;  %v234_v53 = vld [vmem:[#allocation2 + $0xc] sm:$0x1] }
  0x30   : > { %v4060_v62 = vrot.slane %v1517_v57, 5  ;;  %v824_v57 = vld [vmem:[%s3973_s20 + $0x2c] sm:$0xf]  ;;  %v235_v58 = vsel %vm4047_vm7, 0, %v234_v53 }
  0x31   : > { %v1452_v0 = vld [vmem:[#allocation2 + $0x8] sm:$0x1]  ;;  %v1115_v2 = vsel %vm3982_vm2, %v1107_v60, %v1114_v61  ;;  %v4117_v60 = vld [vmem:[%s3973_s20 + $0x58] sm:$0xf]  ;;  %v836_v61 = vld [vmem:[%s3973_s20 + $0x5c] sm:$0xf] }
  0x32   : > { %v1527_v5 = vshll.u32 %v1452_v0, 16  ;;  %v2086_v7 = vld [vmem:[#allocation2 + $0x8] sm:$0x1]  ;;  %236 = vst [vmem:[#allocation2 + $0xc] sm:$0x1] %v235_v58  ;;  %v1033_v0 = vshrl.u32 %v4117_v60, 16 }
  0x33   : > { %v2200_v13 = vrot.slane %v2086_v7, 5  ;;  %v1041_v1 = vshrl.u32 %v836_v61, 16 }
  0x34   : > { %v1529_v10 = vrot.slane %v1527_v5, 5  ;;  %v942_v5 = vshll.u32 %v824_v57, 16 }
  0x35   : > { %1197 = vrot.lane.b32.xlu0 %v1081_v3, %s3930_s21  ;;  %v929_v3 = vrot.slane %v924_v48, 4  ;;  %v2201_v23 = vsel %vm4079_vm13, %v2199_v12, %v2200_v13  ;;  %v1450_v48 = vld [vmem:[#allocation2] sm:$0xf] }
  0x36   : > { %1133 = vrot.lane.b32.xlu1 %v895_v4, %s3930_s21  ;;  %v1524_v4 = vor.u32 %v1523_v63, %v4060_v62  ;;  %v1508_v49 = vshrl.u32 %v1450_v48, 16  ;;  %v1511_v50 = vshll.u32 %v1450_v48, 16 }
  0x37   : > { %1199 = vrot.lane.b32.xlu2 %v1082_v8, %s3930_s21  ;;  %v1116_v8 = vrot.slane %v1111_v56, 4 }
  0x38   : > { %v1525_v9 = vrot.slane %v1524_v4, 4 }
  0x3a   : > { %v1530_v19 = vsel %vm4074_vm12, %v1525_v9, %v1529_v10  ;;  %v1043_v9 = vrot.slane %v1041_v1, 7 }
  0x3d   : > { %1135 = vrot.lane.b32.xlu0 %v902_v18, %s3930_s21  ;;  %v393_v18 = vshrl.u32 %v343_v17, 16  ;;  %v1510_v17 = vrot.slane %v1508_v49, 4  ;;  %v1036_v49 = vshll.u32 %v4117_v60, 16  ;;  %v273_v60 = vld [vmem:[#allocation2 + $0xa8] sm:$0x1] }
  0x3e   : > { %1201 = vrot.lane.b32.xlu1 %v1089_v21, %s3930_s21  ;;  %v931_v21 = vshrl.u32 %v823_v15, 16  ;;  %v1044_v15 = vshll.u32 %v836_v61, 16  ;;  %v274_v1 = vsel %vm4047_vm7, 0, %v273_v60 }
  0x3f   : > { %1137 = vrot.lane.b32.xlu2 %v911_v24, %s3930_s21  ;;  %v395_v24 = vrot.slane %v393_v18, 7  ;;  %275 = vst [vmem:[#allocation2 + $0xa8] sm:$0x1] %v274_v1 }
  0x40   : > { %v933_v32 = vrot.slane %v931_v21, 7  ;;  %v1513_v21 = vrot.slane %v1511_v50, 5  ;;  %v342_v50 = vld [vmem:[%s4070_s24 + $0x4] sm:$0xf] }
  0x41   : > { %v398_v31 = vor.u32 %v396_v26, %v395_v24  ;;  %v399_v54 = vrot.slane %v395_v24, 4  ;;  %v1046_v26 = vor.u32 %v1044_v15, %v1043_v9  ;;  %v387_v58 = vshll.u32 %v342_v50, 16 }
  0x42   : > { %v936_v44 = vor.u32 %v934_v33, %v933_v32  ;;  %v937_v12 = vrot.slane %v933_v32, 4 }
  0x43   : > { %v709_v36 = vsel %vm4093_vm15, %v398_v31, %v708_v29  ;;  %v326_v29 = vld [vmem:[#allocation2 + $0xa4] sm:$0x1]  ;;  %v1514_v31 = vor.u32 %v1513_v21, %v1510_v17  ;;  %v296_v21 = vld [vmem:[#allocation2 + $0x2c] sm:$0x1] }
  0x44   : > { %710 = vst [vmem:[#allocation2 + $0x18] sm:$0xf] %v709_v36 }
  0x45   : > { %1203 = vrot.lane.b32.xlu0 %v1098_v34, %s3930_s21  ;;  %v270_v34 = vld [vmem:[#allocation2 + $0x9c] sm:$0x1]  ;;  %v1515_v42 = vrot.slane %v1514_v31, 4 }
  0x46   : > { %1139 = vrot.lane.b32.xlu1 %v912_v35, %s3930_s21  ;;  %v293_v35 = vld [vmem:[#allocation2 + $0x20] sm:$0x1]  ;;  %v271_v37 = vsel %vm4047_vm7, 0, %v270_v34  ;;  %v327_v34 = vsel %vm4031_vm6, 0, %v326_v29 }
  0x47   : > { %1205 = vrot.lane.b32.xlu2 %v1099_v39, %s3930_s21  ;;  %v294_v38 = vsel %vm4031_vm6, 0, %v293_v35  ;;  %v344_v39 = vld [vmem:[%s4070_s24 + $0xc] sm:$0xf]  ;;  %272 = vst [vmem:[#allocation2 + $0x9c] sm:$0x1] %v271_v37  ;;  %v1520_v48 = vsel %vm4074_vm12, %v1515_v42, %v4060_v62 }
  0x48   : > { %v401_v41 = vshrl.u32 %v344_v39, 16  ;;  %295 = vst [vmem:[#allocation2 + $0x20] sm:$0x1] %v294_v38  ;;  %v404_v47 = vshll.u32 %v344_v39, 16  ;;  %v698_v35 = vld [vmem:[#allocation2 + $0xc] sm:$0xf] }
  0x49   : > { %328 = vst [vmem:[#allocation2 + $0xa4] sm:$0x1] %v327_v34 }
  0x4a   : > { %v403_v46 = vrot.slane %v401_v41, 7 }
  0x4c   : > { %v408_v56 = vrot.slane %v403_v46, 4 }
  0x4d   : > { %1141 = vrot.lane.b32.xlu0 %v919_v51, %s3930_s21  ;;  %v4109_v51 = vrot.slane %v580_v45, 7 }
  0x4e   : > { %1207 = vrot.lane.b32.xlu1 %v1106_v55, %s3930_s21  ;;  %v406_v55 = vor.u32 %v404_v47, %v403_v46  ;;  %v785_v10 = vld [vmem:[#allocation2 + $0x9c] sm:$0xf]  ;;  %v240_v47 = vld [vmem:[#allocation2 + $0x24] sm:$0x1] }
  0x4f   : > { %1143 = vrot.lane.b32.xlu2 %v928_v59, %s3930_s21  ;;  %v939_v59 = vshrl.u32 %v824_v57, 16  ;;  %v712_v18 = vld [vmem:[#allocation2 + $0x20] sm:$0x1]  ;;  %v586_v38 = vrot.slane %v4109_v51, 4 }
  0x50   : > { %v407_v63 = vsel %vm3982_vm2, %v399_v54, %v406_v55  ;;  %v713_v37 = vsel %vm4139_vm4, %v408_v56, %v712_v18  ;;  %v1048_v54 = vrot.slane %v1043_v9, 4  ;;  %v384_v55 = vshrl.u32 %v342_v50, 16  ;;  %v345_v56 = vld [vmem:[%s4070_s24 + $0x10] sm:$0xf] }
  0x51   : > { %711 = vst.msk [vmem:[#allocation2 + $0x1c] sm:$0xf] %vm696_vm14, %v407_v63  ;;  %v4126_v4 = vrot.slane %v939_v59, 7  ;;  %v410_v62 = vshrl.u32 %v345_v56, 16  ;;  %v413_v59 = vshll.u32 %v345_v56, 16 }
  0x52   : > { %714 = vst [vmem:[#allocation2 + $0x20] sm:$0x1] %v713_v37  ;;  %v386_v57 = vrot.slane %v384_v55, 7  ;;  %v789_v63 = vld [vmem:[#allocation2 + $0xa4] sm:$0x1] }
  0x53   : > { %v944_v13 = vor.u32 %v942_v5, %v4126_v4 }
  0x54   : > { %v389_v9 = vor.u32 %v387_v58, %v386_v57 }
  0x55   : > { %1209 = vrot.lane.b32.xlu0 %v1115_v2, %s3930_s21  ;;  %v585_v2 = vor.u32 %v583_v52, %v4109_v51  ;;  %v945_v24 = vsel %vm3982_vm2, %v937_v12, %v944_v13  ;;  %v241_v51 = vsel %vm4047_vm7, 0, %v240_v47 }
  0x56   : > { %1145 = vrot.lane.b32.xlu1 %v929_v3, %s3930_s21  ;;  %v341_v3 = vld [vmem:[%s4070_s24] sm:$0xf]  ;;  %242 = vst [vmem:[#allocation2 + $0x24] sm:$0x1] %v241_v51 }
  0x57   : > { %1211 = vrot.lane.b32.xlu2 %v1116_v8, %s3930_s21  ;;  %v376_v6 = vshrl.u32 %v341_v3, 16  ;;  %v379_v7 = vshll.u32 %v341_v3, 16  ;;  %v1035_v8 = vrot.slane %v1033_v0, 7  ;;  %v786_v22 = vsel %vm4093_vm15, %v585_v2, %v785_v10  ;;  %v367_v2 = vld [vmem:[%s4070_s24 + $0x68] sm:$0xf] }
  0x58   : > { %787 = vst [vmem:[#allocation2 + $0x9c] sm:$0xf] %v786_v22  ;;  %v412_v0 = vrot.slane %v410_v62, 7  ;;  %v597_v15 = vshrl.u32 %v367_v2, 16  ;;  %v600_v17 = vshll.u32 %v367_v2, 16 }
  0x59   : > { %v1039_v20 = vrot.slane %v1035_v8, 4  ;;  %v1038_v61 = vor.u32 %v1036_v49, %v1035_v8  ;;  %v1277_v5 = vld [vmem:[#allocation2 + $0x20] sm:$0x1]  ;;  %v391_v8 = vrot.slane %v386_v57, 4  ;;  %v329_v22 = vld [vmem:[#allocation2 + $0xb0] sm:$0x1] }
  0x5a   : > { %v415_v13 = vor.u32 %v413_v59, %v412_v0 }
  0x5b   : > { %v1047_v36 = vsel %vm3982_vm2, %v1039_v20, %v1046_v26  ;;  %v599_v26 = vrot.slane %v597_v15, 7 }
  0x5d   : > { %1941 = vrot.lane.b32.xlu0 %v1530_v19, %s3932_s25  ;;  %v4129_v19 = vrot.slane %v376_v6, 7 }
  0x5e   : > { %2323 = vrot.lane.b32.xlu1 %v2201_v23, %s3933_s26  ;;  %v366_v23 = vld [vmem:[%s4070_s24 + $0x64] sm:$0xf] }
  0x5f   : > { %v588_v27 = vshrl.u32 %v366_v23, 16  ;;  %v381_v30 = vor.u32 %v379_v7, %v4129_v19  ;;  %v591_v33 = vshll.u32 %v366_v23, 16  ;;  %1939 = vrot.lane.b32.xlu2 %v1520_v48, %s3932_s25  ;;  %v382_v7 = vrot.slane %v4129_v19, 4  ;;  %v1350_v2 = vld [vmem:[#allocation2 + $0x9c] sm:$0xf] }
  0x61   : > { %v590_v39 = vrot.slane %v588_v27, 7  ;;  %v699_v41 = vsel %vm4093_vm15, %v381_v30, %v698_v35  ;;  %v390_v19 = vsel %vm3982_vm2, %v382_v7, %v389_v9  ;;  %v346_v30 = vld [vmem:[%s4070_s24 + $0x14] sm:$0xf]  ;;  %v368_v35 = vld [vmem:[%s4070_s24 + $0x6c] sm:$0xf] }
  0x62   : > { %700 = vst [vmem:[#allocation2 + $0xc] sm:$0xf] %v699_v41  ;;  %v418_v34 = vshrl.u32 %v346_v30, 16  ;;  %v421_v37 = vshll.u32 %v346_v30, 16  ;;  %v605_v42 = vshrl.u32 %v368_v35, 16 }
  0x63   : > { %v595_v45 = vrot.slane %v590_v39, 4  ;;  %702 = vst.msk [vmem:[#allocation2 + $0x10] sm:$0xf] %vm696_vm14, %v390_v19 }
  0x64   : > { %v420_v41 = vrot.slane %v418_v34, 7  ;;  %v607_v48 = vrot.slane %v605_v42, 7 }
  0x65   : > { %2321 = vrot.lane.b32.xlu0 %v2198_v43, %s3933_s26  ;;  %v290_v43 = vld [vmem:[#allocation2 + $0x14] sm:$0x1]  ;;  %v790_v6 = vsel %vm4139_vm4, %v595_v45, %v789_v63  ;;  %v416_v45 = vrot.slane %v412_v0, 4 }
  0x66   : > { %1147 = vrot.lane.b32.xlu1 %v936_v44, %s3930_s21  ;;  %v593_v44 = vor.u32 %v591_v33, %v590_v39  ;;  %v291_v46 = vsel %vm4031_vm6, 0, %v290_v43  ;;  %791 = vst [vmem:[#allocation2 + $0xa4] sm:$0x1] %v790_v6  ;;  %v602_v33 = vor.u32 %v600_v17, %v599_v26  ;;  %v792_v39 = vld [vmem:[#allocation2 + $0xa8] sm:$0xf]  ;;  %v946_v43 = vrot.slane %v4126_v4, 4 }
  0x67   : > { %292 = vst [vmem:[#allocation2 + $0x14] sm:$0x1] %v291_v46  ;;  %1183 = vrot.lane.b32.xlu2 %v1038_v61, %s3930_s21  ;;  %v423_v46 = vor.u32 %v421_v37, %v420_v41  ;;  %v425_v51 = vrot.slane %v420_v41, 4  ;;  %v612_v56 = vrot.slane %v607_v48, 4 }
  0x68   : > { %v594_v53 = vsel %vm3982_vm2, %v586_v38, %v593_v44  ;;  %v330_v38 = vsel %vm4031_vm6, 0, %v329_v22  ;;  %v793_v44 = vsel %vm4093_vm15, %v602_v33, %v792_v39 }
  0x69   : > { %788 = vst.msk [vmem:[#allocation2 + $0xa0] sm:$0xf] %vm696_vm14, %v594_v53  ;;  %v1263_v10 = vld [vmem:[#allocation2 + $0xc] sm:$0xf]  ;;  %v424_v47 = vsel %vm3982_vm2, %v416_v45, %v423_v46  ;;  %v1273_v53 = vld [vmem:[#allocation2 + $0x18] sm:$0xf] }
  0x6a   : > { %794 = vst [vmem:[#allocation2 + $0xa8] sm:$0xf] %v793_v44 }
  0x6b   : > { %331 = vst [vmem:[#allocation2 + $0xb0] sm:$0x1] %v330_v38 }
  0x6c   : > { %718 = vst.msk [vmem:[#allocation2 + $0x28] sm:$0xf] %vm696_vm14, %v424_v47  ;;  %v243_v47 = vld [vmem:[#allocation2 + $0x30] sm:$0x1] }
  0x6d   : > { %1149 = vrot.lane.b32.xlu0 %v945_v24, %s3930_s21  ;;  %v715_v24 = vld [vmem:[#allocation2 + $0x24] sm:$0xf] }
  0x6e   : > { %1185 = vrot.lane.b32.xlu1 %v1047_v36, %s3930_s21  ;;  %v705_v20 = vld [vmem:[#allocation2 + $0x14] sm:$0x1]  ;;  %v716_v29 = vsel %vm4093_vm15, %v415_v13, %v715_v24  ;;  %v297_v36 = vsel %vm4031_vm6, 0, %v296_v21  ;;  %v1354_v24 = vld [vmem:[#allocation2 + $0xa4] sm:$0x1] }
  0x6f   : > { %v706_v23 = vsel %vm4139_vm4, %v391_v8, %v705_v20  ;;  %717 = vst [vmem:[#allocation2 + $0x24] sm:$0xf] %v716_v29  ;;  %1151 = vrot.lane.b32.xlu2 %v946_v43, %s3930_s21 }
  0x70   : > { %707 = vst [vmem:[#allocation2 + $0x14] sm:$0x1] %v706_v23 }
  0x71   : > { %v1118_v52 = vpop.permute.xlu2 %1117  ;;  %298 = vst [vmem:[#allocation2 + $0x2c] sm:$0x1] %v297_v36 }
  0x72   : > { %v1264_v18 = vsel %vm4173_vm10, %v1118_v52, %v1263_v10  ;;  %v608_v52 = vshll.u32 %v368_v35, 16  ;;  %v796_v60 = vld [vmem:[#allocation2 + $0xb0] sm:$0x1] }
  0x73   : > { %1265 = vst [vmem:[#allocation2 + $0xc] sm:$0xf] %v1264_v18  ;;  %v797_v0 = vsel %vm4139_vm4, %v612_v56, %v796_v60  ;;  %v244_v60 = vsel %vm4047_vm7, 0, %v243_v47 }
  0x74   : > { %v610_v55 = vor.u32 %v608_v52, %v607_v48  ;;  %798 = vst [vmem:[#allocation2 + $0xb0] sm:$0x1] %v797_v0  ;;  %v347_v52 = vld [vmem:[%s4070_s24 + $0x18] sm:$0xf] }
  0x75   : > { %1187 = vrot.lane.b32.xlu0 %v1048_v54, %s3930_s21  ;;  %v603_v54 = vrot.slane %v599_v26, 4  ;;  %245 = vst [vmem:[#allocation2 + $0x30] sm:$0x1] %v244_v60 }
  0x77   : > { %v1270_v50 = vld [vmem:[#allocation2 + $0x14] sm:$0x1]  ;;  %v611_v59 = vsel %vm3982_vm2, %v603_v54, %v610_v55 }
  0x78   : > { %v719_v62 = vld [vmem:[#allocation2 + $0x2c] sm:$0x1]  ;;  %795 = vst.msk [vmem:[#allocation2 + $0xac] sm:$0xf] %vm696_vm14, %v611_v59  ;;  %v427_v59 = vshrl.u32 %v347_v52, 16 }
  0x79   : > { %v1128_v27 = vpop.permute.xlu2 %1127  ;;  %v720_v57 = vsel %vm4139_vm4, %v425_v51, %v719_v62 }
  0x7a   : > { %v1278_v31 = vsel %vm4182_vm11, %v1128_v27, %v1277_v5  ;;  %721 = vst [vmem:[#allocation2 + $0x2c] sm:$0x1] %v720_v57  ;;  %v1453_v5 = vld [vmem:[#allocation2 + $0xc] sm:$0xf]  ;;  %v1357_v57 = vld [vmem:[#allocation2 + $0xa8] sm:$0xf] }
  0x7b   : > { %1279 = vst [vmem:[#allocation2 + $0x20] sm:$0x1] %v1278_v31  ;;  %v1532_v10 = vshrl.u32 %v1453_v5, 16  ;;  %v1535_v18 = vshll.u32 %v1453_v5, 16  ;;  %v1361_v21 = vld [vmem:[#allocation2 + $0xb0] sm:$0x1] }
  0x7c   : > { %v2087_v33 = vld [vmem:[#allocation2 + $0xc] sm:$0xe]  ;;  %v722_v47 = vld [vmem:[#allocation2 + $0x30] sm:$0xf] }
  0x7d   : > { %v1534_v26 = vrot.slane %v1532_v10, 4  ;;  %v1537_v27 = vrot.slane %v1535_v18, 5  ;;  %v3571_v46 = vrot.slane %v2087_v33, 9 }
  0x7f   : > { %v1538_v43 = vor.u32 %v1537_v27, %v1534_v26  ;;  %v276_v27 = vld [vmem:[#allocation2 + $0xb4] sm:$0x1] }
  0x81   : > { %v1122_v49 = vpop.permute.xlu2 %1121  ;;  %v4256_v62 = vrot.slane %v1538_v43, 4 }
  0x82   : > { %v1271_v4 = vsel %vm4182_vm11, %v1122_v49, %v1270_v50  ;;  %v1458_v29 = vld [vmem:[#allocation2 + $0x20] sm:$0x1] }
  0x83   : > { %1272 = vst [vmem:[#allocation2 + $0x14] sm:$0x1] %v1271_v4  ;;  %v4241_v37 = vld [vmem:[#allocation2 + $0x20] sm:$0x1]  ;;  %v1575_v42 = vshll.u32 %v1458_v29, 16 }
  0x84   : > { %v2214_v55 = vrot.slane %v4241_v37, 5  ;;  %v369_v29 = vld [vmem:[%s4070_s24 + $0x70] sm:$0xf] }
  0x85   : > { %v4254_v56 = vrot.slane %v1575_v42, 5 }
  0x87   : > { %v1124_v58 = vpop.permute.xlu0 %1123 }
  0x88   : > { %v1274_v61 = vsel %vm4173_vm10, %v1124_v58, %v1273_v53  ;;  %v1126_v63 = vpop.permute.xlu1 %1125  ;;  %v1280_v53 = vld [vmem:[#allocation2 + $0x24] sm:$0xf] }
  0x89   : > { %1275 = vst [vmem:[#allocation2 + $0x18] sm:$0xf] %v1274_v61  ;;  %v1132_v1 = vpop.permute.xlu2 %1131 }
  0x8a   : > { %1276 = vst.msk [vmem:[#allocation2 + $0x1c] sm:$0xf] %vm1261_vm8, %v1126_v63  ;;  %v2089_v45 = vld [vmem:[#allocation2 + $0x14] sm:$0x1] }
  0x8b   : > { %1283 = vst.msk [vmem:[#allocation2 + $0x28] sm:$0xf] %vm1261_vm8, %v1132_v1  ;;  %v1455_v48 = vld [vmem:[#allocation2 + $0x14] sm:$0x1]  ;;  %v2207_v54 = vrot.slane %v2089_v45, 5 }
  0x8c   : > { %v1551_v61 = vshll.u32 %v1455_v48, 16 }
  0x8f   : > { %v1190_v6 = vpop.permute.xlu0 %1189 }
  0x90   : > { %v1351_v7 = vsel %vm4173_vm10, %v1190_v6, %v1350_v2  ;;  %v1192_v9 = vpop.permute.xlu1 %1191  ;;  %v2090_v8 = vld [vmem:[#allocation2 + $0x18] sm:$0xe]  ;;  %v430_v2 = vshll.u32 %v347_v52, 16 }
  0x91   : > { %v1382_v13 = vld [vmem:[#allocation2 + $0x18] sm:$0xf]  ;;  %1352 = vst [vmem:[#allocation2 + $0x9c] sm:$0xf] %v1351_v7  ;;  %v4226_v15 = vld [vmem:[#allocation2 + $0x1c] sm:$0xf]  ;;  %v1200_v20 = vpop.permute.xlu2 %1199 }
  0x92   : > { %v3572_v17 = vrot.slane %v2090_v8, 9  ;;  %1353 = vst.msk [vmem:[#allocation2 + $0xa0] sm:$0xf] %vm1261_vm8, %v1192_v9  ;;  %v2211_v19 = vrot.slane %v4226_v15, 5  ;;  %v1362_v23 = vsel %vm4182_vm11, %v1200_v20, %v1361_v21  ;;  %v1383_v30 = vld [vmem:[#allocation2 + $0x1c] sm:$0xf] }
  0x93   : > { %1418 = vst.msk [vmem:[#allocation3 + $0x10] sm:$0xf] %vm219_vm3, %v1382_v13  ;;  %v1456_v38 = vld [vmem:[#allocation2 + $0x18] sm:$0xf]  ;;  %v1457_v50 = vld [vmem:[#allocation2 + $0x1c] sm:$0xf] }
  0x94   : > { %v2212_v22 = vsel %vm4079_vm13, %v3572_v17, %v2211_v19  ;;  %1363 = vst [vmem:[#allocation2 + $0xb0] sm:$0x1] %v1362_v23  ;;  %v1556_v51 = vshrl.u32 %v1456_v38, 16  ;;  %v1559_v4 = vshll.u32 %v1456_v38, 16  ;;  %v1569_v58 = vshrl.u32 %v1457_v50, 16 }
  0x95   : > { %2329 = vrot.lane.b32.xlu1 %v2212_v22, %s3933_s26  ;;  %1419 = vst.msk [vmem:[#allocation3 + $0x14] sm:$0xf] %vm219_vm3, %v1383_v30  ;;  %v4260_v0 = vld [vmem:[#allocation2 + $0x28] sm:$0xf]  ;;  %v1565_v1 = vshll.u32 %v1457_v50, 16  ;;  %v4264_v8 = vrot.slane %v427_v59, 7 }
  0x96   : > { %v1558_v7 = vrot.slane %v1556_v51, 4  ;;  %v1561_v9 = vrot.slane %v1559_v4, 5  ;;  %v2218_v20 = vrot.slane %v4260_v0, 5  ;;  %v1571_v21 = vrot.slane %v1569_v58, 4 }
  0x97   : > { %v1194_v31 = vpop.permute.xlu0 %1193  ;;  %v4269_v22 = vrot.slane %v1551_v61, 5  ;;  %v4273_v23 = vrot.slane %v2211_v19, 4  ;;  %v432_v26 = vor.u32 %v430_v2, %v4264_v8  ;;  %v614_v38 = vshrl.u32 %v369_v29, 16 }
  0x98   : > { %v1355_v34 = vsel %vm4182_vm11, %v1194_v31, %v1354_v24  ;;  %v1120_v35 = vpop.permute.xlu1 %1119  ;;  %v2123_v36 = vld [vmem:[#allocation2 + $0x9c] sm:$0xe]  ;;  %v4275_v24 = vrot.slane %v1565_v1, 5  ;;  %v1284_v31 = vld [vmem:[#allocation2 + $0x2c] sm:$0x1]  ;;  %v4287_v15 = vrot.slane %v2218_v20, 4  ;;  %v1562_v19 = vor.u32 %v1561_v9, %v1558_v7 }
  0x99   : > { %1356 = vst [vmem:[#allocation2 + $0xa4] sm:$0x1] %v1355_v34  ;;  %v4243_v39 = vld [vmem:[#allocation2 + $0xa0] sm:$0xf]  ;;  %v3583_v41 = vrot.slane %v2123_v36, 9  ;;  %v433_v51 = vrot.slane %v4264_v8, 4  ;;  %v723_v4 = vsel %vm4093_vm15, %v432_v26, %v722_v47  ;;  %v1138_v61 = vpop.permute.xlu2 %1137 }
  0x9a   : > { %1267 = vst.msk [vmem:[#allocation2 + $0x10] sm:$0xf] %vm1261_vm8, %v1120_v35  ;;  %v2288_v44 = vrot.slane %v4243_v39, 5  ;;  %v1404_v17 = vld [vmem:[#allocation2 + $0x9c] sm:$0xf]  ;;  %v277_v35 = vsel %vm4047_vm7, 0, %v276_v27  ;;  %v1572_v43 = vor.u32 %v1571_v21, %v4275_v24 }
  0x9b   : > { %v4281_v34 = vld [vmem:[#allocation2 + $0x9c] sm:$0xf]  ;;  %1440 = vst.msk [vmem:[#allocation3 + $0x68] sm:$0xf] %vm219_vm3, %v1404_v17  ;;  %v4302_v52 = vrot.slane %v614_v38, 7  ;;  %v617_v58 = vshll.u32 %v369_v29, 16 }
  0x9c   : > { %v2289_v49 = vsel %vm4079_vm13, %v3583_v41, %v2288_v44  ;;  %v348_v36 = vld [vmem:[%s4070_s24 + $0x1c] sm:$0xf]  ;;  %v4290_v41 = vld [vmem:[#allocation2 + $0x28] sm:$0xf]  ;;  %278 = vst [vmem:[#allocation2 + $0xb4] sm:$0x1] %v277_v35 }
  0x9d   : > { %2373 = vrot.lane.b32.xlu0 %v2289_v49, %s3933_s26  ;;  %v435_v45 = vshrl.u32 %v348_v36, 16  ;;  %v4296_v49 = vld [vmem:[#allocation2 + $0xa0] sm:$0xf]  ;;  %v1820_v50 = vshrl.u32 %v4281_v34, 16  ;;  %724 = vst [vmem:[#allocation2 + $0x30] sm:$0xf] %v723_v4  ;;  %v619_v7 = vor.u32 %v617_v58, %v4302_v52 }
  0x9e   : > { %v4310_v2 = vrot.slane %v1562_v19, 4  ;;  %v4317_v8 = vrot.slane %v1572_v43, 4  ;;  %v370_v17 = vld [vmem:[%s4070_s24 + $0x74] sm:$0xf]  ;;  %v620_v43 = vrot.slane %v4302_v52, 4  ;;  %v2290_v47 = vrot.slane %v2288_v44, 4 }
  0x9f   : > { %v1130_v63 = vpop.permute.xlu0 %1129  ;;  %v622_v27 = vshrl.u32 %v370_v17, 16  ;;  %v625_v19 = vshll.u32 %v370_v17, 16 }
  0xa0   : > { %v1281_v5 = vsel %vm4173_vm10, %v1130_v63, %v1280_v53  ;;  %v1196_v6 = vpop.permute.xlu1 %1195  ;;  %v1589_v63 = vshll.u32 %v4290_v41, 16  ;;  %v1491_v37 = vld [vmem:[#allocation2 + $0xa4] sm:$0x1] }
  0xa1   : > { %1282 = vst [vmem:[#allocation2 + $0x24] sm:$0xf] %v1281_v5  ;;  %v1358_v10 = vsel %vm4173_vm10, %v1196_v6, %v1357_v57  ;;  %v2088_v13 = vld [vmem:[#allocation2 + $0x10] sm:$0xf]  ;;  %v4305_v57 = vrot.slane %v435_v45, 7  ;;  %v1823_v5 = vshll.u32 %v4281_v34, 16 }
  0xa2   : > { %1359 = vst [vmem:[#allocation2 + $0xa8] sm:$0xf] %v1358_v10  ;;  %v2204_v18 = vrot.slane %v2088_v13, 5  ;;  %v1381_v0 = vld [vmem:[#allocation2 + $0x10] sm:$0xf]  ;;  %v4319_v10 = vrot.slane %v1820_v50, 4 }
  0xa3   : > { %v332_v13 = vld [vmem:[#allocation2 + $0xbc] sm:$0x1]  ;;  %v1454_v26 = vld [vmem:[#allocation2 + $0x10] sm:$0xf]  ;;  %1417 = vst.msk [vmem:[#allocation3 + $0xc] sm:$0xf] %vm219_vm3, %v1381_v0  ;;  %v4347_v0 = vpop.permute.xlu2 %1205 }
  0xa4   : > { %v2205_v30 = vsel %vm4079_vm13, %v3571_v46, %v2204_v18  ;;  %v2206_v33 = vrot.slane %v2204_v18, 4  ;;  %v438_v46 = vshll.u32 %v348_v36, 16  ;;  %v1829_v18 = vshll.u32 %v4296_v49, 16 }
  0xa5   : > { %2325 = vrot.lane.b32.xlu2 %v2205_v30, %s3933_s26  ;;  %v799_v30 = vld [vmem:[#allocation2 + $0xb4] sm:$0xf]  ;;  %v333_v35 = vsel %vm4031_vm6, 0, %v332_v13  ;;  %v1545_v4 = vshrl.u32 %v1454_v26, 16  ;;  %v1825_v44 = vrot.slane %v1823_v5, 5 }
  0xa6   : > { %v2208_v42 = vsel %vm4079_vm13, %v2206_v33, %v2207_v54  ;;  %v440_v6 = vor.u32 %v438_v46, %v4305_v57  ;;  %v800_v34 = vsel %vm4093_vm15, %v619_v7, %v799_v30  ;;  %v2125_v46 = vld [vmem:[#allocation2 + $0xa4] sm:$0x1]  ;;  %334 = vst [vmem:[#allocation2 + $0xbc] sm:$0x1] %v333_v35  ;;  %v299_v5 = vld [vmem:[#allocation2 + $0x38] sm:$0x1] }
  0xa7   : > { %v1198_v48 = vpop.permute.xlu0 %1197  ;;  %2327 = vrot.lane.b32.xlu0 %v2208_v42, %s3933_s26  ;;  %801 = vst [vmem:[#allocation2 + $0xb4] sm:$0xf] %v800_v34  ;;  %v624_v42 = vrot.slane %v622_v27, 7  ;;  %v350_v34 = vld [vmem:[%s4070_s24 + $0x24] sm:$0xf] }
  0xa8   : > { %1360 = vst.msk [vmem:[#allocation2 + $0xac] sm:$0xf] %vm1261_vm8, %v1198_v48  ;;  %v1134_v53 = vpop.permute.xlu1 %1133  ;;  %v2093_v54 = vld [vmem:[#allocation2 + $0x24] sm:$0xe]  ;;  %v441_v21 = vsel %vm3982_vm2, %v433_v51, %v440_v6  ;;  %v1287_v48 = vld [vmem:[#allocation2 + $0x30] sm:$0xf]  ;;  %v2215_v6 = vsel %vm4079_vm13, %v4273_v23, %v2214_v55 }
  0xa9   : > { %v1285_v59 = vsel %vm4182_vm11, %v1134_v53, %v1284_v31  ;;  %v3573_v60 = vrot.slane %v2093_v54, 9  ;;  %v2126_v1 = vld [vmem:[#allocation2 + $0xa8] sm:$0xe]  ;;  %725 = vst.msk [vmem:[#allocation2 + $0x34] sm:$0xf] %vm696_vm14, %v441_v21  ;;  %v1541_v51 = vshll.u32 %v1454_v26, 16  ;;  %v627_v54 = vor.u32 %v625_v19, %v624_v42 }
  0xaa   : > { %1286 = vst [vmem:[#allocation2 + $0x2c] sm:$0x1] %v1285_v59  ;;  %v3584_v29 = vrot.slane %v2126_v1, 9  ;;  %v4329_v31 = vld [vmem:[#allocation2 + $0xb0] sm:$0x1]  ;;  %v629_v55 = vrot.slane %v624_v42, 4  ;;  %v1826_v19 = vor.u32 %v1825_v44, %v4319_v10 }
  0xab   : > { %v2219_v9 = vsel %vm4079_vm13, %v3573_v60, %v2218_v20  ;;  %v1833_v20 = vshrl.u32 %v4296_v49, 16  ;;  %1290 = vst.msk [vmem:[#allocation2 + $0x34] sm:$0xf] %vm1261_vm8, %v1138_v61  ;;  %v1492_v33 = vld [vmem:[#allocation2 + $0xa8] sm:$0xf]  ;;  %v2298_v39 = vrot.slane %v4329_v31, 5  ;;  %v628_v1 = vsel %vm3982_vm2, %v620_v43, %v627_v54 }
  0xac   : > { %v1844_v52 = vshrl.u32 %v1492_v33, 16  ;;  %v1847_v60 = vshll.u32 %v1492_v33, 16  ;;  %v4345_v61 = vrot.slane %v1829_v18, 5  ;;  %802 = vst.msk [vmem:[#allocation2 + $0xb8] sm:$0xf] %vm696_vm14, %v628_v1  ;;  %v4362_v17 = vrot.slane %v1541_v51, 5 }
  0xad   : > { %2333 = vrot.lane.b32.xlu2 %v2219_v9, %s3933_s26  ;;  %v2291_v9 = vrot.slane %v2125_v46, 5  ;;  %v1835_v13 = vrot.slane %v1833_v20, 4  ;;  %v1547_v18 = vrot.slane %v1545_v4, 4  ;;  %v300_v23 = vsel %vm4031_vm6, 0, %v299_v5  ;;  %v4366_v27 = vld [vmem:[#allocation2 + $0x24] sm:$0xf] }
  0xae   : > { %v1849_v21 = vrot.slane %v1847_v60, 5  ;;  %v1364_v26 = vld [vmem:[#allocation2 + $0xb4] sm:$0xf]  ;;  %v1568_v20 = vsel %vm4074_vm12, %v4310_v2, %v4275_v24  ;;  %301 = vst [vmem:[#allocation2 + $0x38] sm:$0x1] %v300_v23  ;;  %v1839_v2 = vshll.u32 %v1491_v37, 16 }
  0xaf   : > { %v2127_v36 = vld [vmem:[#allocation2 + $0xac] sm:$0xf]  ;;  %v1136_v38 = vpop.permute.xlu0 %1135  ;;  %v4377_v33 = vld [vmem:[%s4070_s24 + $0x20] sm:$0xf]  ;;  %v2292_v24 = vsel %vm4079_vm13, %v2290_v47, %v2291_v9  ;;  %v1548_v43 = vor.u32 %v1547_v18, %v4362_v17  ;;  %v442_v51 = vrot.slane %v4305_v57, 4  ;;  %v1580_v47 = vshrl.u32 %v4366_v27, 16 }
  0xb0   : > { %v2295_v45 = vrot.slane %v2127_v36, 5  ;;  %v1288_v50 = vsel %vm4173_vm10, %v1136_v38, %v1287_v48  ;;  %v1202_v53 = vpop.permute.xlu1 %1201  ;;  %v1836_v36 = vor.u32 %v1835_v13, %v4345_v61  ;;  %v803_v38 = vld [vmem:[#allocation2 + $0xbc] sm:$0x1]  ;;  %v444_v42 = vshrl.u32 %v4377_v33, 16  ;;  %v1493_v46 = vld [vmem:[#allocation2 + $0xac] sm:$0xf] }
  0xb1   : > { %v2095_v49 = vld [vmem:[#allocation2 + $0x2c] sm:$0x1]  ;;  %1289 = vst [vmem:[#allocation2 + $0x30] sm:$0xf] %v1288_v50  ;;  %v1365_v30 = vsel %vm4173_vm10, %v1202_v53, %v1364_v26  ;;  %v804_v48 = vsel %vm4139_vm4, %v629_v55, %v803_v38  ;;  %v455_v50 = vshll.u32 %v350_v34, 16  ;;  %v4396_v4 = vrot.slane %v1589_v63, 5 }
  0xb2   : > { %v2296_v58 = vsel %vm4079_vm13, %v3584_v29, %v2295_v45  ;;  %v2221_v59 = vrot.slane %v2095_v49, 5  ;;  %v4368_v29 = vld [vmem:[#allocation2 + $0xb0] sm:$0x1]  ;;  %v2297_v35 = vrot.slane %v2295_v45, 4  ;;  %1366 = vst [vmem:[#allocation2 + $0xb4] sm:$0xf] %v1365_v30 }
  0xb3   : > { %2377 = vrot.lane.b32.xlu1 %v2296_v58, %s3933_s26  ;;  %805 = vst [vmem:[#allocation2 + $0xbc] sm:$0x1] %v804_v48  ;;  %v4389_v10 = vrot.slane %v444_v42, 7  ;;  %v452_v49 = vshrl.u32 %v350_v34, 16  ;;  %v1863_v54 = vshll.u32 %v4368_v29, 16  ;;  %v1827_v57 = vrot.slane %v1826_v19, 4 }
  0xb4   : > { %v2222_v7 = vsel %vm4079_vm13, %v4287_v15, %v2221_v59  ;;  %v1846_v15 = vrot.slane %v1844_v52, 4  ;;  %v1385_v58 = vld [vmem:[#allocation2 + $0x28] sm:$0xf]  ;;  %v2299_v59 = vsel %vm4079_vm13, %v2297_v35, %v2298_v39  ;;  %v1853_v52 = vshll.u32 %v1493_v46, 16  ;;  %v246_v37 = vld [vmem:[#allocation2 + $0x3c] sm:$0x1] }
  0xb5   : > { %2331 = vrot.lane.b32.xlu2 %v2215_v6, %s3933_s26  ;;  %2335 = vrot.lane.b32.xlu0 %v2222_v7, %s3933_s26  ;;  %v450_v60 = vrot.slane %v4389_v10, 4  ;;  %v4404_v44 = vrot.slane %v452_v49, 7  ;;  %1421 = vst.msk [vmem:[#allocation3 + $0x1c] sm:$0xf] %vm219_vm3, %v1385_v58  ;;  %v1837_v63 = vrot.slane %v1836_v36, 4  ;;  %v1841_v1 = vrot.slane %v1839_v2, 5  ;;  %v1144_v7 = vpop.permute.xlu2 %1143 }
  0xb6   : > { %v1850_v45 = vor.u32 %v1849_v21, %v1846_v15  ;;  %v1857_v6 = vshrl.u32 %v1493_v46, 16  ;;  %v4409_v9 = vrot.slane %v1548_v43, 4  ;;  %v726_v13 = vld [vmem:[#allocation2 + $0x38] sm:$0x1]  ;;  %v4414_v18 = vrot.slane %v1580_v47, 4 }
  0xb7   : > { %v1204_v31 = vpop.permute.xlu0 %1203  ;;  %v457_v5 = vor.u32 %v455_v50, %v4404_v44  ;;  %v1583_v55 = vshll.u32 %v4366_v27, 16  ;;  %v1461_v23 = vld [vmem:[#allocation2 + $0x2c] sm:$0x1]  ;;  %v727_v15 = vsel %vm4139_vm4, %v442_v51, %v726_v13  ;;  %v279_v26 = vld [vmem:[#allocation2 + $0xc0] sm:$0x1]  ;;  %v1593_v30 = vshrl.u32 %v4290_v41, 16 }
  0xb8   : > { %1367 = vst.msk [vmem:[#allocation2 + $0xb8] sm:$0xf] %vm1261_vm8, %v1204_v31  ;;  %v4398_v53 = vpop.permute.xlu1 %1139  ;;  %v4411_v39 = vrot.slane %v1850_v45, 4  ;;  %v4425_v31 = vld [vmem:[%s3973_s20 + $0x30] sm:$0xf]  ;;  %v4430_v27 = vrot.slane %v1857_v6, 4  ;;  %v1578_v41 = vsel %vm4074_vm12, %v4317_v8, %v4254_v56  ;;  %v1832_v8 = vsel %vm4074_vm12, %v1827_v57, %v4345_v61 }
  0xb9   : > { %728 = vst [vmem:[#allocation2 + $0x38] sm:$0x1] %v727_v15  ;;  %v458_v34 = vsel %vm3982_vm2, %v450_v60, %v457_v5  ;;  %v4432_v19 = vld [vmem:[#allocation2 + $0x30] sm:$0xf]  ;;  %v247_v36 = vsel %vm4047_vm7, 0, %v246_v37  ;;  %v1599_v42 = vshll.u32 %v1461_v23, 16 }
  0xba   : > { %v1368_v35 = vld [vmem:[#allocation2 + $0xbc] sm:$0x1]  ;;  %732 = vst.msk [vmem:[#allocation2 + $0x40] sm:$0xf] %vm696_vm14, %v458_v34  ;;  %v371_v2 = vld [vmem:[%s4070_s24 + $0x78] sm:$0xf] }
  0xbb   : > { %2375 = vrot.lane.b32.xlu1 %v2292_v24, %s3933_s26  ;;  %v1369_v38 = vsel %vm4182_vm11, %v4347_v0, %v1368_v35  ;;  %1297 = vst.msk [vmem:[#allocation2 + $0x40] sm:$0xf] %vm1261_vm8, %v1144_v7  ;;  %v280_v24 = vsel %vm4047_vm7, 0, %v279_v26  ;;  %v4448_v43 = vrot.slane %v1583_v55, 5  ;;  %v631_v46 = vshrl.u32 %v371_v2, 16 }
  0xbc   : > { %1370 = vst [vmem:[#allocation2 + $0xbc] sm:$0x1] %v1369_v38  ;;  %v335_v48 = vld [vmem:[#allocation2 + $0xc8] sm:$0x1]  ;;  %v1405_v56 = vld [vmem:[#allocation2 + $0xa0] sm:$0xf]  ;;  %v1842_v0 = vsel %vm4074_vm12, %v1837_v63, %v1841_v1  ;;  %v1544_v63 = vsel %vm4074_vm12, %v4256_v62, %v4362_v17  ;;  %v1554_v26 = vsel %vm4074_vm12, %v4409_v9, %v4269_v22 }
  0xbd   : > { %2379 = vrot.lane.b32.xlu2 %v2299_v59, %s3933_s26  ;;  %1947 = vrot.lane.b32.xlu0 %v1568_v20, %s3932_s25  ;;  %v4421_v20 = vrot.slane %v1853_v52, 5  ;;  %v447_v45 = vshll.u32 %v4377_v33, 16  ;;  %248 = vst [vmem:[#allocation2 + $0x3c] sm:$0x1] %v247_v36  ;;  %v336_v49 = vsel %vm4031_vm6, 0, %v335_v48  ;;  %v948_v51 = vshrl.u32 %v4425_v31, 16  ;;  %v4472_v7 = vpop.permute.xlu2 %1211 }
  0xbe   : > { %v372_v50 = vld [vmem:[%s4070_s24 + $0x7c] sm:$0xf]  ;;  %281 = vst [vmem:[#allocation2 + $0xc0] sm:$0x1] %v280_v24  ;;  %v633_v61 = vrot.slane %v631_v46, 7  ;;  %v634_v58 = vshll.u32 %v371_v2, 16  ;;  %v1586_v29 = vor.u32 %v4448_v43, %v4414_v18 }
  0xbf   : > { %v4419_v21 = vpop.permute.xlu0 %1141  ;;  %v639_v59 = vshrl.u32 %v372_v50, 16  ;;  %v1595_v52 = vrot.slane %v1593_v30, 4  ;;  %v4464_v60 = vrot.slane %v1599_v42, 5  ;;  %v1604_v33 = vshrl.u32 %v4432_v19, 16  ;;  %337 = vst [vmem:[#allocation2 + $0xc8] sm:$0x1] %v336_v49 }
  0xc0   : > { %v4462_v47 = vpop.permute.xlu1 %1207  ;;  %v642_v57 = vshll.u32 %v372_v50, 16  ;;  %v1291_v1 = vld [vmem:[#allocation2 + $0x38] sm:$0x1]  ;;  %v1607_v6 = vshll.u32 %v4432_v19, 16  ;;  %v302_v37 = vld [vmem:[#allocation2 + $0x44] sm:$0x1]  ;;  %v449_v15 = vor.u32 %v447_v45, %v4389_v10  ;;  %v1856_v22 = vsel %vm4074_vm12, %v4411_v39, %v4421_v20 }
  0xc1   : > { %v641_v13 = vrot.slane %v639_v59, 7  ;;  %v951_v55 = vshll.u32 %v4425_v31, 16  ;;  %v1292_v23 = vsel %vm4182_vm11, %v4398_v53, %v1291_v1  ;;  %v4481_v62 = vrot.slane %v1863_v54, 5  ;;  %v1495_v17 = vld [vmem:[#allocation2 + $0xb4] sm:$0xf] }
  0xc2   : > { %1441 = vst.msk [vmem:[#allocation3 + $0x6c] sm:$0xf] %vm219_vm3, %v1405_v56  ;;  %v4488_v30 = vrot.slane %v948_v51, 7  ;;  %v4491_v31 = vld [vmem:[%s3973_s20 + $0x34] sm:$0xf]  ;;  %v636_v53 = vor.u32 %v634_v58, %v633_v61  ;;  %v637_v34 = vrot.slane %v633_v61, 4  ;;  %v1596_v9 = vor.u32 %v1595_v52, %v4396_v4 }
  0xc3   : > { %1949 = vrot.lane.b32.xlu1 %v1578_v41, %s3932_s25  ;;  %1293 = vst [vmem:[#allocation2 + $0x38] sm:$0x1] %v1292_v23  ;;  %v1378_v10 = vld [vmem:[#allocation2] sm:$0xf]  ;;  %v1463_v54 = vld [vmem:[#allocation2 + $0x34] sm:$0xf]  ;;  %v644_v36 = vor.u32 %v642_v57, %v641_v13  ;;  %v1860_v18 = vor.u32 %v4430_v27, %v4421_v20 }
  0xc4   : > { %v646_v35 = vrot.slane %v641_v13, 4  ;;  %v1496_v19 = vld [vmem:[#allocation2 + $0xb8] sm:$0xf]  ;;  %v303_v41 = vsel %vm4031_vm6, 0, %v302_v37  ;;  %v1606_v38 = vrot.slane %v1604_v33, 4  ;;  %v1609_v42 = vrot.slane %v1607_v6, 5 }
  0xc5   : > { %1991 = vrot.lane.b32.xlu2 %v1832_v8, %s3932_s25  ;;  %1993 = vrot.lane.b32.xlu0 %v1842_v0, %s3932_s25  ;;  %v729_v24 = vld [vmem:[#allocation2 + $0x3c] sm:$0xf]  ;;  %304 = vst [vmem:[#allocation2 + $0x44] sm:$0x1] %v303_v41  ;;  %v806_v43 = vld [vmem:[#allocation2 + $0xc0] sm:$0xf]  ;;  %v645_v20 = vsel %vm3982_vm2, %v637_v34, %v644_v36  ;;  %v953_v1 = vor.u32 %v951_v55, %v4488_v30 }
  0xc6   : > { %v730_v2 = vsel %vm4093_vm15, %v449_v15, %v729_v24  ;;  %v1868_v46 = vshrl.u32 %v1495_v17, 16  ;;  %v1871_v48 = vshll.u32 %v1495_v17, 16  ;;  %1414 = vst.msk [vmem:[#allocation3] sm:$0xf] %vm219_vm3, %v1378_v10  ;;  %v807_v39 = vsel %vm4093_vm15, %v636_v53, %v806_v43  ;;  %v810_v56 = vld [vmem:[#allocation2 + $0xc8] sm:$0x1] }
  0xc7   : > { %v1210_v5 = vpop.permute.xlu0 %1209  ;;  %731 = vst [vmem:[#allocation2 + $0x3c] sm:$0xf] %v730_v2  ;;  %v1877_v8 = vshll.u32 %v1496_v19, 16  ;;  %v1881_v0 = vshrl.u32 %v1496_v19, 16  ;;  %v1587_v27 = vrot.slane %v1586_v29, 4  ;;  %v956_v45 = vshrl.u32 %v4491_v31, 16 }
  0xc8   : > { %v1617_v49 = vshrl.u32 %v1463_v54, 16  ;;  %808 = vst [vmem:[#allocation2 + $0xc0] sm:$0xf] %v807_v39  ;;  %v811_v50 = vsel %vm4139_vm4, %v646_v35, %v810_v56  ;;  %v1597_v51 = vrot.slane %v1596_v9, 4  ;;  %v459_v61 = vrot.slane %v4404_v44, 4  ;;  %v4518_v59 = vpop.permute.xlu1 %1145  ;;  %v1940_v44 = vpop.permute.xlu2 %1939 }
  0xc9   : > { %v1613_v58 = vshll.u32 %v1463_v54, 16  ;;  %812 = vst [vmem:[#allocation2 + $0xc8] sm:$0x1] %v811_v50  ;;  %v4520_v52 = vrot.slane %v1860_v18, 4  ;;  %v1610_v33 = vor.u32 %v1609_v42, %v1606_v38  ;;  %v1870_v57 = vrot.slane %v1868_v46, 4 }
  0xca   : > { %809 = vst.msk [vmem:[#allocation2 + $0xc4] sm:$0xf] %vm696_vm14, %v645_v20  ;;  %v4524_v6 = vrot.slane %v1877_v8, 5  ;;  %v1497_v13 = vld [vmem:[#allocation2 + $0xbc] sm:$0x1]  ;;  %v1883_v37 = vrot.slane %v1881_v0, 4  ;;  %v1592_v15 = vsel %vm4074_vm12, %v1587_v27, %v4396_v4  ;;  %v1602_v4 = vsel %vm4074_vm12, %v1597_v51, %v4464_v60 }
  0xcb   : > { %1943 = vrot.lane.b32.xlu1 %v1544_v63, %s3932_s25  ;;  %v1873_v63 = vrot.slane %v1871_v48, 5  ;;  %1374 = vst.msk [vmem:[#allocation2 + $0xc4] sm:$0xf] %vm1261_vm8, %v1210_v5  ;;  %v958_v17 = vrot.slane %v956_v45, 7  ;;  %v1619_v53 = vrot.slane %v1617_v49, 4  ;;  %v1615_v55 = vrot.slane %v1613_v58, 5 }
  0xcc   : > { %2048 = vst.msk [vmem:[#allocation3] sm:$0xf] %vm2047_vm0, %v1940_v44  ;;  %v959_v34 = vshll.u32 %v4491_v31, 16  ;;  %v4535_v5 = vld [vmem:[#allocation2 + $0x34] sm:$0xf]  ;;  %v1611_v54 = vrot.slane %v1610_v33, 4  ;;  %v1866_v39 = vsel %vm4074_vm12, %v4520_v52, %v4481_v62 }
  0xcd   : > { %1945 = vrot.lane.b32.xlu2 %v1554_v26, %s3932_s25  ;;  %1995 = vrot.lane.b32.xlu0 %v1856_v22, %s3932_s25  ;;  %v733_v26 = vld [vmem:[#allocation2 + $0x44] sm:$0x1]  ;;  %v1887_v19 = vshll.u32 %v1497_v13, 16  ;;  %v1874_v41 = vor.u32 %v1873_v63, %v1870_v57  ;;  %v1884_v22 = vor.u32 %v1883_v37, %v4524_v6  ;;  %v267_v60 = vld [vmem:[#allocation2 + $0x90] sm:$0x1]  ;;  %v1620_v42 = vor.u32 %v1619_v53, %v1615_v55 }
  0xce   : > { %v734_v10 = vsel %vm4139_vm4, %v459_v61, %v733_v26  ;;  %v1379_v29 = vld [vmem:[#allocation2 + $0x4] sm:$0xf]  ;;  %v1294_v35 = vld [vmem:[#allocation2 + $0x3c] sm:$0xf]  ;;  %v2225_v24 = vrot.slane %v4535_v5, 5  ;;  %v963_v43 = vrot.slane %v958_v17, 4  ;;  %v1616_v56 = vsel %vm4074_vm12, %v1611_v54, %v1615_v55 }
  0xcf   : > { %v1942_v23 = vpop.permute.xlu0 %1941  ;;  %735 = vst [vmem:[#allocation2 + $0x44] sm:$0x1] %v734_v10  ;;  %v1295_v31 = vsel %vm4173_vm10, %v4419_v21, %v1294_v35  ;;  %v1371_v36 = vld [vmem:[#allocation2 + $0xc0] sm:$0xf]  ;;  %v1464_v18 = vld [vmem:[#allocation2 + $0x38] sm:$0x1]  ;;  %v961_v62 = vor.u32 %v959_v34, %v958_v17 }
  0xd0   : > { %1415 = vst.msk [vmem:[#allocation3 + $0x4] sm:$0xf] %vm219_vm3, %v1379_v29  ;;  %v1372_v9 = vsel %vm4173_vm10, %v4462_v47, %v1371_v36  ;;  %v1375_v38 = vld [vmem:[#allocation2 + $0xc8] sm:$0x1]  ;;  %v363_v2 = vld [vmem:[%s4070_s24 + $0x58] sm:$0xf] }
  0xd1   : > { %1296 = vst [vmem:[#allocation2 + $0x3c] sm:$0xf] %v1295_v31  ;;  %v1376_v21 = vsel %vm4182_vm11, %v4472_v7, %v1375_v38  ;;  %v954_v46 = vrot.slane %v4488_v30, 4  ;;  %v268_v48 = vsel %vm4047_vm7, 0, %v267_v60  ;;  %v563_v47 = vshrl.u32 %v363_v2, 16  ;;  %v2324_v30 = vpop.permute.xlu1 %2323 }
  0xd2   : > { %1373 = vst [vmem:[#allocation2 + $0xc0] sm:$0xf] %v1372_v9  ;;  %v4564_v8 = vrot.slane %v1874_v41, 4  ;;  %v4566_v7 = vrot.slane %v1887_v19, 5  ;;  %v2098_v0 = vld [vmem:[#allocation2 + $0x38] sm:$0x1] }
  0xd3   : > { %1951 = vrot.lane.b32.xlu1 %v1592_v15, %s3932_s25  ;;  %1377 = vst [vmem:[#allocation2 + $0xc8] sm:$0x1] %v1376_v21  ;;  %v1885_v20 = vrot.slane %v1884_v22, 4  ;;  %v4569_v27 = vrot.slane %v1620_v42, 4  ;;  %v1623_v45 = vshll.u32 %v1464_v18, 16  ;;  %v2227_v49 = vrot.slane %v2225_v24, 4 }
  0xd4   : > { %2049 = vst.msk [vmem:[#allocation3 + $0x4] sm:$0xf] %vm2047_vm0, %v1942_v23  ;;  %v2129_v50 = vld [vmem:[#allocation2 + $0xb4] sm:$0xe]  ;;  %v4575_v61 = vrot.slane %v563_v47, 7  ;;  %v566_v58 = vshll.u32 %v363_v2, 16  ;;  %v962_v15 = vsel %vm3982_vm2, %v954_v46, %v961_v62  ;;  %v1880_v31 = vsel %vm4074_vm12, %v4564_v8, %v4524_v6  ;;  %v1184_v62 = vpop.permute.xlu2 %1183 }
  0xd5   : > { %1953 = vrot.lane.b32.xlu2 %v1602_v4, %s3932_s25  ;;  %1153 = vrot.lane.b32.xlu0 %v953_v1, %s3930_s21  ;;  %2431 = vst.msk [vmem:[#allocation3 + $0x4] sm:$0xf] %vm2429_vm5, %v2324_v30  ;;  %v4580_v57 = vld [vmem:[#allocation2 + $0xb8] sm:$0xf]  ;;  %v249_v63 = vld [vmem:[#allocation2 + $0x48] sm:$0x1]  ;;  %v1890_v36 = vsel %vm4074_vm12, %v1885_v20, %v4566_v7 }
  0xd6   : > { %v1298_v51 = vld [vmem:[#allocation2 + $0x44] sm:$0x1]  ;;  %269 = vst [vmem:[#allocation2 + $0x90] sm:$0x1] %v268_v48  ;;  %v2228_v1 = vrot.slane %v2098_v0, 5  ;;  %v250_v13 = vsel %vm4047_vm7, 0, %v249_v63  ;;  %v568_v53 = vor.u32 %v566_v58, %v4575_v61 }
  0xd7   : > { %v2322_v52 = vpop.permute.xlu0 %2321  ;;  %v1299_v33 = vsel %vm4182_vm11, %v4518_v59, %v1298_v51  ;;  %v351_v37 = vld [vmem:[%s4070_s24 + $0x28] sm:$0xf]  ;;  %v4589_v44 = vld [vmem:[%s3973_s20 + $0x38] sm:$0xf]  ;;  %251 = vst [vmem:[#allocation2 + $0x48] sm:$0x1] %v250_v13 }
  0xd8   : > { %2430 = vst.msk [vmem:[#allocation3] sm:$0xf] %vm2429_vm5, %v2322_v52  ;;  %v461_v59 = vshrl.u32 %v351_v37, 16  ;;  %v464_v23 = vshll.u32 %v351_v37, 16  ;;  %v4593_v17 = vrot.slane %v1623_v45, 5  ;;  %v3585_v26 = vrot.slane %v2129_v50, 9 }
  0xd9   : > { %1300 = vst [vmem:[#allocation2 + $0x44] sm:$0x1] %v1299_v33  ;;  %v305_v55 = vld [vmem:[#allocation2 + $0x50] sm:$0x1]  ;;  %v352_v34 = vld [vmem:[%s4070_s24 + $0x2c] sm:$0xf]  ;;  %v2229_v42 = vsel %vm4079_vm13, %v2227_v49, %v2228_v1  ;;  %v4632_v48 = vpop.permute.xlu1 %1147 }
  0xda   : > { %v2302_v10 = vrot.slane %v4580_v57, 5  ;;  %v463_v29 = vrot.slane %v461_v59, 7  ;;  %v306_v4 = vsel %vm4031_vm6, 0, %v305_v55  ;;  %v469_v54 = vshrl.u32 %v352_v34, 16  ;;  %v4600_v35 = vld [vmem:[#allocation2 + $0x30] sm:$0xe] }
  0xdb   : > { %1997 = vrot.lane.b32.xlu1 %v1866_v39, %s3932_s25  ;;  %v965_v19 = vshrl.u32 %v4589_v44, 16  ;;  %307 = vst [vmem:[#allocation2 + $0x50] sm:$0x1] %v306_v4  ;;  %v4611_v22 = vld [vmem:[%s3973_s20 + $0x3c] sm:$0xf]  ;;  %v1626_v38 = vsel %vm4074_vm12, %v4569_v27, %v4593_v17  ;;  %v968_v46 = vshll.u32 %v4589_v44, 16 }
  0xdc   : > { %v466_v60 = vor.u32 %v464_v23, %v463_v29  ;;  %v471_v9 = vrot.slane %v469_v54, 7  ;;  %v364_v21 = vld [vmem:[%s4070_s24 + $0x5c] sm:$0xf]  ;;  %v2500_v18 = vld [vmem:[%s5353_s2 + $0x8] sm:$0xf]  ;;  %v2303_v2 = vsel %vm4079_vm13, %v3585_v26, %v2302_v10  ;;  %v973_v8 = vshrl.u32 %v4611_v22, 16 }
  0xdd   : > { %1157 = vrot.lane.b32.xlu2 %v963_v43, %s3930_s21  ;;  %1955 = vrot.lane.b32.xlu0 %v1616_v56, %s3932_s25  ;;  %v778_v41 = vld [vmem:[#allocation2 + $0x90] sm:$0xf]  ;;  %v3574_v43 = vrot.slane %v4600_v35, 9  ;;  %v1465_v47 = vld [vmem:[#allocation2 + $0x3c] sm:$0xf]  ;;  %v2854_v39 = vunpack.c.l.b16 %v2500_v18  ;;  %v4636_v56 = vrot.slane %v965_v19, 7 }
  0xde   : > { %v779_v6 = vsel %vm4093_vm15, %v568_v53, %v778_v41  ;;  %v976_v7 = vshll.u32 %v4611_v22, 16  ;;  %v736_v0 = vld [vmem:[#allocation2 + $0x48] sm:$0xf]  ;;  %v476_v30 = vrot.slane %v471_v9, 4  ;;  %v1466_v27 = vld [vmem:[#allocation2 + $0x40] sm:$0xf] }
  0xdf   : > { %780 = vst [vmem:[#allocation2 + $0x90] sm:$0xf] %v779_v6  ;;  %v737_v20 = vsel %vm4093_vm15, %v466_v60, %v736_v0  ;;  %v467_v45 = vrot.slane %v463_v29, 4  ;;  %v472_v49 = vshll.u32 %v352_v34, 16  ;;  %v571_v50 = vshrl.u32 %v364_v21, 16  ;;  %v4659_v34 = vld [vmem:[%s5353_s2] sm:$0xff]  ;;  %v1150_v4 = vpop.permute.xlu0 %1149 }
  0xe0   : > { %738 = vst [vmem:[#allocation2 + $0x48] sm:$0xf] %v737_v20  ;;  %v1628_v51 = vshrl.u32 %v1465_v47, 16  ;;  %v1631_v58 = vshll.u32 %v1465_v47, 16  ;;  %v569_v52 = vrot.slane %v4575_v61, 4  ;;  %v574_v33 = vshll.u32 %v364_v21, 16 }
  0xe1   : > { %v474_v1 = vor.u32 %v472_v49, %v471_v9  ;;  %v4643_v13 = vrot.slane %v571_v50, 7  ;;  %v2856_v37 = vpack.c.b16 %v2854_v39, %v2854_v39  ;;  %v4645_v59 = vrot.slane %v973_v8, 7  ;;  %v323_v54 = vld [vmem:[#allocation2 + $0x98] sm:$0x1]  ;;  %v1467_v60 = vld [vmem:[#allocation2 + $0x44] sm:$0x1]  ;;  %v1186_v21 = vpop.permute.xlu1 %1185 }
  0xe2   : > { %v740_v63 = vld [vmem:[#allocation2 + $0x50] sm:$0x1]  ;;  %v1641_v17 = vshrl.u32 %v1466_v27, 16  ;;  %v971_v26 = vrot.slane %v4636_v56, 4  ;;  %v324_v18 = vsel %vm4031_vm6, 0, %v323_v54  ;;  %v3851_v47 = vld [vmem:[#allocation3] sm:$0xff]  ;;  %v2226_v39 = vsel %vm4079_vm13, %v3574_v43, %v2225_v24 }
  0xe3   : > { %1155 = vrot.lane.b32.xlu1 %v962_v15, %s3930_s21  ;;  %v741_v23 = vsel %vm4139_vm4, %v476_v30, %v740_v63  ;;  %v1637_v15 = vshll.u32 %v1466_v27, 16  ;;  %v475_v61 = vsel %vm3982_vm2, %v467_v45, %v474_v1  ;;  %v576_v53 = vor.u32 %v574_v33, %v4643_v13  ;;  %v2131_v8 = vld [vmem:[#allocation2 + $0xbc] sm:$0x1]  ;;  %325 = vst [vmem:[#allocation2 + $0x98] sm:$0x1] %v324_v18 }
  0xe4   : > { %742 = vst [vmem:[#allocation2 + $0x50] sm:$0x1] %v741_v23  ;;  %v4654_v55 = vsel %vm2676_vm1, %v2856_v37, 0  ;;  %v1643_v9 = vrot.slane %v1641_v17, 4  ;;  %v1647_v27 = vshll.u32 %v1467_v60, 16  ;;  %v2304_v44 = vrot.slane %v2302_v10, 4 }
  0xe5   : > { %1999 = vrot.lane.b32.xlu2 %v1880_v31, %s3932_s25  ;;  %2001 = vrot.lane.b32.xlu0 %v1890_v36, %s3932_s25  ;;  %739 = vst.msk [vmem:[#allocation2 + $0x4c] sm:$0xf] %vm696_vm14, %v475_v61  ;;  %v1630_v31 = vrot.slane %v1628_v51, 4  ;;  %v1633_v36 = vrot.slane %v1631_v58, 5  ;;  %v577_v41 = vsel %vm3982_vm2, %v569_v52, %v576_v53  ;;  %v4671_v22 = vrot.slane %v1637_v15, 5 }
  0xe6   : > { %v1343_v29 = vld [vmem:[#allocation2 + $0x90] sm:$0xf]  ;;  %2915 = vmatpush.bf16.msra.mxu1 %v4654_v55  ;;  %1304 = vst.msk [vmem:[#allocation2 + $0x4c] sm:$0xf] %vm1261_vm8, %v1150_v4  ;;  %v1649_v49 = vrot.slane %v1647_v27, 5  ;;  %v578_v50 = vrot.slane %v4643_v13, 4 }
  0xe7   : > { %v1344_v19 = vsel %vm4173_vm10, %v1184_v62, %v1343_v29  ;;  %v1301_v6 = vld [vmem:[#allocation2 + $0x48] sm:$0xf]  ;;  %781 = vst.msk [vmem:[#allocation2 + $0x94] sm:$0xf] %vm696_vm14, %v577_v41  ;;  %v1634_v30 = vor.u32 %v1633_v36, %v1630_v31  ;;  %v1644_v20 = vor.u32 %v1643_v9, %v4671_v22  ;;  %v1380_v62 = vld [vmem:[#allocation2 + $0xc] sm:$0xf] }
  0xe8   : > { %1345 = vst [vmem:[#allocation2 + $0x90] sm:$0xf] %v1344_v19  ;;  %v1406_v52 = vld [vmem:[#allocation2 + $0xa8] sm:$0xf]  ;;  %v1498_v57 = vld [vmem:[#allocation2 + $0xc0] sm:$0xf] }
  0xe9   : > { %1346 = vst.msk [vmem:[#allocation2 + $0x94] sm:$0xf] %vm1261_vm8, %v1186_v21  ;;  %v1645_v45 = vrot.slane %v1644_v20, 4  ;;  %v1500_v33 = vld [vmem:[#allocation2 + $0xc8] sm:$0x1]  ;;  %v1892_v29 = vshrl.u32 %v1498_v57, 16 }
  0xea   : > { %2916 = vmatpush.bf16.msra.mxu1 %v4659_v34  ;;  %1416 = vst.msk [vmem:[#allocation3 + $0x8] sm:$0xf] %vm219_vm3, %v1380_v62  ;;  %v782_v63 = vld [vmem:[#allocation2 + $0x98] sm:$0x1]  ;;  %v1384_v1 = vld [vmem:[#allocation2 + $0x24] sm:$0xf] }
  0xeb   : > { %1957 = vrot.lane.b32.xlu1 %v1626_v38, %s3932_s25  ;;  %v978_v38 = vor.u32 %v976_v7, %v4645_v59  ;;  %v970_v7 = vor.u32 %v968_v46, %v4636_v56  ;;  %v1305_v0 = vld [vmem:[#allocation2 + $0x50] sm:$0x1]  ;;  %v2305_v46 = vrot.slane %v2131_v8, 5  ;;  %v1635_v56 = vrot.slane %v1634_v30, 4  ;;  %1442 = vst.msk [vmem:[#allocation3 + $0x70] sm:$0xf] %vm219_vm3, %v1406_v52 }
  0xec   : > { %v1407_v37 = vld [vmem:[#allocation2 + $0xac] sm:$0xf]  ;;  %v1650_v23 = vsel %vm4074_vm12, %v1645_v45, %v1649_v49  ;;  %v2099_v15 = vld [vmem:[#allocation2 + $0x3c] sm:$0xe]  ;;  %v2100_v17 = vld [vmem:[#allocation2 + $0x40] sm:$0xf] }
  0xed   : > { %2339 = vrot.lane.b32.xlu2 %v2229_v42, %s3933_s26  ;;  %2381 = vrot.lane.b32.xlu0 %v2303_v2, %s3933_s26  ;;  %v1302_v42 = vsel %vm4173_vm10, %v4632_v48, %v1301_v6  ;;  %v1499_v2 = vld [vmem:[#allocation2 + $0xc4] sm:$0xf]  ;;  %v1152_v48 = vpop.permute.xlu2 %1151  ;;  %v979_v5 = vsel %vm3982_vm2, %v971_v26, %v978_v38  ;;  %v2306_v10 = vsel %vm4079_vm13, %v2304_v44, %v2305_v46  ;;  %v1911_v53 = vshll.u32 %v1500_v33, 16  ;;  %v1188_v38 = vpop.permute.xlu0 %1187 }
  0xee   : > { %1303 = vst [vmem:[#allocation2 + $0x48] sm:$0xf] %v1302_v42  ;;  %v1306_v35 = vsel %vm4182_vm11, %v1152_v48, %v1305_v0  ;;  %v1901_v24 = vshll.u32 %v1499_v2, 16  ;;  %v1905_v43 = vshrl.u32 %v1499_v2, 16  ;;  %3743 = vmatmul.msk.bf16.vlgmr.msra.gmra.mxu1 %vm2627_vm9, %v3851_v47  ;;  %v1640_v13 = vsel %vm4074_vm12, %v1635_v56, %v4671_v22  ;;  %v2133_v21 = vld [vmem:[#allocation2 + $0xc4] sm:$0xf] }
  0xef   : > { %1307 = vst [vmem:[#allocation2 + $0x50] sm:$0x1] %v1306_v35  ;;  %v783_v26 = vsel %vm4139_vm4, %v578_v50, %v782_v63  ;;  %v1895_v4 = vshll.u32 %v1498_v57, 16  ;;  %v3575_v54 = vrot.slane %v2099_v15, 9  ;;  %v2232_v19 = vrot.slane %v2100_v17, 5 }
  0xf0   : > { %v4703_v51 = vrot.slane %v1901_v24, 5  ;;  %v1907_v58 = vrot.slane %v1905_v43, 4  ;;  %1420 = vst.msk [vmem:[#allocation3 + $0x18] sm:$0xf] %vm219_vm3, %v1384_v1  ;;  %v1913_v36 = vrot.slane %v1911_v53, 5  ;;  %v1894_v41 = vrot.slane %v1892_v29, 4 }
  0xf1   : > { %784 = vst [vmem:[#allocation2 + $0x98] sm:$0x1] %v783_v26  ;;  %v1897_v22 = vrot.slane %v1895_v4, 5  ;;  %v980_v9 = vrot.slane %v4645_v59, 4  ;;  %v2233_v47 = vsel %vm4079_vm13, %v3575_v54, %v2232_v19  ;;  %v830_v8 = vld [vmem:[%s3973_s20 + $0x44] sm:$0xf] }
  0xf2   : > { %v1908_v61 = vor.u32 %v1907_v58, %v4703_v51  ;;  %1443 = vst.msk [vmem:[#allocation3 + $0x74] sm:$0xf] %vm219_vm3, %v1407_v37  ;;  %v2134_v59 = vld [vmem:[#allocation2 + $0xc8] sm:$0x1]  ;;  %v2132_v48 = vld [vmem:[#allocation2 + $0xc0] sm:$0xe] }
  0xf3   : > { %2337 = vrot.lane.b32.xlu1 %v2226_v39, %s3933_s26  ;;  %v1898_v2 = vor.u32 %v1897_v22, %v1894_v41  ;;  %v4732_v39 = vld [vmem:[%s3973_s20 + $0x40] sm:$0xf]  ;;  %v990_v30 = vshrl.u32 %v830_v8, 16  ;;  %v1469_v35 = vld [vmem:[#allocation2 + $0x4c] sm:$0xf]  ;;  %v3586_v44 = vrot.slane %v2132_v48, 9 }
  0xf4   : > { %v1909_v31 = vrot.slane %v1908_v61, 4  ;;  %v982_v0 = vshrl.u32 %v4732_v39, 16  ;;  %v1486_v43 = vld [vmem:[#allocation2 + $0x90] sm:$0xf]  ;;  %v993_v46 = vshll.u32 %v830_v8, 16  ;;  %v1661_v50 = vshll.u32 %v1469_v35, 16 }
  0xf5   : > { %1159 = vrot.lane.b32.xlu2 %v970_v7, %s3930_s21  ;;  %1161 = vrot.lane.b32.xlu0 %v979_v5, %s3930_s21  ;;  %v2309_v7 = vrot.slane %v2133_v21, 5  ;;  %v1899_v20 = vrot.slane %v1898_v2, 4  ;;  %v2312_v5 = vrot.slane %v2134_v59, 5  ;;  %v2101_v56 = vld [vmem:[#allocation2 + $0x44] sm:$0x1]  ;;  %v992_v49 = vrot.slane %v990_v30, 7 }
  0xf6   : > { %v1914_v18 = vsel %vm4074_vm12, %v1909_v31, %v1913_v36  ;;  %v984_v45 = vrot.slane %v982_v0, 7  ;;  %v1665_v62 = vshrl.u32 %v1469_v35, 16  ;;  %v1796_v33 = vshrl.u32 %v1486_v43, 16  ;;  %v1470_v15 = vld [vmem:[#allocation2 + $0x50] sm:$0x1] }
  0xf7   : > { %v2311_v27 = vrot.slane %v2309_v7, 4  ;;  %v1904_v58 = vsel %vm4074_vm12, %v1899_v20, %v4703_v51  ;;  %v1799_v57 = vshll.u32 %v1486_v43, 16  ;;  %v2234_v63 = vrot.slane %v2232_v19, 4  ;;  %v1487_v53 = vld [vmem:[#allocation2 + $0x94] sm:$0xf] }
  0xf8   : > { %v1347_v6 = vld [vmem:[#allocation2 + $0x98] sm:$0x1]  ;;  %v2235_v1 = vrot.slane %v2101_v56, 5  ;;  %v988_v37 = vrot.slane %v984_v45, 4  ;;  %v1667_v51 = vrot.slane %v1665_v62, 4  ;;  %v1798_v17 = vrot.slane %v1796_v33, 4 }
  0xf9   : > { %v1348_v42 = vsel %vm4182_vm11, %v1188_v38, %v1347_v6  ;;  %v2313_v52 = vsel %vm4079_vm13, %v2311_v27, %v2312_v5  ;;  %v1801_v26 = vrot.slane %v1799_v57, 5  ;;  %v1468_v29 = vld [vmem:[#allocation2 + $0x48] sm:$0xf]  ;;  %v997_v19 = vrot.slane %v992_v49, 4  ;;  %v2103_v0 = vld [vmem:[#allocation2 + $0x4c] sm:$0xf] }
  0xfa   : > { %1349 = vst [vmem:[#allocation2 + $0x98] sm:$0x1] %v1348_v42  ;;  %v2236_v4 = vsel %vm4079_vm13, %v2234_v63, %v2235_v1  ;;  %v1671_v36 = vshll.u32 %v1470_v15, 16  ;;  %v1805_v22 = vshll.u32 %v1487_v53, 16  ;;  %v1655_v38 = vshll.u32 %v1468_v29, 16 }
  0xfb   : > { %2383 = vrot.lane.b32.xlu1 %v2306_v10, %s3933_s26  ;;  %v2310_v10 = vsel %vm4079_vm13, %v3586_v44, %v2309_v7  ;;  %v1802_v41 = vor.u32 %v1801_v26, %v1798_v17  ;;  %v985_v6 = vshll.u32 %v4732_v39, 16  ;;  %v308_v30 = vld [vmem:[#allocation2 + $0x5c] sm:$0x1]  ;;  %v4769_v20 = vld [vmem:[%s4070_s24 + $0x34] sm:$0xf]  ;;  %v1809_v43 = vshrl.u32 %v1487_v53, 16 }
  0xfc   : > { %v4764_v2 = vrot.slane %v1805_v22, 5  ;;  %v1657_v59 = vrot.slane %v1655_v38, 5  ;;  %v309_v39 = vsel %vm4031_vm6, 0, %v308_v30  ;;  %v486_v27 = vshrl.u32 %v4769_v20, 16  ;;  %v1408_v5 = vld [vmem:[#allocation2 + $0xb4] sm:$0xf] }
  0xfd   : > { %1959 = vrot.lane.b32.xlu2 %v1640_v13, %s3932_s25  ;;  %1961 = vrot.lane.b32.xlu0 %v1650_v23, %s3932_s25  ;;  %v995_v13 = vor.u32 %v993_v46, %v992_v49  ;;  %v4751_v23 = vrot.slane %v1661_v50, 5  ;;  %v1803_v42 = vrot.slane %v1802_v41, 4  ;;  %v987_v48 = vor.u32 %v985_v6, %v984_v45  ;;  %310 = vst [vmem:[#allocation2 + $0x5c] sm:$0x1] %v309_v39  ;;  %v3761_v49 = vld [vmem:[%s5353_s2 + $0x20] sm:$0xf] }
  0xfe   : > { %v2239_v56 = vrot.slane %v2103_v0, 5  ;;  %v4779_v45 = vrot.slane %v486_v27, 7  ;;  %v2104_v50 = vld [vmem:[#allocation2 + $0x50] sm:$0x1]  ;;  %v3120_v62 = vunpack.c.l.b16 %v3761_v49  ;;  %1444 = vst.msk [vmem:[#allocation3 + $0x78] sm:$0xf] %vm219_vm3, %v1408_v5 }
  0xff   : > { %v4722_v60 = vpop.permute.xlu2 %2325  ;;  %v996_v54 = vsel %vm3982_vm2, %v988_v37, %v995_v13  ;;  %v1668_v31 = vor.u32 %v1667_v51, %v4751_v23  ;;  %v1808_v44 = vsel %vm4074_vm12, %v1803_v42, %v4764_v2  ;;  %v2242_v51 = vrot.slane %v2104_v50, 5  ;;  %v831_v17 = vld [vmem:[%s3973_s20 + $0x48] sm:$0xf]  ;;  %v4815_v42 = vld [vmem:[#allocation2 + $0x94] sm:$0xf] }
 0x100   : > { %v2241_v63 = vrot.slane %v2239_v56, 4  ;;  %v493_v1 = vrot.slane %v4779_v45, 4  ;;  %v3122_v37 = vpack.c.b16 %v3120_v62, %v3120_v62  ;;  %v1811_v15 = vrot.slane %v1809_v43, 4  ;;  %v832_v49 = vld [vmem:[%s3973_s20 + $0x4c] sm:$0xf] }
 0x101   : > { %v999_v41 = vshrl.u32 %v831_v17, 16  ;;  %v1002_v30 = vshll.u32 %v831_v17, 16  ;;  %v1410_v17 = vld [vmem:[#allocation2 + $0xc0] sm:$0xf] }
 0x102   : > { %v2243_v6 = vsel %vm4079_vm13, %v2241_v63, %v2242_v51  ;;  %1446 = vst.msk [vmem:[#allocation3 + $0x80] sm:$0xf] %vm219_vm3, %v1410_v17 }
 0x103   : > { %1163 = vrot.lane.b32.xlu1 %v980_v9, %s3930_s21  ;;  %v1652_v9 = vshrl.u32 %v1468_v29, 16  ;;  %v4831_v0 = vrot.slane %v999_v41, 7  ;;  %v489_v41 = vshll.u32 %v4769_v20, 16 }
 0x105   : > { %2005 = vrot.lane.b32.xlu2 %v1914_v18, %s3932_s25  ;;  %2341 = vrot.lane.b32.xlu0 %v2233_v47, %s3933_s26  ;;  %v1669_v18 = vrot.slane %v1668_v31, 4  ;;  %v1673_v47 = vrot.slane %v1671_v36, 5  ;;  %v1654_v8 = vrot.slane %v1652_v9, 4  ;;  %v4804_v36 = vld [vmem:[%s5353_s2 + $0x18] sm:$0xff]  ;;  %v1387_v9 = vld [vmem:[#allocation2 + $0x34] sm:$0xf] }
 0x106   : > { %1423 = vst.msk [vmem:[#allocation3 + $0x24] sm:$0xf] %vm219_vm3, %v1387_v9 }
 0x107   : > { %v4739_v24 = vpop.permute.xlu2 %2333  ;;  %v1674_v35 = vsel %vm4074_vm12, %v1669_v18, %v1673_v47  ;;  %v1658_v46 = vor.u32 %v1657_v59, %v1654_v8  ;;  %v4789_v57 = vpop.permute.xlu1 %2329  ;;  %v1812_v18 = vor.u32 %v1811_v15, %v4764_v2  ;;  %v1386_v8 = vld [vmem:[#allocation2 + $0x30] sm:$0xf]  ;;  %v2122_v59 = vld [vmem:[#allocation2 + $0x98] sm:$0x1] }
 0x108   : > { %1422 = vst.msk [vmem:[#allocation3 + $0x20] sm:$0xf] %vm219_vm3, %v1386_v8 }
 0x109   : > { %v1659_v13 = vrot.slane %v1658_v46, 4  ;;  %v1813_v39 = vrot.slane %v1812_v18, 4  ;;  %v252_v46 = vld [vmem:[#allocation2 + $0x54] sm:$0x1] }
 0x10a   : > { %v253_v50 = vsel %vm4047_vm7, 0, %v252_v46 }
 0x10b   : > { %2003 = vrot.lane.b32.xlu1 %v1904_v58, %s3932_s25  ;;  %v3590_v58 = vld [vmem:[%s5353_s2 + $0x14] sm:$0xf]  ;;  %v1664_v38 = vsel %vm4074_vm12, %v1659_v13, %v4751_v23  ;;  %254 = vst [vmem:[#allocation2 + $0x54] sm:$0x1] %v253_v50 }
 0x10c   : > { %v2623_v33 = vunpack.c.l.b16 %v3590_v58  ;;  %v1004_v58 = vor.u32 %v1002_v30, %v4831_v0 }
 0x10d   : > { %2385 = vrot.lane.b32.xlu2 %v2310_v10, %s3933_s26  ;;  %2387 = vrot.lane.b32.xlu0 %v2313_v52, %s3933_s26  ;;  %v2102_v52 = vld [vmem:[#allocation2 + $0x48] sm:$0xe] }
 0x10e   : > { %v2625_v26 = vpack.c.b16 %v2623_v33, %v2623_v33  ;;  %v3576_v29 = vrot.slane %v2102_v52, 9 }
 0x10f   : > { %v4753_v61 = vpop.permute.xlu2 %2331  ;;  %v2374_v21 = vpop.permute.xlu0 %2373 }
 0x110   : > { %v2678_v31 = vsel %vm2676_vm1, %v2625_v26, 0  ;;  %v2240_v23 = vsel %vm4079_vm13, %v3576_v29, %v2239_v56  ;;  %v353_v56 = vld [vmem:[%s4070_s24 + $0x30] sm:$0xf] }
 0x111   : > { %3902 = vmatpush.bf16.msra.mxu3 %v2678_v31  ;;  %2686 = vmatpush.bf16.msra.mxu0 %v2678_v31  ;;  %v478_v62 = vshrl.u32 %v353_v56, 16  ;;  %v481_v63 = vshll.u32 %v353_v56, 16 }
 0x112   : > { %v743_v31 = vld [vmem:[#allocation2 + $0x54] sm:$0xf] }
 0x113   : > { %2343 = vrot.lane.b32.xlu1 %v2236_v4, %s3933_s26  ;;  %v1488_v4 = vld [vmem:[#allocation2 + $0x98] sm:$0x1]  ;;  %v480_v33 = vrot.slane %v478_v62, 7  ;;  %v1389_v62 = vld [vmem:[#allocation2 + $0x40] sm:$0xf] }
 0x114   : > { %v1815_v47 = vshll.u32 %v1488_v4, 16  ;;  %v1010_v4 = vshll.u32 %v832_v49, 16  ;;  %1425 = vst.msk [vmem:[#allocation3 + $0x2c] sm:$0xf] %vm219_vm3, %v1389_v62 }
 0x115   : > { %1167 = vrot.lane.b32.xlu2 %v996_v54, %s3930_s21  ;;  %1169 = vrot.lane.b32.xlu0 %v997_v19, %s3930_s21  ;;  %v4796_v54 = vsel %vm2676_vm1, %v3122_v37, 0  ;;  %v747_v19 = vld [vmem:[#allocation2 + $0x5c] sm:$0x1]  ;;  %v1007_v37 = vshrl.u32 %v832_v49, 16  ;;  %v483_v15 = vor.u32 %v481_v63, %v480_v33  ;;  %v1390_v63 = vld [vmem:[#allocation2 + $0x48] sm:$0xf] }
 0x116   : > { %3181 = vmatpush.bf16.msra.mxu2 %v4796_v54  ;;  %v748_v22 = vsel %vm4139_vm4, %v493_v1, %v747_v19  ;;  %v1817_v27 = vrot.slane %v1815_v47, 5  ;;  %v1409_v1 = vld [vmem:[#allocation2 + $0xb8] sm:$0xf]  ;;  %v255_v19 = vld [vmem:[#allocation2 + $0x60] sm:$0x1]  ;;  %v484_v47 = vrot.slane %v480_v33, 4 }
 0x117   : > { %v4766_v7 = vpop.permute.xlu2 %2379  ;;  %749 = vst [vmem:[#allocation2 + $0x5c] sm:$0x1] %v748_v22  ;;  %v1009_v29 = vrot.slane %v1007_v37, 7  ;;  %v744_v9 = vsel %vm4093_vm15, %v483_v15, %v743_v31 }
 0x118   : > { %v1818_v52 = vsel %vm4074_vm12, %v1813_v39, %v1817_v27  ;;  %1445 = vst.msk [vmem:[#allocation3 + $0x7c] sm:$0xf] %vm219_vm3, %v1409_v1  ;;  %v1388_v39 = vld [vmem:[#allocation2 + $0x3c] sm:$0xf] }
 0x119   : > { %v2328_v10 = vpop.permute.xlu0 %2327  ;;  %v1012_v18 = vor.u32 %v1010_v4, %v1009_v29  ;;  %745 = vst [vmem:[#allocation2 + $0x54] sm:$0xf] %v744_v9  ;;  %v1014_v27 = vrot.slane %v1009_v29, 4 }
 0x11a   : > { %3182 = vmatpush.bf16.msra.mxu2 %v4804_v36  ;;  %1424 = vst.msk [vmem:[#allocation3 + $0x28] sm:$0xf] %vm219_vm3, %v1388_v39 }
 0x11b   : > { %1165 = vrot.lane.b32.xlu1 %v987_v48, %s3930_s21  ;;  %v2281_v48 = vrot.slane %v4815_v42, 5  ;;  %v491_v42 = vor.u32 %v489_v41, %v4779_v45  ;;  %1426 = vst.msk [vmem:[#allocation3 + $0x30] sm:$0xf] %vm219_vm3, %v1390_v63 }
 0x11d   : > { %1965 = vrot.lane.b32.xlu2 %v1674_v35, %s3932_s25  ;;  %1987 = vrot.lane.b32.xlu0 %v1808_v44, %s3932_s25  ;;  %v2283_v43 = vrot.slane %v2281_v48, 4  ;;  %v2284_v44 = vrot.slane %v2122_v59, 5  ;;  %v492_v30 = vsel %vm3982_vm2, %v484_v47, %v491_v42 }
 0x11e   : > { %v1312_v8 = vld [vmem:[#allocation2 + $0x5c] sm:$0x1]  ;;  %746 = vst.msk [vmem:[#allocation2 + $0x58] sm:$0xf] %vm696_vm14, %v492_v30 }
 0x11f   : > { %v1992_v53 = vpop.permute.xlu2 %1991 }
 0x120   : > { %2074 = vst.msk [vmem:[#allocation3 + $0x68] sm:$0xf] %vm2047_vm0, %v1992_v53 }
 0x121   : > { %2456 = vst.msk [vmem:[#allocation3 + $0x68] sm:$0xf] %vm2429_vm5, %v2374_v21  ;;  %v3884_v21 = vld [vmem:[%s5353_s2 + $0xc] sm:$0xff] }
 0x122   : > { %3903 = vmatpush.bf16.msra.mxu3 %v3884_v21  ;;  %2687 = vmatpush.bf16.msra.mxu0 %v3884_v21 }
 0x123   : > { %1963 = vrot.lane.b32.xlu1 %v1664_v38, %s3932_s25  ;;  %v256_v38 = vsel %vm4047_vm7, 0, %v255_v19  ;;  %v4922_v19 = vld [vmem:[%s4070_s24 + $0x40] sm:$0xf] }
 0x124   : > { %257 = vst [vmem:[#allocation2 + $0x60] sm:$0x1] %v256_v38 }
 0x125   : > { %2345 = vrot.lane.b32.xlu2 %v2240_v23, %s3933_s26  ;;  %v4827_v2 = vpop.permute.xlu1 %2377  ;;  %2347 = vrot.lane.b32.xlu0 %v2243_v6, %s3933_s26  ;;  %v1005_v6 = vrot.slane %v4831_v0, 4 }
 0x126   : > { %3904 = vmatpush.bf16.msrb.mxu3 %v4654_v55  ;;  %v2120_v55 = vld [vmem:[#allocation2 + $0x90] sm:$0xe] }
 0x127   : > { %v1946_v5 = vpop.permute.xlu2 %1945  ;;  %v2336_v35 = vpop.permute.xlu0 %2335  ;;  %v3582_v51 = vrot.slane %v2120_v55, 9  ;;  %v1013_v59 = vsel %vm3982_vm2, %v1005_v6, %v1012_v18  ;;  %v356_v55 = vld [vmem:[%s4070_s24 + $0x3c] sm:$0xf] }
 0x128   : > { %2051 = vst.msk [vmem:[#allocation3 + $0xc] sm:$0xf] %vm2047_vm0, %v1946_v5 }
 0x129   : > { %2433 = vst.msk [vmem:[#allocation3 + $0xc] sm:$0xf] %vm2429_vm5, %v2328_v10  ;;  %v2285_v10 = vsel %vm4079_vm13, %v2283_v43, %v2284_v44  ;;  %v2282_v22 = vsel %vm4079_vm13, %v3582_v51, %v2281_v48 }
 0x12a   : > { %3905 = vmatpush.bf16.msrb.mxu3 %v4659_v34  ;;  %v355_v34 = vld [vmem:[%s4070_s24 + $0x38] sm:$0xf] }
 0x12b   : > { %1989 = vrot.lane.b32.xlu1 %v1818_v52, %s3932_s25  ;;  %v495_v20 = vshrl.u32 %v355_v34, 16  ;;  %v498_v45 = vshll.u32 %v355_v34, 16  ;;  %v750_v43 = vld [vmem:[#allocation2 + $0x60] sm:$0xf]  ;;  %v358_v34 = vld [vmem:[%s4070_s24 + $0x44] sm:$0xf] }
 0x12c   : > { %v520_v38 = vshrl.u32 %v358_v34, 16  ;;  %v523_v6 = vshll.u32 %v358_v34, 16 }
 0x12d   : > { %2371 = vrot.lane.b32.xlu2 %v2285_v10, %s3933_s26  ;;  %v2376_v13 = vpop.permute.xlu1 %2375  ;;  %1171 = vrot.lane.b32.xlu0 %v1004_v58, %s3930_s21  ;;  %v4875_v0 = vrot.slane %v495_v20, 7  ;;  %v1308_v58 = vld [vmem:[#allocation2 + $0x54] sm:$0xf]  ;;  %v506_v10 = vshll.u32 %v356_v55, 16 }
 0x12e   : > { %v4933_v20 = vrot.slane %v520_v38, 7 }
 0x12f   : > { %v1954_v26 = vpop.permute.xlu2 %1953  ;;  %v1948_v53 = vpop.permute.xlu0 %1947  ;;  %v500_v5 = vor.u32 %v498_v45, %v4875_v0  ;;  %v501_v51 = vrot.slane %v4875_v0, 4 }
 0x130   : > { %2055 = vst.msk [vmem:[#allocation3 + $0x1c] sm:$0xf] %vm2047_vm0, %v1954_v26 }
 0x131   : > { %2437 = vst.msk [vmem:[#allocation3 + $0x1c] sm:$0xf] %vm2429_vm5, %v2336_v35  ;;  %v751_v49 = vsel %vm4093_vm15, %v500_v5, %v750_v43 }
 0x132   : > { %2052 = vst.msk [vmem:[#allocation3 + $0x10] sm:$0xf] %vm2047_vm0, %v1948_v53 }
 0x133   : > { %2434 = vst.msk [vmem:[#allocation3 + $0x10] sm:$0xf] %vm2429_vm5, %v4789_v57  ;;  %2369 = vrot.lane.b32.xlu1 %v2282_v22, %s3933_s26  ;;  %v512_v22 = vshrl.u32 %v4922_v19, 16 }
 0x134   : > { %752 = vst [vmem:[#allocation2 + $0x60] sm:$0xf] %v751_v49 }
 0x135   : > { %v1950_v21 = vpop.permute.xlu1 %1949  ;;  %1175 = vrot.lane.b32.xlu2 %v1014_v27, %s3930_s21  ;;  %v4931_v18 = vrot.slane %v512_v22, 7 }
 0x136   : > { %2053 = vst.msk [vmem:[#allocation3 + $0x14] sm:$0xf] %vm2047_vm0, %v1950_v21 }
 0x137   : > { %2435 = vst.msk [vmem:[#allocation3 + $0x14] sm:$0xf] %vm2429_vm5, %v4753_v61  ;;  %v1158_v23 = vpop.permute.xlu2 %1157  ;;  %v1994_v57 = vpop.permute.xlu0 %1993  ;;  %v1411_v61 = vld [vmem:[#allocation2 + $0xc4] sm:$0xf]  ;;  %v518_v21 = vrot.slane %v4931_v18, 4 }
 0x138   : > { %v1313_v48 = vsel %vm4182_vm11, %v1158_v23, %v1312_v8  ;;  %2075 = vst.msk [vmem:[#allocation3 + $0x6c] sm:$0xf] %vm2047_vm0, %v1994_v57  ;;  %v311_v8 = vld [vmem:[#allocation2 + $0x68] sm:$0x1] }
 0x139   : > { %1314 = vst [vmem:[#allocation2 + $0x5c] sm:$0x1] %v1313_v48  ;;  %v525_v48 = vor.u32 %v523_v6, %v4933_v20  ;;  %v312_v0 = vsel %vm4031_vm6, 0, %v311_v8 }
 0x13a   : > { %2457 = vst.msk [vmem:[#allocation3 + $0x6c] sm:$0xf] %vm2429_vm5, %v2376_v13  ;;  %v1402_v13 = vld [vmem:[#allocation2 + $0x90] sm:$0xf] }
 0x13b   : > { %1173 = vrot.lane.b32.xlu1 %v1013_v59, %s3930_s21  ;;  %1447 = vst.msk [vmem:[#allocation3 + $0x84] sm:$0xf] %vm219_vm3, %v1411_v61  ;;  %v1315_v26 = vld [vmem:[#allocation2 + $0x60] sm:$0xf]  ;;  %v526_v27 = vsel %vm3982_vm2, %v518_v21, %v525_v48  ;;  %v1391_v61 = vld [vmem:[#allocation2 + $0x4c] sm:$0xf] }
 0x13c   : > { %1438 = vst.msk [vmem:[#allocation3 + $0x60] sm:$0xf] %vm219_vm3, %v1402_v13  ;;  %v833_v13 = vld [vmem:[%s3973_s20 + $0x50] sm:$0xf] }
 0x13d   : > { %v1944_v35 = vpop.permute.xlu1 %1943  ;;  %313 = vst [vmem:[#allocation2 + $0x68] sm:$0x1] %v312_v0 }
 0x13e   : > { %2050 = vst.msk [vmem:[#allocation3 + $0x8] sm:$0xf] %vm2047_vm0, %v1944_v35  ;;  %v3885_v44 = vld [vmem:[#allocation3 + $0x10] sm:$0xff]  ;;  %v1403_v35 = vld [vmem:[#allocation2 + $0x94] sm:$0xf] }
 0x13f   : > { %2432 = vst.msk [vmem:[#allocation3 + $0x8] sm:$0xf] %vm2429_vm5, %v4722_v60  ;;  %v2000_v46 = vpop.permute.xlu2 %1999  ;;  %v1996_v56 = vpop.permute.xlu0 %1995  ;;  %3830 = vmatmul.msk.bf16.vlgmr.msra.gmra.mxu2 %vm2627_vm9, %v3885_v44  ;;  %v3869_v42 = vld [vmem:[#allocation3 + $0x10] sm:$0xff] }
 0x140   : > { %2078 = vst.msk [vmem:[#allocation3 + $0x78] sm:$0xf] %vm2047_vm0, %v2000_v46  ;;  %v3853_v39 = vld [vmem:[#allocation3 + $0x10] sm:$0xff]  ;;  %v1473_v44 = vld [vmem:[#allocation2 + $0x5c] sm:$0x1] }
 0x141   : > { %2076 = vst.msk [vmem:[#allocation3 + $0x70] sm:$0xf] %vm2047_vm0, %v1996_v56  ;;  %v3880_v50 = vld [vmem:[#allocation3 + $0x68] sm:$0xff] }
 0x142   : > { %2458 = vst.msk [vmem:[#allocation3 + $0x70] sm:$0xf] %vm2429_vm5, %v4827_v2  ;;  %3671 = vmatmul.msk.bf16.vlgmr.msra.gmra.mxu3 %vm2627_vm9, %v3880_v50 }
 0x143   : > { %3906 = vmatpush.bf16.msra.mxu3 %v4796_v54  ;;  %v503_v54 = vshrl.u32 %v356_v55, 16  ;;  %760 = vst.msk [vmem:[#allocation2 + $0x70] sm:$0xf] %vm696_vm14, %v526_v27 }
 0x144   : > { %1427 = vst.msk [vmem:[#allocation3 + $0x34] sm:$0xf] %vm219_vm3, %v1391_v61  ;;  %v258_v61 = vld [vmem:[#allocation2 + $0x6c] sm:$0x1] }
 0x145   : > { %v1952_v60 = vpop.permute.xlu1 %1951  ;;  %1439 = vst.msk [vmem:[#allocation3 + $0x64] sm:$0xf] %vm219_vm3, %v1403_v35 }
 0x146   : > { %2054 = vst.msk [vmem:[#allocation3 + $0x18] sm:$0xf] %vm2047_vm0, %v1952_v60  ;;  %v3868_v52 = vld [vmem:[#allocation3 + $0x8] sm:$0xff]  ;;  %v1695_v60 = vshll.u32 %v1473_v44, 16  ;;  %v515_v44 = vshll.u32 %v4922_v19, 16 }
 0x147   : > { %v3852_v33 = vld [vmem:[#allocation3 + $0x8] sm:$0xff]  ;;  %2436 = vst.msk [vmem:[#allocation3 + $0x18] sm:$0xf] %vm2429_vm5, %v4739_v24  ;;  %v4902_v1 = vpop.permute.xlu2 %2339  ;;  %v1154_v2 = vpop.permute.xlu0 %1153  ;;  %3659 = vmatmul.msk.bf16.vlgmr.msra.gmra.mxu0 %vm2627_vm9, %v3868_v52  ;;  %3907 = vmatpush.bf16.msra.mxu3 %v4804_v36  ;;  %v4911_v24 = vrot.slane %v503_v54, 7 }
 0x148   : > { %v1309_v37 = vsel %vm4173_vm10, %v1154_v2, %v1308_v58  ;;  %3744 = vmatmul.msk.bf16.gmra.mxu1 %vm2627_vm9, %v3852_v33 }
 0x149   : > { %1310 = vst [vmem:[#allocation2 + $0x54] sm:$0xf] %v1309_v37  ;;  %v508_v15 = vor.u32 %v506_v10, %v4911_v24  ;;  %v510_v62 = vrot.slane %v4911_v24, 4  ;;  %v754_v37 = vld [vmem:[#allocation2 + $0x68] sm:$0x1] }
 0x14b   : > { %v509_v36 = vsel %vm3982_vm2, %v501_v51, %v508_v15  ;;  %v755_v51 = vsel %vm4139_vm4, %v510_v62, %v754_v37  ;;  %v527_v62 = vrot.slane %v4933_v20, 4 }
 0x14c   : > { %753 = vst.msk [vmem:[#allocation2 + $0x64] sm:$0xf] %vm696_vm14, %v509_v36 }
 0x14d   : > { %v1998_v17 = vpop.permute.xlu1 %1997  ;;  %756 = vst [vmem:[#allocation2 + $0x68] sm:$0x1] %v755_v51 }
 0x14e   : > { %2077 = vst.msk [vmem:[#allocation3 + $0x74] sm:$0xf] %vm2047_vm0, %v1998_v17  ;;  %v3886_v53 = vld [vmem:[#allocation3 + $0x18] sm:$0xff] }
 0x14f   : > { %2459 = vst.msk [vmem:[#allocation3 + $0x74] sm:$0xf] %vm2429_vm5, %v4766_v7  ;;  %v1160_v29 = vpop.permute.xlu2 %1159  ;;  %v1956_v4 = vpop.permute.xlu0 %1955  ;;  %3831 = vmatmul.msk.bf16.gmra.mxu2 %vm2627_vm9, %v3886_v53  ;;  %v834_v53 = vld [vmem:[%s3973_s20 + $0x54] sm:$0xf] }
 0x150   : > { %v1316_v31 = vsel %vm4173_vm10, %v1160_v29, %v1315_v26  ;;  %2056 = vst.msk [vmem:[#allocation3 + $0x20] sm:$0xf] %vm2047_vm0, %v1956_v4  ;;  %v1471_v41 = vld [vmem:[#allocation2 + $0x54] sm:$0xf]  ;;  %v1697_v26 = vrot.slane %v1695_v60, 5  ;;  %v1016_v4 = vshrl.u32 %v833_v13, 16 }
 0x151   : > { %1317 = vst [vmem:[#allocation2 + $0x60] sm:$0xf] %v1316_v31  ;;  %v1676_v7 = vshrl.u32 %v1471_v41, 16  ;;  %v1679_v9 = vshll.u32 %v1471_v41, 16  ;;  %v2105_v5 = vld [vmem:[#allocation2 + $0x54] sm:$0xe] }
 0x152   : > { %v3577_v46 = vrot.slane %v2105_v5, 9  ;;  %v2107_v29 = vld [vmem:[#allocation2 + $0x5c] sm:$0x1]  ;;  %v1024_v22 = vshrl.u32 %v834_v53, 16  ;;  %v3854_v21 = vld [vmem:[#allocation3 + $0x18] sm:$0xff]  ;;  %v1018_v8 = vrot.slane %v1016_v4, 7 }
 0x153   : > { %v1678_v57 = vrot.slane %v1676_v7, 4  ;;  %v1681_v59 = vrot.slane %v1679_v9, 5  ;;  %v3870_v9 = vld [vmem:[#allocation3 + $0x18] sm:$0xff]  ;;  %v2249_v6 = vrot.slane %v2107_v29, 5 }
 0x154   : > { %v1319_v37 = vld [vmem:[#allocation2 + $0x68] sm:$0x1] }
 0x155   : > { %v1156_v47 = vpop.permute.xlu1 %1155  ;;  %v1682_v43 = vor.u32 %v1681_v59, %v1678_v57  ;;  %v314_v57 = vld [vmem:[#allocation2 + $0x74] sm:$0x1] }
 0x156   : > { %1311 = vst.msk [vmem:[#allocation2 + $0x58] sm:$0xf] %vm1261_vm8, %v1156_v47  ;;  %v3881_v23 = vld [vmem:[#allocation3 + $0x70] sm:$0xff]  ;;  %v315_v0 = vsel %vm4031_vm6, 0, %v314_v57 }
 0x157   : > { %v1960_v45 = vpop.permute.xlu2 %1959  ;;  %v2002_v30 = vpop.permute.xlu0 %2001  ;;  %3660 = vmatmul.msk.bf16.gmra.mxu0 %vm2627_vm9, %v3869_v42  ;;  %3672 = vmatmul.msk.bf16.gmra.mxu3 %vm2627_vm9, %v3881_v23  ;;  %v1683_v52 = vrot.slane %v1682_v43, 4  ;;  %v1019_v23 = vshll.u32 %v833_v13, 16  ;;  %316 = vst [vmem:[#allocation2 + $0x74] sm:$0x1] %v315_v0  ;;  %v259_v43 = vsel %vm4047_vm7, 0, %v258_v61 }
 0x158   : > { %2058 = vst.msk [vmem:[#allocation3 + $0x28] sm:$0xf] %vm2047_vm0, %v1960_v45  ;;  %3745 = vmatmul.msk.bf16.gmra.mxu1 %vm2627_vm9, %v3853_v39  ;;  %v1026_v45 = vrot.slane %v1024_v22, 7  ;;  %v1027_v39 = vshll.u32 %v834_v53, 16  ;;  %v261_v61 = vld [vmem:[#allocation2 + $0x78] sm:$0x1] }
 0x159   : > { %2079 = vst.msk [vmem:[#allocation3 + $0x7c] sm:$0xf] %vm2047_vm0, %v2002_v30  ;;  %v1022_v30 = vrot.slane %v1018_v8, 4  ;;  %v1021_v5 = vor.u32 %v1019_v23, %v1018_v8 }
 0x15a   : > { %v1029_v35 = vor.u32 %v1027_v39, %v1026_v45  ;;  %260 = vst [vmem:[#allocation2 + $0x6c] sm:$0x1] %v259_v43  ;;  %v1031_v19 = vrot.slane %v1026_v45, 4 }
 0x15d   : > { %v1958_v56 = vpop.permute.xlu1 %1957  ;;  %v2106_v49 = vld [vmem:[#allocation2 + $0x58] sm:$0xf] }
 0x15e   : > { %v1472_v50 = vld [vmem:[#allocation2 + $0x58] sm:$0xf]  ;;  %2057 = vst.msk [vmem:[#allocation3 + $0x24] sm:$0xf] %vm2047_vm0, %v1958_v56  ;;  %v2246_v58 = vrot.slane %v2106_v49, 5 }
 0x15f   : > { %v1685_v33 = vshll.u32 %v1472_v50, 16  ;;  %v1689_v63 = vshrl.u32 %v1472_v50, 16  ;;  %2439 = vst.msk [vmem:[#allocation3 + $0x24] sm:$0xf] %vm2429_vm5, %v4902_v1  ;;  %v2006_v2 = vpop.permute.xlu2 %2005  ;;  %v2382_v55 = vpop.permute.xlu0 %2381  ;;  %v1474_v1 = vld [vmem:[#allocation2 + $0x60] sm:$0xf]  ;;  %v1030_v50 = vsel %vm3982_vm2, %v1022_v30, %v1029_v35 }
 0x160   : > { %2081 = vst.msk [vmem:[#allocation3 + $0x84] sm:$0xf] %vm2047_vm0, %v2006_v2  ;;  %v2247_v54 = vsel %vm4079_vm13, %v3577_v46, %v2246_v58  ;;  %v1700_v34 = vshrl.u32 %v1474_v1, 16  ;;  %v1703_v31 = vshll.u32 %v1474_v1, 16  ;;  %v2248_v38 = vrot.slane %v2246_v58, 4 }
 0x161   : > { %v1687_v10 = vrot.slane %v1685_v33, 5  ;;  %v1691_v24 = vrot.slane %v1689_v63, 4  ;;  %2460 = vst.msk [vmem:[#allocation3 + $0x78] sm:$0xf] %vm2429_vm5, %v2382_v55  ;;  %2349 = vrot.lane.b32.xlu2 %v2247_v54, %s3933_s26  ;;  %v517_v33 = vor.u32 %v515_v44, %v4931_v18  ;;  %v2108_v55 = vld [vmem:[#allocation2 + $0x60] sm:$0xe] }
 0x162   : > { %v1702_v59 = vrot.slane %v1700_v34, 4  ;;  %v1705_v48 = vrot.slane %v1703_v31, 5  ;;  %v2250_v27 = vsel %vm4079_vm13, %v2248_v38, %v2249_v6  ;;  %v761_v20 = vld [vmem:[#allocation2 + $0x74] sm:$0x1]  ;;  %v757_v13 = vld [vmem:[#allocation2 + $0x6c] sm:$0xf] }
 0x163   : > { %v1688_v15 = vsel %vm4074_vm12, %v1683_v52, %v1687_v10  ;;  %v1692_v17 = vor.u32 %v1691_v24, %v1687_v10  ;;  %v762_v10 = vsel %vm4139_vm4, %v527_v62, %v761_v20  ;;  %v3578_v1 = vrot.slane %v2108_v55, 9 }
 0x164   : > { %1967 = vrot.lane.b32.xlu0 %v1688_v15, %s3932_s25  ;;  %v1706_v46 = vor.u32 %v1705_v48, %v1702_v59  ;;  %763 = vst [vmem:[#allocation2 + $0x74] sm:$0x1] %v762_v10  ;;  %v758_v15 = vsel %vm4093_vm15, %v517_v33, %v757_v13  ;;  %v262_v44 = vsel %vm4047_vm7, 0, %v261_v61 }
 0x165   : > { %v1693_v36 = vrot.slane %v1692_v17, 4  ;;  %v2338_v41 = vpop.permute.xlu1 %2337  ;;  %759 = vst [vmem:[#allocation2 + $0x6c] sm:$0xf] %v758_v15 }
 0x166   : > { %2438 = vst.msk [vmem:[#allocation3 + $0x20] sm:$0xf] %vm2429_vm5, %v2338_v41  ;;  %v1707_v63 = vrot.slane %v1706_v46, 4 }
 0x167   : > { %v1698_v7 = vsel %vm4074_vm12, %v1693_v36, %v1697_v26  ;;  %v4969_v47 = vpop.permute.xlu2 %2385  ;;  %v1162_v42 = vpop.permute.xlu0 %1161  ;;  %3661 = vmatmul.msk.bf16.gmra.mxu0 %vm2627_vm9, %v3870_v9  ;;  %263 = vst [vmem:[#allocation2 + $0x78] sm:$0x1] %v262_v44 }
 0x168   : > { %1969 = vrot.lane.b32.xlu1 %v1698_v7, %s3932_s25  ;;  %1318 = vst.msk [vmem:[#allocation2 + $0x64] sm:$0xf] %vm1261_vm8, %v1162_v42  ;;  %3746 = vmatmul.msk.bf16.gmra.mxu1 %vm2627_vm9, %v3854_v21 }
 0x169   : > { %1179 = vrot.lane.b32.xlu2 %v1030_v50, %s3930_s21 }
 0x16b   : > { %v1326_v30 = vld [vmem:[#allocation2 + $0x74] sm:$0x1] }
 0x16c   : > { %2351 = vrot.lane.b32.xlu0 %v2250_v27, %s3933_s26 }
 0x16d   : > { %v2384_v56 = vpop.permute.xlu1 %2383  ;;  %v3887_v49 = vld [vmem:[#allocation3 + $0x20] sm:$0xff] }
 0x16e   : > { %2461 = vst.msk [vmem:[#allocation3 + $0x7c] sm:$0xf] %vm2429_vm5, %v2384_v56  ;;  %3832 = vmatmul.msk.bf16.gmra.mxu2 %vm2627_vm9, %v3887_v49  ;;  %v3871_v29 = vld [vmem:[#allocation3 + $0x20] sm:$0xff]  ;;  %v360_v56 = vld [vmem:[%s4070_s24 + $0x4c] sm:$0xf] }
 0x16f   : > { %v1168_v60 = vpop.permute.xlu2 %1167  ;;  %v1962_v58 = vpop.permute.xlu0 %1961  ;;  %v1475_v52 = vld [vmem:[#allocation2 + $0x64] sm:$0xf]  ;;  %v3855_v31 = vld [vmem:[#allocation3 + $0x20] sm:$0xff]  ;;  %v537_v62 = vshrl.u32 %v360_v56, 16 }
 0x170   : > { %1177 = vrot.lane.b32.xlu1 %v1021_v5, %s3930_s21  ;;  %1325 = vst.msk [vmem:[#allocation2 + $0x70] sm:$0xf] %vm1261_vm8, %v1168_v60  ;;  %v1709_v2 = vshll.u32 %v1475_v52, 16  ;;  %v2109_v24 = vld [vmem:[#allocation2 + $0x64] sm:$0xf]  ;;  %v1713_v51 = vshrl.u32 %v1475_v52, 16 }
 0x171   : > { %2059 = vst.msk [vmem:[#allocation3 + $0x2c] sm:$0xf] %vm2047_vm0, %v1962_v58  ;;  %v2253_v4 = vrot.slane %v2109_v24, 5  ;;  %v359_v5 = vld [vmem:[%s4070_s24 + $0x48] sm:$0xf]  ;;  %v540_v60 = vshll.u32 %v360_v56, 16 }
 0x172   : > { %v1711_v54 = vrot.slane %v1709_v2, 5  ;;  %v1715_v22 = vrot.slane %v1713_v51, 4  ;;  %v529_v46 = vshrl.u32 %v359_v5, 16  ;;  %v532_v50 = vshll.u32 %v359_v5, 16  ;;  %v764_v15 = vld [vmem:[#allocation2 + $0x78] sm:$0xf] }
 0x173   : > { %v2254_v41 = vsel %vm4079_vm13, %v3578_v1, %v2253_v4  ;;  %v2255_v38 = vrot.slane %v2253_v4, 4  ;;  %v539_v33 = vrot.slane %v537_v62, 7 }
 0x174   : > { %1181 = vrot.lane.b32.xlu0 %v1031_v19, %s3930_s21  ;;  %v1712_v18 = vsel %vm4074_vm12, %v1707_v63, %v1711_v54  ;;  %v1716_v7 = vor.u32 %v1715_v22, %v1711_v54  ;;  %v531_v52 = vrot.slane %v529_v46, 7  ;;  %v1322_v63 = vld [vmem:[#allocation2 + $0x6c] sm:$0xf] }
 0x175   : > { %v1164_v17 = vpop.permute.xlu1 %1163  ;;  %v3882_v26 = vld [vmem:[#allocation3 + $0x78] sm:$0xff]  ;;  %v542_v20 = vor.u32 %v540_v60, %v539_v33 }
 0x176   : > { %v1320_v53 = vsel %vm4182_vm11, %v1164_v17, %v1319_v37  ;;  %3673 = vmatmul.msk.bf16.gmra.mxu3 %vm2627_vm9, %v3882_v26  ;;  %v1717_v23 = vrot.slane %v1716_v7, 4  ;;  %v535_v2 = vrot.slane %v531_v52, 4  ;;  %v534_v55 = vor.u32 %v532_v50, %v531_v52  ;;  %v1392_v7 = vld [vmem:[#allocation2 + $0x54] sm:$0xf] }
 0x177   : > { %1321 = vst [vmem:[#allocation2 + $0x68] sm:$0x1] %v1320_v53  ;;  %v1966_v36 = vpop.permute.xlu2 %1965  ;;  %v2342_v34 = vpop.permute.xlu0 %2341  ;;  %3662 = vmatmul.msk.bf16.gmra.mxu0 %vm2627_vm9, %v3871_v29  ;;  %v1478_v0 = vld [vmem:[#allocation2 + $0x70] sm:$0xf] }
 0x178   : > { %1971 = vrot.lane.b32.xlu1 %v1712_v18, %s3932_s25  ;;  %2061 = vst.msk [vmem:[#allocation3 + $0x34] sm:$0xf] %vm2047_vm0, %v1966_v36  ;;  %3747 = vmatmul.msk.bf16.gmra.mxu1 %vm2627_vm9, %v3855_v31  ;;  %v1733_v39 = vshll.u32 %v1478_v0, 16  ;;  %v1737_v27 = vshrl.u32 %v1478_v0, 16  ;;  %v543_v17 = vsel %vm3982_vm2, %v535_v2, %v542_v20  ;;  %v2112_v53 = vld [vmem:[#allocation2 + $0x70] sm:$0xf]  ;;  %v765_v29 = vsel %vm4093_vm15, %v534_v55, %v764_v15 }
 0x179   : > { %2440 = vst.msk [vmem:[#allocation3 + $0x28] sm:$0xf] %vm2429_vm5, %v2342_v34  ;;  %v317_v34 = vld [vmem:[#allocation2 + $0x80] sm:$0x1] }
 0x17a   : > { %v5029_v58 = vrot.slane %v1733_v39, 5  ;;  %v1739_v19 = vrot.slane %v1737_v27, 4  ;;  %766 = vst [vmem:[#allocation2 + $0x78] sm:$0xf] %v765_v29  ;;  %v318_v31 = vsel %vm4031_vm6, 0, %v317_v34 }
 0x17b   : > { %767 = vst.msk [vmem:[#allocation2 + $0x7c] sm:$0xf] %vm696_vm14, %v543_v17 }
 0x17c   : > { %2353 = vrot.lane.b32.xlu0 %v2254_v41, %s3933_s26  ;;  %v1740_v13 = vor.u32 %v1739_v19, %v5029_v58  ;;  %v1393_v41 = vld [vmem:[#allocation2 + $0x58] sm:$0xf]  ;;  %319 = vst [vmem:[#allocation2 + $0x80] sm:$0x1] %v318_v31 }
 0x17d   : > { %v2004_v9 = vpop.permute.xlu1 %2003  ;;  %1428 = vst.msk [vmem:[#allocation3 + $0x38] sm:$0xf] %vm219_vm3, %v1392_v7 }
 0x17e   : > { %2080 = vst.msk [vmem:[#allocation3 + $0x80] sm:$0xf] %vm2047_vm0, %v2004_v9  ;;  %v2110_v6 = vld [vmem:[#allocation2 + $0x68] sm:$0x1]  ;;  %v1741_v4 = vrot.slane %v1740_v13, 4 }
 0x17f   : > { %v1476_v42 = vld [vmem:[#allocation2 + $0x68] sm:$0x1]  ;;  %2462 = vst.msk [vmem:[#allocation3 + $0x80] sm:$0xf] %vm2429_vm5, %v4969_v47  ;;  %v2388_v21 = vpop.permute.xlu0 %2387  ;;  %v2256_v8 = vrot.slane %v2110_v6, 5  ;;  %v2346_v51 = vpop.permute.xlu2 %2345  ;;  %v2260_v6 = vrot.slane %v2112_v53, 5 }
 0x180   : > { %v1719_v57 = vshll.u32 %v1476_v42, 16  ;;  %2463 = vst.msk [vmem:[#allocation3 + $0x84] sm:$0xf] %vm2429_vm5, %v2388_v21 }
 0x181   : > { %v2257_v59 = vsel %vm4079_vm13, %v2255_v38, %v2256_v8  ;;  %1429 = vst.msk [vmem:[#allocation3 + $0x3c] sm:$0xf] %vm219_vm3, %v1393_v41  ;;  %v2262_v19 = vrot.slane %v2260_v6, 4 }
 0x182   : > { %v1721_v48 = vrot.slane %v1719_v57, 5  ;;  %2355 = vrot.lane.b32.xlu1 %v2257_v59, %s3933_s26 }
 0x183   : > { %v768_v39 = vld [vmem:[#allocation2 + $0x80] sm:$0x1] }
 0x184   : > { %v1722_v45 = vsel %vm4074_vm12, %v1717_v23, %v1721_v48  ;;  %v544_v48 = vrot.slane %v539_v33, 4 }
 0x185   : > { %1973 = vrot.lane.b32.xlu2 %v1722_v45, %s3932_s25  ;;  %v2344_v47 = vpop.permute.xlu1 %2343 }
 0x186   : > { %2441 = vst.msk [vmem:[#allocation3 + $0x2c] sm:$0xf] %vm2429_vm5, %v2344_v47  ;;  %v769_v61 = vsel %vm4139_vm4, %v544_v48, %v768_v39  ;;  %v5093_v39 = vld [vmem:[%s5354_s3] ss:$0 sm:$0xff] }
 0x187   : > { %v1170_v35 = vpop.permute.xlu0 %1169  ;;  %v3883_v43 = vld [vmem:[#allocation3 + $0x80] sm:$0xff]  ;;  %v2372_v0 = vpop.permute.xlu2 %2371  ;;  %770 = vst [vmem:[#allocation2 + $0x80] sm:$0x1] %v769_v61 }
 0x188   : > { %v1327_v49 = vsel %vm4182_vm11, %v1170_v35, %v1326_v30  ;;  %3674 = vmatmul.msk.bf16.gmra.mxu3 %vm2627_vm9, %v3883_v43  ;;  %v1329_v35 = vld [vmem:[#allocation2 + $0x78] sm:$0xf] }
 0x189   : > { %1328 = vst [vmem:[#allocation2 + $0x74] sm:$0x1] %v1327_v49 }
 0x18d   : > { %v1166_v37 = vpop.permute.xlu1 %1165  ;;  %v3872_v54 = vld [vmem:[#allocation3 + $0x28] sm:$0xff] }
 0x18e   : > { %v3856_v10 = vld [vmem:[#allocation3 + $0x28] sm:$0xff]  ;;  %v1323_v18 = vsel %vm4173_vm10, %v1166_v37, %v1322_v63  ;;  %3663 = vmatmul.msk.bf16.gmra.mxu0 %vm2627_vm9, %v3872_v54 }
 0x18f   : > { %v3888_v24 = vld [vmem:[#allocation3 + $0x28] sm:$0xff]  ;;  %1324 = vst [vmem:[#allocation2 + $0x6c] sm:$0xf] %v1323_v18  ;;  %v1988_v1 = vpop.permute.xlu0 %1987  ;;  %3748 = vmatmul.msk.bf16.gmra.mxu1 %vm2627_vm9, %v3856_v10  ;;  %v1176_v33 = vpop.permute.xlu2 %1175 }
 0x190   : > { %2072 = vst.msk [vmem:[#allocation3 + $0x60] sm:$0xf] %vm2047_vm0, %v1988_v1  ;;  %3833 = vmatmul.msk.bf16.gmra.mxu2 %vm2627_vm9, %v3888_v24  ;;  %v1479_v26 = vld [vmem:[#allocation2 + $0x74] sm:$0x1]  ;;  %v1333_v63 = vld [vmem:[#allocation2 + $0x80] sm:$0x1] }
 0x191   : > { %v1743_v36 = vshll.u32 %v1479_v26, 16  ;;  %v2113_v44 = vld [vmem:[#allocation2 + $0x74] sm:$0x1]  ;;  %v1334_v2 = vsel %vm4182_vm11, %v1176_v33, %v1333_v63 }
 0x192   : > { %v2263_v52 = vrot.slane %v2113_v44, 5  ;;  %1335 = vst [vmem:[#allocation2 + $0x80] sm:$0x1] %v1334_v2 }
 0x193   : > { %v1745_v22 = vrot.slane %v1743_v36, 5 }
 0x194   : > { %v2264_v55 = vsel %vm4079_vm13, %v2262_v19, %v2263_v52 }
 0x195   : > { %v1964_v9 = vpop.permute.xlu1 %1963  ;;  %v1746_v38 = vsel %vm4074_vm12, %v1741_v4, %v1745_v22 }
 0x196   : > { %2060 = vst.msk [vmem:[#allocation3 + $0x30] sm:$0xf] %vm2047_vm0, %v1964_v9  ;;  %1977 = vrot.lane.b32.xlu0 %v1746_v38, %s3932_s25  ;;  %v2111_v42 = vld [vmem:[#allocation2 + $0x6c] sm:$0xe] }
 0x197   : > { %v1477_v21 = vld [vmem:[#allocation2 + $0x6c] sm:$0xf]  ;;  %2442 = vst.msk [vmem:[#allocation3 + $0x30] sm:$0xf] %vm2429_vm5, %v2346_v51  ;;  %v2348_v8 = vpop.permute.xlu0 %2347  ;;  %v3579_v23 = vrot.slane %v2111_v42, 9 }
 0x198   : > { %v1724_v57 = vshrl.u32 %v1477_v21, 16  ;;  %v1727_v59 = vshll.u32 %v1477_v21, 16  ;;  %2443 = vst.msk [vmem:[#allocation3 + $0x34] sm:$0xf] %vm2429_vm5, %v2348_v8  ;;  %v3864_v21 = vld [vmem:[#allocation3 + $0x68] sm:$0xff] }
 0x199   : > { %v2261_v45 = vsel %vm4079_vm13, %v3579_v23, %v2260_v6  ;;  %v1482_v1 = vld [vmem:[#allocation2 + $0x80] sm:$0x1]  ;;  %v2918_v23 = vpop.f32.mrf.mxu1  ;;  %v1396_v12 = vld [vmem:[#allocation2 + $0x6c] sm:$0xf] }
 0x19a   : > { %v1726_v47 = vrot.slane %v1724_v57, 4  ;;  %v1729_v30 = vrot.slane %v1727_v59, 5  ;;  %2357 = vrot.lane.b32.xlu1 %v2261_v45, %s3933_s26  ;;  %v1767_v4 = vshll.u32 %v1482_v1, 16  ;;  %v2116_v41 = vld [vmem:[#allocation2 + $0x80] sm:$0x1] }
 0x19b   : > { %v2270_v42 = vrot.slane %v2116_v41, 5  ;;  %1432 = vst.msk [vmem:[#allocation3 + $0x48] sm:$0xf] %vm219_vm3, %v1396_v12 }
 0x19c   : > { %v1730_v27 = vor.u32 %v1729_v30, %v1726_v47  ;;  %v1769_v9 = vrot.slane %v1767_v4, 5 }
 0x19d   : > { %v1990_v5 = vpop.permute.xlu1 %1989 }
 0x19e   : > { %v1731_v43 = vrot.slane %v1730_v27, 4  ;;  %2073 = vst.msk [vmem:[#allocation3 + $0x64] sm:$0xf] %vm2047_vm0, %v1990_v5  ;;  %v264_v5 = vld [vmem:[#allocation2 + $0x84] sm:$0x1] }
 0x19f   : > { %2455 = vst.msk [vmem:[#allocation3 + $0x64] sm:$0xf] %vm2429_vm5, %v2372_v0  ;;  %v3873_v46 = vld [vmem:[#allocation3 + $0x30] sm:$0xff]  ;;  %v1172_v50 = vpop.permute.xlu0 %1171 }
 0x1a0   : > { %v3857_v56 = vld [vmem:[#allocation3 + $0x30] sm:$0xff]  ;;  %v1736_v62 = vsel %vm4074_vm12, %v1731_v43, %v5029_v58  ;;  %v1330_v60 = vsel %vm4173_vm10, %v1172_v50, %v1329_v35  ;;  %3664 = vmatmul.msk.bf16.gmra.mxu0 %vm2627_vm9, %v3873_v46  ;;  %v361_v35 = vld [vmem:[%s4070_s24 + $0x50] sm:$0xf]  ;;  %v362_v43 = vld [vmem:[%s4070_s24 + $0x54] sm:$0xf] }
 0x1a1   : > { %v3889_v49 = vld [vmem:[#allocation3 + $0x30] sm:$0xff]  ;;  %1975 = vrot.lane.b32.xlu2 %v1736_v62, %s3932_s25  ;;  %3749 = vmatmul.msk.bf16.gmra.mxu1 %vm2627_vm9, %v3857_v56  ;;  %1331 = vst [vmem:[#allocation2 + $0x78] sm:$0xf] %v1330_v60  ;;  %v2920_v44 = vpop.f32.mrf.mxu1  ;;  %v265_v56 = vsel %vm4047_vm7, 0, %v264_v5  ;;  %v549_v60 = vshll.u32 %v361_v35, 16  ;;  %v554_v19 = vshrl.u32 %v362_v43, 16 }
 0x1a2   : > { %3834 = vmatmul.msk.bf16.gmra.mxu2 %vm2627_vm9, %v3889_v49  ;;  %v546_v49 = vshrl.u32 %v361_v35, 16  ;;  %v320_v50 = vld [vmem:[#allocation2 + $0x8c] sm:$0x1]  ;;  %266 = vst [vmem:[#allocation2 + $0x84] sm:$0x1] %v265_v56  ;;  %v557_v52 = vshll.u32 %v362_v43, 16 }
 0x1a3   : > { %v321_v33 = vsel %vm4031_vm6, 0, %v320_v50 }
 0x1a4   : > { %v548_v2 = vrot.slane %v546_v49, 7  ;;  %322 = vst [vmem:[#allocation2 + $0x8c] sm:$0x1] %v321_v33 }
 0x1a5   : > { %v2370_v58 = vpop.permute.xlu1 %2369 }
 0x1a6   : > { %2454 = vst.msk [vmem:[#allocation3 + $0x60] sm:$0xf] %vm2429_vm5, %v2370_v58 }
 0x1a8   : > { %v1480_v20 = vld [vmem:[#allocation2 + $0x78] sm:$0xf] }
 0x1a9   : > { %2359 = vrot.lane.b32.xlu2 %v2264_v55, %s3933_s26  ;;  %v1748_v37 = vshrl.u32 %v1480_v20, 16  ;;  %v1751_v54 = vshll.u32 %v1480_v20, 16  ;;  %v2114_v59 = vld [vmem:[#allocation2 + $0x78] sm:$0xe]  ;;  %v3865_v55 = vld [vmem:[#allocation3 + $0x70] sm:$0xff]  ;;  %v556_v20 = vrot.slane %v554_v19, 7 }
 0x1aa   : > { %v3580_v48 = vrot.slane %v2114_v59, 9  ;;  %v771_v4 = vld [vmem:[#allocation2 + $0x84] sm:$0xf] }
 0x1ab   : > { %v1750_v13 = vrot.slane %v1748_v37, 4  ;;  %v1753_v18 = vrot.slane %v1751_v54, 5  ;;  %v1394_v37 = vld [vmem:[#allocation2 + $0x60] sm:$0xf] }
 0x1ac   : > { %1430 = vst.msk [vmem:[#allocation3 + $0x40] sm:$0xf] %vm219_vm3, %v1394_v37  ;;  %v1502_v37 = vld [vmem:[#allocation2 + $0xd0] sm:$0xf] }
 0x1ad   : > { %v1174_v10 = vpop.permute.xlu1 %1173  ;;  %v3863_v24 = vld [vmem:[#allocation3 + $0x60] sm:$0xff]  ;;  %v1754_v51 = vor.u32 %v1753_v18, %v1750_v13  ;;  %v551_v18 = vor.u32 %v549_v60, %v548_v2 }
 0x1ae   : > { %1332 = vst.msk [vmem:[#allocation2 + $0x7c] sm:$0xf] %vm1261_vm8, %v1174_v10  ;;  %3755 = vmatmul.msk.bf16.vlgmr.msrb.gmra.mxu3 %vm2627_vm9, %v3863_v24  ;;  %v552_v24 = vrot.slane %v548_v2, 4 }
 0x1af   : > { %v1755_v26 = vrot.slane %v1754_v51, 4  ;;  %v559_v51 = vor.u32 %v557_v52, %v556_v20 }
 0x1b5   : > { %v1481_v15 = vld [vmem:[#allocation2 + $0x7c] sm:$0xf] }
 0x1b6   : > { %v2115_v17 = vld [vmem:[#allocation2 + $0x7c] sm:$0xf]  ;;  %v1757_v53 = vshll.u32 %v1481_v15, 16  ;;  %v1761_v29 = vshrl.u32 %v1481_v15, 16  ;;  %v561_v15 = vrot.slane %v556_v20, 4 }
 0x1b7   : > { %v2267_v31 = vrot.slane %v2115_v17, 5  ;;  %v338_v20 = vld [vmem:[#allocation2 + $0xd4] sm:$0x1] }
 0x1b8   : > { %v1759_v36 = vrot.slane %v1757_v53, 5  ;;  %v1763_v34 = vrot.slane %v1761_v29, 4 }
 0x1b9   : > { %v2269_v6 = vrot.slane %v2267_v31, 4  ;;  %v2268_v45 = vsel %vm4079_vm13, %v3580_v48, %v2267_v31  ;;  %v3866_v48 = vld [vmem:[#allocation3 + $0x78] sm:$0xff] }
 0x1ba   : > { %v1760_v22 = vsel %vm4074_vm12, %v1755_v26, %v1759_v36  ;;  %v1764_v7 = vor.u32 %v1763_v34, %v1759_v36  ;;  %2361 = vrot.lane.b32.xlu2 %v2268_v45, %s3933_s26  ;;  %v560_v26 = vsel %vm3982_vm2, %v552_v24, %v559_v51  ;;  %v772_v36 = vsel %vm4093_vm15, %v551_v18, %v771_v4  ;;  %v775_v34 = vld [vmem:[#allocation2 + $0x8c] sm:$0x1] }
 0x1bb   : > { %1979 = vrot.lane.b32.xlu0 %v1760_v22, %s3932_s25  ;;  %v2271_v57 = vsel %vm4079_vm13, %v2269_v6, %v2270_v42  ;;  %v2350_v27 = vpop.permute.xlu2 %2349  ;;  %774 = vst.msk [vmem:[#allocation2 + $0x88] sm:$0xf] %vm696_vm14, %v560_v26  ;;  %v776_v14 = vsel %vm4139_vm4, %v561_v15, %v775_v34  ;;  %v1925_v24 = vshll.u32 %v1502_v37, 16 }
 0x1bc   : > { %v1765_v38 = vrot.slane %v1764_v7, 4  ;;  %773 = vst [vmem:[#allocation2 + $0x84] sm:$0xf] %v772_v36 }
 0x1bd   : > { %777 = vst [vmem:[#allocation2 + $0x8c] sm:$0x1] %v776_v14 }
 0x1be   : > { %v1770_v8 = vsel %vm4074_vm12, %v1765_v38, %v1769_v9  ;;  %3756 = vmatmul.msk.bf16.gmra.mxu3 %vm2627_vm9, %v3864_v21  ;;  %v1395_v9 = vld [vmem:[#allocation2 + $0x64] sm:$0xf] }
 0x1bf   : > { %1981 = vrot.lane.b32.xlu1 %v1770_v8, %s3932_s25  ;;  %1431 = vst.msk [vmem:[#allocation3 + $0x44] sm:$0xf] %vm219_vm3, %v1395_v9 }
 0x1c2   : > { %v3184_v0 = vpop.f32.mrf.mxu2 }
 0x1c3   : > { %2363 = vrot.lane.b32.xlu0 %v2271_v57, %s3933_s26  ;;  %v1180_v17 = vpop.permute.xlu2 %1179 }
 0x1c4   : > { %v2689_v47 = vpop.f32.mrf.mxu0  ;;  %1339 = vst.msk [vmem:[#allocation2 + $0x88] sm:$0xf] %vm1261_vm8, %v1180_v17  ;;  %v1340_v50 = vld [vmem:[#allocation2 + $0x8c] sm:$0x1] }
 0x1c5   : > { %v2919_v30 = vadd.f32 %v2918_v23, %v2689_v47  ;;  %v2923_v53 = vpop.f32.mrf.mxu1  ;;  %v5150_v17 = vpop.f32.mrf.mxu3 }
 0x1c7   : > { %v3264_v61 = vadd.f32 %v3184_v0, %v2919_v30 }
 0x1c9   : > { %v3300_v46 = vadd.f32 %v5093_v39, %v3264_v61  ;;  %v1336_v61 = vld [vmem:[#allocation2 + $0x84] sm:$0xf] }
 0x1ca   : > { %v3186_v62 = vpop.f32.mrf.mxu2 }
 0x1cb   : > { %vm3332_vm1 = vcmp.gt.f32.partialorder %v3300_v46, 0.0  ;;  %v3364_v63 = vmul.f32 0.01, %v3300_v46  ;;  %v1484_v5 = vld [vmem:[#allocation2 + $0x88] sm:$0xf] }
 0x1cc   : > { %v2691_v58 = vpop.f32.mrf.mxu0  ;;  %v1781_v56 = vshll.u32 %v1484_v5, 16  ;;  %v1785_v49 = vshrl.u32 %v1484_v5, 16  ;;  %v5136_v60 = vld [vmem:[#allocation2 + $0x88] sm:$0xf] }
 0x1cd   : > { %v3396_v54 = vsel %vm3332_vm1, %v3300_v46, %v3364_v63  ;;  %v2921_v10 = vadd.f32 %v2920_v44, %v2691_v58  ;;  %v2925_v8 = vpop.f32.mrf.mxu1  ;;  %v2274_v51 = vrot.slane %v5136_v60, 5  ;;  %v5165_v5 = vpop.f32.mrf.mxu3 }
 0x1ce   : > { %v3428_v13 = vpack.c.bf16 %v3396_v54, %v3396_v54  ;;  %3757 = vmatmul.msk.bf16.gmra.mxu3 %vm2627_vm9, %v3865_v55  ;;  %v1783_v55 = vrot.slane %v1781_v56, 5  ;;  %v1787_v3 = vrot.slane %v1785_v49, 4 }
 0x1cf   : > { %v3265_v1 = vadd.f32 %v3186_v62, %v2921_v10  ;;  %v339_v10 = vsel %vm4031_vm6, 0, %v338_v20  ;;  %v3898_v20 = vld [vmem:[#allocation3 + $0x78] sm:$0xff] }
 0x1d0   : > { %3460 = vst.msk [vmem:[%s5106_s19] sm:$0xf] %vm219_vm3, %v3428_v13  ;;  %v1929_v13 = vshrl.u32 %v1502_v37, 16  ;;  %v1788_v36 = vor.u32 %v1787_v3, %v1783_v55 }
 0x1d1   : > { %v3301_v29 = vadd.f32 %v5093_v39, %v3265_v1  ;;  %340 = vst [vmem:[#allocation2 + $0xd4] sm:$0x1] %v339_v10  ;;  %v5148_v1 = vrot.slane %v1925_v24, 5 }
 0x1d2   : > { %v3189_v41 = vpop.f32.mrf.mxu2  ;;  %v1931_v15 = vrot.slane %v1929_v13, 4 }
 0x1d3   : > { %vm3333_vm1 = vcmp.gt.f32.partialorder %v3301_v29, 0.0  ;;  %v3365_v31 = vmul.f32 0.01, %v3301_v29 }
 0x1d4   : > { %v2694_v7 = vpop.f32.mrf.mxu0 }
 0x1d5   : > { %v3397_v38 = vsel %vm3333_vm1, %v3301_v29, %v3365_v31  ;;  %v2924_v28 = vadd.f32 %v2923_v53, %v2694_v7  ;;  %v1932_v31 = vor.u32 %v1931_v15, %v5148_v1  ;;  %v282_v15 = vld [vmem:[#allocation2 + $0xcc] sm:$0x1] }
 0x1d6   : > { %v1968_v22 = vpop.permute.xlu0 %1967  ;;  %v3429_v6 = vpack.c.bf16 %v3397_v38, %v3397_v38 }
 0x1d7   : > { %2062 = vst.msk [vmem:[#allocation3 + $0x38] sm:$0xf] %vm2047_vm0, %v1968_v22  ;;  %v3266_v42 = vadd.f32 %v3189_v41, %v2924_v28  ;;  %v1397_v41 = vld [vmem:[#allocation2 + $0x70] sm:$0xf]  ;;  %v3897_v22 = vld [vmem:[#allocation3 + $0x70] sm:$0xff]  ;;  %v2928_v28 = vpop.f32.mrf.mxu1 }
 0x1d8   : > { %2444 = vst.msk [vmem:[#allocation3 + $0x38] sm:$0xf] %vm2429_vm5, %v2350_v27 }
 0x1d9   : > { %3461 = vst.msk [vmem:[%s5106_s19 + $0x4] sm:$0xf] %vm219_vm3, %v3429_v6  ;;  %v3302_v32 = vadd.f32 %v5093_v39, %v3266_v42 }
 0x1da   : > { %v1970_v21 = vpop.permute.xlu1 %1969  ;;  %v3191_v27 = vpop.f32.mrf.mxu2  ;;  %1433 = vst.msk [vmem:[#allocation3 + $0x4c] sm:$0xf] %vm219_vm3, %v1397_v41 }
 0x1db   : > { %2063 = vst.msk [vmem:[#allocation3 + $0x3c] sm:$0xf] %vm2047_vm0, %v1970_v21  ;;  %vm3334_vm2 = vcmp.gt.f32.partialorder %v3302_v32, 0.0  ;;  %v3366_v23 = vmul.f32 0.01, %v3302_v32  ;;  %v1789_v21 = vrot.slane %v1788_v36, 4  ;;  %v5176_v37 = vpop.f32.mrf.mxu3 }
 0x1dc   : > { %v2696_v59 = vpop.f32.mrf.mxu0 }
 0x1dd   : > { %v3398_v0 = vsel %vm3334_vm2, %v3302_v32, %v3366_v23  ;;  %v2926_v45 = vadd.f32 %v2925_v8, %v2696_v59  ;;  %v1503_v8 = vld [vmem:[#allocation2 + $0xd4] sm:$0x1]  ;;  %v1933_v23 = vrot.slane %v1932_v31, 4 }
 0x1de   : > { %v2352_v57 = vpop.permute.xlu0 %2351  ;;  %v3430_v30 = vpack.c.bf16 %v3398_v0, %v3398_v0  ;;  %3758 = vmatmul.msk.bf16.gmra.mxu3 %vm2627_vm9, %v3866_v48 }
 0x1df   : > { %2445 = vst.msk [vmem:[#allocation3 + $0x3c] sm:$0xf] %vm2429_vm5, %v2352_v57  ;;  %v1974_v47 = vpop.permute.xlu2 %1973  ;;  %v3267_v35 = vadd.f32 %v3191_v27, %v2926_v45  ;;  %v1935_v57 = vshll.u32 %v1503_v8, 16  ;;  %v2930_v60 = vpop.f32.mrf.mxu1 }
 0x1e0   : > { %2065 = vst.msk [vmem:[#allocation3 + $0x44] sm:$0xf] %vm2047_vm0, %v1974_v47 }
 0x1e1   : > { %3462 = vst.msk [vmem:[%s5106_s19 + $0x8] sm:$0xf] %vm219_vm3, %v3430_v30  ;;  %v3303_v44 = vadd.f32 %v5093_v39, %v3267_v35  ;;  %v1937_v47 = vrot.slane %v1935_v57, 5  ;;  %v2137_v57 = vld [vmem:[#allocation2 + $0xd4] sm:$0x1] }
 0x1e2   : > { %v1178_v43 = vpop.permute.xlu1 %1177 }
 0x1e3   : > { %v1337_v46 = vsel %vm4173_vm10, %v1178_v43, %v1336_v61  ;;  %vm3335_vm14 = vcmp.gt.f32.partialorder %v3303_v44, 0.0  ;;  %v3367_v62 = vmul.f32 0.01, %v3303_v44  ;;  %v5194_v36 = vpop.f32.mrf.mxu3 }
 0x1e4   : > { %1338 = vst [vmem:[#allocation2 + $0x84] sm:$0xf] %v1337_v46  ;;  %v2699_v34 = vpop.f32.mrf.mxu0 }
 0x1e5   : > { %v3399_v2 = vsel %vm3335_vm14, %v3303_v44, %v3367_v62  ;;  %v2929_v59 = vadd.f32 %v2928_v28, %v2699_v34  ;;  %v1938_v44 = vsel %vm4074_vm12, %v1933_v23, %v1937_v47 }
 0x1e6   : > { %v1182_v19 = vpop.permute.xlu0 %1181  ;;  %v3874_v52 = vld [vmem:[#allocation3 + $0x38] sm:$0xff]  ;;  %v3431_v54 = vpack.c.bf16 %v3399_v2, %v3399_v2  ;;  %v2135_v2 = vld [vmem:[#allocation2 + $0xcc] sm:$0xe] }
 0x1e7   : > { %v3858_v33 = vld [vmem:[#allocation3 + $0x38] sm:$0xff]  ;;  %v1341_v58 = vsel %vm4182_vm11, %v1182_v19, %v1340_v50  ;;  %3665 = vmatmul.msk.bf16.gmra.mxu0 %vm2627_vm9, %v3874_v52  ;;  %v2276_v50 = vrot.slane %v2274_v51, 4 }
 0x1e8   : > { %v3890_v63 = vld [vmem:[#allocation3 + $0x38] sm:$0xff]  ;;  %1342 = vst [vmem:[#allocation2 + $0x8c] sm:$0x1] %v1341_v58  ;;  %3750 = vmatmul.msk.bf16.gmra.mxu1 %vm2627_vm9, %v3858_v33 }
 0x1e9   : > { %3835 = vmatmul.msk.bf16.gmra.mxu2 %vm2627_vm9, %v3890_v63  ;;  %3463 = vst.msk [vmem:[%s5106_s19 + $0xc] sm:$0xf] %vm219_vm3, %v3431_v54  ;;  %v2136_v58 = vld [vmem:[#allocation2 + $0xd0] sm:$0xf] }
 0x1ea   : > { %v1972_v18 = vpop.permute.xlu1 %1971 }
 0x1eb   : > { %2064 = vst.msk [vmem:[#allocation3 + $0x40] sm:$0xf] %vm2047_vm0, %v1972_v18  ;;  %v2117_v25 = vld [vmem:[#allocation2 + $0x84] sm:$0xe]  ;;  %v3587_v18 = vrot.slane %v2135_v2, 9 }
 0x1ec   : > { %v1483_v26 = vld [vmem:[#allocation2 + $0x84] sm:$0xf]  ;;  %v3581_v53 = vrot.slane %v2117_v25, 9  ;;  %v2701_v56 = vpop.f32.mrf.mxu0  ;;  %v283_v25 = vsel %vm4047_vm7, 0, %v282_v15 }
 0x1ed   : > { %v1772_v29 = vshrl.u32 %v1483_v26, 16  ;;  %v1775_v4 = vshll.u32 %v1483_v26, 16  ;;  %v2931_v19 = vadd.f32 %v2930_v60, %v2701_v56  ;;  %284 = vst [vmem:[#allocation2 + $0xcc] sm:$0x1] %v283_v25 }
 0x1ee   : > { %v2275_v14 = vsel %vm4079_vm13, %v3581_v53, %v2274_v51  ;;  %v2354_v7 = vpop.permute.xlu0 %2353  ;;  %3842 = vmatmul.msk.bf16.vlgmr.msra.gmra.mxu3 %vm2627_vm9, %v3897_v22  ;;  %v2316_v51 = vrot.slane %v2136_v58, 5 }
 0x1ef   : > { %v1774_v9 = vrot.slane %v1772_v29, 4  ;;  %v1777_v38 = vrot.slane %v1775_v4, 5  ;;  %2365 = vrot.lane.b32.xlu0 %v2275_v14, %s3933_s26  ;;  %2446 = vst.msk [vmem:[#allocation3 + $0x40] sm:$0xf] %vm2429_vm5, %v2354_v7  ;;  %v1485_v6 = vld [vmem:[#allocation2 + $0x8c] sm:$0x1] }
 0x1f0   : > { %v1791_v32 = vshll.u32 %v1485_v6, 16  ;;  %v2119_v43 = vld [vmem:[#allocation2 + $0x8c] sm:$0x1]  ;;  %v2317_v29 = vsel %vm4079_vm13, %v3587_v18, %v2316_v51 }
 0x1f1   : > { %v1778_v42 = vor.u32 %v1777_v38, %v1774_v9  ;;  %v3194_v45 = vpop.f32.mrf.mxu2  ;;  %v2277_v62 = vrot.slane %v2119_v43, 5  ;;  %v1399_v9 = vld [vmem:[#allocation2 + $0x7c] sm:$0xf]  ;;  %v1398_v38 = vld [vmem:[#allocation2 + $0x78] sm:$0xf] }
 0x1f2   : > { %v1793_v0 = vrot.slane %v1791_v32, 5  ;;  %v3268_v30 = vadd.f32 %v3194_v45, %v2929_v59  ;;  %1434 = vst.msk [vmem:[#allocation3 + $0x50] sm:$0xf] %vm219_vm3, %v1398_v38  ;;  %v3899_v32 = vld [vmem:[#allocation3 + $0x80] sm:$0xff] }
 0x1f3   : > { %v1779_v48 = vrot.slane %v1778_v42, 4  ;;  %v2278_v3 = vsel %vm4079_vm13, %v2276_v50, %v2277_v62  ;;  %1435 = vst.msk [vmem:[#allocation3 + $0x54] sm:$0xf] %vm219_vm3, %v1399_v9  ;;  %v2933_v42 = vpop.f32.mrf.mxu1  ;;  %v1400_v50 = vld [vmem:[#allocation2 + $0x84] sm:$0xf] }
 0x1f4   : > { %v1794_v61 = vsel %vm4074_vm12, %v1789_v21, %v1793_v0  ;;  %v2356_v35 = vpop.permute.xlu1 %2355  ;;  %v3304_v46 = vadd.f32 %v5093_v39, %v3268_v30  ;;  %v1501_v40 = vld [vmem:[#allocation2 + $0xcc] sm:$0xf]  ;;  %v2704_v21 = vpop.f32.mrf.mxu0  ;;  %v2319_v0 = vrot.slane %v2137_v57, 5  ;;  %1436 = vst.msk [vmem:[#allocation3 + $0x58] sm:$0xf] %vm219_vm3, %v1400_v50 }
 0x1f5   : > { %v1784_v27 = vsel %vm4074_vm12, %v1779_v48, %v1783_v55  ;;  %1985 = vrot.lane.b32.xlu2 %v1794_v61, %s3932_s25  ;;  %2447 = vst.msk [vmem:[#allocation3 + $0x44] sm:$0xf] %vm2429_vm5, %v2356_v35  ;;  %v1916_v31 = vshrl.u32 %v1501_v40, 16  ;;  %v1919_v41 = vshll.u32 %v1501_v40, 16  ;;  %v2318_v48 = vrot.slane %v2316_v51, 4 }
 0x1f6   : > { %1983 = vrot.lane.b32.xlu1 %v1784_v27, %s3932_s25  ;;  %vm3336_vm6 = vcmp.gt.f32.partialorder %v3304_v46, 0.0  ;;  %v3368_v49 = vmul.f32 0.01, %v3304_v46  ;;  %v2934_v45 = vadd.f32 %v2933_v42, %v2704_v21 }
 0x1f7   : > { %2009 = vrot.lane.b32.xlu0 %v1938_v44, %s3932_s25  ;;  %v1918_v22 = vrot.slane %v1916_v31, 4  ;;  %v1921_v7 = vrot.slane %v1919_v41, 5  ;;  %v2320_v43 = vsel %vm4079_vm13, %v2318_v48, %v2319_v0  ;;  %v1412_v48 = vld [vmem:[#allocation2 + $0xcc] sm:$0xf] }
 0x1f8   : > { %v3400_v52 = vsel %vm3336_vm6, %v3304_v46, %v3368_v49  ;;  %1448 = vst.msk [vmem:[#allocation3 + $0x88] sm:$0xf] %vm219_vm3, %v1412_v48 }
 0x1f9   : > { %v3432_v33 = vpack.c.bf16 %v3400_v52, %v3400_v52  ;;  %v3196_v63 = vpop.f32.mrf.mxu2  ;;  %v1922_v28 = vor.u32 %v1921_v7, %v1918_v22  ;;  %v5201_v23 = vpop.f32.mrf.mxu3 }
 0x1fa   : > { %v3269_v55 = vadd.f32 %v3196_v63, %v2931_v19 }
 0x1fb   : > { %3464 = vst.msk [vmem:[%s5106_s19 + $0x10] sm:$0xf] %vm219_vm3, %v3432_v33  ;;  %v1976_v24 = vpop.permute.xlu2 %1975  ;;  %v1923_v8 = vrot.slane %v1922_v28, 4  ;;  %v2935_v11 = vpop.f32.mrf.mxu1  ;;  %v1401_v33 = vld [vmem:[#allocation2 + $0x88] sm:$0xf] }
 0x1fc   : > { %v3875_v54 = vld [vmem:[#allocation3 + $0x40] sm:$0xff]  ;;  %v3305_v12 = vadd.f32 %v5093_v39, %v3269_v55  ;;  %2066 = vst.msk [vmem:[#allocation3 + $0x48] sm:$0xf] %vm2047_vm0, %v1976_v24 }
 0x1fd   : > { %v3891_v10 = vld [vmem:[#allocation3 + $0x40] sm:$0xff]  ;;  %3666 = vmatmul.msk.bf16.gmra.mxu0 %vm2627_vm9, %v3875_v54  ;;  %v1928_v59 = vsel %vm4074_vm12, %v1923_v8, %v5148_v1  ;;  %v2706_v1 = vpop.f32.mrf.mxu0  ;;  %1437 = vst.msk [vmem:[#allocation3 + $0x5c] sm:$0xf] %vm219_vm3, %v1401_v33 }
 0x1fe   : > { %2367 = vrot.lane.b32.xlu1 %v2278_v3, %s3933_s26  ;;  %v3859_v13 = vld [vmem:[#allocation3 + $0x40] sm:$0xff]  ;;  %3836 = vmatmul.msk.bf16.gmra.mxu2 %vm2627_vm9, %v3891_v10  ;;  %vm3337_vm15 = vcmp.gt.f32.partialorder %v3305_v12, 0.0  ;;  %v3369_v26 = vmul.f32 0.01, %v3305_v12  ;;  %v2936_v49 = vadd.f32 %v2935_v11, %v2706_v1 }
 0x1ff   : > { %3843 = vmatmul.msk.bf16.gmra.mxu3 %vm2627_vm9, %v3898_v20  ;;  %3751 = vmatmul.msk.bf16.gmra.mxu1 %vm2627_vm9, %v3859_v13 }
 0x200   : > { %v3401_v53 = vsel %vm3337_vm15, %v3305_v12, %v3369_v26  ;;  %2007 = vrot.lane.b32.xlu2 %v1928_v59, %s3932_s25 }
 0x201   : > { %v3433_v4 = vpack.c.bf16 %v3401_v53, %v3401_v53  ;;  %v5214_v46 = vpop.f32.mrf.mxu3 }
 0x203   : > { %3465 = vst.msk [vmem:[%s5106_s19 + $0x14] sm:$0xf] %vm219_vm3, %v3433_v4  ;;  %v2360_v34 = vpop.permute.xlu2 %2359  ;;  %v2938_v55 = vpop.f32.mrf.mxu1 }
 0x206   : > { %2389 = vrot.lane.b32.xlu1 %v2317_v29, %s3933_s26 }
 0x208   : > { %v1978_v14 = vpop.permute.xlu0 %1977  ;;  %2391 = vrot.lane.b32.xlu2 %v2320_v43, %s3933_s26 }
 0x209   : > { %2067 = vst.msk [vmem:[#allocation3 + $0x4c] sm:$0xf] %vm2047_vm0, %v1978_v14 }
 0x20a   : > { %2449 = vst.msk [vmem:[#allocation3 + $0x4c] sm:$0xf] %vm2429_vm5, %v2360_v34 }
 0x20b   : > { %v2709_v63 = vpop.f32.mrf.mxu0  ;;  %v5222_v2 = vpop.f32.mrf.mxu3 }
 0x20c   : > { %v2358_v6 = vpop.permute.xlu1 %2357  ;;  %v2939_v54 = vadd.f32 %v2938_v55, %v2709_v63  ;;  %v2940_v15 = vpop.f32.mrf.mxu1 }
 0x20d   : > { %2448 = vst.msk [vmem:[#allocation3 + $0x48] sm:$0xf] %vm2429_vm5, %v2358_v6 }
 0x20f   : > { %3844 = vmatmul.msk.bf16.gmra.mxu3 %vm2627_vm9, %v3899_v32 }
 0x213   : > { %v3199_v47 = vpop.f32.mrf.mxu2  ;;  %v2711_v12 = vpop.f32.mrf.mxu0 }
 0x214   : > { %v3270_v30 = vadd.f32 %v3199_v47, %v2934_v45  ;;  %v3892_v27 = vld [vmem:[#allocation3 + $0x48] sm:$0xff]  ;;  %v2766_v18 = vpop.f32.mrf.mxu3  ;;  %v2941_v25 = vadd.f32 %v2940_v15, %v2711_v12  ;;  %v2362_v53 = vpop.permute.xlu2 %2361  ;;  %v1413_v45 = vld [vmem:[#allocation2 + $0xd0] sm:$0xf] }
 0x215   : > { %v3876_v61 = vld [vmem:[#allocation3 + $0x48] sm:$0xff]  ;;  %3837 = vmatmul.msk.bf16.gmra.mxu2 %vm2627_vm9, %v3892_v27  ;;  %1449 = vst.msk [vmem:[#allocation3 + $0x8c] sm:$0xf] %vm219_vm3, %v1413_v45 }
 0x216   : > { %v3860_v35 = vld [vmem:[#allocation3 + $0x48] sm:$0xff]  ;;  %v3306_v44 = vadd.f32 %v5093_v39, %v3270_v30  ;;  %3667 = vmatmul.msk.bf16.gmra.mxu0 %vm2627_vm9, %v3876_v61 }
 0x217   : > { %3752 = vmatmul.msk.bf16.gmra.mxu1 %vm2627_vm9, %v3860_v35  ;;  %v2943_v35 = vpop.f32.mrf.mxu1 }
 0x218   : > { %vm3338_vm7 = vcmp.gt.f32.partialorder %v3306_v44, 0.0  ;;  %v3370_v56 = vmul.f32 0.01, %v3306_v44 }
 0x21a   : > { %v3402_v16 = vsel %vm3338_vm7, %v3306_v44, %v3370_v56 }
 0x21b   : > { %v3434_v62 = vpack.c.bf16 %v3402_v16, %v3402_v16  ;;  %v3201_v60 = vpop.f32.mrf.mxu2 }
 0x21c   : > { %v3271_v19 = vadd.f32 %v3201_v60, %v2936_v49 }
 0x21d   : > { %3466 = vst.msk [vmem:[%s5106_s19 + $0x18] sm:$0xf] %vm219_vm3, %v3434_v62  ;;  %v2714_v27 = vpop.f32.mrf.mxu0 }
 0x21e   : > { %v3307_v52 = vadd.f32 %v5093_v39, %v3271_v19  ;;  %v2944_v44 = vadd.f32 %v2943_v35, %v2714_v27 }
 0x220   : > { %vm3339_vm12 = vcmp.gt.f32.partialorder %v3307_v52, 0.0  ;;  %v3371_v58 = vmul.f32 0.01, %v3307_v52 }
 0x222   : > { %v3403_v3 = vsel %vm3339_vm12, %v3307_v52, %v3371_v58  ;;  %v2945_v52 = vpop.f32.mrf.mxu1 }
 0x223   : > { %v3435_v20 = vpack.c.bf16 %v3403_v3, %v3403_v3 }
 0x225   : > { %3467 = vst.msk [vmem:[%s5106_s19 + $0x1c] sm:$0xf] %vm219_vm3, %v3435_v20  ;;  %v3204_v10 = vpop.f32.mrf.mxu2  ;;  %v2716_v60 = vpop.f32.mrf.mxu0 }
 0x226   : > { %v3272_v24 = vadd.f32 %v3204_v10, %v2939_v54  ;;  %v2946_v63 = vadd.f32 %v2945_v52, %v2716_v60 }
 0x228   : > { %v3308_v13 = vadd.f32 %v5093_v39, %v3272_v24 }
 0x22a   : > { %vm3340_vm13 = vcmp.gt.f32.partialorder %v3308_v13, 0.0  ;;  %v3372_v51 = vmul.f32 0.01, %v3308_v13 }
 0x22c   : > { %v3404_v26 = vsel %vm3340_vm13, %v3308_v13, %v3372_v51 }
 0x22d   : > { %v3436_v29 = vpack.c.bf16 %v3404_v26, %v3404_v26  ;;  %v3206_v4 = vpop.f32.mrf.mxu2  ;;  %v1980_v40 = vpop.permute.xlu0 %1979 }
 0x22e   : > { %v3273_v34 = vadd.f32 %v3206_v4, %v2941_v25  ;;  %2068 = vst.msk [vmem:[#allocation3 + $0x50] sm:$0xf] %vm2047_vm0, %v1980_v40 }
 0x22f   : > { %3468 = vst.msk [vmem:[%s5106_s19 + $0x20] sm:$0xf] %vm219_vm3, %v3436_v29 }
 0x230   : > { %v3309_v31 = vadd.f32 %v5093_v39, %v3273_v34  ;;  %2450 = vst.msk [vmem:[#allocation3 + $0x50] sm:$0xf] %vm2429_vm5, %v2362_v53 }
 0x231   : > { %v1982_v41 = vpop.permute.xlu1 %1981  ;;  %v2978_v22 = vpop.f32.mrf.mxu3 }
 0x232   : > { %vm3341_vm4 = vcmp.gt.f32.partialorder %v3309_v31, 0.0  ;;  %v3373_v14 = vmul.f32 0.01, %v3309_v31  ;;  %2069 = vst.msk [vmem:[#allocation3 + $0x54] sm:$0xf] %vm2047_vm0, %v1982_v41  ;;  %v2979_v33 = vadd.f32 %v2978_v22, %v5150_v17  ;;  %v2948_v22 = vpop.f32.mrf.mxu1 }
 0x234   : > { %v3405_v7 = vsel %vm3341_vm4, %v3309_v31, %v3373_v14 }
 0x235   : > { %v3437_v9 = vpack.c.bf16 %v3405_v7, %v3405_v7  ;;  %v2364_v38 = vpop.permute.xlu0 %2363 }
 0x236   : > { %2451 = vst.msk [vmem:[#allocation3 + $0x54] sm:$0xf] %vm2429_vm5, %v2364_v38 }
 0x237   : > { %3469 = vst.msk [vmem:[%s5106_s19 + $0x24] sm:$0xf] %vm219_vm3, %v3437_v9 }
 0x239   : > { %v5236_v28 = vpop.f32.mrf.mxu3 }
 0x23a   : > { %v2981_v53 = vadd.f32 %v5236_v28, %v5165_v5 }
 0x23d   : > { %v3877_v6 = vld [vmem:[#allocation3 + $0x50] sm:$0xff] }
 0x23e   : > { %v3861_v42 = vld [vmem:[#allocation3 + $0x50] sm:$0xff]  ;;  %3668 = vmatmul.msk.bf16.gmra.mxu0 %vm2627_vm9, %v3877_v6 }
 0x23f   : > { %v3893_v21 = vld [vmem:[#allocation3 + $0x50] sm:$0xff]  ;;  %3753 = vmatmul.msk.bf16.gmra.mxu1 %vm2627_vm9, %v3861_v42 }
 0x240   : > { %3838 = vmatmul.msk.bf16.gmra.mxu2 %vm2627_vm9, %v3893_v21 }
 0x241   : > { %v5241_v32 = vpop.f32.mrf.mxu3 }
 0x242   : > { %v2984_v28 = vadd.f32 %v5241_v32, %v5176_v37  ;;  %v3895_v32 = vld [vmem:[#allocation3 + $0x60] sm:$0xff] }
 0x249   : > { %v5243_v8 = vpop.f32.mrf.mxu3 }
 0x24f   : > { %v1986_v57 = vpop.permute.xlu2 %1985 }
 0x250   : > { %2071 = vst.msk [vmem:[#allocation3 + $0x5c] sm:$0xf] %vm2047_vm0, %v1986_v57 }
 0x251   : > { %v5246_v59 = vpop.f32.mrf.mxu3 }
 0x259   : > { %v5249_v0 = vpop.f32.mrf.mxu3 }
 0x25a   : > { %v2008_v1 = vpop.permute.xlu2 %2007 }
 0x25b   : > { %2082 = vst.msk [vmem:[#allocation3 + $0x88] sm:$0xf] %vm2047_vm0, %v2008_v1 }
 0x261   : > { %v2366_v47 = vpop.permute.xlu0 %2365  ;;  %v5252_v30 = vpop.f32.mrf.mxu3 }
 0x262   : > { %v2392_v3 = vpop.permute.xlu2 %2391 }
 0x264   : > { %v2719_v31 = vpop.f32.mrf.mxu0 }
 0x265   : > { %v2949_v38 = vadd.f32 %v2948_v22, %v2719_v31 }
 0x268   : > { %v1984_v61 = vpop.permute.xlu1 %1983 }
 0x269   : > { %2070 = vst.msk [vmem:[#allocation3 + $0x58] sm:$0xf] %vm2047_vm0, %v1984_v61  ;;  %v2010_v43 = vpop.permute.xlu0 %2009  ;;  %v2995_v11 = vpop.f32.mrf.mxu3 }
 0x26a   : > { %2452 = vst.msk [vmem:[#allocation3 + $0x58] sm:$0xf] %vm2429_vm5, %v2366_v47  ;;  %v5257_v56 = vadd.f32 %v2995_v11, %v2766_v18 }
 0x26b   : > { %2083 = vst.msk [vmem:[#allocation3 + $0x8c] sm:$0xf] %vm2047_vm0, %v2010_v43  ;;  %v3879_v43 = vld [vmem:[#allocation3 + $0x60] sm:$0xff] }
 0x26c   : > { %v3209_v49 = vpop.f32.mrf.mxu2  ;;  %2465 = vst.msk [vmem:[#allocation3 + $0x8c] sm:$0xf] %vm2429_vm5, %v2392_v3  ;;  %v2721_v27 = vpop.f32.mrf.mxu0  ;;  %v2989_v3 = vadd.f32 %v5246_v59, %v5201_v23  ;;  %v2991_v23 = vadd.f32 %v5249_v0, %v5214_v46 }
 0x26d   : > { %v3274_v16 = vadd.f32 %v3209_v49, %v2944_v44  ;;  %v2950_v44 = vpop.f32.mrf.mxu1  ;;  %v2986_v49 = vadd.f32 %v5243_v8, %v5194_v36 }
 0x26e   : > { %v2951_v11 = vadd.f32 %v2950_v44, %v2721_v27 }
 0x26f   : > { %v3310_v50 = vadd.f32 %v5093_v39, %v3274_v16 }
 0x270   : > { %v2368_v62 = vpop.permute.xlu1 %2367 }
 0x271   : > { %2453 = vst.msk [vmem:[#allocation3 + $0x5c] sm:$0xf] %vm2429_vm5, %v2368_v62  ;;  %vm3342_vm8 = vcmp.gt.f32.partialorder %v3310_v50, 0.0  ;;  %v3374_v19 = vmul.f32 0.01, %v3310_v50  ;;  %v3244_v55 = vpop.f32.mrf.mxu3 }
 0x272   : > { %v3288_v10 = vadd.f32 %v3244_v55, %v2979_v33 }
 0x273   : > { %v3406_v58 = vsel %vm3342_vm8, %v3310_v50, %v3374_v19 }
 0x274   : > { %v3438_v20 = vpack.c.bf16 %v3406_v58, %v3406_v58  ;;  %v3211_v54 = vpop.f32.mrf.mxu2  ;;  %v3324_v13 = vadd.f32 %v5093_v39, %v3288_v10 }
 0x275   : > { %v3275_v24 = vadd.f32 %v3211_v54, %v2946_v63 }
 0x276   : > { %3470 = vst.msk [vmem:[%s5106_s19 + $0x28] sm:$0xf] %vm219_vm3, %v3438_v20  ;;  %vm3356_vm10 = vcmp.gt.f32.partialorder %v3324_v13, 0.0  ;;  %v3388_v25 = vmul.f32 0.01, %v3324_v13 }
 0x277   : > { %v3311_v12 = vadd.f32 %v5093_v39, %v3275_v24 }
 0x278   : > { %v2390_v18 = vpop.permute.xlu1 %2389  ;;  %v3878_v51 = vld [vmem:[#allocation3 + $0x58] sm:$0xff]  ;;  %v3420_v29 = vsel %vm3356_vm10, %v3324_v13, %v3388_v25 }
 0x279   : > { %v3862_v15 = vld [vmem:[#allocation3 + $0x58] sm:$0xff]  ;;  %2464 = vst.msk [vmem:[#allocation3 + $0x88] sm:$0xf] %vm2429_vm5, %v2390_v18  ;;  %vm3343_vm11 = vcmp.gt.f32.partialorder %v3311_v12, 0.0  ;;  %v3375_v26 = vmul.f32 0.01, %v3311_v12  ;;  %3669 = vmatmul.msk.bf16.gmra.mxu0 %vm2627_vm9, %v3878_v51  ;;  %v3452_v40 = vpack.c.bf16 %v3420_v29, %v3420_v29  ;;  %v3246_v34 = vpop.f32.mrf.mxu3  ;;  %v2953_v18 = vpop.f32.mrf.mxu1 }
 0x27a   : > { %v3894_v17 = vld [vmem:[#allocation3 + $0x58] sm:$0xff]  ;;  %3754 = vmatmul.msk.bf16.gmra.mxu1 %vm2627_vm9, %v3862_v15  ;;  %v3289_v14 = vadd.f32 %v3246_v34, %v2981_v53  ;;  %v2724_v13 = vpop.f32.mrf.mxu0 }
 0x27b   : > { %3839 = vmatmul.msk.bf16.gmra.mxu2 %vm2627_vm9, %v3894_v17  ;;  %v3407_v4 = vsel %vm3343_vm11, %v3311_v12, %v3375_v26  ;;  %3484 = vst.msk [vmem:[%s5106_s19 + $0x60] sm:$0xf] %vm219_vm3, %v3452_v40  ;;  %v3896_v17 = vld [vmem:[#allocation3 + $0x68] sm:$0xff]  ;;  %v2954_v25 = vadd.f32 %v2953_v18, %v2724_v13 }
 0x27c   : > { %v3439_v41 = vpack.c.bf16 %v3407_v4, %v3407_v4  ;;  %v3325_v7 = vadd.f32 %v5093_v39, %v3289_v14 }
 0x27e   : > { %3471 = vst.msk [vmem:[%s5106_s19 + $0x2c] sm:$0xf] %vm219_vm3, %v3439_v41  ;;  %vm3357_vm0 = vcmp.gt.f32.partialorder %v3325_v7, 0.0  ;;  %v3389_v5 = vmul.f32 0.01, %v3325_v7 }
 0x280   : > { %v3900_v9 = vld [vmem:[#allocation3 + $0x88] sm:$0xff]  ;;  %v3421_v6 = vsel %vm3357_vm0, %v3325_v7, %v3389_v5 }
 0x281   : > { %3845 = vmatmul.msk.bf16.gmra.mxu3 %vm2627_vm9, %v3900_v9  ;;  %v3214_v42 = vpop.f32.mrf.mxu2  ;;  %v3453_v21 = vpack.c.bf16 %v3421_v6, %v3421_v6  ;;  %v2955_v46 = vpop.f32.mrf.mxu1 }
 0x282   : > { %v3276_v57 = vadd.f32 %v3214_v42, %v2949_v38  ;;  %v3249_v48 = vpop.f32.mrf.mxu3  ;;  %v2726_v31 = vpop.f32.mrf.mxu0 }
 0x283   : > { %v3290_v45 = vadd.f32 %v3249_v48, %v2984_v28  ;;  %3485 = vst.msk [vmem:[%s5106_s19 + $0x64] sm:$0xf] %vm219_vm3, %v3453_v21  ;;  %v2956_v22 = vadd.f32 %v2955_v46, %v2726_v31 }
 0x284   : > { %v3312_v47 = vadd.f32 %v5093_v39, %v3276_v57 }
 0x285   : > { %v3326_v61 = vadd.f32 %v5093_v39, %v3290_v45 }
 0x286   : > { %vm3344_vm5 = vcmp.gt.f32.partialorder %v3312_v47, 0.0  ;;  %v3376_v35 = vmul.f32 0.01, %v3312_v47 }
 0x287   : > { %vm3358_vm1 = vcmp.gt.f32.partialorder %v3326_v61, 0.0  ;;  %v3390_v37 = vmul.f32 0.01, %v3326_v61 }
 0x288   : > { %v3408_v1 = vsel %vm3344_vm5, %v3312_v47, %v3376_v35 }
 0x289   : > { %3670 = vmatmul.msk.bf16.gmra.mxu0 %vm2627_vm9, %v3879_v43  ;;  %v3440_v16 = vpack.c.bf16 %v3408_v1, %v3408_v1  ;;  %v3422_v50 = vsel %vm3358_vm1, %v3326_v61, %v3390_v37  ;;  %v3216_v62 = vpop.f32.mrf.mxu2  ;;  %v2958_v47 = vpop.f32.mrf.mxu1 }
 0x28a   : > { %v3454_v60 = vpack.c.bf16 %v3422_v50, %v3422_v50  ;;  %v3277_v19 = vadd.f32 %v3216_v62, %v2951_v11  ;;  %v3251_v52 = vpop.f32.mrf.mxu3 }
 0x28b   : > { %3840 = vmatmul.msk.bf16.gmra.mxu2 %vm2627_vm9, %v3895_v32  ;;  %3472 = vst.msk [vmem:[%s5106_s19 + $0x30] sm:$0xf] %vm219_vm3, %v3440_v16  ;;  %v3291_v33 = vadd.f32 %v3251_v52, %v2986_v49 }
 0x28c   : > { %3486 = vst.msk [vmem:[%s5106_s19 + $0x68] sm:$0xf] %vm219_vm3, %v3454_v60  ;;  %v3313_v63 = vadd.f32 %v5093_v39, %v3277_v19 }
 0x28d   : > { %v3327_v58 = vadd.f32 %v5093_v39, %v3291_v33 }
 0x28e   : > { %vm3345_vm2 = vcmp.gt.f32.partialorder %v3313_v63, 0.0  ;;  %v3377_v36 = vmul.f32 0.01, %v3313_v63 }
 0x28f   : > { %vm3359_vm14 = vcmp.gt.f32.partialorder %v3327_v58, 0.0  ;;  %v3391_v8 = vmul.f32 0.01, %v3327_v58 }
 0x290   : > { %v3409_v55 = vsel %vm3345_vm2, %v3313_v63, %v3377_v36 }
 0x291   : > { %v3441_v20 = vpack.c.bf16 %v3409_v55, %v3409_v55  ;;  %v3423_v54 = vsel %vm3359_vm14, %v3327_v58, %v3391_v8  ;;  %v2960_v32 = vpop.f32.mrf.mxu1 }
 0x292   : > { %v3455_v10 = vpack.c.bf16 %v3423_v54, %v3423_v54  ;;  %v3254_v24 = vpop.f32.mrf.mxu3 }
 0x293   : > { %3473 = vst.msk [vmem:[%s5106_s19 + $0x34] sm:$0xf] %vm219_vm3, %v3441_v20  ;;  %v3292_v12 = vadd.f32 %v3254_v24, %v2989_v3  ;;  %v2729_v45 = vpop.f32.mrf.mxu0 }
 0x294   : > { %3487 = vst.msk [vmem:[%s5106_s19 + $0x6c] sm:$0xf] %vm219_vm3, %v3455_v10  ;;  %v2959_v27 = vadd.f32 %v2958_v47, %v2729_v45  ;;  %v2994_v10 = vadd.f32 %v5252_v30, %v5222_v2 }
 0x295   : > { %v3328_v51 = vadd.f32 %v5093_v39, %v3292_v12 }
 0x297   : > { %vm3360_vm6 = vcmp.gt.f32.partialorder %v3328_v51, 0.0  ;;  %v3392_v15 = vmul.f32 0.01, %v3328_v51 }
 0x298   : > { %v3219_v26 = vpop.f32.mrf.mxu2 }
 0x299   : > { %v3424_v59 = vsel %vm3360_vm6, %v3328_v51, %v3392_v15  ;;  %v3278_v29 = vadd.f32 %v3219_v26, %v2954_v25  ;;  %v2963_v63 = vpop.f32.mrf.mxu1 }
 0x29a   : > { %v3456_v53 = vpack.c.bf16 %v3424_v59, %v3424_v59  ;;  %v3256_v4 = vpop.f32.mrf.mxu3 }
 0x29b   : > { %3841 = vmatmul.msk.bf16.gmra.mxu2 %vm2627_vm9, %v3896_v17  ;;  %v3293_v40 = vadd.f32 %v3256_v4, %v2991_v23  ;;  %v3314_v34 = vadd.f32 %v5093_v39, %v3278_v29  ;;  %v2731_v44 = vpop.f32.mrf.mxu0 }
 0x29c   : > { %3488 = vst.msk [vmem:[%s5106_s19 + $0x70] sm:$0xf] %vm219_vm3, %v3456_v53  ;;  %v2961_v11 = vadd.f32 %v2960_v32, %v2731_v44 }
 0x29d   : > { %v3329_v41 = vadd.f32 %v5093_v39, %v3293_v40  ;;  %vm3346_vm15 = vcmp.gt.f32.partialorder %v3314_v34, 0.0  ;;  %v3378_v14 = vmul.f32 0.01, %v3314_v34 }
 0x29f   : > { %vm3361_vm7 = vcmp.gt.f32.partialorder %v3329_v41, 0.0  ;;  %v3393_v0 = vmul.f32 0.01, %v3329_v41  ;;  %v3410_v7 = vsel %vm3346_vm15, %v3314_v34, %v3378_v14 }
 0x2a0   : > { %v3442_v9 = vpack.c.bf16 %v3410_v7, %v3410_v7  ;;  %v3221_v38 = vpop.f32.mrf.mxu2 }
 0x2a1   : > { %v3425_v5 = vsel %vm3361_vm7, %v3329_v41, %v3393_v0  ;;  %v3279_v6 = vadd.f32 %v3221_v38, %v2956_v22  ;;  %v2965_v3 = vpop.f32.mrf.mxu1 }
 0x2a2   : > { %v3457_v28 = vpack.c.bf16 %v3425_v5, %v3425_v5  ;;  %3474 = vst.msk [vmem:[%s5106_s19 + $0x38] sm:$0xf] %vm219_vm3, %v3442_v9 }
 0x2a3   : > { %v3315_v42 = vadd.f32 %v5093_v39, %v3279_v6 }
 0x2a4   : > { %3489 = vst.msk [vmem:[%s5106_s19 + $0x74] sm:$0xf] %vm219_vm3, %v3457_v28 }
 0x2a5   : > { %vm3347_vm9 = vcmp.gt.f32.partialorder %v3315_v42, 0.0  ;;  %v3379_v21 = vmul.f32 0.01, %v3315_v42 }
 0x2a7   : > { %v3411_v57 = vsel %vm3347_vm9, %v3315_v42, %v3379_v21 }
 0x2a8   : > { %v3443_v48 = vpack.c.bf16 %v3411_v57, %v3411_v57 }
 0x2aa   : > { %3475 = vst.msk [vmem:[%s5106_s19 + $0x3c] sm:$0xf] %vm219_vm3, %v3443_v48 }
 0x2bb   : > { %v2734_v33 = vpop.f32.mrf.mxu0 }
 0x2bc   : > { %v2964_v36 = vadd.f32 %v2963_v63, %v2734_v33  ;;  %v2968_v23 = vpop.f32.mrf.mxu1 }
 0x2c3   : > { %v3224_v61 = vpop.f32.mrf.mxu2  ;;  %v2736_v58 = vpop.f32.mrf.mxu0 }
 0x2c4   : > { %v3280_v35 = vadd.f32 %v3224_v61, %v2959_v27  ;;  %v2966_v13 = vadd.f32 %v2965_v3, %v2736_v58  ;;  %v2970_v9 = vpop.f32.mrf.mxu1 }
 0x2c6   : > { %v3316_v43 = vadd.f32 %v5093_v39, %v3280_v35 }
 0x2c8   : > { %vm3348_vm12 = vcmp.gt.f32.partialorder %v3316_v43, 0.0  ;;  %v3380_v37 = vmul.f32 0.01, %v3316_v43 }
 0x2ca   : > { %v3412_v1 = vsel %vm3348_vm12, %v3316_v43, %v3380_v37 }
 0x2cb   : > { %v3444_v49 = vpack.c.bf16 %v3412_v1, %v3412_v1  ;;  %v3226_v16 = vpop.f32.mrf.mxu2 }
 0x2cc   : > { %v3281_v50 = vadd.f32 %v3226_v16, %v2961_v11 }
 0x2cd   : > { %3476 = vst.msk [vmem:[%s5106_s19 + $0x40] sm:$0xf] %vm219_vm3, %v3444_v49 }
 0x2ce   : > { %v3317_v62 = vadd.f32 %v5093_v39, %v3281_v50 }
 0x2d0   : > { %vm3349_vm13 = vcmp.gt.f32.partialorder %v3317_v62, 0.0  ;;  %v3381_v60 = vmul.f32 0.01, %v3317_v62 }
 0x2d2   : > { %v3413_v19 = vsel %vm3349_vm13, %v3317_v62, %v3381_v60 }
 0x2d3   : > { %v3445_v52 = vpack.c.bf16 %v3413_v19, %v3413_v19 }
 0x2d5   : > { %3477 = vst.msk [vmem:[%s5106_s19 + $0x44] sm:$0xf] %vm219_vm3, %v3445_v52 }
 0x2f6   : > { %v2739_v24 = vpop.f32.mrf.mxu0 }
 0x2f7   : > { %v2969_v29 = vadd.f32 %v2968_v23, %v2739_v24  ;;  %v2973_v27 = vpop.f32.mrf.mxu1 }
 0x2fe   : > { %v3229_v8 = vpop.f32.mrf.mxu2  ;;  %v2741_v31 = vpop.f32.mrf.mxu0 }
 0x2ff   : > { %v3282_v55 = vadd.f32 %v3229_v8, %v2964_v36  ;;  %v2975_v16 = vpop.f32.mrf.mxu1 }
 0x301   : > { %v3318_v20 = vadd.f32 %v5093_v39, %v3282_v55 }
 0x303   : > { %vm3350_vm4 = vcmp.gt.f32.partialorder %v3318_v20, 0.0  ;;  %v3382_v54 = vmul.f32 0.01, %v3318_v20 }
 0x304   : > { %v3259_v18 = vpop.f32.mrf.mxu3 }
 0x305   : > { %v3414_v12 = vsel %vm3350_vm4, %v3318_v20, %v3382_v54  ;;  %v3294_v17 = vadd.f32 %v3259_v18, %v2994_v10 }
 0x306   : > { %v3446_v51 = vpack.c.bf16 %v3414_v12, %v3414_v12  ;;  %v3231_v15 = vpop.f32.mrf.mxu2  ;;  %v2744_v45 = vpop.f32.mrf.mxu0 }
 0x307   : > { %v3283_v25 = vadd.f32 %v3231_v15, %v2966_v13  ;;  %v3330_v59 = vadd.f32 %v5093_v39, %v3294_v17  ;;  %v2974_v35 = vadd.f32 %v2973_v27, %v2744_v45 }
 0x308   : > { %3478 = vst.msk [vmem:[%s5106_s19 + $0x48] sm:$0xf] %vm219_vm3, %v3446_v51 }
 0x309   : > { %v3319_v26 = vadd.f32 %v5093_v39, %v3283_v25  ;;  %vm3362_vm8 = vcmp.gt.f32.partialorder %v3330_v59, 0.0  ;;  %v3394_v53 = vmul.f32 0.01, %v3330_v59  ;;  %v3921_v39 = vld [vmem:[%s5354_s3] ss:$0 sm:$0xff] }
 0x30b   : > { %vm3351_vm10 = vcmp.gt.f32.partialorder %v3319_v26, 0.0  ;;  %v3383_v2 = vmul.f32 0.01, %v3319_v26  ;;  %v3426_v30 = vsel %vm3362_vm8, %v3330_v59, %v3394_v53 }
 0x30c   : > { %v3458_v40 = vpack.c.bf16 %v3426_v30, %v3426_v30  ;;  %v3261_v34 = vpop.f32.mrf.mxu3 }
 0x30d   : > { %v3415_v4 = vsel %vm3351_vm10, %v3319_v26, %v3383_v2  ;;  %v3295_v46 = vadd.f32 %v3261_v34, %v5257_v56  ;;  %v2971_v56 = vadd.f32 %v2970_v9, %v2741_v31 }
 0x30e   : > { %v3447_v41 = vpack.c.bf16 %v3415_v4, %v3415_v4  ;;  %v3234_v14 = vpop.f32.mrf.mxu2  ;;  %3490 = vst.msk [vmem:[%s5106_s19 + $0x78] sm:$0xf] %vm219_vm3, %v3458_v40  ;;  %v2746_v1 = vpop.f32.mrf.mxu0 }
 0x30f   : > { %v3284_v0 = vadd.f32 %v3234_v14, %v2969_v29  ;;  %v3331_v22 = vadd.f32 %v3921_v39, %v3295_v46  ;;  %v2976_v50 = vadd.f32 %v2975_v16, %v2746_v1 }
 0x310   : > { %3479 = vst.msk [vmem:[%s5106_s19 + $0x4c] sm:$0xf] %vm219_vm3, %v3447_v41 }
 0x311   : > { %v3320_v7 = vadd.f32 %v3921_v39, %v3284_v0  ;;  %vm3363_vm11 = vcmp.gt.f32.partialorder %v3331_v22, 0.0  ;;  %v3395_v5 = vmul.f32 0.01, %v3331_v22 }
 0x313   : > { %vm3352_vm0 = vcmp.gt.f32.partialorder %v3320_v7, 0.0  ;;  %v3384_v38 = vmul.f32 0.01, %v3320_v7  ;;  %v3427_v28 = vsel %vm3363_vm11, %v3331_v22, %v3395_v5 }
 0x314   : > { %v3459_v42 = vpack.c.bf16 %v3427_v28, %v3427_v28 }
 0x315   : > { %v3416_v6 = vsel %vm3352_vm0, %v3320_v7, %v3384_v38 }
 0x316   : > { %v3448_v21 = vpack.c.bf16 %v3416_v6, %v3416_v6  ;;  %v3236_v57 = vpop.f32.mrf.mxu2  ;;  %3491 = vst.msk [vmem:[%s5106_s19 + $0x7c] sm:$0xf] %vm219_vm3, %v3459_v42 }
 0x317   : > { %v3285_v48 = vadd.f32 %v3236_v57, %v2971_v56 }
 0x318   : > { %3480 = vst.msk [vmem:[%s5106_s19 + $0x50] sm:$0xf] %vm219_vm3, %v3448_v21 }
 0x319   : > { %v3321_v47 = vadd.f32 %v3921_v39, %v3285_v48 }
 0x31b   : > { %vm3353_vm5 = vcmp.gt.f32.partialorder %v3321_v47, 0.0  ;;  %v3385_v61 = vmul.f32 0.01, %v3321_v47 }
 0x31d   : > { %v3417_v43 = vsel %vm3353_vm5, %v3321_v47, %v3385_v61 }
 0x31e   : > { %v3449_v44 = vpack.c.bf16 %v3417_v43, %v3417_v43  ;;  %v3239_v37 = vpop.f32.mrf.mxu2 }
 0x31f   : > { %v3286_v32 = vadd.f32 %v3239_v37, %v2974_v35 }
 0x320   : > { %3481 = vst.msk [vmem:[%s5106_s19 + $0x54] sm:$0xf] %vm219_vm3, %v3449_v44 }
 0x321   : > { %v3322_v11 = vadd.f32 %v3921_v39, %v3286_v32 }
 0x323   : > { %vm3354_vm1 = vcmp.gt.f32.partialorder %v3322_v11, 0.0  ;;  %v3386_v49 = vmul.f32 0.01, %v3322_v11 }
 0x325   : > { %v3418_v62 = vsel %vm3354_vm1, %v3322_v11, %v3386_v49 }
 0x326   : > { %v3450_v60 = vpack.c.bf16 %v3418_v62, %v3418_v62  ;;  %v3241_v19 = vpop.f32.mrf.mxu2 }
 0x327   : > { %v3287_v52 = vadd.f32 %v3241_v19, %v2976_v50 }
 0x328   : > { %3482 = vst.msk [vmem:[%s5106_s19 + $0x58] sm:$0xf] %vm219_vm3, %v3450_v60 }
 0x329   : > { %v3323_v33 = vadd.f32 %v3921_v39, %v3287_v52 }
 0x32b   : > { %vm3355_vm2 = vcmp.gt.f32.partialorder %v3323_v33, 0.0  ;;  %v3387_v63 = vmul.f32 0.01, %v3323_v33 }
 0x32d   : > { %v3419_v58 = vsel %vm3355_vm2, %v3323_v33, %v3387_v63 }
 0x32e   : > { %v3451_v36 = vpack.c.bf16 %v3419_v58, %v3419_v58 }
 0x330   : > { %3483 = vst.msk [vmem:[%s5106_s19 + $0x5c] sm:$0xf] %vm219_vm3, %v3451_v36 }
 0x331 PF: > { %s14_s15 = sadd.s32 1, %s3928_s15  }
 0x332   : > { %p11_p4 = scmp.ge.s32.totalorder %s14_s15, 4  }
 0x334   :  { %13 = sbr.rel (!%p11_p4) target bundleno = 1 (0x1), region = 75 }

// kernel: up_conv_forward.5
= control target key start
LH: loop header
LB: loop body
LE: loop exit
PB: predicated region body
PF: predicated region fallthrough
CT: control target
= control target key end

     0   :  { %s3465_s12 = smov 0   ;;  %s4526_s0 = inlined_call_operand.vmem [shape: bf16[2,16,16,8], index: 0, kind: input, shape index: {}]   ;;  %s4527_s1 = inlined_call_operand.vmem [shape: bf16[3,24,8], index: 1, kind: input, shape index: {}]   ;;  %s4528_s2 = inlined_call_operand.vmem [shape: f32[1,8], index: 2, kind: input, shape index: {}]   ;;  %s4529_s3 = inlined_call_operand.vmem [shape: f32[2,16,16,8], index: 3, kind: output, shape index: {}]  }
   0x1 LB: > { %s2997_s13 = sadd.s32 4294967295, %s3440_s12   ;;  %p3001_p0 = scmp.ge.s32.totalorder %s3440_s12, 1  ;;  %s3440_s12 = sphi %s3465_s12, %s13_s12  }
   0x2   : > { %p137_p1 = scmp.lt.s32.totalorder %s3440_s12, 3 }
   0x4   : > { %p138_p2 = pnand %p3001_p0, %p137_p1 }
   0x5   : > { %p161_p3 = scmp.lt.s32.totalorder (!%p138_p2), %s2997_s13, 1  ;;  %s3443_s18 = smov (!%p138_p2), 8  }
   0x6   : > { %141 = sbr.rel (%p138_p2) target bundleno = 544 (0x220), region = 32  ;;  %s3444_s19 = smov (!%p138_p2), 16  }
   0xb   : > { %vm172_vm0 = vcmask 60416   ;;  %vm175_vm1 = vcmask 57344   ;;  %v3442_v0 = vmov 0   ;;  %vm182_vm2 = vsmask.f32 256  ;;  %s4543_s13 = smov (!%p161_p3, %s2997_s13), 1 }
   0xc   : > { %174 = vst.msk [vmem:[#allocation2 + $0x4] sm:$0xf] %vm172_vm0, %v3442_v0  ;;  %vm238_vm3 = vsmask.f32 7938  ;;  %v279_v2 = vld [vmem:[#allocation2 + $0xa4] sm:$0x1]  ;;  %vm3484_vm5 = vmand %vm175_vm1, %vm182_vm2 }
   0xd   : > { %176 = vst.msk [vmem:[#allocation2 + $0x8] sm:$0x1] %vm175_vm1, %v3442_v0  ;;  %vm3477_vm4 = vmand %vm175_vm1, %vm238_vm3  ;;  %vm326_vm6 = vsmask.f32 4368  ;;  %v223_v5 = vld [vmem:[#allocation2 + $0x9c] sm:$0x1] }
   0xe   : > { %173 = vst.msk [vmem:[#allocation2] sm:$0xf] %vm172_vm0, %v3442_v0  ;;  %v280_v4 = vsel %vm3477_vm4, 0, %v279_v2  ;;  %s3284_s14 = sshll.u32 %s4543_s13, 7  ;;  %v190_v6 = vld [vmem:[#allocation2 + $0x18] sm:$0x1]  ;;  %vm3515_vm9 = vmor %vm182_vm2, %vm326_vm6 }
   0xf   : > { %178 = vst.msk [vmem:[#allocation2 + $0xcc] sm:$0xf] %vm172_vm0, %v3442_v0  ;;  %s3499_s17 = scalar_lea.vmem %s4526_s0, %s3284_s14  ;;  %v224_v7 = vsel %vm3484_vm5, 0, %v223_v5  ;;  %v191_v8 = vsel %vm3484_vm5, 0, %v190_v6  ;;  %v246_v9 = vld [vmem:[#allocation2 + $0x20] sm:$0x1]  ;;  %vm3524_vm10 = vmand %vm172_vm0, %vm238_vm3 }
  0x10   : > { %179 = vst.msk [vmem:[#allocation2 + $0xd0] sm:$0xf] %vm172_vm0, %v3442_v0  ;;  %v318_v11 = vld [vmem:[%s3499_s17 + $0x60] sm:$0xf]  ;;  %v319_v12 = vld [vmem:[%s3499_s17 + $0x64] sm:$0xf] }
  0x11   : > { %180 = vst.msk [vmem:[#allocation2 + $0xd4] sm:$0x1] %vm175_vm1, %v3442_v0  ;;  %vm889_vm7 = vsmask.f32 3328  ;;  %vm890_vm8 = vsmask.f32 7440 }
  0x12   : > { %281 = vst [vmem:[#allocation2 + $0xa4] sm:$0x1] %v280_v4  ;;  %v533_v16 = vshrl.u32 %v318_v11, 16  ;;  %v541_v17 = vshrl.u32 %v319_v12, 16  ;;  %v544_v19 = vshll.u32 %v319_v12, 16  ;;  %v536_v20 = vshll.u32 %v318_v11, 16  ;;  %vm3541_vm11 = vmor %vm889_vm7, %vm890_vm8 }
  0x13   : > { %v836_v10 = vld [vmem:[#allocation2 + $0x4] sm:$0xf]  ;;  %225 = vst [vmem:[#allocation2 + $0x9c] sm:$0x1] %v224_v7  ;;  %v247_v21 = vsel %vm3477_vm4, 0, %v246_v9  ;;  %vm1577_vm12 = vcmask 1042432  }
  0x14   : > { %v240_v13 = vld [vmem:[#allocation2 + $0x8] sm:$0x1]  ;;  %v902_v14 = vshll.u32 %v836_v10, 16  ;;  %v906_v15 = vshrl.u32 %v836_v10, 16  ;;  %v535_v24 = vrot.slane %v533_v16, 7  ;;  %v543_v25 = vrot.slane %v541_v17, 7 }
  0x15   : > { %v241_v18 = vsel %vm3477_vm4, 0, %v240_v13  ;;  %192 = vst [vmem:[#allocation2 + $0x18] sm:$0x1] %v191_v8  ;;  %v296_v27 = vld [vmem:[%s3499_s17 + $0x8] sm:$0xf]  ;;  %vm1578_vm13 = vcmask 1046532  }
  0x16   : > { %242 = vst [vmem:[#allocation2 + $0x8] sm:$0x1] %v241_v18  ;;  %v3511_v22 = vrot.slane %v902_v14, 5  ;;  %v908_v23 = vrot.slane %v906_v15, 4  ;;  %v297_v28 = vld [vmem:[%s3499_s17 + $0xc] sm:$0xf]  ;;  %v546_v31 = vor.u32 %v544_v19, %v543_v25  ;;  %v538_v35 = vor.u32 %v536_v20, %v535_v24  ;;  %vm3560_vm14 = vmor %vm1577_vm12, %vm1578_vm13 }
  0x17   : > { %v539_v30 = vrot.slane %v535_v24, 4  ;;  %v548_v32 = vrot.slane %v543_v25, 4  ;;  %248 = vst [vmem:[#allocation2 + $0x20] sm:$0x1] %v247_v21  ;;  %v187_v33 = vld [vmem:[#allocation2 + $0xc] sm:$0x1] }
  0x18   : > { %v909_v29 = vor.u32 %v908_v23, %v3511_v22  ;;  %v346_v36 = vshrl.u32 %v296_v27, 16  ;;  %v349_v37 = vshll.u32 %v296_v27, 16  ;;  %v354_v38 = vshrl.u32 %v297_v28, 16  ;;  %v294_v44 = vld [vmem:[%s3499_s17] sm:$0xf]  ;;  %s3285_s7 = sshll.u32 %s4543_s13, 8 }
  0x19   : > { %v739_v34 = vld [vmem:[#allocation2 + $0xa4] sm:$0x1]  ;;  %v547_v41 = vsel %vm3515_vm9, %v539_v30, %v546_v31  ;;  %v357_v43 = vshll.u32 %v297_v28, 16  ;;  %v188_v48 = vsel %vm3484_vm5, 0, %v187_v33  ;;  %v329_v49 = vshrl.u32 %v294_v44, 16  ;;  %s4338_s10 = scalar_lea.vmem %s4529_s3, %s3285_s7 }
  0x1a   : > { %v910_v40 = vrot.slane %v909_v29, 4  ;;  %v740_v42 = vsel %vm3484_vm5, %v548_v32, %v739_v34  ;;  %v295_v45 = vld [vmem:[%s3499_s17 + $0x4] sm:$0xf]  ;;  %738 = vst.msk [vmem:[#allocation2 + $0xa0] sm:$0xf] %vm172_vm0, %v547_v41  ;;  %v348_v46 = vrot.slane %v346_v36, 7 }
  0x1b   : > { %v356_v47 = vrot.slane %v354_v38, 7  ;;  %741 = vst [vmem:[#allocation2 + $0xa4] sm:$0x1] %v740_v42  ;;  %v735_v50 = vld [vmem:[#allocation2 + $0x9c] sm:$0xf]  ;;  %v332_v51 = vshll.u32 %v294_v44, 16 }
  0x1c   : > { %v337_v52 = vshrl.u32 %v295_v45, 16  ;;  %v736_v54 = vsel %vm3524_vm10, %v538_v35, %v735_v50  ;;  %v351_v55 = vor.u32 %v349_v37, %v348_v46  ;;  %v352_v56 = vrot.slane %v348_v46, 4  ;;  %189 = vst [vmem:[#allocation2 + $0xc] sm:$0x1] %v188_v48  ;;  %v658_v59 = vld [vmem:[#allocation2 + $0x18] sm:$0xf] }
  0x1d   : > { %v837_v53 = vld [vmem:[#allocation2 + $0x8] sm:$0x1]  ;;  %v359_v57 = vor.u32 %v357_v43, %v356_v47  ;;  %737 = vst [vmem:[#allocation2 + $0x9c] sm:$0xf] %v736_v54  ;;  %v361_v60 = vrot.slane %v356_v47, 4  ;;  %v331_v2 = vrot.slane %v329_v49, 7 }
  0x1e   : > { %v912_v58 = vshll.u32 %v837_v53, 16  ;;  %v659_v63 = vsel %vm3524_vm10, %v351_v55, %v658_v59  ;;  %v662_v0 = vld [vmem:[#allocation2 + $0x20] sm:$0x1]  ;;  %v3549_v4 = vrot.slane %v337_v52, 7  ;;  %v340_v7 = vshll.u32 %v295_v45, 16 }
  0x1f   : > { %v360_v62 = vsel %vm3515_vm9, %v352_v56, %v359_v57  ;;  %660 = vst [vmem:[#allocation2 + $0x18] sm:$0xf] %v659_v63  ;;  %v663_v6 = vsel %vm3484_vm5, %v361_v60, %v662_v0  ;;  %v334_v8 = vor.u32 %v332_v51, %v331_v2  ;;  %v335_v9 = vrot.slane %v331_v2, 4  ;;  %v243_v37 = vld [vmem:[#allocation2 + $0x14] sm:$0x1] }
  0x20   : > { %v914_v5 = vrot.slane %v912_v58, 5  ;;  %661 = vst.msk [vmem:[#allocation2 + $0x1c] sm:$0xf] %vm172_vm0, %v360_v62  ;;  %v342_v17 = vor.u32 %v340_v7, %v3549_v4  ;;  %v244_v55 = vsel %vm3477_vm4, 0, %v243_v37  ;;  %vm1432_vm15 = vcmask 126016  }
  0x21   : > { %v1509_v11 = vld [vmem:[#allocation2 + $0xa0] sm:$0xf]  ;;  %664 = vst [vmem:[#allocation2 + $0x20] sm:$0x1] %v663_v6  ;;  %vm2061_vm1 = vcmask 1043456   ;;  %vm1814_vm2 = vcmask 191616  }
  0x22   : > { %v915_v10 = vsel %vm3541_vm11, %v910_v40, %v914_v5  ;;  %v875_v12 = vld [vmem:[#allocation2 + $0xa0] sm:$0xf]  ;;  %v1510_v13 = vld [vmem:[#allocation2 + $0xa4] sm:$0x1]  ;;  %v1673_v14 = vrot.slane %v1509_v11, 5  ;;  %v343_v36 = vsel %vm3515_vm9, %v335_v9, %v342_v17  ;;  %vm2012_vm3 = vcmask 195584  }
  0x23   : > { %1326 = vrot.lane.b32.xlu0 %v915_v10, %s3443_s18  ;;  %v1214_v15 = vshll.u32 %v875_v12, 16  ;;  %v1218_v16 = vshrl.u32 %v875_v12, 16  ;;  %v1676_v19 = vrot.slane %v1510_v13, 5  ;;  %v876_v20 = vld [vmem:[#allocation2 + $0xa4] sm:$0x1] }
  0x24   : > { %v651_v21 = vld [vmem:[#allocation2 + $0xc] sm:$0xf]  ;;  %v1675_v23 = vrot.slane %v1673_v14, 4  ;;  %v1508_v24 = vld [vmem:[#allocation2 + $0x9c] sm:$0xe]  ;;  %v1224_v35 = vshll.u32 %v876_v20, 16 }
  0x25   : > { %v874_v25 = vld [vmem:[#allocation2 + $0x9c] sm:$0xf]  ;;  %v652_v27 = vsel %vm3524_vm10, %v334_v8, %v651_v21  ;;  %v3019_v28 = vrot.slane %v1508_v24, 9  ;;  %v1220_v31 = vrot.slane %v1218_v16, 4  ;;  %v1216_v33 = vrot.slane %v1214_v15, 5 }
  0x26   : > { %v1205_v29 = vshrl.u32 %v874_v25, 16  ;;  %v1208_v30 = vshll.u32 %v874_v25, 16  ;;  %653 = vst [vmem:[#allocation2 + $0xc] sm:$0xf] %v652_v27  ;;  %v1677_v32 = vsel %vm3560_vm14, %v1675_v23, %v1676_v19  ;;  %v841_v34 = vld [vmem:[#allocation2 + $0x18] sm:$0xf] }
  0x27   : > { %1760 = vrot.lane.b32.xlu1 %v1677_v32, %s3444_s19  ;;  %v1674_v38 = vsel %vm3560_vm14, %v3019_v28, %v1673_v14  ;;  %v842_v42 = vld [vmem:[#allocation2 + $0x1c] sm:$0xf]  ;;  %v941_v43 = vshrl.u32 %v841_v34, 16  ;;  %v944_v44 = vshll.u32 %v841_v34, 16  ;;  %v1221_v47 = vor.u32 %v1220_v31, %v1216_v33  ;;  %v1475_v48 = vld [vmem:[#allocation2 + $0x18] sm:$0xe] }
  0x28   : > { %v1207_v40 = vrot.slane %v1205_v29, 4  ;;  %v1210_v41 = vrot.slane %v1208_v30, 5  ;;  %v950_v45 = vshll.u32 %v842_v42, 16  ;;  %v954_v46 = vshrl.u32 %v842_v42, 16  ;;  %v843_v51 = vld [vmem:[#allocation2 + $0x20] sm:$0x1] }
  0x29   : > { %v943_v50 = vrot.slane %v941_v43, 4  ;;  %v1476_v52 = vld [vmem:[#allocation2 + $0x1c] sm:$0xf]  ;;  %v946_v53 = vrot.slane %v944_v44, 5  ;;  %654 = vst.msk [vmem:[#allocation2 + $0x10] sm:$0xf] %vm172_vm0, %v343_v36 }
  0x2a   : > { %v1211_v49 = vor.u32 %v1210_v41, %v1207_v40  ;;  %v956_v54 = vrot.slane %v954_v46, 4  ;;  %v3577_v57 = vrot.slane %v1224_v35, 5  ;;  %v3008_v58 = vrot.slane %v1475_v48, 9  ;;  %v1477_v60 = vld [vmem:[#allocation2 + $0x20] sm:$0x1] }
  0x2b   : > { %1758 = vrot.lane.b32.xlu0 %v1674_v38, %s3444_s19  ;;  %v1596_v59 = vrot.slane %v1476_v52, 5  ;;  %v947_v62 = vor.u32 %v946_v53, %v943_v50  ;;  %v952_v63 = vrot.slane %v950_v45, 5  ;;  %v1222_v0 = vrot.slane %v1221_v47, 4  ;;  %245 = vst [vmem:[#allocation2 + $0x14] sm:$0x1] %v244_v55 }
  0x2c   : > { %v1212_v56 = vrot.slane %v1211_v49, 4  ;;  %v960_v2 = vshll.u32 %v843_v51, 16  ;;  %v184_v10 = vld [vmem:[#allocation2] sm:$0x1]  ;;  %v1599_v14 = vrot.slane %v1477_v60, 5  ;;  %v344_v24 = vrot.slane %v3549_v4, 4 }
  0x2d   : > { %v838_v5 = vld [vmem:[#allocation2 + $0xc] sm:$0xf]  ;;  %v1597_v7 = vsel %vm3560_vm14, %v3008_v58, %v1596_v59  ;;  %v948_v11 = vrot.slane %v947_v62, 4  ;;  %v957_v12 = vor.u32 %v956_v54, %v952_v63  ;;  %v1598_v13 = vrot.slane %v1596_v59, 4  ;;  %v193_v15 = vld [vmem:[#allocation2 + $0x24] sm:$0x1] }
  0x2e   : > { %v1217_v6 = vsel %vm3541_vm11, %v1212_v56, %v1216_v33  ;;  %v917_v8 = vshrl.u32 %v838_v5, 16  ;;  %v920_v9 = vshll.u32 %v838_v5, 16  ;;  %1714 = vrot.lane.b32.xlu2 %v1597_v7, %s3444_s19  ;;  %v185_v19 = vsel %vm3484_vm5, 0, %v184_v10  ;;  %v298_v20 = vld [vmem:[%s3499_s17 + $0x10] sm:$0xf] }
  0x2f   : > { %1376 = vrot.lane.b32.xlu1 %v1217_v6, %s3443_s18  ;;  %v953_v21 = vsel %vm3541_vm11, %v948_v11, %v952_v63  ;;  %v962_v23 = vrot.slane %v960_v2, 5  ;;  %186 = vst [vmem:[#allocation2] sm:$0x1] %v185_v19  ;;  %v299_v25 = vld [vmem:[%s3499_s17 + $0x14] sm:$0xf]  ;;  %v194_v29 = vsel %vm3484_vm5, 0, %v193_v15  ;;  %v1227_v32 = vsel %vm3541_vm11, %v1222_v0, %v3577_v57 }
  0x30   : > { %v919_v16 = vrot.slane %v917_v8, 4  ;;  %v922_v17 = vrot.slane %v920_v9, 5  ;;  %v839_v27 = vld [vmem:[#allocation2 + $0x10] sm:$0xf]  ;;  %v363_v30 = vshrl.u32 %v298_v20, 16  ;;  %v958_v33 = vrot.slane %v957_v12, 4 }
  0x31   : > { %v226_v31 = vld [vmem:[#allocation2 + $0xa8] sm:$0x1]  ;;  %v1600_v4 = vsel %vm3560_vm14, %v1598_v13, %v1599_v14  ;;  %195 = vst [vmem:[#allocation2 + $0x24] sm:$0x1] %v194_v29  ;;  %v366_v34 = vshll.u32 %v298_v20, 16  ;;  %v926_v35 = vshll.u32 %v839_v27, 16 }
  0x32   : > { %v923_v28 = vor.u32 %v922_v17, %v919_v16  ;;  %v365_v36 = vrot.slane %v363_v30, 7  ;;  %v371_v37 = vshrl.u32 %v299_v25, 16  ;;  %v374_v38 = vshll.u32 %v299_v25, 16  ;;  %v320_v40 = vld [vmem:[%s3499_s17 + $0x68] sm:$0xf] }
  0x33   : > { %1332 = vrot.lane.b32.xlu0 %v953_v21, %s3443_s18  ;;  %v930_v42 = vshrl.u32 %v839_v27, 16  ;;  %v655_v43 = vld [vmem:[#allocation2 + $0x14] sm:$0x1]  ;;  %v227_v44 = vsel %vm3484_vm5, 0, %v226_v31  ;;  %v550_v45 = vshrl.u32 %v320_v40, 16  ;;  %v553_v55 = vshll.u32 %v320_v40, 16 }
  0x34   : > { %v3601_v41 = vrot.slane %v923_v28, 4  ;;  %v656_v46 = vsel %vm3484_vm5, %v344_v24, %v655_v43  ;;  %v369_v47 = vrot.slane %v365_v36, 4  ;;  %v3607_v48 = vrot.slane %v371_v37, 7  ;;  %228 = vst [vmem:[#allocation2 + $0xa8] sm:$0x1] %v227_v44 }
  0x35   : > { %v321_v49 = vld [vmem:[%s3499_s17 + $0x6c] sm:$0xf]  ;;  %v1469_v50 = vld [vmem:[#allocation2] sm:$0xe]  ;;  %v1470_v51 = vld [vmem:[#allocation2 + $0x4] sm:$0xf]  ;;  %v368_v53 = vor.u32 %v366_v34, %v365_v36  ;;  %v963_v57 = vsel %vm3541_vm11, %v958_v33, %v962_v23 }
  0x36   : > { %1716 = vrot.lane.b32.xlu2 %v1600_v4, %s3444_s19  ;;  %657 = vst [vmem:[#allocation2 + $0x14] sm:$0x1] %v656_v46  ;;  %v3611_v52 = vld [vmem:[#allocation2 + $0x10] sm:$0xf]  ;;  %v552_v54 = vrot.slane %v550_v45, 7  ;;  %v558_v56 = vshrl.u32 %v321_v49, 16  ;;  %v376_v60 = vor.u32 %v374_v38, %v3607_v48 }
  0x37   : > { %1378 = vrot.lane.b32.xlu1 %v1227_v32, %s3443_s18  ;;  %v928_v58 = vrot.slane %v926_v35, 5  ;;  %v835_v59 = vld [vmem:[#allocation2] sm:$0xf]  ;;  %v561_v62 = vshll.u32 %v321_v49, 16  ;;  %v282_v63 = vld [vmem:[#allocation2 + $0xb0] sm:$0x1] }
  0x38   : > { %v3617_v0 = vld [vmem:[#allocation2 + $0x8] sm:$0x1]  ;;  %v893_v2 = vshrl.u32 %v835_v59, 16  ;;  %v896_v5 = vshll.u32 %v835_v59, 16  ;;  %v555_v6 = vor.u32 %v553_v55, %v552_v54  ;;  %v932_v7 = vrot.slane %v930_v42, 4 }
  0x39   : > { %v249_v8 = vld [vmem:[#allocation2 + $0x2c] sm:$0x1]  ;;  %v377_v9 = vsel %vm3515_vm9, %v369_v47, %v376_v60  ;;  %v665_v10 = vld [vmem:[#allocation2 + $0x24] sm:$0xf]  ;;  %v556_v11 = vrot.slane %v552_v54, 4  ;;  %v560_v12 = vrot.slane %v558_v56, 7  ;;  %v929_v24 = vsel %vm3541_vm11, %v3601_v41, %v928_v58 }
  0x3a   : > { %v283_v13 = vsel %vm3477_vm4, 0, %v282_v63  ;;  %v895_v14 = vrot.slane %v893_v2, 4  ;;  %v898_v15 = vrot.slane %v896_v5, 5  ;;  %v666_v16 = vsel %vm3524_vm10, %v368_v53, %v665_v10  ;;  %668 = vst.msk [vmem:[#allocation2 + $0x28] sm:$0xf] %vm172_vm0, %v377_v9 }
  0x3b   : > { %1334 = vrot.lane.b32.xlu0 %v963_v57, %s3443_s18  ;;  %v250_v17 = vsel %vm3477_vm4, 0, %v249_v8  ;;  %v3006_v19 = vrot.slane %v1469_v50, 9  ;;  %v1582_v20 = vrot.slane %v1470_v51, 5  ;;  %v1589_v21 = vrot.slane %v3611_v52, 5  ;;  %667 = vst [vmem:[#allocation2 + $0x24] sm:$0xf] %v666_v16 }
  0x3c   : > { %v563_v23 = vor.u32 %v561_v62, %v560_v12  ;;  %v899_v25 = vor.u32 %v898_v15, %v895_v14  ;;  %v742_v27 = vld [vmem:[#allocation2 + $0xa8] sm:$0xf]  ;;  %284 = vst [vmem:[#allocation2 + $0xb0] sm:$0x1] %v283_v13  ;;  %v196_v28 = vld [vmem:[#allocation2 + $0x30] sm:$0x1]  ;;  %v933_v35 = vor.u32 %v932_v7, %v928_v58 }
  0x3d   : > { %v1584_v29 = vrot.slane %v1582_v20, 4  ;;  %v1585_v30 = vrot.slane %v3617_v0, 5  ;;  %v743_v32 = vsel %vm3524_vm10, %v555_v6, %v742_v27  ;;  %v840_v33 = vld [vmem:[#allocation2 + $0x14] sm:$0x1]  ;;  %251 = vst [vmem:[#allocation2 + $0x2c] sm:$0x1] %v250_v17  ;;  %v1583_v37 = vsel %vm3560_vm14, %v3006_v19, %v1582_v20 }
  0x3e   : > { %v564_v31 = vsel %vm3515_vm9, %v556_v11, %v563_v23  ;;  %v1474_v4 = vld [vmem:[#allocation2 + $0x14] sm:$0x1]  ;;  %v900_v34 = vrot.slane %v899_v25, 4  ;;  %744 = vst [vmem:[#allocation2 + $0xa8] sm:$0xf] %v743_v32  ;;  %v936_v36 = vshll.u32 %v840_v33, 16 }
  0x3f   : > { %1328 = vrot.lane.b32.xlu1 %v929_v24, %s3443_s18  ;;  %v1591_v38 = vrot.slane %v1589_v21, 4  ;;  %745 = vst.msk [vmem:[#allocation2 + $0xac] sm:$0xf] %vm172_vm0, %v564_v31  ;;  %v197_v40 = vsel %vm3484_vm5, 0, %v196_v28  ;;  %v300_v41 = vld [vmem:[%s3499_s17 + $0x18] sm:$0xf]  ;;  %v1586_v59 = vsel %vm3560_vm14, %v1584_v29, %v1585_v30 }
  0x40   : > { %v905_v42 = vsel %vm3541_vm11, %v900_v34, %v3511_v22  ;;  %v565_v43 = vrot.slane %v560_v12, 4  ;;  %v378_v44 = vrot.slane %v3607_v48, 4  ;;  %v3651_v45 = vld [vmem:[#allocation2 + $0xc] sm:$0xe]  ;;  %198 = vst [vmem:[#allocation2 + $0x30] sm:$0x1] %v197_v40 }
  0x41   : > { %v1592_v46 = vrot.slane %v1474_v4, 5  ;;  %1324 = vrot.lane.b32.xlu2 %v905_v42, %s3443_s18  ;;  %v845_v47 = vld [vmem:[#allocation2 + $0x28] sm:$0xf]  ;;  %v301_v49 = vld [vmem:[%s3499_s17 + $0x1c] sm:$0xf]  ;;  %v380_v50 = vshrl.u32 %v300_v41, 16 }
  0x42   : > { %v844_v51 = vld [vmem:[#allocation2 + $0x24] sm:$0xf]  ;;  %v934_v53 = vrot.slane %v933_v35, 4  ;;  %v938_v54 = vrot.slane %v936_v36, 5  ;;  %v383_v55 = vshll.u32 %v300_v41, 16  ;;  %v3007_v48 = vrot.slane %v3651_v45, 9 }
  0x43   : > { %1706 = vrot.lane.b32.xlu0 %v1583_v37, %s3444_s19  ;;  %v965_v56 = vshrl.u32 %v844_v51, 16  ;;  %v968_v22 = vshll.u32 %v844_v51, 16  ;;  %v746_v57 = vld [vmem:[#allocation2 + $0xb0] sm:$0x1]  ;;  %v382_v58 = vrot.slane %v380_v50, 7  ;;  %v974_v60 = vshll.u32 %v845_v47, 16 }
  0x44   : > { %v747_v62 = vsel %vm3484_vm5, %v565_v43, %v746_v57  ;;  %v669_v63 = vld [vmem:[#allocation2 + $0x2c] sm:$0x1]  ;;  %v3661_v0 = vld [vmem:[#allocation2 + $0x28] sm:$0xf]  ;;  %v388_v2 = vshrl.u32 %v301_v49, 16  ;;  %v1593_v5 = vsel %vm3560_vm14, %v1591_v38, %v1592_v46  ;;  %v939_v13 = vsel %vm3541_vm11, %v934_v53, %v938_v54 }
  0x45   : > { %v967_v6 = vrot.slane %v965_v56, 4  ;;  %v970_v7 = vrot.slane %v968_v22, 5  ;;  %v877_v8 = vld [vmem:[#allocation2 + $0xa8] sm:$0xf]  ;;  %748 = vst [vmem:[#allocation2 + $0xb0] sm:$0x1] %v747_v62  ;;  %v670_v9 = vsel %vm3484_vm5, %v378_v44, %v669_v63  ;;  %v385_v14 = vor.u32 %v383_v55, %v382_v58 }
  0x46   : > { %v878_v10 = vld [vmem:[#allocation2 + $0xac] sm:$0xf]  ;;  %v1229_v11 = vshrl.u32 %v877_v8, 16  ;;  %v1232_v12 = vshll.u32 %v877_v8, 16  ;;  %671 = vst [vmem:[#allocation2 + $0x2c] sm:$0x1] %v670_v9  ;;  %v1590_v56 = vsel %vm3560_vm14, %v3007_v48, %v1589_v21 }
  0x47   : > { %1708 = vrot.lane.b32.xlu1 %v1586_v59, %s3444_s19  ;;  %v971_v15 = vor.u32 %v970_v7, %v967_v6  ;;  %v978_v16 = vshrl.u32 %v845_v47, 16  ;;  %v1238_v17 = vshll.u32 %v878_v10, 16  ;;  %v1242_v19 = vshrl.u32 %v878_v10, 16  ;;  %v672_v27 = vld [vmem:[#allocation2 + $0x30] sm:$0xf] }
  0x48   : > { %v976_v20 = vrot.slane %v974_v60, 5  ;;  %v1231_v23 = vrot.slane %v1229_v11, 4  ;;  %v1234_v24 = vrot.slane %v1232_v12, 5  ;;  %v391_v25 = vshll.u32 %v301_v49, 16  ;;  %v252_v32 = vld [vmem:[#allocation2 + $0x38] sm:$0x1] }
  0x49   : > { %v972_v28 = vrot.slane %v971_v15, 4  ;;  %v1240_v29 = vrot.slane %v1238_v17, 5  ;;  %1330 = vrot.lane.b32.xlu2 %v939_v13, %s3443_s18  ;;  %v1244_v30 = vrot.slane %v1242_v19, 4  ;;  %v1603_v31 = vrot.slane %v3661_v0, 5  ;;  %v285_v36 = vld [vmem:[#allocation2 + $0xbc] sm:$0x1] }
  0x4a   : > { %v1235_v33 = vor.u32 %v1234_v24, %v1231_v23  ;;  %v386_v4 = vrot.slane %v382_v58, 4  ;;  %v390_v34 = vrot.slane %v388_v2, 7  ;;  %v673_v35 = vsel %vm3524_vm10, %v385_v14, %v672_v27  ;;  %v3675_v38 = vld [vmem:[#allocation2 + $0xa8] sm:$0xe]  ;;  %v3680_v42 = vld [vmem:[%s3499_s17 + $0x70] sm:$0xf] }
  0x4b   : > { %1712 = vrot.lane.b32.xlu0 %v1593_v5, %s3444_s19  ;;  %v1245_v37 = vor.u32 %v1244_v30, %v1240_v29  ;;  %674 = vst [vmem:[#allocation2 + $0x30] sm:$0xf] %v673_v35  ;;  %v980_v40 = vrot.slane %v978_v16, 4  ;;  %v253_v41 = vsel %vm3477_vm4, 0, %v252_v32  ;;  %v977_v43 = vsel %vm3541_vm11, %v972_v28, %v976_v20  ;;  %v323_v53 = vld [vmem:[%s3499_s17 + $0x74] sm:$0xf] }
  0x4c   : > { %v1236_v44 = vrot.slane %v1235_v33, 4  ;;  %v879_v45 = vld [vmem:[#allocation2 + $0xb0] sm:$0x1]  ;;  %v393_v46 = vor.u32 %v391_v25, %v390_v34  ;;  %254 = vst [vmem:[#allocation2 + $0x38] sm:$0x1] %v253_v41  ;;  %v1605_v49 = vrot.slane %v1603_v31, 4 }
  0x4d   : > { %v1248_v47 = vshll.u32 %v879_v45, 16  ;;  %v846_v50 = vld [vmem:[#allocation2 + $0x2c] sm:$0x1]  ;;  %v981_v51 = vor.u32 %v980_v40, %v976_v20  ;;  %v1246_v54 = vrot.slane %v1245_v37, 4  ;;  %v229_v58 = vld [vmem:[#allocation2 + $0xb4] sm:$0x1] }
  0x4e   : > { %v1480_v55 = vld [vmem:[#allocation2 + $0x2c] sm:$0x1]  ;;  %v394_v22 = vsel %vm3515_vm9, %v386_v4, %v393_v46  ;;  %v984_v57 = vshll.u32 %v846_v50, 16  ;;  %v1241_v59 = vsel %vm3541_vm11, %v1236_v44, %v1240_v29  ;;  %v286_v62 = vsel %vm3477_vm4, 0, %v285_v36  ;;  %v255_v13 = vld [vmem:[#allocation2 + $0x44] sm:$0x1] }
  0x4f   : > { %1336 = vrot.lane.b32.xlu1 %v977_v43, %s3443_s18  ;;  %v1250_v60 = vrot.slane %v1248_v47, 5  ;;  %675 = vst.msk [vmem:[#allocation2 + $0x34] sm:$0xf] %vm172_vm0, %v394_v22  ;;  %v567_v52 = vshrl.u32 %v3680_v42, 16  ;;  %v3020_v21 = vrot.slane %v3675_v38, 9  ;;  %v395_v48 = vrot.slane %v390_v34, 4 }
  0x50   : > { %287 = vst [vmem:[#allocation2 + $0xbc] sm:$0x1] %v286_v62  ;;  %v575_v63 = vshrl.u32 %v323_v53, 16  ;;  %v578_v2 = vshll.u32 %v323_v53, 16  ;;  %v1606_v5 = vrot.slane %v1480_v55, 5  ;;  %v982_v7 = vrot.slane %v981_v51, 4 }
  0x51   : > { %1710 = vrot.lane.b32.xlu2 %v1590_v56, %s3444_s19  ;;  %v1512_v6 = vld [vmem:[#allocation2 + $0xac] sm:$0xf]  ;;  %v569_v8 = vrot.slane %v567_v52, 7  ;;  %v230_v9 = vsel %vm3484_vm5, 0, %v229_v58  ;;  %v986_v11 = vrot.slane %v984_v57, 5  ;;  %v1251_v14 = vsel %vm3541_vm11, %v1246_v54, %v1250_v60 }
  0x52   : > { %v847_v10 = vld [vmem:[#allocation2 + $0x30] sm:$0xf]  ;;  %v577_v12 = vrot.slane %v575_v63, 7  ;;  %231 = vst [vmem:[#allocation2 + $0xb4] sm:$0x1] %v230_v9  ;;  %v570_v25 = vshll.u32 %v3680_v42, 16  ;;  %v1607_v36 = vsel %vm3560_vm14, %v1605_v49, %v1606_v5 }
  0x53   : > { %1380 = vrot.lane.b32.xlu0 %v1241_v59, %s3443_s18  ;;  %v989_v15 = vshrl.u32 %v847_v10, 16  ;;  %v992_v16 = vshll.u32 %v847_v10, 16  ;;  %v676_v17 = vld [vmem:[#allocation2 + $0x38] sm:$0x1]  ;;  %v573_v19 = vrot.slane %v569_v8, 4  ;;  %v1680_v30 = vrot.slane %v1512_v6, 5 }
  0x54   : > { %v677_v20 = vsel %vm3484_vm5, %v395_v48, %v676_v17  ;;  %v580_v23 = vor.u32 %v578_v2, %v577_v12  ;;  %v582_v24 = vrot.slane %v577_v12, 4  ;;  %v1478_v29 = vld [vmem:[#allocation2 + $0x24] sm:$0xe]  ;;  %v987_v33 = vsel %vm3541_vm11, %v982_v7, %v986_v11  ;;  %v3714_v34 = vld [vmem:[#allocation2 + $0x30] sm:$0xe] }
  0x55   : > { %v991_v27 = vrot.slane %v989_v15, 4  ;;  %v994_v28 = vrot.slane %v992_v16, 5  ;;  %678 = vst [vmem:[#allocation2 + $0x38] sm:$0x1] %v677_v20  ;;  %v256_v35 = vsel %vm3477_vm4, 0, %v255_v13  ;;  %v3009_v43 = vrot.slane %v1478_v29, 9 }
  0x56   : > { %v848_v32 = vld [vmem:[#allocation2 + $0x34] sm:$0xf]  ;;  %v581_v4 = vsel %vm3515_vm9, %v573_v19, %v580_v23  ;;  %v572_v44 = vor.u32 %v570_v25, %v569_v8  ;;  %257 = vst [vmem:[#allocation2 + $0x44] sm:$0x1] %v256_v35  ;;  %v3725_v45 = vld [vmem:[%s3499_s17 + $0x20] sm:$0xf]  ;;  %v1681_v51 = vsel %vm3560_vm14, %v3020_v21, %v1680_v30 }
  0x57   : > { %1382 = vrot.lane.b32.xlu1 %v1251_v14, %s3443_s18  ;;  %v995_v37 = vor.u32 %v994_v28, %v991_v27  ;;  %v998_v38 = vshll.u32 %v848_v32, 16  ;;  %v1002_v40 = vshrl.u32 %v848_v32, 16  ;;  %752 = vst.msk [vmem:[#allocation2 + $0xb8] sm:$0xf] %vm172_vm0, %v581_v4  ;;  %v753_v41 = vld [vmem:[#allocation2 + $0xbc] sm:$0x1]  ;;  %v1604_v10 = vsel %vm3560_vm14, %v3009_v43, %v1603_v31 }
  0x58   : > { %v754_v42 = vsel %vm3484_vm5, %v582_v24, %v753_v41  ;;  %v3010_v49 = vrot.slane %v3714_v34, 9  ;;  %v397_v50 = vshrl.u32 %v3725_v45, 16  ;;  %v303_v53 = vld [vmem:[%s3499_s17 + $0x24] sm:$0xf]  ;;  %v232_v54 = vld [vmem:[#allocation2 + $0xc0] sm:$0x1] }
  0x59   : > { %v1000_v46 = vrot.slane %v998_v38, 5  ;;  %1338 = vrot.lane.b32.xlu2 %v987_v33, %s3443_s18  ;;  %v1004_v47 = vrot.slane %v1002_v40, 4  ;;  %755 = vst [vmem:[#allocation2 + $0xbc] sm:$0x1] %v754_v42  ;;  %v3735_v55 = vld [vmem:[%s3499_s17 + $0x78] sm:$0xf] }
  0x5a   : > { %v996_v56 = vrot.slane %v995_v37, 4  ;;  %v749_v22 = vld [vmem:[#allocation2 + $0xb4] sm:$0xf]  ;;  %v1682_v57 = vrot.slane %v1680_v30, 4  ;;  %v3737_v58 = vrot.slane %v397_v50, 7  ;;  %v405_v59 = vshrl.u32 %v303_v53, 16 }
  0x5b   : > { %1720 = vrot.lane.b32.xlu0 %v1607_v36, %s3444_s19  ;;  %v1005_v62 = vor.u32 %v1004_v47, %v1000_v46  ;;  %v750_v52 = vsel %vm3524_vm10, %v572_v44, %v749_v22  ;;  %v1513_v48 = vld [vmem:[#allocation2 + $0xb0] sm:$0x1]  ;;  %v408_v63 = vshll.u32 %v303_v53, 16  ;;  %v233_v21 = vsel %vm3484_vm5, 0, %v232_v54  ;;  %v3743_v5 = vld [vmem:[#allocation2 + $0x34] sm:$0xf] }
  0x5c   : > { %v849_v60 = vld [vmem:[#allocation2 + $0x38] sm:$0x1]  ;;  %751 = vst [vmem:[#allocation2 + $0xb4] sm:$0xf] %v750_v52  ;;  %v403_v6 = vrot.slane %v3737_v58, 4  ;;  %v407_v7 = vrot.slane %v405_v59, 7  ;;  %v1001_v12 = vsel %vm3541_vm11, %v996_v56, %v1000_v46 }
  0x5d   : > { %v1008_v2 = vshll.u32 %v849_v60, 16  ;;  %v584_v8 = vshrl.u32 %v3735_v55, 16  ;;  %234 = vst [vmem:[#allocation2 + $0xc0] sm:$0x1] %v233_v21  ;;  %v1683_v15 = vrot.slane %v1513_v48, 5  ;;  %v1006_v17 = vrot.slane %v1005_v62, 4 }
  0x5e   : > { %v881_v9 = vld [vmem:[#allocation2 + $0xb8] sm:$0xf]  ;;  %v683_v16 = vld [vmem:[#allocation2 + $0x44] sm:$0x1]  ;;  %v410_v0 = vor.u32 %v408_v63, %v407_v7  ;;  %v412_v23 = vrot.slane %v407_v7, 4  ;;  %v1610_v29 = vrot.slane %v3743_v5, 5 }
  0x5f   : > { %v3751_v11 = vld [vmem:[#allocation2 + $0xb8] sm:$0xf]  ;;  %1762 = vrot.lane.b32.xlu1 %v1681_v51, %s3444_s19  ;;  %v1262_v13 = vshll.u32 %v881_v9, 16  ;;  %v1266_v14 = vshrl.u32 %v881_v9, 16  ;;  %v1010_v19 = vrot.slane %v1008_v2, 5  ;;  %v586_v4 = vrot.slane %v584_v8, 7 }
  0x60   : > { %v882_v20 = vld [vmem:[#allocation2 + $0xbc] sm:$0x1]  ;;  %v1687_v27 = vrot.slane %v3751_v11, 5  ;;  %v411_v32 = vsel %vm3515_vm9, %v403_v6, %v410_v0  ;;  %v684_v33 = vsel %vm3484_vm5, %v412_v23, %v683_v16  ;;  %v587_v40 = vshll.u32 %v3735_v55, 16  ;;  %v288_v46 = vld [vmem:[#allocation2 + $0xc8] sm:$0x1] }
  0x61   : > { %v3756_v24 = vrot.slane %v1262_v13, 5  ;;  %v1268_v31 = vrot.slane %v1266_v14, 4  ;;  %v1272_v25 = vshll.u32 %v882_v20, 16  ;;  %1718 = vrot.lane.b32.xlu2 %v1604_v10, %s3444_s19  ;;  %v325_v28 = vld [vmem:[%s3499_s17 + $0x7c] sm:$0xf]  ;;  %v1011_v41 = vsel %vm3541_vm11, %v1006_v17, %v1010_v19 }
  0x62   : > { %v3763_v30 = vld [vmem:[#allocation2 + $0xbc] sm:$0x1]  ;;  %v3770_v38 = vrot.slane %v1687_v27, 4  ;;  %682 = vst.msk [vmem:[#allocation2 + $0x40] sm:$0xf] %vm172_vm0, %v411_v32  ;;  %v1684_v43 = vsel %vm3560_vm14, %v1682_v57, %v1683_v15  ;;  %v589_v56 = vor.u32 %v587_v40, %v586_v4  ;;  %v592_v22 = vshrl.u32 %v325_v28, 16 }
  0x63   : > { %1340 = vrot.lane.b32.xlu0 %v1001_v12, %s3443_s18  ;;  %v199_v35 = vld [vmem:[#allocation2 + $0x3c] sm:$0x1]  ;;  %v1269_v36 = vor.u32 %v1268_v31, %v3756_v24  ;;  %v1274_v37 = vrot.slane %v1272_v25, 5  ;;  %v1514_v42 = vld [vmem:[#allocation2 + $0xb4] sm:$0xe]  ;;  %v1690_v50 = vrot.slane %v3763_v30, 5 }
  0x64   : > { %685 = vst [vmem:[#allocation2 + $0x44] sm:$0x1] %v684_v33  ;;  %v880_v44 = vld [vmem:[#allocation2 + $0xb4] sm:$0xf]  ;;  %v756_v54 = vld [vmem:[#allocation2 + $0xc0] sm:$0xf] }
  0x65   : > { %v1270_v47 = vrot.slane %v1269_v36, 4  ;;  %v1253_v51 = vshrl.u32 %v880_v44, 16  ;;  %v1256_v53 = vshll.u32 %v880_v44, 16  ;;  %v595_v59 = vshll.u32 %v325_v28, 16  ;;  %v202_v60 = vld [vmem:[#allocation2 + $0x48] sm:$0x1] }
  0x66   : > { %v200_v55 = vsel %vm3484_vm5, 0, %v199_v35  ;;  %v590_v48 = vrot.slane %v586_v4, 4  ;;  %v3021_v63 = vrot.slane %v1514_v42, 9  ;;  %v594_v21 = vrot.slane %v592_v22, 7  ;;  %v3788_v7 = vld [vmem:[#allocation2 + $0x38] sm:$0x1] }
  0x67   : > { %1342 = vrot.lane.b32.xlu1 %v1011_v41, %s3443_s18  ;;  %v1275_v57 = vsel %vm3541_vm11, %v1270_v47, %v1274_v37  ;;  %v1255_v62 = vrot.slane %v1253_v51, 4  ;;  %v1258_v52 = vrot.slane %v1256_v53, 5  ;;  %201 = vst [vmem:[#allocation2 + $0x3c] sm:$0x1] %v200_v55  ;;  %v757_v2 = vsel %vm3524_vm10, %v589_v56, %v756_v54  ;;  %v304_v12 = vld [vmem:[%s3499_s17 + $0x28] sm:$0xf] }
  0x68   : > { %v400_v5 = vshll.u32 %v3725_v45, 16  ;;  %758 = vst [vmem:[#allocation2 + $0xc0] sm:$0xf] %v757_v2  ;;  %v289_v8 = vsel %vm3477_vm4, 0, %v288_v46  ;;  %v203_v9 = vsel %vm3484_vm5, 0, %v202_v60  ;;  %v1611_v45 = vsel %vm3560_vm14, %v3010_v49, %v1610_v29 }
  0x69   : > { %1764 = vrot.lane.b32.xlu2 %v1684_v43, %s3444_s19  ;;  %v1259_v6 = vor.u32 %v1258_v52, %v1255_v62  ;;  %v851_v10 = vld [vmem:[#allocation2 + $0x40] sm:$0xf]  ;;  %v597_v11 = vor.u32 %v595_v59, %v594_v21  ;;  %290 = vst [vmem:[#allocation2 + $0xc8] sm:$0x1] %v289_v8  ;;  %v1688_v19 = vsel %vm3560_vm14, %v3021_v63, %v1687_v27  ;;  %v1612_v0 = vrot.slane %v1610_v29, 4 }
  0x6a   : > { %v1022_v14 = vshll.u32 %v851_v10, 16  ;;  %v1026_v15 = vshrl.u32 %v851_v10, 16  ;;  %v402_v17 = vor.u32 %v400_v5, %v3737_v58  ;;  %204 = vst [vmem:[#allocation2 + $0x48] sm:$0x1] %v203_v9  ;;  %v305_v49 = vld [vmem:[%s3499_s17 + $0x2c] sm:$0xf] }
  0x6b   : > { %1386 = vrot.lane.b32.xlu0 %v1275_v57, %s3443_s18  ;;  %v852_v13 = vld [vmem:[#allocation2 + $0x44] sm:$0x1]  ;;  %v1260_v16 = vrot.slane %v1259_v6, 4  ;;  %v598_v34 = vsel %vm3515_vm9, %v590_v48, %v597_v11  ;;  %v1613_v25 = vrot.slane %v3788_v7, 5  ;;  %v599_v28 = vrot.slane %v594_v21, 4 }
  0x6c   : > { %v1032_v20 = vshll.u32 %v852_v13, 16  ;;  %v3806_v23 = vrot.slane %v1022_v14, 5  ;;  %v1028_v31 = vrot.slane %v1026_v15, 4  ;;  %759 = vst.msk [vmem:[#allocation2 + $0xc4] sm:$0xf] %vm172_vm0, %v598_v34  ;;  %v414_v33 = vshrl.u32 %v304_v12, 16 }
  0x6d   : > { %v1265_v27 = vsel %vm3541_vm11, %v1260_v16, %v3756_v24  ;;  %v417_v29 = vshll.u32 %v304_v12, 16  ;;  %v422_v36 = vshrl.u32 %v305_v49, 16  ;;  %v425_v37 = vshll.u32 %v305_v49, 16  ;;  %v220_v40 = vld [vmem:[#allocation2 + $0x90] sm:$0x1] }
  0x6e   : > { %v3810_v58 = vrot.slane %v1032_v20, 5  ;;  %v679_v32 = vld [vmem:[#allocation2 + $0x3c] sm:$0xf]  ;;  %v1029_v4 = vor.u32 %v1028_v31, %v3806_v23  ;;  %v316_v41 = vld [vmem:[%s3499_s17 + $0x58] sm:$0xf]  ;;  %v416_v43 = vrot.slane %v414_v33, 7  ;;  %v1691_v48 = vsel %vm3560_vm14, %v3770_v38, %v1690_v50 }
  0x6f   : > { %1722 = vrot.lane.b32.xlu1 %v1611_v45, %s3444_s19  ;;  %v680_v35 = vsel %vm3524_vm10, %v402_v17, %v679_v32  ;;  %v883_v42 = vld [vmem:[#allocation2 + $0xc0] sm:$0xf]  ;;  %v221_v24 = vsel %vm3484_vm5, 0, %v220_v40  ;;  %v3823_v53 = vrot.slane %v422_v36, 7  ;;  %v317_v59 = vld [vmem:[%s3499_s17 + $0x5c] sm:$0xf]  ;;  %v1614_v9 = vsel %vm3560_vm14, %v1612_v0, %v1613_v25 }
  0x70   : > { %681 = vst [vmem:[#allocation2 + $0x3c] sm:$0xf] %v680_v35  ;;  %v1030_v44 = vrot.slane %v1029_v4, 4  ;;  %v1277_v46 = vshrl.u32 %v883_v42, 16  ;;  %v1280_v47 = vshll.u32 %v883_v42, 16  ;;  %v419_v56 = vor.u32 %v417_v29, %v416_v43 }
  0x71   : > { %1384 = vrot.lane.b32.xlu2 %v1265_v27, %s3443_s18  ;;  %v760_v51 = vld [vmem:[#allocation2 + $0xc8] sm:$0x1]  ;;  %v420_v22 = vrot.slane %v416_v43, 4  ;;  %222 = vst [vmem:[#allocation2 + $0x90] sm:$0x1] %v221_v24  ;;  %v516_v55 = vshrl.u32 %v316_v41, 16  ;;  %v427_v62 = vor.u32 %v425_v37, %v3823_v53 }
  0x72   : > { %v761_v54 = vsel %vm3484_vm5, %v599_v28, %v760_v51  ;;  %v1279_v60 = vrot.slane %v1277_v46, 4  ;;  %v1282_v57 = vrot.slane %v1280_v47, 5  ;;  %v686_v52 = vld [vmem:[#allocation2 + $0x48] sm:$0xf]  ;;  %v519_v5 = vshll.u32 %v316_v41, 16 }
  0x73   : > { %1766 = vrot.lane.b32.xlu0 %v1688_v19, %s3444_s19  ;;  %762 = vst [vmem:[#allocation2 + $0xc8] sm:$0x1] %v761_v54  ;;  %v884_v63 = vld [vmem:[#allocation2 + $0xc4] sm:$0xf]  ;;  %v687_v21 = vsel %vm3524_vm10, %v419_v56, %v686_v52  ;;  %v518_v2 = vrot.slane %v516_v55, 7  ;;  %v428_v30 = vsel %vm3515_vm9, %v420_v22, %v427_v62  ;;  %v524_v38 = vshrl.u32 %v317_v59, 16 }
  0x74   : > { %v1283_v6 = vor.u32 %v1282_v57, %v1279_v60  ;;  %v1286_v7 = vshll.u32 %v884_v63, 16  ;;  %v1290_v8 = vshrl.u32 %v884_v63, 16  ;;  %688 = vst [vmem:[#allocation2 + $0x48] sm:$0xf] %v687_v21  ;;  %v1485_v45 = vld [vmem:[#allocation2 + $0x40] sm:$0xf]  ;;  %v1035_v50 = vsel %vm3541_vm11, %v1030_v44, %v3810_v58 }
  0x75   : > { %v521_v10 = vor.u32 %v519_v5, %v518_v2  ;;  %v522_v11 = vrot.slane %v518_v2, 4  ;;  %v527_v14 = vshll.u32 %v317_v59, 16  ;;  %v764_v15 = vld [vmem:[#allocation2 + $0x4] sm:$0xf]  ;;  %689 = vst.msk [vmem:[#allocation2 + $0x4c] sm:$0xf] %vm172_vm0, %v428_v30 }
  0x76   : > { %v1284_v12 = vrot.slane %v1283_v6, 4  ;;  %v1288_v16 = vrot.slane %v1286_v7, 5  ;;  %v3846_v19 = vrot.slane %v524_v38, 7  ;;  %v276_v49 = vld [vmem:[#allocation2 + $0x98] sm:$0x1]  ;;  %v1617_v31 = vrot.slane %v1485_v45, 5 }
  0x77   : > { %1768 = vrot.lane.b32.xlu1 %v1691_v48, %s3444_s19  ;;  %v1484_v13 = vld [vmem:[#allocation2 + $0x3c] sm:$0xe]  ;;  %v3850_v25 = vld [vmem:[#allocation2 + $0xc4] sm:$0xf]  ;;  %800 = vst.msk [vmem:[#allocation3 + $0x4] sm:$0xf] %vm172_vm0, %v764_v15 }
  0x78   : > { %v850_v17 = vld [vmem:[#allocation2 + $0x3c] sm:$0xf]  ;;  %v728_v0 = vld [vmem:[#allocation2 + $0x90] sm:$0xf]  ;;  %v529_v28 = vor.u32 %v527_v14, %v3846_v19  ;;  %v3011_v27 = vrot.slane %v1484_v13, 9  ;;  %v1292_v4 = vrot.slane %v1290_v8, 4  ;;  %v1289_v35 = vsel %vm3541_vm11, %v1284_v12, %v1288_v16 }
  0x79   : > { %1724 = vrot.lane.b32.xlu2 %v1614_v9, %s3444_s19  ;;  %v1013_v20 = vshrl.u32 %v850_v17, 16  ;;  %v1016_v34 = vshll.u32 %v850_v17, 16  ;;  %v729_v58 = vsel %vm3524_vm10, %v521_v10, %v728_v0  ;;  %v1486_v32 = vld [vmem:[#allocation2 + $0x44] sm:$0x1]  ;;  %v277_v41 = vsel %vm3477_vm4, 0, %v276_v49 }
  0x7a   : > { %730 = vst [vmem:[#allocation2 + $0x90] sm:$0xf] %v729_v58  ;;  %v530_v37 = vsel %vm3515_vm9, %v522_v11, %v529_v28  ;;  %v885_v40 = vld [vmem:[#allocation2 + $0xc8] sm:$0x1]  ;;  %v258_v44 = vld [vmem:[#allocation2 + $0x50] sm:$0x1]  ;;  %v1618_v51 = vsel %vm3560_vm14, %v3011_v27, %v1617_v31  ;;  %v1293_v59 = vor.u32 %v1292_v4, %v1288_v16 }
  0x7b   : > { %1346 = vrot.lane.b32.xlu0 %v1035_v50, %s3443_s18  ;;  %v1015_v33 = vrot.slane %v1013_v20, 4  ;;  %v1018_v29 = vrot.slane %v1016_v34, 5  ;;  %v853_v36 = vld [vmem:[#allocation2 + $0x48] sm:$0xf]  ;;  %731 = vst.msk [vmem:[#allocation2 + $0x94] sm:$0xf] %vm172_vm0, %v530_v37 }
  0x7c   : > { %v1037_v43 = vshrl.u32 %v853_v36, 16  ;;  %v1040_v24 = vshll.u32 %v853_v36, 16  ;;  %v1694_v46 = vrot.slane %v3850_v25, 5  ;;  %278 = vst [vmem:[#allocation2 + $0x98] sm:$0x1] %v277_v41  ;;  %v259_v47 = vsel %vm3477_vm4, 0, %v258_v44 }
  0x7d   : > { %v1019_v42 = vor.u32 %v1018_v29, %v1015_v33  ;;  %v1519_v54 = vld [vmem:[#allocation2 + $0xc8] sm:$0x1]  ;;  %v854_v22 = vld [vmem:[#allocation2 + $0x4c] sm:$0xf]  ;;  %v1296_v55 = vshll.u32 %v885_v40, 16  ;;  %v1619_v60 = vrot.slane %v1617_v31, 4 }
  0x7e   : > { %v1620_v57 = vrot.slane %v1486_v32, 5  ;;  %v1039_v62 = vrot.slane %v1037_v43, 4  ;;  %v1042_v52 = vrot.slane %v1040_v24, 5  ;;  %260 = vst [vmem:[#allocation2 + $0x50] sm:$0x1] %v259_v47  ;;  %v1696_v63 = vrot.slane %v1694_v46, 4 }
  0x7f   : > { %1388 = vrot.lane.b32.xlu1 %v1289_v35, %s3443_s18  ;;  %v1020_v56 = vrot.slane %v1019_v42, 4  ;;  %v1697_v21 = vrot.slane %v1519_v54, 5  ;;  %v1046_v2 = vshll.u32 %v854_v22, 16  ;;  %v531_v6 = vrot.slane %v3846_v19, 4  ;;  %v789_v30 = vld [vmem:[#allocation2 + $0x9c] sm:$0xf] }
  0x80   : > { %v1294_v9 = vrot.slane %v1293_v59, 4  ;;  %v1298_v45 = vrot.slane %v1296_v55, 5  ;;  %v1043_v10 = vor.u32 %v1042_v52, %v1039_v62  ;;  %v429_v38 = vrot.slane %v3823_v53, 4  ;;  %v3880_v50 = vld [vmem:[#allocation2 + $0xc0] sm:$0xe] }
  0x81   : > { %v1025_v48 = vsel %vm3541_vm11, %v1020_v56, %v3806_v23  ;;  %v871_v5 = vld [vmem:[#allocation2 + $0x90] sm:$0xf]  ;;  %v1621_v23 = vsel %vm3560_vm14, %v1619_v60, %v1620_v57  ;;  %v1050_v12 = vshrl.u32 %v854_v22, 16  ;;  %v1698_v17 = vsel %vm3560_vm14, %v1696_v63, %v1697_v21  ;;  %825 = vst.msk [vmem:[#allocation3 + $0x68] sm:$0xf] %vm172_vm0, %v789_v30 }
  0x82   : > { %1344 = vrot.lane.b32.xlu2 %v1025_v48, %s3443_s18  ;;  %v1181_v7 = vshrl.u32 %v871_v5, 16  ;;  %v1184_v8 = vshll.u32 %v871_v5, 16  ;;  %v872_v11 = vld [vmem:[#allocation2 + $0x94] sm:$0xf]  ;;  %v3884_v19 = vrot.slane %v1046_v2, 5  ;;  %v1299_v31 = vsel %vm3541_vm11, %v1294_v9, %v1298_v45 }
  0x83   : > { %1726 = vrot.lane.b32.xlu0 %v1618_v51, %s3444_s19  ;;  %v1190_v15 = vshll.u32 %v872_v11, 16  ;;  %v732_v16 = vld [vmem:[#allocation2 + $0x98] sm:$0x1]  ;;  %v1194_v20 = vshrl.u32 %v872_v11, 16  ;;  %v205_v53 = vld [vmem:[#allocation2 + $0x54] sm:$0x1] }
  0x84   : > { %v1183_v13 = vrot.slane %v1181_v7, 4  ;;  %v1186_v14 = vrot.slane %v1184_v8, 5  ;;  %v733_v34 = vsel %vm3484_vm5, %v531_v6, %v732_v16  ;;  %v206_v58 = vsel %vm3484_vm5, 0, %v205_v53  ;;  %v3900_v4 = vld [vmem:[#allocation2 + $0x4c] sm:$0xf] }
  0x85   : > { %v3890_v49 = vrot.slane %v1190_v15, 5  ;;  %734 = vst [vmem:[#allocation2 + $0x98] sm:$0x1] %v733_v34  ;;  %v690_v28 = vld [vmem:[#allocation2 + $0x50] sm:$0x1]  ;;  %v1044_v27 = vrot.slane %v1043_v10, 4 }
  0x86   : > { %v1187_v0 = vor.u32 %v1186_v14, %v1183_v13  ;;  %v1196_v32 = vrot.slane %v1194_v20, 4  ;;  %v691_v29 = vsel %vm3484_vm5, %v429_v38, %v690_v28  ;;  %207 = vst [vmem:[#allocation2 + $0x54] sm:$0x1] %v206_v58  ;;  %v306_v35 = vld [vmem:[%s3499_s17 + $0x30] sm:$0xf]  ;;  %v3022_v36 = vrot.slane %v3880_v50, 9 }
  0x87   : > { %1728 = vrot.lane.b32.xlu1 %v1621_v23, %s3444_s19  ;;  %692 = vst [vmem:[#allocation2 + $0x50] sm:$0x1] %v691_v29  ;;  %v307_v37 = vld [vmem:[%s3499_s17 + $0x34] sm:$0xf]  ;;  %v431_v40 = vshrl.u32 %v306_v35, 16  ;;  %v434_v41 = vshll.u32 %v306_v35, 16  ;;  %v1049_v22 = vsel %vm3541_vm11, %v1044_v27, %v3884_v19 }
  0x88   : > { %v3896_v33 = vpop.permute.xlu2 %1714  ;;  %v439_v42 = vshrl.u32 %v307_v37, 16  ;;  %v442_v43 = vshll.u32 %v307_v37, 16  ;;  %v767_v24 = vld [vmem:[#allocation2 + $0x18] sm:$0xf]  ;;  %v1052_v44 = vrot.slane %v1050_v12, 4  ;;  %v1188_v47 = vrot.slane %v1187_v0, 4 }
  0x89   : > { %v1197_v51 = vor.u32 %v1196_v32, %v3890_v49  ;;  %v433_v54 = vrot.slane %v431_v40, 7  ;;  %803 = vst.msk [vmem:[#allocation3 + $0x10] sm:$0xf] %vm172_vm0, %v767_v24  ;;  %v790_v56 = vld [vmem:[#allocation2 + $0xa0] sm:$0xf]  ;;  %v1624_v57 = vrot.slane %v3900_v4, 5  ;;  %v1695_v45 = vsel %vm3560_vm14, %v3022_v36, %v1694_v46 }
  0x8a   : > { %1390 = vrot.lane.b32.xlu2 %v1299_v31, %s3443_s18  ;;  %v3912_v59 = vld [vmem:[#allocation2 + $0x90] sm:$0xe]  ;;  %v3914_v55 = vrot.slane %v439_v42, 7  ;;  %826 = vst.msk [vmem:[#allocation3 + $0x6c] sm:$0xf] %vm172_vm0, %v790_v56  ;;  %v1053_v2 = vor.u32 %v1052_v44, %v3884_v19  ;;  %v1193_v7 = vsel %vm3541_vm11, %v1188_v47, %v3890_v49 }
  0x8b   : > { %1772 = vrot.lane.b32.xlu0 %v1698_v17, %s3444_s19  ;;  %v763_v60 = vld [vmem:[#allocation2] sm:$0xf]  ;;  %v436_v62 = vor.u32 %v434_v41, %v433_v54  ;;  %v437_v52 = vrot.slane %v433_v54, 4  ;;  %v261_v48 = vld [vmem:[#allocation2 + $0x5c] sm:$0x1]  ;;  %v1198_v8 = vrot.slane %v1197_v51, 4 }
  0x8c   : > { %799 = vst.msk [vmem:[#allocation3] sm:$0xf] %vm172_vm0, %v763_v60  ;;  %v873_v63 = vld [vmem:[#allocation2 + $0x98] sm:$0x1]  ;;  %v444_v21 = vor.u32 %v442_v43, %v3914_v55  ;;  %v262_v5 = vsel %vm3477_vm4, 0, %v261_v48  ;;  %v1626_v25 = vrot.slane %v1624_v57, 4 }
  0x8d   : > { %v768_v6 = vld [vmem:[#allocation2 + $0x1c] sm:$0xf]  ;;  %v1200_v9 = vshll.u32 %v873_v63, 16  ;;  %v3931_v30 = vld [vmem:[#allocation2 + $0x94] sm:$0xf]  ;;  %v3018_v46 = vrot.slane %v3912_v59, 9 }
  0x8e   : > { %v693_v23 = vld [vmem:[#allocation2 + $0x54] sm:$0xf]  ;;  %263 = vst [vmem:[#allocation2 + $0x5c] sm:$0x1] %v262_v5  ;;  %v1489_v10 = vld [vmem:[#allocation2 + $0x50] sm:$0x1]  ;;  %v445_v11 = vsel %vm3515_vm9, %v437_v52, %v444_v21 }
  0x8f   : > { %1348 = vrot.lane.b32.xlu1 %v1049_v22, %s3443_s18  ;;  %v694_v38 = vsel %vm3524_vm10, %v436_v62, %v693_v23  ;;  %v855_v50 = vld [vmem:[#allocation2 + $0x50] sm:$0x1]  ;;  %804 = vst.msk [vmem:[#allocation3 + $0x14] sm:$0xf] %vm172_vm0, %v768_v6  ;;  %v1202_v12 = vrot.slane %v1200_v9, 5  ;;  %v1627_v15 = vrot.slane %v1489_v10, 5 }
  0x90   : > { %v3941_v13 = vpop.permute.xlu2 %1716  ;;  %695 = vst [vmem:[#allocation2 + $0x54] sm:$0xf] %v694_v38  ;;  %v1056_v14 = vshll.u32 %v855_v50, 16  ;;  %v1054_v16 = vrot.slane %v1053_v2, 4  ;;  %v3026_v17 = vld [vmem:[%s4527_s1 + $0x14] sm:$0xf] }
  0x91   : > { %696 = vst.msk [vmem:[#allocation2 + $0x58] sm:$0xf] %vm172_vm0, %v445_v11  ;;  %v446_v20 = vrot.slane %v3914_v55, 4  ;;  %v2008_v34 = vunpack.c.l.b16 %v3026_v17  ;;  %v766_v53 = vld [vmem:[#allocation2 + $0x10] sm:$0xf]  ;;  %v1203_v31 = vsel %vm3541_vm11, %v1198_v8, %v1202_v12  ;;  %v1666_v28 = vrot.slane %v3931_v30, 5 }
  0x92   : > { %1770 = vrot.lane.b32.xlu2 %v1695_v45, %s3444_s19  ;;  %v1058_v19 = vrot.slane %v1056_v14, 5  ;;  %v765_v0 = vld [vmem:[#allocation2 + $0xc] sm:$0xf]  ;;  %802 = vst.msk [vmem:[#allocation3 + $0xc] sm:$0xf] %vm172_vm0, %v766_v53  ;;  %v1628_v36 = vsel %vm3560_vm14, %v1626_v25, %v1627_v15  ;;  %v3990_v10 = vld [vmem:[%s4527_s1 + $0x18] sm:$0xff] }
  0x93   : > { %1372 = vrot.lane.b32.xlu0 %v1193_v7, %s3443_s18  ;;  %v3197_v58 = vld [vmem:[%s4527_s1 + $0x20] sm:$0xf]  ;;  %v2010_v27 = vpack.c.b16 %v2008_v34, %v2008_v34  ;;  %v308_v35 = vld [vmem:[%s3499_s17 + $0x38] sm:$0xf]  ;;  %v1487_v41 = vld [vmem:[#allocation2 + $0x48] sm:$0xe]  ;;  %v1667_v38 = vsel %vm3560_vm14, %v3018_v46, %v1666_v28 }
  0x94   : > { %v2505_v32 = vunpack.c.l.b16 %v3197_v58  ;;  %v208_v29 = vld [vmem:[#allocation2 + $0x60] sm:$0x1]  ;;  %v1059_v37 = vsel %vm3541_vm11, %v1054_v16, %v1058_v19  ;;  %801 = vst.msk [vmem:[#allocation3 + $0x8] sm:$0xf] %vm172_vm0, %v765_v0  ;;  %v3319_v42 = vld [vmem:[%s4527_s1 + $0xc] sm:$0xff]  ;;  %v448_v24 = vshrl.u32 %v308_v35, 16 }
  0x95   : > { %v1327_v49 = vpop.permute.xlu0 %1326  ;;  %v697_v40 = vld [vmem:[#allocation2 + $0x5c] sm:$0x1]  ;;  %v209_v43 = vsel %vm3484_vm5, 0, %v208_v29  ;;  %v2063_v47 = vsel %vm2061_vm1, %v2010_v27, 0  ;;  %v451_v56 = vshll.u32 %v308_v35, 16  ;;  %v3012_v45 = vrot.slane %v1487_v41, 9 }
  0x96   : > { %1434 = vst.msk [vmem:[#allocation3 + $0x4] sm:$0xf] %vm1432_vm15, %v1327_v49  ;;  %v698_v44 = vsel %vm3484_vm5, %v446_v20, %v697_v40  ;;  %v2507_v51 = vpack.c.b16 %v2505_v32, %v2505_v32  ;;  %v309_v54 = vld [vmem:[%s3499_s17 + $0x3c] sm:$0xf]  ;;  %3416 = vmatpush.bf16.msra.mxu3 %v2063_v47  ;;  %v3974_v55 = vrot.slane %v448_v24, 7  ;;  %2071 = vmatpush.bf16.msra.mxu0 %v2063_v47  ;;  %v1668_v24 = vrot.slane %v1666_v28, 4 }
  0x97   : > { %1374 = vrot.lane.b32.xlu1 %v1203_v31, %s3443_s18  ;;  %210 = vst [vmem:[#allocation2 + $0x60] sm:$0x1] %v209_v43  ;;  %v856_v22 = vld [vmem:[#allocation2 + $0x54] sm:$0xf]  ;;  %v456_v60 = vshrl.u32 %v309_v54, 16  ;;  %v459_v15 = vshll.u32 %v309_v54, 16  ;;  %v1625_v0 = vsel %vm3560_vm14, %v3012_v45, %v1624_v57 }
  0x98   : > { %699 = vst [vmem:[#allocation2 + $0x5c] sm:$0x1] %v698_v44  ;;  %v857_v52 = vld [vmem:[#allocation2 + $0x58] sm:$0xf]  ;;  %v1061_v48 = vshrl.u32 %v856_v22, 16  ;;  %v1064_v63 = vshll.u32 %v856_v22, 16  ;;  %v453_v23 = vor.u32 %v451_v56, %v3974_v55 }
  0x99   : > { %v3976_v62 = vpop.permute.xlu1 %1760  ;;  %v1070_v21 = vshll.u32 %v857_v52, 16  ;;  %v1074_v2 = vshrl.u32 %v857_v52, 16  ;;  %v3981_v5 = vsel %vm2061_vm1, %v2507_v51, 0  ;;  %v3983_v9 = vld [vmem:[#allocation2 + $0x58] sm:$0xf]  ;;  %v3999_v25 = vrot.slane %v456_v60, 7 }
  0x9a   : > { %1350 = vrot.lane.b32.xlu2 %v1059_v37, %s3443_s18  ;;  %v1063_v6 = vrot.slane %v1061_v48, 4  ;;  %v1066_v7 = vrot.slane %v1064_v63, 5  ;;  %2566 = vmatpush.bf16.msra.mxu2 %v3981_v5  ;;  %v264_v16 = vld [vmem:[#allocation2 + $0x68] sm:$0x1]  ;;  %v1631_v19 = vrot.slane %v3983_v9, 5  ;;  %v454_v49 = vrot.slane %v3974_v55, 4 }
  0x9b   : > { %1732 = vrot.lane.b32.xlu0 %v1628_v36, %s3444_s19  ;;  %v1325_v8 = vpop.permute.xlu2 %1324  ;;  %v1072_v50 = vrot.slane %v1070_v21, 5  ;;  %v1076_v12 = vrot.slane %v1074_v2, 4  ;;  %3417 = vmatpush.bf16.msra.mxu3 %v3319_v42  ;;  %v265_v59 = vsel %vm3477_vm4, 0, %v264_v16  ;;  %v1885_v46 = vld [vmem:[%s4527_s1 + $0x8] sm:$0xf]  ;;  %v461_v35 = vor.u32 %v459_v15, %v3999_v25  ;;  %v3302_v30 = vld [vmem:[%s4527_s1] sm:$0xff] }
  0x9c   : > { %1433 = vst.msk [vmem:[#allocation3] sm:$0xf] %vm1432_vm15, %v1325_v8  ;;  %2072 = vmatpush.bf16.msra.mxu0 %v3319_v42  ;;  %v1067_v14 = vor.u32 %v1066_v7, %v1063_v6  ;;  %v1507_v58 = vld [vmem:[#allocation2 + $0x98] sm:$0x1]  ;;  %v2239_v36 = vunpack.c.l.b16 %v1885_v46  ;;  %v1633_v41 = vrot.slane %v1631_v19, 4  ;;  %v463_v56 = vrot.slane %v3999_v25, 4 }
  0x9d   : > { %v1759_v11 = vpop.permute.xlu0 %1758  ;;  %v1077_v17 = vor.u32 %v1076_v12, %v1072_v50  ;;  %266 = vst [vmem:[#allocation2 + $0x68] sm:$0x1] %v265_v59  ;;  %v1669_v44 = vrot.slane %v1507_v58, 5  ;;  %v462_v54 = vsel %vm3515_vm9, %v454_v49, %v461_v35  ;;  %v770_v28 = vld [vmem:[#allocation2 + $0x28] sm:$0xf] }
  0x9e   : > { %v700_v20 = vld [vmem:[#allocation2 + $0x60] sm:$0xf]  ;;  %v1068_v34 = vrot.slane %v1067_v14, 4  ;;  %2567 = vmatpush.bf16.msra.mxu2 %v3990_v10  ;;  %v2241_v40 = vpack.c.b16 %v2239_v36, %v2239_v36  ;;  %v1490_v60 = vld [vmem:[#allocation2 + $0x54] sm:$0xe] }
  0x9f   : > { %1754 = vrot.lane.b32.xlu1 %v1667_v38, %s3444_s19  ;;  %v858_v53 = vld [vmem:[#allocation2 + $0x5c] sm:$0x1]  ;;  %v701_v31 = vsel %vm3524_vm10, %v453_v23, %v700_v20  ;;  %v1078_v27 = vrot.slane %v1077_v17, 4  ;;  %v4039_v55 = vld [vmem:[%s3499_s17 + $0x40] sm:$0xf]  ;;  %v1670_v2 = vsel %vm3560_vm14, %v1668_v24, %v1669_v44  ;;  %v3013_v16 = vrot.slane %v1490_v60, 9 }
  0xa0   : > { %v1080_v32 = vshll.u32 %v858_v53, 16  ;;  %v1492_v29 = vld [vmem:[#allocation2 + $0x5c] sm:$0x1]  ;;  %702 = vst [vmem:[#allocation2 + $0x60] sm:$0xf] %v701_v31  ;;  %v1073_v4 = vsel %vm3541_vm11, %v1068_v34, %v1072_v50  ;;  %v2292_v22 = vsel %vm2061_vm1, %v2241_v40, 0 }
  0xa1   : > { %v1377_v37 = vpop.permute.xlu1 %1376  ;;  %v1634_v42 = vrot.slane %v1492_v29, 5  ;;  %2300 = vmatpush.bf16.msra.mxu1 %v2292_v22  ;;  %3418 = vmatpush.bf16.msrb.mxu3 %v2292_v22  ;;  %v4043_v52 = vld [vmem:[#allocation2 + $0x74] sm:$0x1]  ;;  %v311_v48 = vld [vmem:[%s3499_s17 + $0x44] sm:$0xf] }
  0xa2   : > { %1459 = vst.msk [vmem:[#allocation3 + $0x68] sm:$0xf] %vm1432_vm15, %v1377_v37  ;;  %v1082_v57 = vrot.slane %v1080_v32, 5  ;;  %1730 = vrot.lane.b32.xlu2 %v1625_v0, %s3444_s19  ;;  %v473_v38 = vshrl.u32 %v311_v48, 16  ;;  %v769_v25 = vld [vmem:[#allocation2 + $0x24] sm:$0xf] }
  0xa3   : > { %1352 = vrot.lane.b32.xlu0 %v1073_v4, %s3443_s18  ;;  %1841 = vst.msk [vmem:[#allocation3 + $0x68] sm:$0xf] %vm1814_vm2, %v1759_v11  ;;  %v1331_v43 = vpop.permute.xlu2 %1330  ;;  %v1635_v63 = vsel %vm3560_vm14, %v1633_v41, %v1634_v42  ;;  %v791_v17 = vld [vmem:[#allocation2 + $0xa8] sm:$0xf]  ;;  %v268_v20 = vsel %vm3477_vm4, 0, %v4043_v52  ;;  %v476_v59 = vshll.u32 %v311_v48, 16  ;;  %v1632_v4 = vsel %vm3560_vm14, %v3013_v16, %v1631_v19 }
  0xa4   : > { %v1083_v51 = vsel %vm3541_vm11, %v1078_v27, %v1082_v57  ;;  %1436 = vst.msk [vmem:[#allocation3 + $0xc] sm:$0xf] %vm1432_vm15, %v1331_v43  ;;  %v704_v45 = vld [vmem:[#allocation2 + $0x68] sm:$0x1]  ;;  %v792_v53 = vld [vmem:[#allocation2 + $0xac] sm:$0xf] }
  0xa5   : > { %v1333_v47 = vpop.permute.xlu0 %1332  ;;  %703 = vst.msk [vmem:[#allocation2 + $0x64] sm:$0xf] %vm172_vm0, %v462_v54  ;;  %v705_v11 = vsel %vm3484_vm5, %v463_v56, %v704_v45  ;;  %2301 = vmatpush.bf16.msra.mxu1 %v3302_v30  ;;  %3419 = vmatpush.bf16.msrb.mxu3 %v3302_v30  ;;  %v4066_v49 = vrot.slane %v473_v38, 7  ;;  %v4069_v31 = vld [vmem:[%s3499_s17 + $0x48] sm:$0xf]  ;;  %v468_v38 = vshll.u32 %v4039_v55, 16 }
  0xa6   : > { %1437 = vst.msk [vmem:[#allocation3 + $0x10] sm:$0xf] %vm1432_vm15, %v1333_v47  ;;  %v313_v58 = vld [vmem:[%s3499_s17 + $0x4c] sm:$0xf]  ;;  %v482_v29 = vshrl.u32 %v4069_v31, 16 }
  0xa7   : > { %1819 = vst.msk [vmem:[#allocation3 + $0x10] sm:$0xf] %vm1814_vm2, %v3896_v33  ;;  %1354 = vrot.lane.b32.xlu1 %v1083_v51, %s3443_s18  ;;  %v859_v21 = vld [vmem:[#allocation2 + $0x60] sm:$0xf]  ;;  %v465_v33 = vshrl.u32 %v4039_v55, 16  ;;  %v490_v41 = vshrl.u32 %v313_v58, 16 }
  0xa8   : > { %v1493_v6 = vld [vmem:[#allocation2 + $0x60] sm:$0xe]  ;;  %v1085_v7 = vshrl.u32 %v859_v21, 16  ;;  %v1088_v8 = vshll.u32 %v859_v21, 16  ;;  %806 = vst.msk [vmem:[#allocation3 + $0x1c] sm:$0xf] %vm172_vm0, %v770_v28 }
  0xa9   : > { %v1379_v23 = vpop.permute.xlu1 %1378  ;;  %v3014_v15 = vrot.slane %v1493_v6, 9  ;;  %706 = vst [vmem:[#allocation2 + $0x68] sm:$0x1] %v705_v11  ;;  %v4064_v0 = vrot.slane %v465_v33, 7  ;;  %v214_v44 = vld [vmem:[#allocation2 + $0x78] sm:$0x1] }
  0xaa   : > { %1460 = vst.msk [vmem:[#allocation3 + $0x6c] sm:$0xf] %vm1432_vm15, %v1379_v23  ;;  %v1087_v50 = vrot.slane %v1085_v7, 4  ;;  %v1090_v12 = vrot.slane %v1088_v8, 5  ;;  %1756 = vrot.lane.b32.xlu2 %v1670_v2, %s3444_s19  ;;  %v484_v51 = vrot.slane %v482_v29, 7  ;;  %v493_v54 = vshll.u32 %v313_v58, 16 }
  0xab   : > { %1736 = vrot.lane.b32.xlu0 %v1635_v63, %s3444_s19  ;;  %1842 = vst.msk [vmem:[#allocation3 + $0x6c] sm:$0xf] %vm1814_vm2, %v3976_v62  ;;  %v1711_v14 = vpop.permute.xlu2 %1710  ;;  %v211_v62 = vld [vmem:[#allocation2 + $0x6c] sm:$0x1]  ;;  %v471_v40 = vrot.slane %v4064_v0, 4  ;;  %v4100_v2 = vrot.slane %v490_v41, 7 }
  0xac   : > { %v1091_v34 = vor.u32 %v1090_v12, %v1087_v50  ;;  %v860_v27 = vld [vmem:[#allocation2 + $0x64] sm:$0xf]  ;;  %805 = vst.msk [vmem:[#allocation3 + $0x18] sm:$0xf] %vm172_vm0, %v769_v25  ;;  %v212_v47 = vsel %vm3484_vm5, 0, %v211_v62  ;;  %v488_v21 = vrot.slane %v484_v51, 4 }
  0xad   : > { %v1335_v46 = vpop.permute.xlu0 %1334  ;;  %v1094_v35 = vshll.u32 %v860_v27, 16  ;;  %v1098_v36 = vshrl.u32 %v860_v27, 16  ;;  %v1494_v37 = vld [vmem:[#allocation2 + $0x64] sm:$0xf]  ;;  %827 = vst.msk [vmem:[#allocation3 + $0x70] sm:$0xf] %vm172_vm0, %v791_v17  ;;  %v495_v11 = vor.u32 %v493_v54, %v4100_v2 }
  0xae   : > { %1438 = vst.msk [vmem:[#allocation3 + $0x14] sm:$0xf] %vm1432_vm15, %v1335_v46  ;;  %v1092_v32 = vrot.slane %v1091_v34, 4  ;;  %v1638_v57 = vrot.slane %v1494_v37, 5  ;;  %v215_v23 = vsel %vm3484_vm5, 0, %v214_v44  ;;  %v480_v55 = vrot.slane %v4066_v49, 4 }
  0xaf   : > { %1820 = vst.msk [vmem:[#allocation3 + $0x14] sm:$0xf] %vm1814_vm2, %v3941_v13  ;;  %v478_v13 = vor.u32 %v476_v59, %v4066_v49  ;;  %v1096_v43 = vrot.slane %v1094_v35, 5  ;;  %v1100_v24 = vrot.slane %v1098_v36, 4  ;;  %v496_v12 = vsel %vm3515_vm9, %v488_v21, %v495_v11  ;;  %v771_v25 = vld [vmem:[#allocation2 + $0x30] sm:$0xf] }
  0xb0   : > { %828 = vst.msk [vmem:[#allocation3 + $0x74] sm:$0xf] %vm172_vm0, %v792_v53  ;;  %v1639_v19 = vsel %vm3560_vm14, %v3014_v15, %v1638_v57  ;;  %v1495_v22 = vld [vmem:[#allocation2 + $0x68] sm:$0x1]  ;;  %v1640_v7 = vrot.slane %v1638_v57, 4  ;;  %v470_v53 = vor.u32 %v468_v38, %v4064_v0  ;;  %v497_v26 = vrot.slane %v4100_v2, 4 }
  0xb1   : > { %v1329_v42 = vpop.permute.xlu1 %1328  ;;  %v1097_v56 = vsel %vm3541_vm11, %v1092_v32, %v1096_v43  ;;  %v861_v28 = vld [vmem:[#allocation2 + $0x68] sm:$0x1]  ;;  %v1101_v60 = vor.u32 %v1100_v24, %v1096_v43  ;;  %v479_v48 = vsel %vm3515_vm9, %v471_v40, %v478_v13  ;;  %v1641_v8 = vrot.slane %v1495_v22, 5  ;;  %269 = vst [vmem:[#allocation2 + $0x74] sm:$0x1] %v268_v20 }
  0xb2   : > { %1435 = vst.msk [vmem:[#allocation3 + $0x8] sm:$0xf] %vm1432_vm15, %v1329_v42  ;;  %v3315_v9 = vld [vmem:[#allocation3 + $0x68] sm:$0xff]  ;;  %1734 = vrot.lane.b32.xlu2 %v1632_v4, %s3444_s19  ;;  %1356 = vrot.lane.b32.xlu1 %v1097_v56, %s3443_s18  ;;  %v1104_v63 = vshll.u32 %v861_v28, 16  ;;  %v4118_v16 = vld [vmem:[%s3499_s17 + $0x50] sm:$0xf] }
  0xb3   : > { %1817 = vst.msk [vmem:[#allocation3 + $0x8] sm:$0xf] %vm1814_vm2, %v1711_v14  ;;  %1738 = vrot.lane.b32.xlu0 %v1639_v19, %s3444_s19  ;;  %v1339_v30 = vpop.permute.xlu2 %1338  ;;  %3107 = vmatmul.msk.bf16.vlgmr.msra.gmra.mxu3 %vm2012_vm3, %v3315_v9  ;;  %v1102_v45 = vrot.slane %v1101_v60, 4  ;;  %v1642_v15 = vsel %vm3560_vm14, %v1640_v7, %v1641_v8  ;;  %v315_v17 = vld [vmem:[%s3499_s17 + $0x54] sm:$0xf] }
  0xb4   : > { %1440 = vst.msk [vmem:[#allocation3 + $0x1c] sm:$0xf] %vm1432_vm15, %v1339_v30  ;;  %3420 = vmatpush.bf16.msra.mxu3 %v3981_v5  ;;  %v1106_v33 = vrot.slane %v1104_v63, 5  ;;  %v485_v5 = vshll.u32 %v4069_v31, 16  ;;  %v507_v20 = vshrl.u32 %v315_v17, 16  ;;  %v510_v35 = vshll.u32 %v315_v17, 16 }
  0xb5   : > { %v1707_v52 = vpop.permute.xlu0 %1706  ;;  %710 = vst.msk [vmem:[#allocation2 + $0x70] sm:$0xf] %vm172_vm0, %v479_v48  ;;  %v793_v46 = vld [vmem:[#allocation2 + $0xb4] sm:$0xf]  ;;  %v270_v32 = vld [vmem:[#allocation2 + $0x80] sm:$0x1] }
  0xb6   : > { %1815 = vst.msk [vmem:[#allocation3] sm:$0xf] %vm1814_vm2, %v1707_v52  ;;  %v3320_v6 = vld [vmem:[#allocation3 + $0x10] sm:$0xff]  ;;  %v1107_v50 = vsel %vm3541_vm11, %v1102_v45, %v1106_v33  ;;  %v487_v49 = vor.u32 %v485_v5, %v484_v51  ;;  %v772_v62 = vld [vmem:[#allocation2 + $0x34] sm:$0xf]  ;;  %v4134_v29 = vrot.slane %v507_v20, 7 }
  0xb7   : > { %3266 = vmatmul.msk.bf16.vlgmr.msra.gmra.mxu2 %vm2012_vm3, %v3320_v6  ;;  %213 = vst [vmem:[#allocation2 + $0x6c] sm:$0x1] %v212_v47  ;;  %v217_v44 = vld [vmem:[#allocation2 + $0x84] sm:$0x1]  ;;  %v271_v56 = vsel %vm3477_vm4, 0, %v270_v32  ;;  %v502_v63 = vshll.u32 %v4118_v16, 16 }
  0xb8   : > { %216 = vst [vmem:[#allocation2 + $0x78] sm:$0x1] %v215_v23  ;;  %3421 = vmatpush.bf16.msra.mxu3 %v3990_v10  ;;  %v499_v10 = vshrl.u32 %v4118_v16, 16  ;;  %v711_v31 = vld [vmem:[#allocation2 + $0x74] sm:$0x1]  ;;  %v512_v19 = vor.u32 %v510_v35, %v4134_v29  ;;  %v218_v60 = vsel %vm3484_vm5, 0, %v217_v44 }
  0xb9   : > { %v1709_v14 = vpop.permute.xlu1 %1708  ;;  %717 = vst.msk [vmem:[#allocation2 + $0x7c] sm:$0xf] %vm172_vm0, %v496_v12  ;;  %v712_v58 = vsel %vm3484_vm5, %v480_v55, %v711_v31  ;;  %v794_v28 = vld [vmem:[#allocation2 + $0xb8] sm:$0xf]  ;;  %v273_v23 = vld [vmem:[#allocation2 + $0x8c] sm:$0x1] }
  0xba   : > { %1816 = vst.msk [vmem:[#allocation3 + $0x4] sm:$0xf] %vm1814_vm2, %v1709_v14  ;;  %1358 = vrot.lane.b32.xlu2 %v1107_v50, %s3443_s18  ;;  %1740 = vrot.lane.b32.xlu1 %v1642_v15, %s3444_s19  ;;  %v501_v40 = vrot.slane %v499_v10, 7  ;;  %v773_v15 = vld [vmem:[#allocation2 + $0x3c] sm:$0xf] }
  0xbb   : > { %v1719_v59 = vpop.permute.xlu2 %1718  ;;  %807 = vst.msk [vmem:[#allocation3 + $0x20] sm:$0xf] %vm172_vm0, %v771_v25  ;;  %v774_v44 = vld [vmem:[#allocation2 + $0x40] sm:$0xf]  ;;  %v777_v3 = vld [vmem:[#allocation2 + $0x54] sm:$0xf] }
  0xbc   : > { %v863_v27 = vld [vmem:[#allocation2 + $0x70] sm:$0xf]  ;;  %829 = vst.msk [vmem:[#allocation3 + $0x78] sm:$0xf] %vm172_vm0, %v793_v46  ;;  %v505_v9 = vrot.slane %v501_v40, 4  ;;  %v504_v14 = vor.u32 %v502_v63, %v501_v40 }
  0xbd   : > { %v1713_v34 = vpop.permute.xlu0 %1712  ;;  %713 = vst [vmem:[#allocation2 + $0x74] sm:$0x1] %v712_v58  ;;  %v1118_v0 = vshll.u32 %v863_v27, 16  ;;  %v1122_v36 = vshrl.u32 %v863_v27, 16  ;;  %v4148_v51 = vld [vmem:[#allocation2 + $0x70] sm:$0xf] }
  0xbe   : > { %1818 = vst.msk [vmem:[#allocation3 + $0xc] sm:$0xf] %vm1814_vm2, %v1713_v34  ;;  %v707_v37 = vld [vmem:[#allocation2 + $0x6c] sm:$0xf]  ;;  %v1645_v48 = vrot.slane %v4148_v51, 5  ;;  %v513_v21 = vsel %vm3515_vm9, %v505_v9, %v512_v19 }
  0xbf   : > { %v708_v4 = vsel %vm3524_vm10, %v470_v53, %v707_v37  ;;  %v714_v57 = vld [vmem:[#allocation2 + $0x78] sm:$0xf]  ;;  %808 = vst.msk [vmem:[#allocation3 + $0x24] sm:$0xf] %vm172_vm0, %v772_v62  ;;  %v4139_v42 = vrot.slane %v1118_v0, 5  ;;  %v1124_v43 = vrot.slane %v1122_v36, 4 }
  0xc0   : > { %709 = vst [vmem:[#allocation2 + $0x6c] sm:$0xf] %v708_v4  ;;  %v715_v24 = vsel %vm3524_vm10, %v487_v49, %v714_v57  ;;  %v866_v8 = vld [vmem:[#allocation2 + $0x7c] sm:$0xf]  ;;  %v274_v62 = vsel %vm3477_vm4, 0, %v273_v23  ;;  %v1647_v39 = vrot.slane %v1645_v48, 4 }
  0xc1   : > { %v1337_v13 = vpop.permute.xlu1 %1336  ;;  %v3286_v41 = vld [vmem:[#allocation3] sm:$0xff]  ;;  %v1125_v47 = vor.u32 %v1124_v43, %v4139_v42  ;;  %716 = vst [vmem:[#allocation2 + $0x78] sm:$0xf] %v715_v24  ;;  %v1146_v20 = vshrl.u32 %v866_v8, 16  ;;  %v1142_v10 = vshll.u32 %v866_v8, 16 }
  0xc2   : > { %1439 = vst.msk [vmem:[#allocation3 + $0x18] sm:$0xf] %vm1432_vm15, %v1337_v13  ;;  %3179 = vmatmul.msk.bf16.vlgmr.msra.gmra.mxu1 %vm2012_vm3, %v3286_v41  ;;  %v4164_v12 = vld [vmem:[#allocation2 + $0x7c] sm:$0xf] }
  0xc3   : > { %1821 = vst.msk [vmem:[#allocation3 + $0x18] sm:$0xf] %vm1814_vm2, %v1719_v59  ;;  %v1765_v54 = vpop.permute.xlu2 %1764  ;;  %v1126_v6 = vrot.slane %v1125_v47, 4  ;;  %v1148_v0 = vrot.slane %v1146_v20, 4  ;;  %v1652_v36 = vrot.slane %v4164_v12, 5  ;;  %v1144_v57 = vrot.slane %v1142_v10, 5 }
  0xc4   : > { %v864_v52 = vld [vmem:[#allocation2 + $0x74] sm:$0x1]  ;;  %272 = vst [vmem:[#allocation2 + $0x80] sm:$0x1] %v271_v56  ;;  %v3304_v47 = vld [vmem:[#allocation3 + $0x10] sm:$0xff] }
  0xc5   : > { %v1381_v22 = vpop.permute.xlu0 %1380  ;;  %v3303_v30 = vld [vmem:[#allocation3 + $0x8] sm:$0xff]  ;;  %v1128_v7 = vshll.u32 %v864_v52, 16  ;;  %830 = vst.msk [vmem:[#allocation3 + $0x7c] sm:$0xf] %vm172_vm0, %v794_v28  ;;  %v1498_v24 = vld [vmem:[#allocation2 + $0x74] sm:$0x1] }
  0xc6   : > { %1461 = vst.msk [vmem:[#allocation3 + $0x70] sm:$0xf] %vm1432_vm15, %v1381_v22  ;;  %3095 = vmatmul.msk.bf16.vlgmr.msra.gmra.mxu0 %vm2012_vm3, %v3303_v30  ;;  %v3287_v40 = vld [vmem:[#allocation3 + $0x8] sm:$0xff]  ;;  %v1648_v52 = vrot.slane %v1498_v24, 5  ;;  %v1654_v63 = vrot.slane %v1652_v36, 4 }
  0xc7   : > { %v1496_v45 = vld [vmem:[#allocation2 + $0x6c] sm:$0xe]  ;;  %219 = vst [vmem:[#allocation2 + $0x84] sm:$0x1] %v218_v60  ;;  %v1130_v38 = vrot.slane %v1128_v7, 5 }
  0xc8   : > { %v862_v33 = vld [vmem:[#allocation2 + $0x6c] sm:$0xf]  ;;  %v3015_v50 = vrot.slane %v1496_v45, 9  ;;  %724 = vst.msk [vmem:[#allocation2 + $0x88] sm:$0xf] %vm172_vm0, %v513_v21  ;;  %v514_v45 = vrot.slane %v4134_v29, 4 }
  0xc9   : > { %v1383_v11 = vpop.permute.xlu1 %1382  ;;  %v1109_v5 = vshrl.u32 %v862_v33, 16  ;;  %v1112_v25 = vshll.u32 %v862_v33, 16  ;;  %v1131_v16 = vsel %vm3541_vm11, %v1126_v6, %v1130_v38  ;;  %v865_v55 = vld [vmem:[#allocation2 + $0x78] sm:$0xf]  ;;  %809 = vst.msk [vmem:[#allocation3 + $0x28] sm:$0xf] %vm172_vm0, %v773_v15  ;;  %v1649_v33 = vsel %vm3560_vm14, %v1647_v39, %v1648_v52 }
  0xca   : > { %1462 = vst.msk [vmem:[#allocation3 + $0x74] sm:$0xf] %vm1432_vm15, %v1383_v11  ;;  %v1646_v17 = vsel %vm3560_vm14, %v3015_v50, %v1645_v48  ;;  %1362 = vrot.lane.b32.xlu0 %v1131_v16, %s3443_s18  ;;  %v1133_v34 = vshrl.u32 %v865_v55, 16  ;;  %v1136_v53 = vshll.u32 %v865_v55, 16  ;;  %v796_v22 = vld [vmem:[#allocation2 + $0xc4] sm:$0xf] }
  0xcb   : > { %1844 = vst.msk [vmem:[#allocation3 + $0x74] sm:$0xf] %vm1814_vm2, %v1765_v54  ;;  %v1385_v59 = vpop.permute.xlu2 %1384  ;;  %v1111_v46 = vrot.slane %v1109_v5, 4  ;;  %1742 = vrot.lane.b32.xlu1 %v1646_v17, %s3444_s19  ;;  %v1114_v31 = vrot.slane %v1112_v25, 5  ;;  %v718_v49 = vld [vmem:[#allocation2 + $0x80] sm:$0x1]  ;;  %v1149_v54 = vor.u32 %v1148_v0, %v1144_v57 }
  0xcc   : > { %1463 = vst.msk [vmem:[#allocation3 + $0x78] sm:$0xf] %vm1432_vm15, %v1385_v59  ;;  %v1135_v58 = vrot.slane %v1133_v34, 4  ;;  %v1138_v27 = vrot.slane %v1136_v53, 5  ;;  %v719_v32 = vsel %vm3484_vm5, %v497_v26, %v718_v49  ;;  %v787_v24 = vld [vmem:[#allocation2 + $0x90] sm:$0xf] }
  0xcd   : > { %v1721_v2 = vpop.permute.xlu0 %1720  ;;  %v1115_v35 = vor.u32 %v1114_v31, %v1111_v46  ;;  %720 = vst [vmem:[#allocation2 + $0x80] sm:$0x1] %v719_v32  ;;  %v1150_v6 = vrot.slane %v1149_v54, 4  ;;  %v781_v18 = vld [vmem:[#allocation2 + $0x6c] sm:$0xf] }
  0xce   : > { %1822 = vst.msk [vmem:[#allocation3 + $0x1c] sm:$0xf] %vm1814_vm2, %v1721_v2  ;;  %v721_v37 = vld [vmem:[#allocation2 + $0x84] sm:$0xf]  ;;  %v1139_v4 = vor.u32 %v1138_v27, %v1135_v58  ;;  %v775_v58 = vld [vmem:[#allocation2 + $0x48] sm:$0xf] }
  0xcf   : > { %v1116_v13 = vrot.slane %v1115_v35, 4  ;;  %v722_v41 = vsel %vm3524_vm10, %v504_v14, %v721_v37  ;;  %275 = vst [vmem:[#allocation2 + $0x8c] sm:$0x1] %v274_v62  ;;  %v869_v51 = vld [vmem:[#allocation2 + $0x88] sm:$0xf] }
  0xd0   : > { %723 = vst [vmem:[#allocation2 + $0x84] sm:$0xf] %v722_v41  ;;  %v1140_v9 = vrot.slane %v1139_v4, 4  ;;  %v1166_v11 = vshll.u32 %v869_v51, 16  ;;  %v1499_v14 = vld [vmem:[#allocation2 + $0x78] sm:$0xe] }
  0xd1   : > { %v1763_v43 = vpop.permute.xlu1 %1762  ;;  %v1121_v19 = vsel %vm3541_vm11, %v1116_v13, %v4139_v42  ;;  %810 = vst.msk [vmem:[#allocation3 + $0x2c] sm:$0xf] %vm172_vm0, %v774_v44  ;;  %v795_v42 = vld [vmem:[#allocation2 + $0xc0] sm:$0xf]  ;;  %v1170_v16 = vshrl.u32 %v869_v51, 16  ;;  %v3016_v31 = vrot.slane %v1499_v14, 9 }
  0xd2   : > { %1843 = vst.msk [vmem:[#allocation3 + $0x70] sm:$0xf] %vm1814_vm2, %v1763_v43  ;;  %3180 = vmatmul.msk.bf16.gmra.mxu1 %vm2012_vm3, %v3287_v40  ;;  %1360 = vrot.lane.b32.xlu2 %v1121_v19, %s3443_s18  ;;  %v1145_v30 = vsel %vm3541_vm11, %v1140_v9, %v1144_v57  ;;  %v1168_v34 = vrot.slane %v1166_v11, 5  ;;  %v1503_v10 = vld [vmem:[#allocation2 + $0x88] sm:$0xf] }
  0xd3   : > { %v1725_v56 = vpop.permute.xlu2 %1724  ;;  %1364 = vrot.lane.b32.xlu0 %v1145_v30, %s3443_s18  ;;  %832 = vst.msk [vmem:[#allocation3 + $0x84] sm:$0xf] %vm172_vm0, %v796_v22  ;;  %v776_v62 = vld [vmem:[#allocation2 + $0x4c] sm:$0xf]  ;;  %v1172_v32 = vrot.slane %v1170_v16, 4  ;;  %v1659_v0 = vrot.slane %v1503_v10, 5  ;;  %v1653_v37 = vsel %vm3560_vm14, %v3016_v31, %v1652_v36 }
  0xd4   : > { %v867_v48 = vld [vmem:[#allocation2 + $0x80] sm:$0x1]  ;;  %831 = vst.msk [vmem:[#allocation3 + $0x80] sm:$0xf] %vm172_vm0, %v795_v42  ;;  %v3288_v13 = vld [vmem:[#allocation3 + $0x10] sm:$0xff] }
  0xd5   : > { %v1341_v28 = vpop.permute.xlu0 %1340  ;;  %v3321_v60 = vld [vmem:[#allocation3 + $0x18] sm:$0xff]  ;;  %v1501_v21 = vld [vmem:[#allocation2 + $0x80] sm:$0x1]  ;;  %v1152_v7 = vshll.u32 %v867_v48, 16  ;;  %812 = vst.msk [vmem:[#allocation3 + $0x34] sm:$0xf] %vm172_vm0, %v776_v62  ;;  %v1173_v4 = vor.u32 %v1172_v32, %v1168_v34 }
  0xd6   : > { %1441 = vst.msk [vmem:[#allocation3 + $0x20] sm:$0xf] %vm1432_vm15, %v1341_v28  ;;  %3096 = vmatmul.msk.bf16.gmra.mxu0 %vm2012_vm3, %v3304_v47  ;;  %3267 = vmatmul.msk.bf16.gmra.mxu2 %vm2012_vm3, %v3321_v60  ;;  %v1655_v8 = vrot.slane %v1501_v21, 5  ;;  %v725_v29 = vld [vmem:[#allocation2 + $0x8c] sm:$0x1]  ;;  %v3305_v9 = vld [vmem:[#allocation3 + $0x18] sm:$0xff] }
  0xd7   : > { %v868_v23 = vld [vmem:[#allocation2 + $0x84] sm:$0xf]  ;;  %v1154_v50 = vrot.slane %v1152_v7, 5  ;;  %v726_v46 = vsel %vm3484_vm5, %v514_v45, %v725_v29  ;;  %811 = vst.msk [vmem:[#allocation3 + $0x30] sm:$0xf] %vm172_vm0, %v775_v58  ;;  %v1174_v47 = vrot.slane %v1173_v4, 4 }
  0xd8   : > { %v1157_v26 = vshrl.u32 %v868_v23, 16  ;;  %v1160_v25 = vshll.u32 %v868_v23, 16  ;;  %v1656_v15 = vsel %vm3560_vm14, %v1654_v63, %v1655_v8  ;;  %v1502_v59 = vld [vmem:[#allocation2 + $0x84] sm:$0xe]  ;;  %727 = vst [vmem:[#allocation2 + $0x8c] sm:$0x1] %v726_v46 }
  0xd9   : > { %v1343_v38 = vpop.permute.xlu1 %1342  ;;  %v3316_v5 = vld [vmem:[#allocation3 + $0x70] sm:$0xff]  ;;  %v1155_v17 = vsel %vm3541_vm11, %v1150_v6, %v1154_v50  ;;  %v3017_v27 = vrot.slane %v1502_v59, 9  ;;  %v291_v43 = vld [vmem:[#allocation2 + $0xd4] sm:$0x1]  ;;  %823 = vst.msk [vmem:[#allocation3 + $0x60] sm:$0xf] %vm172_vm0, %v787_v24 }
  0xda   : > { %1442 = vst.msk [vmem:[#allocation3 + $0x24] sm:$0xf] %vm1432_vm15, %v1343_v38  ;;  %3108 = vmatmul.msk.bf16.gmra.mxu3 %vm2012_vm3, %v3316_v5  ;;  %1744 = vrot.lane.b32.xlu2 %v1649_v33, %s3444_s19  ;;  %v1159_v55 = vrot.slane %v1157_v26, 4  ;;  %v1162_v20 = vrot.slane %v1160_v25, 5  ;;  %v292_v22 = vsel %vm3477_vm4, 0, %v291_v43  ;;  %v3289_v29 = vld [vmem:[#allocation3 + $0x18] sm:$0xff] }
  0xdb   : > { %1824 = vst.msk [vmem:[#allocation3 + $0x24] sm:$0xf] %vm1814_vm2, %v1725_v56  ;;  %1366 = vrot.lane.b32.xlu1 %v1155_v17, %s3443_s18  ;;  %1748 = vrot.lane.b32.xlu0 %v1656_v15, %s3444_s19  ;;  %v1660_v41 = vsel %vm3560_vm14, %v3017_v27, %v1659_v0  ;;  %v1661_v56 = vrot.slane %v1659_v0, 4  ;;  %v788_v28 = vld [vmem:[#allocation2 + $0x94] sm:$0xf] }
  0xdc   : > { %v1345_v53 = vpop.permute.xlu2 %1344  ;;  %v1163_v49 = vor.u32 %v1162_v20, %v1159_v55  ;;  %824 = vst.msk [vmem:[#allocation3 + $0x64] sm:$0xf] %vm172_vm0, %v788_v28  ;;  %v887_v60 = vld [vmem:[#allocation2 + $0xd0] sm:$0xf]  ;;  %v1520_v33 = vld [vmem:[#allocation2 + $0xcc] sm:$0xe] }
  0xdd   : > { %v1387_v2 = vpop.permute.xlu0 %1386  ;;  %1443 = vst.msk [vmem:[#allocation3 + $0x28] sm:$0xf] %vm1432_vm15, %v1345_v53  ;;  %v1310_v42 = vshll.u32 %v887_v60, 16  ;;  %v1314_v63 = vshrl.u32 %v887_v60, 16  ;;  %v1521_v23 = vld [vmem:[#allocation2 + $0xd0] sm:$0xf] }
  0xde   : > { %1464 = vst.msk [vmem:[#allocation3 + $0x7c] sm:$0xf] %vm1432_vm15, %v1387_v2  ;;  %v1164_v35 = vrot.slane %v1163_v49, 4  ;;  %v3023_v11 = vrot.slane %v1520_v33, 9  ;;  %v1701_v38 = vrot.slane %v1521_v23, 5  ;;  %v3299_v33 = vld [vmem:[#allocation3 + $0x68] sm:$0xff] }
  0xdf   : > { %v1504_v12 = vld [vmem:[#allocation2 + $0x8c] sm:$0x1]  ;;  %293 = vst [vmem:[#allocation2 + $0xd4] sm:$0x1] %v292_v22  ;;  %v1312_v21 = vrot.slane %v1310_v42, 5  ;;  %v1316_v6 = vrot.slane %v1314_v63, 4 }
  0xe0   : > { %v1169_v40 = vsel %vm3541_vm11, %v1164_v35, %v1168_v34  ;;  %v870_v36 = vld [vmem:[#allocation2 + $0x8c] sm:$0x1]  ;;  %v1662_v39 = vrot.slane %v1504_v12, 5  ;;  %v1702_v17 = vsel %vm3560_vm14, %v3023_v11, %v1701_v38  ;;  %813 = vst.msk [vmem:[#allocation3 + $0x38] sm:$0xf] %vm172_vm0, %v777_v3  ;;  %v1703_v24 = vrot.slane %v1701_v38, 4 }
  0xe1   : > { %v1723_v57 = vpop.permute.xlu1 %1722  ;;  %v1176_v54 = vshll.u32 %v870_v36, 16  ;;  %v1317_v45 = vor.u32 %v1316_v6, %v1312_v21  ;;  %v235_v50 = vld [vmem:[#allocation2 + $0xcc] sm:$0x1]  ;;  %v778_v58 = vld [vmem:[#allocation2 + $0x58] sm:$0xf] }
  0xe2   : > { %1823 = vst.msk [vmem:[#allocation3 + $0x20] sm:$0xf] %vm1814_vm2, %v1723_v57  ;;  %3181 = vmatmul.msk.bf16.gmra.mxu1 %vm2012_vm3, %v3288_v13  ;;  %1746 = vrot.lane.b32.xlu2 %v1653_v37, %s3444_s19  ;;  %v1663_v1 = vsel %vm3560_vm14, %v1661_v56, %v1662_v39  ;;  %v236_v26 = vsel %vm3484_vm5, 0, %v235_v50  ;;  %v779_v13 = vld [vmem:[#allocation2 + $0x60] sm:$0xf]  ;;  %vm2909_vm5 = vcmask 64512  }
  0xe3   : > { %1368 = vrot.lane.b32.xlu1 %v1169_v40, %s3443_s18  ;;  %1750 = vrot.lane.b32.xlu0 %v1660_v41, %s3444_s19  ;;  %v1178_v30 = vrot.slane %v1176_v54, 5  ;;  %v1318_v25 = vrot.slane %v1317_v45, 4  ;;  %237 = vst [vmem:[#allocation2 + $0xcc] sm:$0x1] %v236_v26  ;;  %v784_v38 = vld [vmem:[#allocation2 + $0x7c] sm:$0xf] }
  0xe4   : > { %v1391_v19 = vpop.permute.xlu2 %1390  ;;  %814 = vst.msk [vmem:[#allocation3 + $0x3c] sm:$0xf] %vm172_vm0, %v778_v58 }
  0xe5   : > { %v1767_v44 = vpop.permute.xlu0 %1766  ;;  %1466 = vst.msk [vmem:[#allocation3 + $0x84] sm:$0xf] %vm1432_vm15, %v1391_v19  ;;  %v1179_v52 = vsel %vm3541_vm11, %v1174_v47, %v1178_v30 }
  0xe6   : > { %1845 = vst.msk [vmem:[#allocation3 + $0x78] sm:$0xf] %vm1814_vm2, %v1767_v44  ;;  %3097 = vmatmul.msk.bf16.gmra.mxu0 %vm2012_vm3, %v3305_v9  ;;  %v888_v5 = vld [vmem:[#allocation2 + $0xd4] sm:$0x1]  ;;  %v780_v9 = vld [vmem:[#allocation2 + $0x64] sm:$0xf] }
  0xe7   : > { %v1320_v14 = vshll.u32 %v888_v5, 16  ;;  %815 = vst.msk [vmem:[#allocation3 + $0x40] sm:$0xf] %vm172_vm0, %v779_v13  ;;  %v1522_v61 = vld [vmem:[#allocation2 + $0xd4] sm:$0x1] }
  0xe8   : > { %v1704_v44 = vrot.slane %v1522_v61, 5  ;;  %816 = vst.msk [vmem:[#allocation3 + $0x44] sm:$0xf] %vm172_vm0, %v780_v9 }
  0xe9   : > { %v1769_v51 = vpop.permute.xlu1 %1768  ;;  %v3322_v48 = vld [vmem:[#allocation3 + $0x20] sm:$0xff]  ;;  %v1322_v55 = vrot.slane %v1320_v14, 5  ;;  %817 = vst.msk [vmem:[#allocation3 + $0x48] sm:$0xf] %vm172_vm0, %v781_v18  ;;  %v785_v14 = vld [vmem:[#allocation2 + $0x84] sm:$0xf] }
  0xea   : > { %1846 = vst.msk [vmem:[#allocation3 + $0x7c] sm:$0xf] %vm1814_vm2, %v1769_v51  ;;  %3268 = vmatmul.msk.bf16.gmra.mxu2 %vm2012_vm3, %v3322_v48  ;;  %1370 = vrot.lane.b32.xlu2 %v1179_v52, %s3443_s18  ;;  %v3306_v59 = vld [vmem:[#allocation3 + $0x20] sm:$0xff]  ;;  %v886_v34 = vld [vmem:[#allocation2 + $0xcc] sm:$0xf]  ;;  %v1705_v19 = vsel %vm3560_vm14, %v1703_v24, %v1704_v44 }
  0xeb   : > { %1752 = vrot.lane.b32.xlu1 %v1663_v1, %s3444_s19  ;;  %v1323_v2 = vsel %vm3541_vm11, %v1318_v25, %v1322_v55  ;;  %v1301_v53 = vshrl.u32 %v886_v34, 16  ;;  %v1304_v10 = vshll.u32 %v886_v34, 16  ;;  %v3290_v57 = vld [vmem:[#allocation3 + $0x20] sm:$0xff]  ;;  %v782_v51 = vld [vmem:[#allocation2 + $0x70] sm:$0xf] }
  0xec   : > { %v1771_v8 = vpop.permute.xlu2 %1770  ;;  %1394 = vrot.lane.b32.xlu0 %v1323_v2, %s3443_s18  ;;  %818 = vst.msk [vmem:[#allocation3 + $0x4c] sm:$0xf] %vm172_vm0, %v782_v51  ;;  %v786_v55 = vld [vmem:[#allocation2 + $0x88] sm:$0xf]  ;;  %v4324_v34 = vld [vmem:[%s4528_s2] ss:$0 sm:$0xff] }
  0xed   : > { %v1347_v7 = vpop.permute.xlu0 %1346  ;;  %v1303_v49 = vrot.slane %v1301_v53, 4  ;;  %v1306_v62 = vrot.slane %v1304_v10, 5  ;;  %820 = vst.msk [vmem:[#allocation3 + $0x54] sm:$0xf] %vm172_vm0, %v784_v38 }
  0xee   : > { %1444 = vst.msk [vmem:[#allocation3 + $0x2c] sm:$0xf] %vm1432_vm15, %v1347_v7 }
  0xef   : > { %v1307_v35 = vor.u32 %v1306_v62, %v1303_v49  ;;  %821 = vst.msk [vmem:[#allocation3 + $0x58] sm:$0xf] %vm172_vm0, %v785_v14 }
  0xf0   : > { %822 = vst.msk [vmem:[#allocation3 + $0x5c] sm:$0xf] %vm172_vm0, %v786_v55 }
  0xf1   : > { %v1389_v15 = vpop.permute.xlu1 %1388  ;;  %v3317_v16 = vld [vmem:[#allocation3 + $0x78] sm:$0xff]  ;;  %v1308_v0 = vrot.slane %v1307_v35, 4 }
  0xf2   : > { %1465 = vst.msk [vmem:[#allocation3 + $0x80] sm:$0xf] %vm1432_vm15, %v1389_v15  ;;  %3109 = vmatmul.msk.bf16.gmra.mxu3 %vm2012_vm3, %v3317_v16  ;;  %3182 = vmatmul.msk.bf16.gmra.mxu1 %vm2012_vm3, %v3289_v29  ;;  %v3300_v15 = vld [vmem:[#allocation3 + $0x70] sm:$0xff] }
  0xf3   : > { %1847 = vst.msk [vmem:[#allocation3 + $0x80] sm:$0xf] %vm1814_vm2, %v1771_v8  ;;  %1774 = vrot.lane.b32.xlu1 %v1702_v17, %s3444_s19  ;;  %v1313_v37 = vsel %vm3541_vm11, %v1308_v0, %v1312_v21  ;;  %v783_v21 = vld [vmem:[#allocation2 + $0x78] sm:$0xf]  ;;  %v3301_v0 = vld [vmem:[#allocation3 + $0x78] sm:$0xff] }
  0xf4   : > { %v1351_v46 = vpop.permute.xlu2 %1350  ;;  %1392 = vrot.lane.b32.xlu2 %v1313_v37, %s3443_s18  ;;  %819 = vst.msk [vmem:[#allocation3 + $0x50] sm:$0xf] %vm172_vm0, %v783_v21  ;;  %v797_v21 = vld [vmem:[#allocation2 + $0xcc] sm:$0xf] }
  0xf5   : > { %v1727_v20 = vpop.permute.xlu0 %1726  ;;  %1446 = vst.msk [vmem:[#allocation3 + $0x34] sm:$0xf] %vm1432_vm15, %v1351_v46 }
  0xf6   : > { %1825 = vst.msk [vmem:[#allocation3 + $0x28] sm:$0xf] %vm1814_vm2, %v1727_v20  ;;  %3098 = vmatmul.msk.bf16.gmra.mxu0 %vm2012_vm3, %v3306_v59 }
  0xf7   : > { %833 = vst.msk [vmem:[#allocation3 + $0x88] sm:$0xf] %vm172_vm0, %v797_v21 }
  0xf9   : > { %v1729_v31 = vpop.permute.xlu1 %1728 }
  0xfa   : > { %1826 = vst.msk [vmem:[#allocation3 + $0x2c] sm:$0xf] %vm1814_vm2, %v1729_v31  ;;  %v3338_v31 = vld [vmem:[%s3499_s17] sm:$0xff]  }
  0xfb   : > { %v3339_v35 = vunpack.c.l.bf16 %v3338_v31  ;;  %v3340_v44 = vunpack.c.h.bf16 %v3338_v31 }
  0xfc   : > { %v1731_v32 = vpop.permute.xlu2 %1730  ;;  %1776 = vrot.lane.b32.xlu2 %v1705_v19, %s3444_s19 }
  0xfd   : > { %v1773_v27 = vpop.permute.xlu0 %1772 }
  0xfe   : > { %1848 = vst.msk [vmem:[#allocation3 + $0x84] sm:$0xf] %vm1814_vm2, %v1773_v27 }
 0x101   : > { %v1349_v4 = vpop.permute.xlu1 %1348  ;;  %v3323_v40 = vld [vmem:[#allocation3 + $0x28] sm:$0xff] }
 0x102   : > { %1445 = vst.msk [vmem:[#allocation3 + $0x30] sm:$0xf] %vm1432_vm15, %v1349_v4  ;;  %3183 = vmatmul.msk.bf16.gmra.mxu1 %vm2012_vm3, %v3290_v57  ;;  %3269 = vmatmul.msk.bf16.gmra.mxu2 %vm2012_vm3, %v3323_v40  ;;  %v3307_v43 = vld [vmem:[#allocation3 + $0x28] sm:$0xff] }
 0x103   : > { %1827 = vst.msk [vmem:[#allocation3 + $0x30] sm:$0xf] %vm1814_vm2, %v1731_v32  ;;  %v3291_v22 = vld [vmem:[#allocation3 + $0x28] sm:$0xff] }
 0x104   : > { %v1757_v36 = vpop.permute.xlu2 %1756 }
 0x105   : > { %v1373_v41 = vpop.permute.xlu0 %1372  ;;  %v3318_v12 = vld [vmem:[#allocation3 + $0x80] sm:$0xff] }
 0x106   : > { %1457 = vst.msk [vmem:[#allocation3 + $0x60] sm:$0xf] %vm1432_vm15, %v1373_v41  ;;  %3099 = vmatmul.msk.bf16.gmra.mxu0 %vm2012_vm3, %v3307_v43  ;;  %3110 = vmatmul.msk.bf16.gmra.mxu3 %vm2012_vm3, %v3318_v12 }
 0x109   : > { %v1375_v47 = vpop.permute.xlu1 %1374 }
 0x10a   : > { %1458 = vst.msk [vmem:[#allocation3 + $0x64] sm:$0xf] %vm1432_vm15, %v1375_v47 }
 0x10b   : > { %1840 = vst.msk [vmem:[#allocation3 + $0x64] sm:$0xf] %vm1814_vm2, %v1757_v36 }
 0x10c   : > { %v1735_v56 = vpop.permute.xlu2 %1734 }
 0x10d   : > { %v1733_v54 = vpop.permute.xlu0 %1732 }
 0x10e   : > { %1828 = vst.msk [vmem:[#allocation3 + $0x34] sm:$0xf] %vm1814_vm2, %v1733_v54 }
 0x111   : > { %v1755_v39 = vpop.permute.xlu1 %1754 }
 0x112   : > { %1839 = vst.msk [vmem:[#allocation3 + $0x60] sm:$0xf] %vm1814_vm2, %v1755_v39  ;;  %3184 = vmatmul.msk.bf16.gmra.mxu1 %vm2012_vm3, %v3291_v22 }
 0x114   : > { %v1359_v52 = vpop.permute.xlu2 %1358 }
 0x115   : > { %v1353_v30 = vpop.permute.xlu0 %1352  ;;  %v3308_v28 = vld [vmem:[#allocation3 + $0x30] sm:$0xff]  ;;  %1450 = vst.msk [vmem:[#allocation3 + $0x44] sm:$0xf] %vm1432_vm15, %v1359_v52 }
 0x116   : > { %v3324_v60 = vld [vmem:[#allocation3 + $0x30] sm:$0xff]  ;;  %1447 = vst.msk [vmem:[#allocation3 + $0x38] sm:$0xf] %vm1432_vm15, %v1353_v30  ;;  %3100 = vmatmul.msk.bf16.gmra.mxu0 %vm2012_vm3, %v3308_v28 }
 0x117   : > { %3270 = vmatmul.msk.bf16.gmra.mxu2 %vm2012_vm3, %v3324_v60  ;;  %1829 = vst.msk [vmem:[#allocation3 + $0x38] sm:$0xf] %vm1814_vm2, %v1735_v56  ;;  %v3292_v48 = vld [vmem:[#allocation3 + $0x30] sm:$0xff] }
 0x119   : > { %v3298_v42 = vld [vmem:[#allocation3 + $0x60] sm:$0xff]  ;;  %v1355_v63 = vpop.permute.xlu1 %1354 }
 0x11a   : > { %1448 = vst.msk [vmem:[#allocation3 + $0x3c] sm:$0xf] %vm1432_vm15, %v1355_v63  ;;  %3191 = vmatmul.msk.bf16.vlgmr.msrb.gmra.mxu3 %vm2012_vm3, %v3298_v42  ;;  %v3332_v63 = vld [vmem:[#allocation3 + $0x70] sm:$0xff] }
 0x11d   : > { %v1737_v1 = vpop.permute.xlu0 %1736 }
 0x11e   : > { %1830 = vst.msk [vmem:[#allocation3 + $0x3c] sm:$0xf] %vm1814_vm2, %v1737_v1  ;;  %v3401_v1 = vld [vmem:[%s3499_s17 + $0x8] sm:$0xff]  }
 0x122   : > { %3185 = vmatmul.msk.bf16.gmra.mxu1 %vm2012_vm3, %v3292_v48 }
 0x124   : > { %v1357_v45 = vpop.permute.xlu1 %1356 }
 0x125   : > { %v3309_v6 = vld [vmem:[#allocation3 + $0x38] sm:$0xff]  ;;  %v1739_v8 = vpop.permute.xlu0 %1738  ;;  %1449 = vst.msk [vmem:[#allocation3 + $0x40] sm:$0xf] %vm1432_vm15, %v1357_v45 }
 0x126   : > { %v3325_v7 = vld [vmem:[#allocation3 + $0x38] sm:$0xff]  ;;  %3101 = vmatmul.msk.bf16.gmra.mxu0 %vm2012_vm3, %v3309_v6  ;;  %1831 = vst.msk [vmem:[#allocation3 + $0x40] sm:$0xf] %vm1814_vm2, %v1739_v8  ;;  %v3343_v8 = vunpack.c.l.bf16 %v3401_v1 }
 0x127   : > { %3271 = vmatmul.msk.bf16.gmra.mxu2 %vm2012_vm3, %v3325_v7  ;;  %v3293_v50 = vld [vmem:[#allocation3 + $0x38] sm:$0xff] }
 0x12a   : > { %3192 = vmatmul.msk.bf16.gmra.mxu3 %vm2012_vm3, %v3299_v33 }
 0x12c   : > { %v1361_v23 = vpop.permute.xlu2 %1360  ;;  %v1741_v11 = vpop.permute.xlu1 %1740 }
 0x12d   : > { %1451 = vst.msk [vmem:[#allocation3 + $0x48] sm:$0xf] %vm1432_vm15, %v1361_v23 }
 0x12e   : > { %1832 = vst.msk [vmem:[#allocation3 + $0x44] sm:$0xf] %vm1814_vm2, %v1741_v11 }
 0x132   : > { %3186 = vmatmul.msk.bf16.gmra.mxu1 %vm2012_vm3, %v3293_v50 }
 0x134   : > { %v1745_v5 = vpop.permute.xlu2 %1744 }
 0x135   : > { %v3310_v26 = vld [vmem:[#allocation3 + $0x40] sm:$0xff] }
 0x136   : > { %v3326_v25 = vld [vmem:[#allocation3 + $0x40] sm:$0xff]  ;;  %3102 = vmatmul.msk.bf16.gmra.mxu0 %vm2012_vm3, %v3310_v26  ;;  %v4346_v39 = vpop.f32.mrf.mxu3 }
 0x137   : > { %3272 = vmatmul.msk.bf16.gmra.mxu2 %vm2012_vm3, %v3326_v25  ;;  %v3294_v20 = vld [vmem:[#allocation3 + $0x40] sm:$0xff] }
 0x13a   : > { %3193 = vmatmul.msk.bf16.gmra.mxu3 %vm2012_vm3, %v3300_v15  ;;  %v2569_v59 = vpop.f32.mrf.mxu2 }
 0x13c   : > { %v1747_v16 = vpop.permute.xlu2 %1746  ;;  %v1363_v29 = vpop.permute.xlu0 %1362 }
 0x13d   : > { %v1743_v17 = vpop.permute.xlu1 %1742  ;;  %1452 = vst.msk [vmem:[#allocation3 + $0x4c] sm:$0xf] %vm1432_vm15, %v1363_v29 }
 0x13e   : > { %1834 = vst.msk [vmem:[#allocation3 + $0x4c] sm:$0xf] %vm1814_vm2, %v1745_v5  ;;  %v4360_v23 = vpop.f32.mrf.mxu3  ;;  %v798_v5 = vld [vmem:[#allocation2 + $0xd0] sm:$0xf] }
 0x13f   : > { %v2303_v3 = vpop.f32.mrf.mxu1  ;;  %1833 = vst.msk [vmem:[#allocation3 + $0x48] sm:$0xf] %vm1814_vm2, %v1743_v17  ;;  %v3344_v17 = vunpack.c.h.bf16 %v3401_v1 }
 0x140   : > { %834 = vst.msk [vmem:[#allocation3 + $0x8c] sm:$0xf] %vm172_vm0, %v798_v5 }
 0x142   : > { %3187 = vmatmul.msk.bf16.gmra.mxu1 %vm2012_vm3, %v3294_v20  ;;  %v2571_v13 = vpop.f32.mrf.mxu2 }
 0x143   : > { %v2074_v46 = vpop.f32.mrf.mxu0 }
 0x144   : > { %v2304_v2 = vadd.f32 %v2303_v3, %v2074_v46  ;;  %v1371_v53 = vpop.permute.xlu2 %1370 }
 0x145   : > { %1456 = vst.msk [vmem:[#allocation3 + $0x5c] sm:$0xf] %vm1432_vm15, %v1371_v53  ;;  %v1365_v49 = vpop.permute.xlu0 %1364 }
 0x146   : > { %v2649_v10 = vadd.f32 %v2569_v59, %v2304_v2  ;;  %1453 = vst.msk [vmem:[#allocation3 + $0x50] sm:$0xf] %vm1432_vm15, %v1365_v49  ;;  %v3311_v58 = vld [vmem:[#allocation3 + $0x48] sm:$0xff] }
 0x147   : > { %v3327_v27 = vld [vmem:[#allocation3 + $0x48] sm:$0xff]  ;;  %v2305_v32 = vpop.f32.mrf.mxu1  ;;  %1835 = vst.msk [vmem:[#allocation3 + $0x50] sm:$0xf] %vm1814_vm2, %v1747_v16  ;;  %3103 = vmatmul.msk.bf16.gmra.mxu0 %vm2012_vm3, %v3311_v58 }
 0x148   : > { %v2685_v62 = vadd.f32 %v4324_v34, %v2649_v10  ;;  %3273 = vmatmul.msk.bf16.gmra.mxu2 %vm2012_vm3, %v3327_v27  ;;  %v3295_v9 = vld [vmem:[#allocation3 + $0x48] sm:$0xff] }
 0x14a   : > { %vm2717_vm4 = vcmp.gt.f32.partialorder %v2685_v62, 0.0  ;;  %v2749_v37 = vmul.f32 0.01, %v2685_v62  ;;  %3194 = vmatmul.msk.bf16.gmra.mxu3 %vm2012_vm3, %v3301_v0  ;;  %v3402_v0 = vld [vmem:[%s3499_s17 + $0x10] sm:$0xff]  }
 0x14b   : > { %v2076_v4 = vpop.f32.mrf.mxu0 }
 0x14c   : > { %v2781_v57 = vsel %vm2717_vm4, %v2685_v62, %v2749_v37  ;;  %v2306_v40 = vadd.f32 %v2305_v32, %v2076_v4  ;;  %v3333_v62 = vld [vmem:[#allocation3 + $0x78] sm:$0xff] }
 0x14d   : > { %v2877_v41 = vadd.f32 %v3339_v35, %v2781_v57  ;;  %v1367_v43 = vpop.permute.xlu1 %1366  ;;  %v1749_v36 = vpop.permute.xlu0 %1748 }
 0x14e   : > { %v2650_v12 = vadd.f32 %v2571_v13, %v2306_v40  ;;  %1454 = vst.msk [vmem:[#allocation3 + $0x54] sm:$0xf] %vm1432_vm15, %v1367_v43  ;;  %v1393_v7 = vpop.permute.xlu2 %1392  ;;  %v3347_v13 = vunpack.c.l.bf16 %v3402_v0 }
 0x14f   : > { %2910 = vst.msk [vmem:[%s4338_s10] sm:$0xff] %vm2909_vm5, %v2877_v41  ;;  %v2308_v24 = vpop.f32.mrf.mxu1 }
 0x150   : > { %v2686_v61 = vadd.f32 %v4324_v34, %v2650_v12  ;;  %1836 = vst.msk [vmem:[#allocation3 + $0x54] sm:$0xf] %vm1814_vm2, %v1749_v36 }
 0x151   : > { %1467 = vst.msk [vmem:[#allocation3 + $0x88] sm:$0xf] %vm1432_vm15, %v1393_v7 }
 0x152   : > { %vm2718_vm6 = vcmp.gt.f32.partialorder %v2686_v61, 0.0  ;;  %v2750_v19 = vmul.f32 0.01, %v2686_v61  ;;  %3188 = vmatmul.msk.bf16.gmra.mxu1 %vm2012_vm3, %v3295_v9  ;;  %v3314_v9 = vld [vmem:[#allocation3 + $0x60] sm:$0xff] }
 0x153   : > { %v2079_v47 = vpop.f32.mrf.mxu0 }
 0x154   : > { %v2782_v54 = vsel %vm2718_vm6, %v2686_v61, %v2750_v19  ;;  %v2309_v30 = vadd.f32 %v2308_v24, %v2079_v47  ;;  %v3330_v19 = vld [vmem:[#allocation3 + $0x60] sm:$0xff] }
 0x155   : > { %v2878_v56 = vadd.f32 %v3340_v44, %v2782_v54  ;;  %v1369_v22 = vpop.permute.xlu1 %1368  ;;  %v1751_v18 = vpop.permute.xlu0 %1750 }
 0x156   : > { %1455 = vst.msk [vmem:[#allocation3 + $0x58] sm:$0xf] %vm1432_vm15, %v1369_v22  ;;  %v1777_v59 = vpop.permute.xlu2 %1776 }
 0x157   : > { %2911 = vst.msk [vmem:[%s4338_s10 + $0x8] sm:$0xff] %vm2909_vm5, %v2878_v56  ;;  %v3312_v28 = vld [vmem:[#allocation3 + $0x50] sm:$0xff]  ;;  %v2310_v52 = vpop.f32.mrf.mxu1  ;;  %v3334_v56 = vld [vmem:[#allocation3 + $0x80] sm:$0xff] }
 0x158   : > { %v3328_v60 = vld [vmem:[#allocation3 + $0x50] sm:$0xff]  ;;  %1837 = vst.msk [vmem:[#allocation3 + $0x58] sm:$0xf] %vm1814_vm2, %v1751_v18  ;;  %3104 = vmatmul.msk.bf16.gmra.mxu0 %vm2012_vm3, %v3312_v28  ;;  %v3348_v18 = vunpack.c.h.bf16 %v3402_v0 }
 0x159   : > { %v2574_v42 = vpop.f32.mrf.mxu2  ;;  %3274 = vmatmul.msk.bf16.gmra.mxu2 %vm2012_vm3, %v3328_v60  ;;  %v3296_v14 = vld [vmem:[#allocation3 + $0x50] sm:$0xff] }
 0x15a   : > { %v2651_v51 = vadd.f32 %v2574_v42, %v2309_v30  ;;  %3278 = vmatmul.msk.bf16.vlgmr.msra.gmra.mxu3 %vm2012_vm3, %v3332_v63 }
 0x15b   : > { %v2081_v48 = vpop.f32.mrf.mxu0 }
 0x15c   : > { %v2687_v6 = vadd.f32 %v4324_v34, %v2651_v51  ;;  %v2311_v38 = vadd.f32 %v2310_v52, %v2081_v48 }
 0x15d   : > { %v1753_v33 = vpop.permute.xlu1 %1752  ;;  %v4368_v53 = vpop.f32.mrf.mxu3 }
 0x15e   : > { %vm2719_vm7 = vcmp.gt.f32.partialorder %v2687_v6, 0.0  ;;  %v2751_v45 = vmul.f32 0.01, %v2687_v6  ;;  %1838 = vst.msk [vmem:[#allocation3 + $0x5c] sm:$0xf] %vm1814_vm2, %v1753_v33  ;;  %v1395_v2 = vpop.permute.xlu0 %1394 }
 0x15f   : > { %v2313_v50 = vpop.f32.mrf.mxu1  ;;  %1468 = vst.msk [vmem:[#allocation3 + $0x8c] sm:$0xf] %vm1432_vm15, %v1395_v2 }
 0x160   : > { %v2783_v11 = vsel %vm2719_vm7, %v2687_v6, %v2751_v45  ;;  %1850 = vst.msk [vmem:[#allocation3 + $0x8c] sm:$0xf] %vm1814_vm2, %v1777_v59  ;;  %v3403_v6 = vld [vmem:[%s3499_s17 + $0x18] sm:$0xff]  }
 0x161   : > { %v2879_v26 = vadd.f32 %v3343_v8, %v2783_v11  ;;  %v2576_v25 = vpop.f32.mrf.mxu2  ;;  %v3331_v8 = vld [vmem:[#allocation3 + $0x68] sm:$0xff]  ;;  %v3351_v11 = vunpack.c.l.bf16 %v3403_v6 }
 0x162   : > { %v2652_v15 = vadd.f32 %v2576_v25, %v2311_v38  ;;  %3189 = vmatmul.msk.bf16.gmra.mxu1 %vm2012_vm3, %v3296_v14 }
 0x163   : > { %2912 = vst.msk [vmem:[%s4338_s10 + $0x10] sm:$0xff] %vm2909_vm5, %v2879_v26  ;;  %v2084_v16 = vpop.f32.mrf.mxu0 }
 0x164   : > { %v2688_v29 = vadd.f32 %v4324_v34, %v2652_v15  ;;  %v2314_v27 = vadd.f32 %v2313_v50, %v2084_v16 }
 0x165   : > { %v3313_v3 = vld [vmem:[#allocation3 + $0x58] sm:$0xff]  ;;  %v1775_v46 = vpop.permute.xlu1 %1774  ;;  %v4379_v40 = vpop.f32.mrf.mxu3 }
 0x166   : > { %vm2720_vm8 = vcmp.gt.f32.partialorder %v2688_v29, 0.0  ;;  %v2752_v55 = vmul.f32 0.01, %v2688_v29  ;;  %v3329_v20 = vld [vmem:[#allocation3 + $0x58] sm:$0xff]  ;;  %1849 = vst.msk [vmem:[#allocation3 + $0x88] sm:$0xf] %vm1814_vm2, %v1775_v46 }
 0x167   : > { %v2315_v31 = vpop.f32.mrf.mxu1  ;;  %v3297_v57 = vld [vmem:[#allocation3 + $0x58] sm:$0xff] }
 0x168   : > { %v2784_v10 = vsel %vm2720_vm8, %v2688_v29, %v2752_v55  ;;  %3105 = vmatmul.msk.bf16.gmra.mxu0 %vm2012_vm3, %v3313_v3  ;;  %v3352_v55 = vunpack.c.h.bf16 %v3403_v6 }
 0x169   : > { %v2880_v49 = vadd.f32 %v3344_v17, %v2784_v10  ;;  %3275 = vmatmul.msk.bf16.gmra.mxu2 %vm2012_vm3, %v3329_v20 }
 0x16a   : > { %3279 = vmatmul.msk.bf16.gmra.mxu3 %vm2012_vm3, %v3333_v62  ;;  %v3404_v62 = vld [vmem:[%s3499_s17 + $0x20] sm:$0xff]  }
 0x16b   : > { %2913 = vst.msk [vmem:[%s4338_s10 + $0x18] sm:$0xff] %vm2909_vm5, %v2880_v49  ;;  %v2086_v58 = vpop.f32.mrf.mxu0 }
 0x16c   : > { %v2316_v12 = vadd.f32 %v2315_v31, %v2086_v58 }
 0x16d   : > { %v2579_v32 = vpop.f32.mrf.mxu2  ;;  %v3335_v7 = vld [vmem:[#allocation3 + $0x88] sm:$0xff] }
 0x16e   : > { %v2653_v35 = vadd.f32 %v2579_v32, %v2314_v27 }
 0x16f   : > { %v2318_v37 = vpop.f32.mrf.mxu1 }
 0x170   : > { %v2689_v4 = vadd.f32 %v4324_v34, %v2653_v35  ;;  %v3355_v35 = vunpack.c.l.bf16 %v3404_v62 }
 0x172   : > { %vm2721_vm0 = vcmp.gt.f32.partialorder %v2689_v4, 0.0  ;;  %v2753_v41 = vmul.f32 0.01, %v2689_v4  ;;  %3190 = vmatmul.msk.bf16.gmra.mxu1 %vm2012_vm3, %v3297_v57 }
 0x173   : > { %v2089_v43 = vpop.f32.mrf.mxu0 }
 0x174   : > { %v2785_v36 = vsel %vm2721_vm0, %v2689_v4, %v2753_v41  ;;  %v2319_v1 = vadd.f32 %v2318_v37, %v2089_v43 }
 0x175   : > { %v2881_v61 = vadd.f32 %v3347_v13, %v2785_v36  ;;  %v2581_v24 = vpop.f32.mrf.mxu2  ;;  %v4385_v22 = vpop.f32.mrf.mxu3 }
 0x176   : > { %v2654_v44 = vadd.f32 %v2581_v24, %v2316_v12  ;;  %v3356_v24 = vunpack.c.h.bf16 %v3404_v62 }
 0x177   : > { %2914 = vst.msk [vmem:[%s4338_s10 + $0x20] sm:$0xff] %vm2909_vm5, %v2881_v61  ;;  %v2320_v47 = vpop.f32.mrf.mxu1 }
 0x178   : > { %v2690_v54 = vadd.f32 %v4324_v34, %v2654_v44  ;;  %3106 = vmatmul.msk.bf16.gmra.mxu0 %vm2012_vm3, %v3314_v9 }
 0x179   : > { %3276 = vmatmul.msk.bf16.gmra.mxu2 %vm2012_vm3, %v3330_v19 }
 0x17a   : > { %vm2722_vm9 = vcmp.gt.f32.partialorder %v2690_v54, 0.0  ;;  %v2754_v30 = vmul.f32 0.01, %v2690_v54  ;;  %3280 = vmatmul.msk.bf16.gmra.mxu3 %vm2012_vm3, %v3334_v56 }
 0x17b   : > { %v2091_v28 = vpop.f32.mrf.mxu0 }
 0x17c   : > { %v2786_v60 = vsel %vm2722_vm9, %v2690_v54, %v2754_v30  ;;  %v2321_v26 = vadd.f32 %v2320_v47, %v2091_v28  ;;  %v3405_v30 = vld [vmem:[%s3499_s17 + $0x28] sm:$0xff]  }
 0x17d   : > { %v2882_v52 = vadd.f32 %v3348_v18, %v2786_v60  ;;  %v4392_v51 = vpop.f32.mrf.mxu3  ;;  %v3359_v60 = vunpack.c.l.bf16 %v3405_v30 }
 0x17f   : > { %2915 = vst.msk [vmem:[%s4338_s10 + $0x28] sm:$0xff] %vm2909_vm5, %v2882_v52  ;;  %v2323_v42 = vpop.f32.mrf.mxu1 }
 0x183   : > { %v2094_v63 = vpop.f32.mrf.mxu0 }
 0x184   : > { %v2324_v10 = vadd.f32 %v2323_v42, %v2094_v63 }
 0x185   : > { %v2584_v48 = vpop.f32.mrf.mxu2 }
 0x186   : > { %v2655_v21 = vadd.f32 %v2584_v48, %v2319_v1 }
 0x187   : > { %v2325_v45 = vpop.f32.mrf.mxu1 }
 0x188   : > { %v2691_v33 = vadd.f32 %v4324_v34, %v2655_v21 }
 0x189   : > { %3277 = vmatmul.msk.bf16.gmra.mxu2 %vm2012_vm3, %v3331_v8  ;;  %v4398_v5 = vpop.f32.mrf.mxu3 }
 0x18a   : > { %vm2723_vm10 = vcmp.gt.f32.partialorder %v2691_v33, 0.0  ;;  %v2755_v38 = vmul.f32 0.01, %v2691_v33  ;;  %3281 = vmatmul.msk.bf16.gmra.mxu3 %vm2012_vm3, %v3335_v7 }
 0x18b   : > { %v2096_v50 = vpop.f32.mrf.mxu0 }
 0x18c   : > { %v2787_v25 = vsel %vm2723_vm10, %v2691_v33, %v2755_v38  ;;  %v2326_v4 = vadd.f32 %v2325_v45, %v2096_v50  ;;  %v3360_v33 = vunpack.c.h.bf16 %v3405_v30 }
 0x18d   : > { %v2883_v14 = vadd.f32 %v3351_v11, %v2787_v25  ;;  %v2586_v15 = vpop.f32.mrf.mxu2 }
 0x18e   : > { %v2656_v16 = vadd.f32 %v2586_v15, %v2321_v26 }
 0x18f   : > { %2916 = vst.msk [vmem:[%s4338_s10 + $0x30] sm:$0xff] %vm2909_vm5, %v2883_v14  ;;  %v2328_v17 = vpop.f32.mrf.mxu1 }
 0x190   : > { %v2692_v29 = vadd.f32 %v4324_v34, %v2656_v16 }
 0x191   : > { %v4403_v2 = vpop.f32.mrf.mxu3 }
 0x192   : > { %vm2724_vm11 = vcmp.gt.f32.partialorder %v2692_v29, 0.0  ;;  %v2756_v3 = vmul.f32 0.01, %v2692_v29 }
 0x193   : > { %v2099_v20 = vpop.f32.mrf.mxu0 }
 0x194   : > { %v2788_v59 = vsel %vm2724_vm11, %v2692_v29, %v2756_v3  ;;  %v2329_v19 = vadd.f32 %v2328_v17, %v2099_v20  ;;  %v3406_v17 = vld [vmem:[%s3499_s17 + $0x30] sm:$0xff]  }
 0x195   : > { %v2884_v46 = vadd.f32 %v3352_v55, %v2788_v59  ;;  %v3363_v20 = vunpack.c.l.bf16 %v3406_v17 }
 0x197   : > { %2917 = vst.msk [vmem:[%s4338_s10 + $0x38] sm:$0xff] %vm2909_vm5, %v2884_v46  ;;  %v2330_v58 = vpop.f32.mrf.mxu1 }
 0x19a   : > { %v2589_v31 = vpop.f32.mrf.mxu2 }
 0x19b   : > { %v2657_v49 = vadd.f32 %v2589_v31, %v2324_v10  ;;  %v2101_v27 = vpop.f32.mrf.mxu0 }
 0x19c   : > { %v2331_v48 = vadd.f32 %v2330_v58, %v2101_v27 }
 0x19d   : > { %v2693_v32 = vadd.f32 %v4324_v34, %v2657_v49  ;;  %v4409_v37 = vpop.f32.mrf.mxu3 }
 0x19f   : > { %vm2725_vm12 = vcmp.gt.f32.partialorder %v2693_v32, 0.0  ;;  %v2757_v0 = vmul.f32 0.01, %v2693_v32  ;;  %v2333_v61 = vpop.f32.mrf.mxu1 }
 0x1a1   : > { %v2789_v57 = vsel %vm2725_vm12, %v2693_v32, %v2757_v0  ;;  %v3364_v0 = vunpack.c.h.bf16 %v3406_v17 }
 0x1a2   : > { %v2885_v13 = vadd.f32 %v3355_v35, %v2789_v57  ;;  %v2591_v41 = vpop.f32.mrf.mxu2 }
 0x1a3   : > { %v2658_v43 = vadd.f32 %v2591_v41, %v2326_v4  ;;  %v2104_v12 = vpop.f32.mrf.mxu0 }
 0x1a4   : > { %2918 = vst.msk [vmem:[%s4338_s10 + $0x40] sm:$0xff] %vm2909_vm5, %v2885_v13  ;;  %v2334_v15 = vadd.f32 %v2333_v61, %v2104_v12 }
 0x1a5   : > { %v2694_v36 = vadd.f32 %v4324_v34, %v2658_v43  ;;  %v4414_v9 = vpop.f32.mrf.mxu3 }
 0x1a7   : > { %vm2726_vm13 = vcmp.gt.f32.partialorder %v2694_v36, 0.0  ;;  %v2758_v44 = vmul.f32 0.01, %v2694_v36  ;;  %v2335_v1 = vpop.f32.mrf.mxu1 }
 0x1a9   : > { %v2790_v47 = vsel %vm2726_vm13, %v2694_v36, %v2758_v44 }
 0x1aa   : > { %v2886_v54 = vadd.f32 %v3356_v24, %v2790_v47  ;;  %v2594_v56 = vpop.f32.mrf.mxu2  ;;  %v3407_v24 = vld [vmem:[%s3499_s17 + $0x38] sm:$0xff]  }
 0x1ab   : > { %v2659_v18 = vadd.f32 %v2594_v56, %v2329_v19  ;;  %v2106_v52 = vpop.f32.mrf.mxu0  ;;  %v3367_v47 = vunpack.c.l.bf16 %v3407_v24 }
 0x1ac   : > { %2919 = vst.msk [vmem:[%s4338_s10 + $0x48] sm:$0xff] %vm2909_vm5, %v2886_v54  ;;  %v2336_v10 = vadd.f32 %v2335_v1, %v2106_v52 }
 0x1ad   : > { %v2695_v28 = vadd.f32 %v4324_v34, %v2659_v18  ;;  %v4420_v63 = vpop.f32.mrf.mxu3 }
 0x1af   : > { %vm2727_vm14 = vcmp.gt.f32.partialorder %v2695_v28, 0.0  ;;  %v2759_v42 = vmul.f32 0.01, %v2695_v28  ;;  %v2338_v25 = vpop.f32.mrf.mxu1 }
 0x1b1   : > { %v2791_v21 = vsel %vm2727_vm14, %v2695_v28, %v2759_v42 }
 0x1b2   : > { %v2887_v6 = vadd.f32 %v3359_v60, %v2791_v21  ;;  %v2596_v7 = vpop.f32.mrf.mxu2  ;;  %v3368_v21 = vunpack.c.h.bf16 %v3407_v24 }
 0x1b3   : > { %v2660_v8 = vadd.f32 %v2596_v7, %v2331_v48  ;;  %v2109_v50 = vpop.f32.mrf.mxu0 }
 0x1b4   : > { %2920 = vst.msk [vmem:[%s4338_s10 + $0x50] sm:$0xff] %vm2909_vm5, %v2887_v6  ;;  %v2339_v43 = vadd.f32 %v2338_v25, %v2109_v50 }
 0x1b5   : > { %v2696_v45 = vadd.f32 %v4324_v34, %v2660_v8  ;;  %v4425_v38 = vpop.f32.mrf.mxu3 }
 0x1b7   : > { %vm2728_vm15 = vcmp.gt.f32.partialorder %v2696_v45, 0.0  ;;  %v2760_v11 = vmul.f32 0.01, %v2696_v45  ;;  %v2340_v49 = vpop.f32.mrf.mxu1 }
 0x1b9   : > { %v2792_v26 = vsel %vm2728_vm15, %v2696_v45, %v2760_v11  ;;  %v2364_v45 = vadd.f32 %v4409_v37, %v4346_v39 }
 0x1ba   : > { %v2888_v14 = vadd.f32 %v3360_v33, %v2792_v26  ;;  %v2599_v16 = vpop.f32.mrf.mxu2  ;;  %v3408_v26 = vld [vmem:[%s3499_s17 + $0x40] sm:$0xff]  }
 0x1bb   : > { %v2661_v29 = vadd.f32 %v2599_v16, %v2334_v15  ;;  %v2111_v46 = vpop.f32.mrf.mxu0  ;;  %v3412_v16 = vld [vmem:[%s3499_s17 + $0x60] sm:$0xff]  }
 0x1bc   : > { %2921 = vst.msk [vmem:[%s4338_s10 + $0x58] sm:$0xff] %vm2909_vm5, %v2888_v14  ;;  %v2341_v56 = vadd.f32 %v2340_v49, %v2111_v46  ;;  %v3387_v37 = vunpack.c.l.bf16 %v3412_v16 }
 0x1bd   : > { %v2697_v55 = vadd.f32 %v4324_v34, %v2661_v29  ;;  %v4431_v3 = vpop.f32.mrf.mxu3 }
 0x1bf   : > { %vm2729_vm1 = vcmp.gt.f32.partialorder %v2697_v55, 0.0  ;;  %v2761_v59 = vmul.f32 0.01, %v2697_v55  ;;  %v2343_v12 = vpop.f32.mrf.mxu1 }
 0x1c1   : > { %v2793_v31 = vsel %vm2729_vm1, %v2697_v55, %v2761_v59  ;;  %v3371_v55 = vunpack.c.l.bf16 %v3408_v26 }
 0x1c2   : > { %v2889_v62 = vadd.f32 %v3363_v20, %v2793_v31  ;;  %v2601_v58 = vpop.f32.mrf.mxu2  ;;  %v2366_v31 = vadd.f32 %v4414_v9, %v4360_v23  ;;  %v3388_v9 = vunpack.c.h.bf16 %v3412_v16 }
 0x1c3   : > { %v2662_v27 = vadd.f32 %v2601_v58, %v2336_v10 }
 0x1c4   : > { %2922 = vst.msk [vmem:[%s4338_s10 + $0x60] sm:$0xff] %vm2909_vm5, %v2889_v62  ;;  %v2114_v41 = vpop.f32.mrf.mxu0 }
 0x1c5   : > { %v2698_v32 = vadd.f32 %v4324_v34, %v2662_v27  ;;  %v4436_v35 = vpop.f32.mrf.mxu3  ;;  %v2344_v7 = vadd.f32 %v2343_v12, %v2114_v41  ;;  %v3372_v41 = vunpack.c.h.bf16 %v3408_v26 }
 0x1c7   : > { %vm2730_vm2 = vcmp.gt.f32.partialorder %v2698_v32, 0.0  ;;  %v2762_v4 = vmul.f32 0.01, %v2698_v32  ;;  %v2345_v1 = vpop.f32.mrf.mxu1 }
 0x1c9   : > { %v2794_v57 = vsel %vm2730_vm2, %v2698_v32, %v2762_v4 }
 0x1ca   : > { %v2890_v13 = vadd.f32 %v3364_v0, %v2794_v57 }
 0x1cb   : > { %v2604_v36 = vpop.f32.mrf.mxu2 }
 0x1cc   : > { %2923 = vst.msk [vmem:[%s4338_s10 + $0x68] sm:$0xff] %vm2909_vm5, %v2890_v13  ;;  %v2663_v61 = vadd.f32 %v2604_v36, %v2339_v43  ;;  %v2116_v28 = vpop.f32.mrf.mxu0 }
 0x1cd   : > { %v4441_v44 = vpop.f32.mrf.mxu3  ;;  %v2346_v46 = vadd.f32 %v2345_v1, %v2116_v28  ;;  %v3409_v28 = vld [vmem:[%s3499_s17 + $0x48] sm:$0xff]  }
 0x1ce   : > { %v2699_v19 = vadd.f32 %v4324_v34, %v2663_v61  ;;  %v3413_v1 = vld [vmem:[%s3499_s17 + $0x68] sm:$0xff]  }
 0x1cf   : > { %v2348_v17 = vpop.f32.mrf.mxu1 }
 0x1d0   : > { %vm2731_vm3 = vcmp.gt.f32.partialorder %v2699_v19, 0.0  ;;  %v2763_v54 = vmul.f32 0.01, %v2699_v19 }
 0x1d2   : > { %v2795_v18 = vsel %vm2731_vm3, %v2699_v19, %v2763_v54  ;;  %v2369_v19 = vadd.f32 %v4420_v63, %v4368_v53  ;;  %v3391_v63 = vunpack.c.l.bf16 %v3413_v1 }
 0x1d3   : > { %v2891_v30 = vadd.f32 %v3367_v47, %v2795_v18  ;;  %v2606_v60 = vpop.f32.mrf.mxu2 }
 0x1d4   : > { %v2664_v52 = vadd.f32 %v2606_v60, %v2341_v56 }
 0x1d5   : > { %v4444_v42 = vpop.f32.mrf.mxu3  ;;  %2924 = vst.msk [vmem:[%s4338_s10 + $0x70] sm:$0xff] %vm2909_vm5, %v2891_v30  ;;  %v2119_v14 = vpop.f32.mrf.mxu0 }
 0x1d6   : > { %v2700_v48 = vadd.f32 %v4324_v34, %v2664_v52  ;;  %v2349_v61 = vadd.f32 %v2348_v17, %v2119_v14 }
 0x1d7   : > { %v2350_v12 = vpop.f32.mrf.mxu1 }
 0x1d8   : > { %vm2732_vm4 = vcmp.gt.f32.partialorder %v2700_v48, 0.0  ;;  %v2764_v6 = vmul.f32 0.01, %v2700_v48 }
 0x1da   : > { %v2796_v8 = vsel %vm2732_vm4, %v2700_v48, %v2764_v6 }
 0x1db   : > { %v2892_v33 = vadd.f32 %v3368_v21, %v2796_v8  ;;  %v3375_v21 = vunpack.c.l.bf16 %v3409_v28 }
 0x1dc   : > { %v2609_v11 = vpop.f32.mrf.mxu2 }
 0x1dd   : > { %v2665_v50 = vadd.f32 %v2609_v11, %v2344_v7  ;;  %v2629_v25 = vpop.f32.mrf.mxu3  ;;  %2925 = vst.msk [vmem:[%s4338_s10 + $0x78] sm:$0xff] %vm2909_vm5, %v2892_v33  ;;  %v2121_v13 = vpop.f32.mrf.mxu0  ;;  %v2371_v11 = vadd.f32 %v4425_v38, %v4379_v40  ;;  %v3392_v38 = vunpack.c.h.bf16 %v3413_v1 }
 0x1de   : > { %v2673_v15 = vadd.f32 %v2629_v25, %v2364_v45  ;;  %v2351_v45 = vadd.f32 %v2350_v12, %v2121_v13 }
 0x1df   : > { %v2701_v29 = vadd.f32 %v4324_v34, %v2665_v50  ;;  %v2353_v50 = vpop.f32.mrf.mxu1 }
 0x1e0   : > { %v2709_v20 = vadd.f32 %v4324_v34, %v2673_v15 }
 0x1e1   : > { %vm2733_vm6 = vcmp.gt.f32.partialorder %v2701_v29, 0.0  ;;  %v2765_v39 = vmul.f32 0.01, %v2701_v29 }
 0x1e2   : > { %vm2741_vm7 = vcmp.gt.f32.partialorder %v2709_v20, 0.0  ;;  %v2773_v59 = vmul.f32 0.01, %v2709_v20 }
 0x1e3   : > { %v2797_v10 = vsel %vm2733_vm6, %v2701_v29, %v2765_v39 }
 0x1e4   : > { %v2893_v49 = vadd.f32 %v3371_v55, %v2797_v10  ;;  %v2805_v62 = vsel %vm2741_vm7, %v2709_v20, %v2773_v59  ;;  %v2611_v58 = vpop.f32.mrf.mxu2  ;;  %v3376_v20 = vunpack.c.h.bf16 %v3409_v28  ;;  %v2374_v10 = vadd.f32 %v4431_v3, %v4385_v22 }
 0x1e5   : > { %v2901_v27 = vadd.f32 %v3387_v37, %v2805_v62  ;;  %v2666_v32 = vadd.f32 %v2611_v58, %v2346_v46  ;;  %v2631_v0 = vpop.f32.mrf.mxu3  ;;  %v2124_v7 = vpop.f32.mrf.mxu0 }
 0x1e6   : > { %2926 = vst.msk [vmem:[%s4338_s10 + $0x80] sm:$0xff] %vm2909_vm5, %v2893_v49  ;;  %v2674_v4 = vadd.f32 %v2631_v0, %v2366_v31  ;;  %v2354_v59 = vadd.f32 %v2353_v50, %v2124_v7  ;;  %v3410_v0 = vld [vmem:[%s3499_s17 + $0x50] sm:$0xff]   ;;  %v2379_v7 = vadd.f32 %v4441_v44, %v4398_v5 }
 0x1e7   : > { %2934 = vst.msk [vmem:[%s4338_s10 + $0xc0] sm:$0xff] %vm2909_vm5, %v2901_v27  ;;  %v2702_v57 = vadd.f32 %v4324_v34, %v2666_v32 }
 0x1e8   : > { %v2710_v43 = vadd.f32 %v4324_v34, %v2674_v4 }
 0x1e9   : > { %vm2734_vm8 = vcmp.gt.f32.partialorder %v2702_v57, 0.0  ;;  %v2766_v23 = vmul.f32 0.01, %v2702_v57 }
 0x1ea   : > { %vm2742_vm0 = vcmp.gt.f32.partialorder %v2710_v43, 0.0  ;;  %v2774_v36 = vmul.f32 0.01, %v2710_v43 }
 0x1eb   : > { %v2798_v24 = vsel %vm2734_vm8, %v2702_v57, %v2766_v23  ;;  %v2355_v57 = vpop.f32.mrf.mxu1  ;;  %v3379_v23 = vunpack.c.l.bf16 %v3410_v0 }
 0x1ec   : > { %v2894_v47 = vadd.f32 %v3372_v41, %v2798_v24  ;;  %v2806_v54 = vsel %vm2742_vm0, %v2710_v43, %v2774_v36  ;;  %v2614_v56 = vpop.f32.mrf.mxu2  ;;  %v3414_v41 = vld [vmem:[%s3499_s17 + $0x70] sm:$0xff]   ;;  %v2376_v24 = vadd.f32 %v4436_v35, %v4392_v51 }
 0x1ed   : > { %v2902_v18 = vadd.f32 %v3388_v9, %v2806_v54  ;;  %v2667_v30 = vadd.f32 %v2614_v56, %v2349_v61  ;;  %v2634_v60 = vpop.f32.mrf.mxu3  ;;  %v2126_v31 = vpop.f32.mrf.mxu0  ;;  %v3395_v9 = vunpack.c.l.bf16 %v3414_v41  ;;  %v3396_v35 = vunpack.c.h.bf16 %v3414_v41 }
 0x1ee   : > { %2927 = vst.msk [vmem:[%s4338_s10 + $0x88] sm:$0xff] %vm2909_vm5, %v2894_v47  ;;  %v2675_v52 = vadd.f32 %v2634_v60, %v2369_v19  ;;  %v2356_v36 = vadd.f32 %v2355_v57, %v2126_v31 }
 0x1ef   : > { %2935 = vst.msk [vmem:[%s4338_s10 + $0xc8] sm:$0xff] %vm2909_vm5, %v2902_v18  ;;  %v2703_v48 = vadd.f32 %v4324_v34, %v2667_v30 }
 0x1f0   : > { %v2711_v6 = vadd.f32 %v4324_v34, %v2675_v52 }
 0x1f1   : > { %vm2735_vm9 = vcmp.gt.f32.partialorder %v2703_v48, 0.0  ;;  %v2767_v53 = vmul.f32 0.01, %v2703_v48 }
 0x1f2   : > { %vm2743_vm10 = vcmp.gt.f32.partialorder %v2711_v6, 0.0  ;;  %v2775_v8 = vmul.f32 0.01, %v2711_v6 }
 0x1f3   : > { %v2799_v33 = vsel %vm2735_vm9, %v2703_v48, %v2767_v53  ;;  %v2358_v1 = vpop.f32.mrf.mxu1  ;;  %v3380_v48 = vunpack.c.h.bf16 %v3410_v0 }
 0x1f4   : > { %v2895_v26 = vadd.f32 %v3375_v21, %v2799_v33  ;;  %v2807_v25 = vsel %vm2743_vm10, %v2711_v6, %v2775_v8  ;;  %v2616_v14 = vpop.f32.mrf.mxu2 }
 0x1f5   : > { %v2903_v15 = vadd.f32 %v3391_v63, %v2807_v25  ;;  %v2668_v16 = vadd.f32 %v2616_v14, %v2351_v45  ;;  %v2636_v29 = vpop.f32.mrf.mxu3  ;;  %v2129_v28 = vpop.f32.mrf.mxu0 }
 0x1f6   : > { %2928 = vst.msk [vmem:[%s4338_s10 + $0x90] sm:$0xff] %vm2909_vm5, %v2895_v26  ;;  %v2676_v17 = vadd.f32 %v2636_v29, %v2371_v11  ;;  %v2359_v53 = vadd.f32 %v2358_v1, %v2129_v28  ;;  %v3411_v26 = vld [vmem:[%s3499_s17 + $0x58] sm:$0xff]  }
 0x1f7   : > { %2936 = vst.msk [vmem:[%s4338_s10 + $0xd0] sm:$0xff] %vm2909_vm5, %v2903_v15  ;;  %v2704_v55 = vadd.f32 %v4324_v34, %v2668_v16  ;;  %v3415_v15 = vld [vmem:[%s3499_s17 + $0x78] sm:$0xff]  }
 0x1f8   : > { %v2712_v39 = vadd.f32 %v4324_v34, %v2676_v17  ;;  %v3383_v17 = vunpack.c.l.bf16 %v3411_v26  ;;  %v3399_v44 = vunpack.c.l.bf16 %v3415_v15 }
 0x1f9   : > { %vm2736_vm11 = vcmp.gt.f32.partialorder %v2704_v55, 0.0  ;;  %v2768_v40 = vmul.f32 0.01, %v2704_v55 }
 0x1fa   : > { %vm2744_vm12 = vcmp.gt.f32.partialorder %v2712_v39, 0.0  ;;  %v2776_v37 = vmul.f32 0.01, %v2712_v39 }
 0x1fb   : > { %v2800_v46 = vsel %vm2736_vm11, %v2704_v55, %v2768_v40 }
 0x1fc   : > { %v2896_v49 = vadd.f32 %v3376_v20, %v2800_v46  ;;  %v2808_v62 = vsel %vm2744_vm12, %v2712_v39, %v2776_v37  ;;  %v2619_v58 = vpop.f32.mrf.mxu2  ;;  %v2360_v20 = vpop.f32.mrf.mxu1  ;;  %v2381_v37 = vadd.f32 %v4444_v42, %v4403_v2  ;;  %v3400_v42 = vunpack.c.h.bf16 %v3415_v15 }
 0x1fd   : > { %v2904_v27 = vadd.f32 %v3392_v38, %v2808_v62  ;;  %v2669_v32 = vadd.f32 %v2619_v58, %v2354_v59  ;;  %v2639_v4 = vpop.f32.mrf.mxu3  ;;  %v2131_v29 = vpop.f32.mrf.mxu0 }
 0x1fe   : > { %2929 = vst.msk [vmem:[%s4338_s10 + $0x98] sm:$0xff] %vm2909_vm5, %v2896_v49  ;;  %v2677_v13 = vadd.f32 %v2639_v4, %v2374_v10  ;;  %v2361_v40 = vadd.f32 %v2360_v20, %v2131_v29 }
 0x1ff   : > { %2937 = vst.msk [vmem:[%s4338_s10 + $0xd8] sm:$0xff] %vm2909_vm5, %v2904_v27  ;;  %v2705_v43 = vadd.f32 %v4324_v34, %v2669_v32  ;;  %v3384_v32 = vunpack.c.h.bf16 %v3411_v26 }
 0x200   : > { %v2713_v22 = vadd.f32 %v4324_v34, %v2677_v13 }
 0x201   : > { %vm2737_vm13 = vcmp.gt.f32.partialorder %v2705_v43, 0.0  ;;  %v2769_v3 = vmul.f32 0.01, %v2705_v43 }
 0x202   : > { %vm2745_vm14 = vcmp.gt.f32.partialorder %v2713_v22, 0.0  ;;  %v2777_v12 = vmul.f32 0.01, %v2713_v22 }
 0x203   : > { %v2801_v61 = vsel %vm2737_vm13, %v2705_v43, %v2769_v3 }
 0x204   : > { %v2897_v19 = vadd.f32 %v3379_v23, %v2801_v61  ;;  %v2809_v47 = vsel %vm2745_vm14, %v2713_v22, %v2777_v12  ;;  %v2621_v54 = vpop.f32.mrf.mxu2 }
 0x205   : > { %v2905_v56 = vadd.f32 %v3395_v9, %v2809_v47  ;;  %v2670_v18 = vadd.f32 %v2621_v54, %v2356_v36  ;;  %v2641_v30 = vpop.f32.mrf.mxu3 }
 0x206   : > { %2930 = vst.msk [vmem:[%s4338_s10 + $0xa0] sm:$0xff] %vm2909_vm5, %v2897_v19  ;;  %v2678_v60 = vadd.f32 %v2641_v30, %v2376_v24 }
 0x207   : > { %2938 = vst.msk [vmem:[%s4338_s10 + $0xe0] sm:$0xff] %vm2909_vm5, %v2905_v56  ;;  %v2706_v52 = vadd.f32 %v4324_v34, %v2670_v18 }
 0x208   : > { %v2714_v21 = vadd.f32 %v4324_v34, %v2678_v60 }
 0x209   : > { %vm2738_vm15 = vcmp.gt.f32.partialorder %v2706_v52, 0.0  ;;  %v2770_v51 = vmul.f32 0.01, %v2706_v52 }
 0x20a   : > { %vm2746_vm1 = vcmp.gt.f32.partialorder %v2714_v21, 0.0  ;;  %v2778_v6 = vmul.f32 0.01, %v2714_v21 }
 0x20b   : > { %v2802_v63 = vsel %vm2738_vm15, %v2706_v52, %v2770_v51 }
 0x20c   : > { %v2898_v8 = vadd.f32 %v3380_v48, %v2802_v63  ;;  %v2810_v45 = vsel %vm2746_vm1, %v2714_v21, %v2778_v6  ;;  %v2624_v33 = vpop.f32.mrf.mxu2 }
 0x20d   : > { %v2906_v11 = vadd.f32 %v3396_v35, %v2810_v45  ;;  %v2671_v50 = vadd.f32 %v2624_v33, %v2359_v53  ;;  %v2644_v25 = vpop.f32.mrf.mxu3 }
 0x20e   : > { %2931 = vst.msk [vmem:[%s4338_s10 + $0xa8] sm:$0xff] %vm2909_vm5, %v2898_v8  ;;  %v2679_v14 = vadd.f32 %v2644_v25, %v2379_v7 }
 0x20f   : > { %2939 = vst.msk [vmem:[%s4338_s10 + $0xe8] sm:$0xff] %vm2909_vm5, %v2906_v11  ;;  %v2707_v16 = vadd.f32 %v4324_v34, %v2671_v50 }
 0x210   : > { %v2715_v55 = vadd.f32 %v4324_v34, %v2679_v14 }
 0x211   : > { %vm2739_vm2 = vcmp.gt.f32.partialorder %v2707_v16, 0.0  ;;  %v2771_v5 = vmul.f32 0.01, %v2707_v16 }
 0x212   : > { %vm2747_vm3 = vcmp.gt.f32.partialorder %v2715_v55, 0.0  ;;  %v2779_v39 = vmul.f32 0.01, %v2715_v55 }
 0x213   : > { %v2803_v38 = vsel %vm2739_vm2, %v2707_v16, %v2771_v5 }
 0x214   : > { %v2899_v59 = vadd.f32 %v3383_v17, %v2803_v38  ;;  %v2811_v46 = vsel %vm2747_vm3, %v2715_v55, %v2779_v39  ;;  %v2626_v10 = vpop.f32.mrf.mxu2 }
 0x215   : > { %v2907_v31 = vadd.f32 %v3399_v44, %v2811_v46  ;;  %v2672_v49 = vadd.f32 %v2626_v10, %v2361_v40  ;;  %v2646_v62 = vpop.f32.mrf.mxu3 }
 0x216   : > { %2932 = vst.msk [vmem:[%s4338_s10 + $0xb0] sm:$0xff] %vm2909_vm5, %v2899_v59  ;;  %v2680_v58 = vadd.f32 %v2646_v62, %v2381_v37 }
 0x217   : > { %2940 = vst.msk [vmem:[%s4338_s10 + $0xf0] sm:$0xff] %vm2909_vm5, %v2907_v31  ;;  %v2708_v27 = vadd.f32 %v4324_v34, %v2672_v49 }
 0x218   : > { %v2716_v0 = vadd.f32 %v4324_v34, %v2680_v58 }
 0x219   : > { %vm2740_vm4 = vcmp.gt.f32.partialorder %v2708_v27, 0.0  ;;  %v2772_v2 = vmul.f32 0.01, %v2708_v27 }
 0x21a   : > { %vm2748_vm6 = vcmp.gt.f32.partialorder %v2716_v0, 0.0  ;;  %v2780_v4 = vmul.f32 0.01, %v2716_v0 }
 0x21b   : > { %v2804_v57 = vsel %vm2740_vm4, %v2708_v27, %v2772_v2 }
 0x21c   : > { %v2900_v13 = vadd.f32 %v3384_v32, %v2804_v57  ;;  %v2812_v41 = vsel %vm2748_vm6, %v2716_v0, %v2780_v4 }
 0x21d   : > { %v2908_v43 = vadd.f32 %v3400_v42, %v2812_v41 }
 0x21e   : > { %2933 = vst.msk [vmem:[%s4338_s10 + $0xb8] sm:$0xff] %vm2909_vm5, %v2900_v13 }
 0x21f   : > { %2941 = vst.msk [vmem:[%s4338_s10 + $0xf8] sm:$0xff] %vm2909_vm5, %v2908_v43 }
 0x220 PF: > { %s13_s12 = sadd.s32 1, %s3440_s12  }
 0x221   : > { %p10_p4 = scmp.ge.s32.totalorder %s13_s12, 4  }
 0x223   :  { %12 = sbr.rel (!%p10_p4) target bundleno = 1 (0x1), region = 68 }

</bundles_post_ra>
